<compile_context>
chip_gen: v5e
topology: v5e:2x2
jax: 0.10.0
libtpu: 0.0.40
codegen_flags: <defaults>
</compile_context>

<pallas_src>
import functools

import jax
import jax.numpy as jnp
from jax import lax
from jax.experimental import pallas as pl
from jax.experimental.pallas import tpu as pltpu


def lstm_sentiment_kernel(x_ref, wih_ref, whh_ref, b_ref, wout_ref, bout_ref,
                          out_ref, gates_sc, h_sc, c_sc):
    """One batch block: full LSTM over time + final projection.

    x_ref:    [T, BB, E]   embedded inputs (bf16, VMEM)
    wih_ref:  [E, 4H]      input->gates weights, gate order (i, f, g, o), bf16
    whh_ref:  [H, 4H]      hidden->gates weights, bf16
    b_ref:    [1, 4H]      combined bias (b_ih + b_hh), f32
    wout_ref: [H, Lp]      hidden->label weights, zero-padded to Lp lanes, bf16
    bout_ref: [1, Lp]      label bias, zero-padded, f32
    out_ref:  [BB, Lp]     lane-dense logits (f32)
    gates_sc: [T*BB, 4H]   precomputed input projection (f32 scratch)
    h_sc/c_sc:[BB, H]      recurrent state scratch (f32)
    """
    T, BB, E = x_ref.shape
    H = h_sc.shape[1]

    # ---- Phase 1: hoisted input projection for ALL timesteps (one big
    #      MXU-friendly matmul), with bias folded in once. ----
    x_flat = x_ref[...].reshape(T * BB, E)                       # bf16
    gates_sc[...] = (
        jnp.dot(x_flat, wih_ref[...], preferred_element_type=jnp.float32)
        + b_ref[...])                                            # [T*BB, 4H] f32

    # ---- Phase 2: serial recurrence (only the small recurrent matmul
    #      plus whole-vreg elementwise gate math). ----
    h_sc[...] = jnp.zeros_like(h_sc)
    c_sc[...] = jnp.zeros_like(c_sc)

    def step(t, carry):
        row = pl.multiple_of(t * BB, BB)
        g_pre = gates_sc[pl.ds(row, BB), :]                      # [BB, 4H]
        gates = g_pre + jnp.dot(h_sc[...].astype(jnp.bfloat16), whh_ref[...],
                                preferred_element_type=jnp.float32)
        # Lane-aligned gate slabs (H == 128 in real configs / this demo).
        i_g = jax.nn.sigmoid(gates[:, 0 * H:1 * H])
        f_g = jax.nn.sigmoid(gates[:, 1 * H:2 * H])
        g_g = jnp.tanh(gates[:, 2 * H:3 * H])
        o_g = jax.nn.sigmoid(gates[:, 3 * H:4 * H])
        c_new = f_g * c_sc[...] + i_g * g_g
        h_new = o_g * jnp.tanh(c_new)
        c_sc[...] = c_new
        h_sc[...] = h_new
        return carry

    lax.fori_loop(0, T, step, 0, unroll=True)

    # ---- Phase 3: lane-dense output projection (padded to Lp lanes). ----
    out_ref[...] = (
        jnp.dot(h_sc[...].astype(jnp.bfloat16), wout_ref[...],
                preferred_element_type=jnp.float32)
        + bout_ref[...])


@functools.partial(jax.jit, static_argnames=("hidden_dim", "num_labels"))
def lstm_sentiment_forward(text, embed_table, w_ih, w_hh, bias, w_out, b_out,
                           *, hidden_dim, num_labels):
    # --- glue: embedding lookup (data-dependent gather) in plain JAX ---
    vecs = embed_table[text].astype(jnp.bfloat16)       # [T, B, E] bf16
    T, B, E = vecs.shape
    H = hidden_dim
    L = num_labels
    Lp = 128                                            # lane-dense output width

    # bf16 MXU operands; f32 accumulation happens in the kernel.
    wih_bf = w_ih.astype(jnp.bfloat16)
    whh_bf = w_hh.astype(jnp.bfloat16)
    wout_p = jnp.zeros((H, Lp), jnp.bfloat16).at[:, :L].set(
        w_out.astype(jnp.bfloat16))
    bout_p = jnp.zeros((1, Lp), jnp.float32).at[:, :L].set(b_out)

    # Batch block: 16 rows (bf16 sublane tile) when possible.
    if B % 16 == 0:
        BB = 16
    elif B % 8 == 0:
        BB = 8
    else:
        BB = B

    grid_spec = pltpu.PrefetchScalarGridSpec(
        num_scalar_prefetch=0,
        grid=(B // BB,),
        in_specs=[
            pl.BlockSpec((T, BB, E), lambda i: (0, i, 0)),   # x (batch-blocked)
            pl.BlockSpec((E, 4 * H), lambda i: (0, 0)),      # W_ih
            pl.BlockSpec((H, 4 * H), lambda i: (0, 0)),      # W_hh
            pl.BlockSpec((1, 4 * H), lambda i: (0, 0)),      # bias
            pl.BlockSpec((H, Lp), lambda i: (0, 0)),         # W_out (padded)
            pl.BlockSpec((1, Lp), lambda i: (0, 0)),         # b_out (padded)
        ],
        out_specs=pl.BlockSpec((BB, Lp), lambda i: (i, 0)),
        scratch_shapes=[
            pltpu.VMEM((T * BB, 4 * H), jnp.float32),        # precomputed gates
            pltpu.VMEM((BB, H), jnp.float32),                # h state
            pltpu.VMEM((BB, H), jnp.float32),                # c state
        ],
    )

    out_padded = pl.pallas_call(
        lstm_sentiment_kernel,
        out_shape=jax.ShapeDtypeStruct((B, Lp), jnp.float32),
        grid_spec=grid_spec,
        compiler_params=pltpu.CompilerParams(
            dimension_semantics=("parallel",)),   # independent batch blocks
    )(vecs, wih_bf, whh_bf, bias, wout_p, bout_p)

    return out_padded[:, :L]


def lstm_sentiment_reference(text, embed_table, w_ih, w_hh, bias, w_out, b_out):
    """Pure-JAX f32 reference matching the PyTorch module semantics."""
    vecs = embed_table[text]                            # [T, B, E] f32
    T, B, _ = vecs.shape
    H = w_hh.shape[0]

    def step(carry, x_t):
        h, c = carry
        gates = x_t @ w_ih + h @ w_hh + bias            # [B, 4H]
        i = jax.nn.sigmoid(gates[:, 0 * H:1 * H])
        f = jax.nn.sigmoid(gates[:, 1 * H:2 * H])
        g = jnp.tanh(gates[:, 2 * H:3 * H])
        o = jax.nn.sigmoid(gates[:, 3 * H:4 * H])
        c = f * c + i * g
        h = o * jnp.tanh(c)
        return (h, c), None

    init = (jnp.zeros((B, H), jnp.float32), jnp.zeros((B, H), jnp.float32))
    (h_T, _), _ = lax.scan(step, init, vecs)
    return h_T @ w_out + b_out


def init_params(key, vocab_size, emb_dim, hidden_dim, num_labels):
    ks = jax.random.split(key, 7)
    scale = 0.1
    embed_table = scale * jax.random.normal(ks[0], (vocab_size, emb_dim),
                                            jnp.float32)
    # PyTorch LSTM gate order (i, f, g, o); stored transposed as [in, 4H].
    w_ih = scale * jax.random.normal(ks[1], (emb_dim, 4 * hidden_dim),
                                     jnp.float32)
    w_hh = scale * jax.random.normal(ks[2], (hidden_dim, 4 * hidden_dim),
                                     jnp.float32)
    b_ih = scale * jax.random.normal(ks[3], (4 * hidden_dim,), jnp.float32)
    b_hh = scale * jax.random.normal(ks[4], (4 * hidden_dim,), jnp.float32)
    bias = (b_ih + b_hh).reshape(1, 4 * hidden_dim)
    w_out = scale * jax.random.normal(ks[5], (hidden_dim, num_labels),
                                      jnp.float32)
    b_out = scale * jax.random.normal(ks[6], (num_labels,),
                                      jnp.float32).reshape(1, num_labels)
    return embed_table, w_ih, w_hh, bias, w_out, b_out


if __name__ == "__main__":
    # Small shapes consistent with the module's forward pass
    # (d_hidden=128, num_labels=2; vocab/seq/batch scaled down).
    seq_len = 16      # T
    batch = 32        # B  (batch.text.shape[1])
    vocab_size = 100  # n_embed (scaled down)
    emb_dim = 128     # d_embed (scaled down, lane-aligned)
    hidden_dim = 128  # d_hidden (module default; lane-aligned gate slabs)
    num_labels = 2

    key = jax.random.PRNGKey(0)
    pkey, tkey = jax.random.split(key)
    params = init_params(pkey, vocab_size, emb_dim, hidden_dim, num_labels)
    text = jax.random.randint(tkey, (seq_len, batch), 0, vocab_size,
                              dtype=jnp.int32)

    logits = lstm_sentiment_forward(text, *params,
                                    hidden_dim=hidden_dim,
                                    num_labels=num_labels)
    jax.block_until_ready(logits)

    assert logits.shape == (batch, num_labels)
    assert logits.dtype == jnp.float32

    # Numerical sanity check vs. pure-JAX f32 reference (loose tolerance for
    # the bf16 matmul inputs).
    ref = lstm_sentiment_reference(text, *params)
    max_err = float(jnp.max(jnp.abs(logits - ref)))
    assert max_err < 5e-2, f"max abs error {max_err}"

    print("KERNEL_OK")
</pallas_src>

<mosaic_0001>
module attributes {stable_mosaic.version = 11 : i64} {
  func.func @lstm_sentiment_kernel(%arg0: i32, %arg1: memref<16x16x128xbf16, #tpu.memory_space<vmem>>, %arg2: memref<128x512xbf16, #tpu.memory_space<vmem>>, %arg3: memref<128x512xbf16, #tpu.memory_space<vmem>>, %arg4: memref<1x512xf32, #tpu.memory_space<vmem>>, %arg5: memref<128x128xbf16, #tpu.memory_space<vmem>>, %arg6: memref<1x128xf32, #tpu.memory_space<vmem>>, %arg7: memref<16x128xf32, #tpu.memory_space<vmem>>, %arg8: memref<256x512xf32, #tpu.memory_space<vmem>>, %arg9: memref<16x128xf32, #tpu.memory_space<vmem>>, %arg10: memref<16x128xf32, #tpu.memory_space<vmem>>) attributes {dimension_semantics = [#tpu.dimension_semantics<parallel>], iteration_bounds = array<i64: 2>, scalar_prefetch = 0 : i64, scratch_operands = 3 : i64, tpu.core_type = #tpu.core_type<tc>, window_params = [{transform_indices = @transform_0, window_bounds = array<i64: 16, 16, 128>}, {pipeline_mode = #tpu.pipeline_mode<synchronous>, transform_indices = @transform_1, window_bounds = array<i64: 128, 512>}, {pipeline_mode = #tpu.pipeline_mode<synchronous>, transform_indices = @transform_2, window_bounds = array<i64: 128, 512>}, {pipeline_mode = #tpu.pipeline_mode<synchronous>, transform_indices = @transform_3, window_bounds = array<i64: 1, 512>}, {pipeline_mode = #tpu.pipeline_mode<synchronous>, transform_indices = @transform_4, window_bounds = array<i64: 128, 128>}, {pipeline_mode = #tpu.pipeline_mode<synchronous>, transform_indices = @transform_5, window_bounds = array<i64: 1, 128>}, {transform_indices = @transform_6, window_bounds = array<i64: 16, 128>}]} {
    %c0 = arith.constant 0 : index
    %c0_0 = arith.constant 0 : index
    %c0_1 = arith.constant 0 : index
    %0 = vector.load %arg1[%c0, %c0_0, %c0_1] : memref<16x16x128xbf16, #tpu.memory_space<vmem>>, vector<16x16x128xbf16>
    %1 = vector.shape_cast %0 : vector<16x16x128xbf16> to vector<256x128xbf16>
    %c0_2 = arith.constant 0 : index
    %c0_3 = arith.constant 0 : index
    %2 = vector.load %arg2[%c0_2, %c0_3] : memref<128x512xbf16, #tpu.memory_space<vmem>>, vector<128x512xbf16>
    %cst = arith.constant dense<0.000000e+00> : vector<256x512xf32>
    %3 = tpu.matmul %1, %2, %cst {dimension_numbers = #tpu.dot_dimension_numbers<[1], [0], [0], [1], [0, 0, 1, 1], [], []>} : vector<256x128xbf16>, vector<128x512xbf16>, vector<256x512xf32> -> vector<256x512xf32>
    %c0_4 = arith.constant 0 : index
    %c0_5 = arith.constant 0 : index
    %4 = vector.load %arg4[%c0_4, %c0_5] : memref<1x512xf32, #tpu.memory_space<vmem>>, vector<1x512xf32>
    %5 = vector.broadcast %4 : vector<1x512xf32> to vector<256x512xf32>
    %6 = arith.addf %3, %5 : vector<256x512xf32>
    %c0_6 = arith.constant 0 : index
    %c0_7 = arith.constant 0 : index
    %7 = vector.load %arg8[%c0_6, %c0_7] : memref<256x512xf32, #tpu.memory_space<vmem>>, vector<256x512xf32>
    tpu.vector_store %arg8[%c0_6, %c0_7], %6 {strides = array<i32>} : memref<256x512xf32, #tpu.memory_space<vmem>>, vector<256x512xf32>,
    %cst_8 = arith.constant 0.000000e+00 : f32
    %8 = vector.broadcast %cst_8 : f32 to vector<16x128xf32>
    %c0_9 = arith.constant 0 : index
    %c0_10 = arith.constant 0 : index
    %9 = vector.load %arg9[%c0_9, %c0_10] : memref<16x128xf32, #tpu.memory_space<vmem>>, vector<16x128xf32>
    tpu.vector_store %arg9[%c0_9, %c0_10], %8 {strides = array<i32>} : memref<16x128xf32, #tpu.memory_space<vmem>>, vector<16x128xf32>,
    %cst_11 = arith.constant 0.000000e+00 : f32
    %10 = vector.broadcast %cst_11 : f32 to vector<16x128xf32>
    %c0_12 = arith.constant 0 : index
    %c0_13 = arith.constant 0 : index
    %11 = vector.load %arg10[%c0_12, %c0_13] : memref<16x128xf32, #tpu.memory_space<vmem>>, vector<16x128xf32>
    tpu.vector_store %arg10[%c0_12, %c0_13], %10 {strides = array<i32>} : memref<16x128xf32, #tpu.memory_space<vmem>>, vector<16x128xf32>,
    %c0_i32 = arith.constant 0 : i32
    %c16_i32 = arith.constant 16 : i32
    %12 = arith.muli %c0_i32, %c16_i32 : i32
    %13 = tpu.assume_multiple %12, 16 : i32
    %14 = arith.index_cast %13 : i32 to index
    %c0_14 = arith.constant 0 : index
    %15 = vector.load %arg8[%14, %c0_14] : memref<256x512xf32, #tpu.memory_space<vmem>>, vector<16x512xf32>
    %c0_15 = arith.constant 0 : index
    %c0_16 = arith.constant 0 : index
    %16 = vector.load %arg9[%c0_15, %c0_16] : memref<16x128xf32, #tpu.memory_space<vmem>>, vector<16x128xf32>
    %17 = arith.truncf %16 : vector<16x128xf32> to vector<16x128xbf16>
    %c0_17 = arith.constant 0 : index
    %c0_18 = arith.constant 0 : index
    %18 = vector.load %arg3[%c0_17, %c0_18] : memref<128x512xbf16, #tpu.memory_space<vmem>>, vector<128x512xbf16>
    %cst_19 = arith.constant dense<0.000000e+00> : vector<16x512xf32>
    %19 = tpu.matmul %17, %18, %cst_19 {dimension_numbers = #tpu.dot_dimension_numbers<[1], [0], [0], [1], [0, 0, 1, 1], [], []>} : vector<16x128xbf16>, vector<128x512xbf16>, vector<16x512xf32> -> vector<16x512xf32>
    %20 = arith.addf %15, %19 : vector<16x512xf32>
    %21 = vector.extract_strided_slice %20 {offsets = [0, 0], sizes = [16, 128], strides = [1, 1]} : vector<16x512xf32> to vector<16x128xf32>
    %22 = arith.negf %21 : vector<16x128xf32>
    %23 = math.exp %22 : vector<16x128xf32>
    %cst_20 = arith.constant 1.000000e+00 : f32
    %24 = vector.broadcast %cst_20 : f32 to vector<16x128xf32>
    %25 = arith.addf %24, %23 : vector<16x128xf32>
    %26 = arith.divf %24, %25 : vector<16x128xf32>
    %27 = vector.extract_strided_slice %20 {offsets = [0, 128], sizes = [16, 128], strides = [1, 1]} : vector<16x512xf32> to vector<16x128xf32>
    %28 = arith.negf %27 : vector<16x128xf32>
    %29 = math.exp %28 : vector<16x128xf32>
    %cst_21 = arith.constant 1.000000e+00 : f32
    %30 = vector.broadcast %cst_21 : f32 to vector<16x128xf32>
    %31 = arith.addf %30, %29 : vector<16x128xf32>
    %32 = arith.divf %30, %31 : vector<16x128xf32>
    %33 = vector.extract_strided_slice %20 {offsets = [0, 256], sizes = [16, 128], strides = [1, 1]} : vector<16x512xf32> to vector<16x128xf32>
    %34 = math.tanh %33 : vector<16x128xf32>
    %35 = vector.extract_strided_slice %20 {offsets = [0, 384], sizes = [16, 128], strides = [1, 1]} : vector<16x512xf32> to vector<16x128xf32>
    %36 = arith.negf %35 : vector<16x128xf32>
    %37 = math.exp %36 : vector<16x128xf32>
    %cst_22 = arith.constant 1.000000e+00 : f32
    %38 = vector.broadcast %cst_22 : f32 to vector<16x128xf32>
    %39 = arith.addf %38, %37 : vector<16x128xf32>
    %40 = arith.divf %38, %39 : vector<16x128xf32>
    %c0_23 = arith.constant 0 : index
    %c0_24 = arith.constant 0 : index
    %41 = vector.load %arg10[%c0_23, %c0_24] : memref<16x128xf32, #tpu.memory_space<vmem>>, vector<16x128xf32>
    %42 = arith.mulf %32, %41 : vector<16x128xf32>
    %43 = arith.mulf %26, %34 : vector<16x128xf32>
    %44 = arith.addf %42, %43 : vector<16x128xf32>
    %45 = math.tanh %44 : vector<16x128xf32>
    %46 = arith.mulf %40, %45 : vector<16x128xf32>
    %c0_25 = arith.constant 0 : index
    %c0_26 = arith.constant 0 : index
    %47 = vector.load %arg10[%c0_25, %c0_26] : memref<16x128xf32, #tpu.memory_space<vmem>>, vector<16x128xf32>
    tpu.vector_store %arg10[%c0_25, %c0_26], %44 {strides = array<i32>} : memref<16x128xf32, #tpu.memory_space<vmem>>, vector<16x128xf32>,
    %c0_27 = arith.constant 0 : index
    %c0_28 = arith.constant 0 : index
    %48 = vector.load %arg9[%c0_27, %c0_28] : memref<16x128xf32, #tpu.memory_space<vmem>>, vector<16x128xf32>
    tpu.vector_store %arg9[%c0_27, %c0_28], %46 {strides = array<i32>} : memref<16x128xf32, #tpu.memory_space<vmem>>, vector<16x128xf32>,
    %c1_i32 = arith.constant 1 : i32
    %c16_i32_29 = arith.constant 16 : i32
    %49 = arith.muli %c1_i32, %c16_i32_29 : i32
    %50 = tpu.assume_multiple %49, 16 : i32
    %51 = arith.index_cast %50 : i32 to index
    %c0_30 = arith.constant 0 : index
    %52 = vector.load %arg8[%51, %c0_30] : memref<256x512xf32, #tpu.memory_space<vmem>>, vector<16x512xf32>
    %c0_31 = arith.constant 0 : index
    %c0_32 = arith.constant 0 : index
    %53 = vector.load %arg9[%c0_31, %c0_32] : memref<16x128xf32, #tpu.memory_space<vmem>>, vector<16x128xf32>
    %54 = arith.truncf %53 : vector<16x128xf32> to vector<16x128xbf16>
    %c0_33 = arith.constant 0 : index
    %c0_34 = arith.constant 0 : index
    %55 = vector.load %arg3[%c0_33, %c0_34] : memref<128x512xbf16, #tpu.memory_space<vmem>>, vector<128x512xbf16>
    %cst_35 = arith.constant dense<0.000000e+00> : vector<16x512xf32>
    %56 = tpu.matmul %54, %55, %cst_35 {dimension_numbers = #tpu.dot_dimension_numbers<[1], [0], [0], [1], [0, 0, 1, 1], [], []>} : vector<16x128xbf16>, vector<128x512xbf16>, vector<16x512xf32> -> vector<16x512xf32>
    %57 = arith.addf %52, %56 : vector<16x512xf32>
    %58 = vector.extract_strided_slice %57 {offsets = [0, 0], sizes = [16, 128], strides = [1, 1]} : vector<16x512xf32> to vector<16x128xf32>
    %59 = arith.negf %58 : vector<16x128xf32>
    %60 = math.exp %59 : vector<16x128xf32>
    %cst_36 = arith.constant 1.000000e+00 : f32
    %61 = vector.broadcast %cst_36 : f32 to vector<16x128xf32>
    %62 = arith.addf %61, %60 : vector<16x128xf32>
    %63 = arith.divf %61, %62 : vector<16x128xf32>
    %64 = vector.extract_strided_slice %57 {offsets = [0, 128], sizes = [16, 128], strides = [1, 1]} : vector<16x512xf32> to vector<16x128xf32>
    %65 = arith.negf %64 : vector<16x128xf32>
    %66 = math.exp %65 : vector<16x128xf32>
    %cst_37 = arith.constant 1.000000e+00 : f32
    %67 = vector.broadcast %cst_37 : f32 to vector<16x128xf32>
    %68 = arith.addf %67, %66 : vector<16x128xf32>
    %69 = arith.divf %67, %68 : vector<16x128xf32>
    %70 = vector.extract_strided_slice %57 {offsets = [0, 256], sizes = [16, 128], strides = [1, 1]} : vector<16x512xf32> to vector<16x128xf32>
    %71 = math.tanh %70 : vector<16x128xf32>
    %72 = vector.extract_strided_slice %57 {offsets = [0, 384], sizes = [16, 128], strides = [1, 1]} : vector<16x512xf32> to vector<16x128xf32>
    %73 = arith.negf %72 : vector<16x128xf32>
    %74 = math.exp %73 : vector<16x128xf32>
    %cst_38 = arith.constant 1.000000e+00 : f32
    %75 = vector.broadcast %cst_38 : f32 to vector<16x128xf32>
    %76 = arith.addf %75, %74 : vector<16x128xf32>
    %77 = arith.divf %75, %76 : vector<16x128xf32>
    %c0_39 = arith.constant 0 : index
    %c0_40 = arith.constant 0 : index
    %78 = vector.load %arg10[%c0_39, %c0_40] : memref<16x128xf32, #tpu.memory_space<vmem>>, vector<16x128xf32>
    %79 = arith.mulf %69, %78 : vector<16x128xf32>
    %80 = arith.mulf %63, %71 : vector<16x128xf32>
    %81 = arith.addf %79, %80 : vector<16x128xf32>
    %82 = math.tanh %81 : vector<16x128xf32>
    %83 = arith.mulf %77, %82 : vector<16x128xf32>
    %c0_41 = arith.constant 0 : index
    %c0_42 = arith.constant 0 : index
    %84 = vector.load %arg10[%c0_41, %c0_42] : memref<16x128xf32, #tpu.memory_space<vmem>>, vector<16x128xf32>
    tpu.vector_store %arg10[%c0_41, %c0_42], %81 {strides = array<i32>} : memref<16x128xf32, #tpu.memory_space<vmem>>, vector<16x128xf32>,
    %c0_43 = arith.constant 0 : index
    %c0_44 = arith.constant 0 : index
    %85 = vector.load %arg9[%c0_43, %c0_44] : memref<16x128xf32, #tpu.memory_space<vmem>>, vector<16x128xf32>
    tpu.vector_store %arg9[%c0_43, %c0_44], %83 {strides = array<i32>} : memref<16x128xf32, #tpu.memory_space<vmem>>, vector<16x128xf32>,
    %c2_i32 = arith.constant 2 : i32
    %c16_i32_45 = arith.constant 16 : i32
    %86 = arith.muli %c2_i32, %c16_i32_45 : i32
    %87 = tpu.assume_multiple %86, 16 : i32
    %88 = arith.index_cast %87 : i32 to index
    %c0_46 = arith.constant 0 : index
    %89 = vector.load %arg8[%88, %c0_46] : memref<256x512xf32, #tpu.memory_space<vmem>>, vector<16x512xf32>
    %c0_47 = arith.constant 0 : index
    %c0_48 = arith.constant 0 : index
    %90 = vector.load %arg9[%c0_47, %c0_48] : memref<16x128xf32, #tpu.memory_space<vmem>>, vector<16x128xf32>
    %91 = arith.truncf %90 : vector<16x128xf32> to vector<16x128xbf16>
    %c0_49 = arith.constant 0 : index
    %c0_50 = arith.constant 0 : index
    %92 = vector.load %arg3[%c0_49, %c0_50] : memref<128x512xbf16, #tpu.memory_space<vmem>>, vector<128x512xbf16>
    %cst_51 = arith.constant dense<0.000000e+00> : vector<16x512xf32>
    %93 = tpu.matmul %91, %92, %cst_51 {dimension_numbers = #tpu.dot_dimension_numbers<[1], [0], [0], [1], [0, 0, 1, 1], [], []>} : vector<16x128xbf16>, vector<128x512xbf16>, vector<16x512xf32> -> vector<16x512xf32>
    %94 = arith.addf %89, %93 : vector<16x512xf32>
    %95 = vector.extract_strided_slice %94 {offsets = [0, 0], sizes = [16, 128], strides = [1, 1]} : vector<16x512xf32> to vector<16x128xf32>
    %96 = arith.negf %95 : vector<16x128xf32>
    %97 = math.exp %96 : vector<16x128xf32>
    %cst_52 = arith.constant 1.000000e+00 : f32
    %98 = vector.broadcast %cst_52 : f32 to vector<16x128xf32>
    %99 = arith.addf %98, %97 : vector<16x128xf32>
    %100 = arith.divf %98, %99 : vector<16x128xf32>
    %101 = vector.extract_strided_slice %94 {offsets = [0, 128], sizes = [16, 128], strides = [1, 1]} : vector<16x512xf32> to vector<16x128xf32>
    %102 = arith.negf %101 : vector<16x128xf32>
    %103 = math.exp %102 : vector<16x128xf32>
    %cst_53 = arith.constant 1.000000e+00 : f32
    %104 = vector.broadcast %cst_53 : f32 to vector<16x128xf32>
    %105 = arith.addf %104, %103 : vector<16x128xf32>
    %106 = arith.divf %104, %105 : vector<16x128xf32>
    %107 = vector.extract_strided_slice %94 {offsets = [0, 256], sizes = [16, 128], strides = [1, 1]} : vector<16x512xf32> to vector<16x128xf32>
    %108 = math.tanh %107 : vector<16x128xf32>
    %109 = vector.extract_strided_slice %94 {offsets = [0, 384], sizes = [16, 128], strides = [1, 1]} : vector<16x512xf32> to vector<16x128xf32>
    %110 = arith.negf %109 : vector<16x128xf32>
    %111 = math.exp %110 : vector<16x128xf32>
    %cst_54 = arith.constant 1.000000e+00 : f32
    %112 = vector.broadcast %cst_54 : f32 to vector<16x128xf32>
    %113 = arith.addf %112, %111 : vector<16x128xf32>
    %114 = arith.divf %112, %113 : vector<16x128xf32>
    %c0_55 = arith.constant 0 : index
    %c0_56 = arith.constant 0 : index
    %115 = vector.load %arg10[%c0_55, %c0_56] : memref<16x128xf32, #tpu.memory_space<vmem>>, vector<16x128xf32>
    %116 = arith.mulf %106, %115 : vector<16x128xf32>
    %117 = arith.mulf %100, %108 : vector<16x128xf32>
    %118 = arith.addf %116, %117 : vector<16x128xf32>
    %119 = math.tanh %118 : vector<16x128xf32>
    %120 = arith.mulf %114, %119 : vector<16x128xf32>
    %c0_57 = arith.constant 0 : index
    %c0_58 = arith.constant 0 : index
    %121 = vector.load %arg10[%c0_57, %c0_58] : memref<16x128xf32, #tpu.memory_space<vmem>>, vector<16x128xf32>
    tpu.vector_store %arg10[%c0_57, %c0_58], %118 {strides = array<i32>} : memref<16x128xf32, #tpu.memory_space<vmem>>, vector<16x128xf32>,
    %c0_59 = arith.constant 0 : index
    %c0_60 = arith.constant 0 : index
    %122 = vector.load %arg9[%c0_59, %c0_60] : memref<16x128xf32, #tpu.memory_space<vmem>>, vector<16x128xf32>
    tpu.vector_store %arg9[%c0_59, %c0_60], %120 {strides = array<i32>} : memref<16x128xf32, #tpu.memory_space<vmem>>, vector<16x128xf32>,
    %c3_i32 = arith.constant 3 : i32
    %c16_i32_61 = arith.constant 16 : i32
    %123 = arith.muli %c3_i32, %c16_i32_61 : i32
    %124 = tpu.assume_multiple %123, 16 : i32
    %125 = arith.index_cast %124 : i32 to index
    %c0_62 = arith.constant 0 : index
    %126 = vector.load %arg8[%125, %c0_62] : memref<256x512xf32, #tpu.memory_space<vmem>>, vector<16x512xf32>
    %c0_63 = arith.constant 0 : index
    %c0_64 = arith.constant 0 : index
    %127 = vector.load %arg9[%c0_63, %c0_64] : memref<16x128xf32, #tpu.memory_space<vmem>>, vector<16x128xf32>
    %128 = arith.truncf %127 : vector<16x128xf32> to vector<16x128xbf16>
    %c0_65 = arith.constant 0 : index
    %c0_66 = arith.constant 0 : index
    %129 = vector.load %arg3[%c0_65, %c0_66] : memref<128x512xbf16, #tpu.memory_space<vmem>>, vector<128x512xbf16>
    %cst_67 = arith.constant dense<0.000000e+00> : vector<16x512xf32>
    %130 = tpu.matmul %128, %129, %cst_67 {dimension_numbers = #tpu.dot_dimension_numbers<[1], [0], [0], [1], [0, 0, 1, 1], [], []>} : vector<16x128xbf16>, vector<128x512xbf16>, vector<16x512xf32> -> vector<16x512xf32>
    %131 = arith.addf %126, %130 : vector<16x512xf32>
    %132 = vector.extract_strided_slice %131 {offsets = [0, 0], sizes = [16, 128], strides = [1, 1]} : vector<16x512xf32> to vector<16x128xf32>
    %133 = arith.negf %132 : vector<16x128xf32>
    %134 = math.exp %133 : vector<16x128xf32>
    %cst_68 = arith.constant 1.000000e+00 : f32
    %135 = vector.broadcast %cst_68 : f32 to vector<16x128xf32>
    %136 = arith.addf %135, %134 : vector<16x128xf32>
    %137 = arith.divf %135, %136 : vector<16x128xf32>
    %138 = vector.extract_strided_slice %131 {offsets = [0, 128], sizes = [16, 128], strides = [1, 1]} : vector<16x512xf32> to vector<16x128xf32>
    %139 = arith.negf %138 : vector<16x128xf32>
    %140 = math.exp %139 : vector<16x128xf32>
    %cst_69 = arith.constant 1.000000e+00 : f32
    %141 = vector.broadcast %cst_69 : f32 to vector<16x128xf32>
    %142 = arith.addf %141, %140 : vector<16x128xf32>
    %143 = arith.divf %141, %142 : vector<16x128xf32>
    %144 = vector.extract_strided_slice %131 {offsets = [0, 256], sizes = [16, 128], strides = [1, 1]} : vector<16x512xf32> to vector<16x128xf32>
    %145 = math.tanh %144 : vector<16x128xf32>
    %146 = vector.extract_strided_slice %131 {offsets = [0, 384], sizes = [16, 128], strides = [1, 1]} : vector<16x512xf32> to vector<16x128xf32>
    %147 = arith.negf %146 : vector<16x128xf32>
    %148 = math.exp %147 : vector<16x128xf32>
    %cst_70 = arith.constant 1.000000e+00 : f32
    %149 = vector.broadcast %cst_70 : f32 to vector<16x128xf32>
    %150 = arith.addf %149, %148 : vector<16x128xf32>
    %151 = arith.divf %149, %150 : vector<16x128xf32>
    %c0_71 = arith.constant 0 : index
    %c0_72 = arith.constant 0 : index
    %152 = vector.load %arg10[%c0_71, %c0_72] : memref<16x128xf32, #tpu.memory_space<vmem>>, vector<16x128xf32>
    %153 = arith.mulf %143, %152 : vector<16x128xf32>
    %154 = arith.mulf %137, %145 : vector<16x128xf32>
    %155 = arith.addf %153, %154 : vector<16x128xf32>
    %156 = math.tanh %155 : vector<16x128xf32>
    %157 = arith.mulf %151, %156 : vector<16x128xf32>
    %c0_73 = arith.constant 0 : index
    %c0_74 = arith.constant 0 : index
    %158 = vector.load %arg10[%c0_73, %c0_74] : memref<16x128xf32, #tpu.memory_space<vmem>>, vector<16x128xf32>
    tpu.vector_store %arg10[%c0_73, %c0_74], %155 {strides = array<i32>} : memref<16x128xf32, #tpu.memory_space<vmem>>, vector<16x128xf32>,
    %c0_75 = arith.constant 0 : index
    %c0_76 = arith.constant 0 : index
    %159 = vector.load %arg9[%c0_75, %c0_76] : memref<16x128xf32, #tpu.memory_space<vmem>>, vector<16x128xf32>
    tpu.vector_store %arg9[%c0_75, %c0_76], %157 {strides = array<i32>} : memref<16x128xf32, #tpu.memory_space<vmem>>, vector<16x128xf32>,
    %c4_i32 = arith.constant 4 : i32
    %c16_i32_77 = arith.constant 16 : i32
    %160 = arith.muli %c4_i32, %c16_i32_77 : i32
    %161 = tpu.assume_multiple %160, 16 : i32
    %162 = arith.index_cast %161 : i32 to index
    %c0_78 = arith.constant 0 : index
    %163 = vector.load %arg8[%162, %c0_78] : memref<256x512xf32, #tpu.memory_space<vmem>>, vector<16x512xf32>
    %c0_79 = arith.constant 0 : index
    %c0_80 = arith.constant 0 : index
    %164 = vector.load %arg9[%c0_79, %c0_80] : memref<16x128xf32, #tpu.memory_space<vmem>>, vector<16x128xf32>
    %165 = arith.truncf %164 : vector<16x128xf32> to vector<16x128xbf16>
    %c0_81 = arith.constant 0 : index
    %c0_82 = arith.constant 0 : index
    %166 = vector.load %arg3[%c0_81, %c0_82] : memref<128x512xbf16, #tpu.memory_space<vmem>>, vector<128x512xbf16>
    %cst_83 = arith.constant dense<0.000000e+00> : vector<16x512xf32>
    %167 = tpu.matmul %165, %166, %cst_83 {dimension_numbers = #tpu.dot_dimension_numbers<[1], [0], [0], [1], [0, 0, 1, 1], [], []>} : vector<16x128xbf16>, vector<128x512xbf16>, vector<16x512xf32> -> vector<16x512xf32>
    %168 = arith.addf %163, %167 : vector<16x512xf32>
    %169 = vector.extract_strided_slice %168 {offsets = [0, 0], sizes = [16, 128], strides = [1, 1]} : vector<16x512xf32> to vector<16x128xf32>
    %170 = arith.negf %169 : vector<16x128xf32>
    %171 = math.exp %170 : vector<16x128xf32>
    %cst_84 = arith.constant 1.000000e+00 : f32
    %172 = vector.broadcast %cst_84 : f32 to vector<16x128xf32>
    %173 = arith.addf %172, %171 : vector<16x128xf32>
    %174 = arith.divf %172, %173 : vector<16x128xf32>
    %175 = vector.extract_strided_slice %168 {offsets = [0, 128], sizes = [16, 128], strides = [1, 1]} : vector<16x512xf32> to vector<16x128xf32>
    %176 = arith.negf %175 : vector<16x128xf32>
    %177 = math.exp %176 : vector<16x128xf32>
    %cst_85 = arith.constant 1.000000e+00 : f32
    %178 = vector.broadcast %cst_85 : f32 to vector<16x128xf32>
    %179 = arith.addf %178, %177 : vector<16x128xf32>
    %180 = arith.divf %178, %179 : vector<16x128xf32>
    %181 = vector.extract_strided_slice %168 {offsets = [0, 256], sizes = [16, 128], strides = [1, 1]} : vector<16x512xf32> to vector<16x128xf32>
    %182 = math.tanh %181 : vector<16x128xf32>
    %183 = vector.extract_strided_slice %168 {offsets = [0, 384], sizes = [16, 128], strides = [1, 1]} : vector<16x512xf32> to vector<16x128xf32>
    %184 = arith.negf %183 : vector<16x128xf32>
    %185 = math.exp %184 : vector<16x128xf32>
    %cst_86 = arith.constant 1.000000e+00 : f32
    %186 = vector.broadcast %cst_86 : f32 to vector<16x128xf32>
    %187 = arith.addf %186, %185 : vector<16x128xf32>
    %188 = arith.divf %186, %187 : vector<16x128xf32>
    %c0_87 = arith.constant 0 : index
    %c0_88 = arith.constant 0 : index
    %189 = vector.load %arg10[%c0_87, %c0_88] : memref<16x128xf32, #tpu.memory_space<vmem>>, vector<16x128xf32>
    %190 = arith.mulf %180, %189 : vector<16x128xf32>
    %191 = arith.mulf %174, %182 : vector<16x128xf32>
    %192 = arith.addf %190, %191 : vector<16x128xf32>
    %193 = math.tanh %192 : vector<16x128xf32>
    %194 = arith.mulf %188, %193 : vector<16x128xf32>
    %c0_89 = arith.constant 0 : index
    %c0_90 = arith.constant 0 : index
    %195 = vector.load %arg10[%c0_89, %c0_90] : memref<16x128xf32, #tpu.memory_space<vmem>>, vector<16x128xf32>
    tpu.vector_store %arg10[%c0_89, %c0_90], %192 {strides = array<i32>} : memref<16x128xf32, #tpu.memory_space<vmem>>, vector<16x128xf32>,
    %c0_91 = arith.constant 0 : index
    %c0_92 = arith.constant 0 : index
    %196 = vector.load %arg9[%c0_91, %c0_92] : memref<16x128xf32, #tpu.memory_space<vmem>>, vector<16x128xf32>
    tpu.vector_store %arg9[%c0_91, %c0_92], %194 {strides = array<i32>} : memref<16x128xf32, #tpu.memory_space<vmem>>, vector<16x128xf32>,
    %c5_i32 = arith.constant 5 : i32
    %c16_i32_93 = arith.constant 16 : i32
    %197 = arith.muli %c5_i32, %c16_i32_93 : i32
    %198 = tpu.assume_multiple %197, 16 : i32
    %199 = arith.index_cast %198 : i32 to index
    %c0_94 = arith.constant 0 : index
    %200 = vector.load %arg8[%199, %c0_94] : memref<256x512xf32, #tpu.memory_space<vmem>>, vector<16x512xf32>
    %c0_95 = arith.constant 0 : index
    %c0_96 = arith.constant 0 : index
    %201 = vector.load %arg9[%c0_95, %c0_96] : memref<16x128xf32, #tpu.memory_space<vmem>>, vector<16x128xf32>
    %202 = arith.truncf %201 : vector<16x128xf32> to vector<16x128xbf16>
    %c0_97 = arith.constant 0 : index
    %c0_98 = arith.constant 0 : index
    %203 = vector.load %arg3[%c0_97, %c0_98] : memref<128x512xbf16, #tpu.memory_space<vmem>>, vector<128x512xbf16>
    %cst_99 = arith.constant dense<0.000000e+00> : vector<16x512xf32>
    %204 = tpu.matmul %202, %203, %cst_99 {dimension_numbers = #tpu.dot_dimension_numbers<[1], [0], [0], [1], [0, 0, 1, 1], [], []>} : vector<16x128xbf16>, vector<128x512xbf16>, vector<16x512xf32> -> vector<16x512xf32>
    %205 = arith.addf %200, %204 : vector<16x512xf32>
    %206 = vector.extract_strided_slice %205 {offsets = [0, 0], sizes = [16, 128], strides = [1, 1]} : vector<16x512xf32> to vector<16x128xf32>
    %207 = arith.negf %206 : vector<16x128xf32>
    %208 = math.exp %207 : vector<16x128xf32>
    %cst_100 = arith.constant 1.000000e+00 : f32
    %209 = vector.broadcast %cst_100 : f32 to vector<16x128xf32>
    %210 = arith.addf %209, %208 : vector<16x128xf32>
    %211 = arith.divf %209, %210 : vector<16x128xf32>
    %212 = vector.extract_strided_slice %205 {offsets = [0, 128], sizes = [16, 128], strides = [1, 1]} : vector<16x512xf32> to vector<16x128xf32>
    %213 = arith.negf %212 : vector<16x128xf32>
    %214 = math.exp %213 : vector<16x128xf32>
    %cst_101 = arith.constant 1.000000e+00 : f32
    %215 = vector.broadcast %cst_101 : f32 to vector<16x128xf32>
    %216 = arith.addf %215, %214 : vector<16x128xf32>
    %217 = arith.divf %215, %216 : vector<16x128xf32>
    %218 = vector.extract_strided_slice %205 {offsets = [0, 256], sizes = [16, 128], strides = [1, 1]} : vector<16x512xf32> to vector<16x128xf32>
    %219 = math.tanh %218 : vector<16x128xf32>
    %220 = vector.extract_strided_slice %205 {offsets = [0, 384], sizes = [16, 128], strides = [1, 1]} : vector<16x512xf32> to vector<16x128xf32>
    %221 = arith.negf %220 : vector<16x128xf32>
    %222 = math.exp %221 : vector<16x128xf32>
    %cst_102 = arith.constant 1.000000e+00 : f32
    %223 = vector.broadcast %cst_102 : f32 to vector<16x128xf32>
    %224 = arith.addf %223, %222 : vector<16x128xf32>
    %225 = arith.divf %223, %224 : vector<16x128xf32>
    %c0_103 = arith.constant 0 : index
    %c0_104 = arith.constant 0 : index
    %226 = vector.load %arg10[%c0_103, %c0_104] : memref<16x128xf32, #tpu.memory_space<vmem>>, vector<16x128xf32>
    %227 = arith.mulf %217, %226 : vector<16x128xf32>
    %228 = arith.mulf %211, %219 : vector<16x128xf32>
    %229 = arith.addf %227, %228 : vector<16x128xf32>
    %230 = math.tanh %229 : vector<16x128xf32>
    %231 = arith.mulf %225, %230 : vector<16x128xf32>
    %c0_105 = arith.constant 0 : index
    %c0_106 = arith.constant 0 : index
    %232 = vector.load %arg10[%c0_105, %c0_106] : memref<16x128xf32, #tpu.memory_space<vmem>>, vector<16x128xf32>
    tpu.vector_store %arg10[%c0_105, %c0_106], %229 {strides = array<i32>} : memref<16x128xf32, #tpu.memory_space<vmem>>, vector<16x128xf32>,
    %c0_107 = arith.constant 0 : index
    %c0_108 = arith.constant 0 : index
    %233 = vector.load %arg9[%c0_107, %c0_108] : memref<16x128xf32, #tpu.memory_space<vmem>>, vector<16x128xf32>
    tpu.vector_store %arg9[%c0_107, %c0_108], %231 {strides = array<i32>} : memref<16x128xf32, #tpu.memory_space<vmem>>, vector<16x128xf32>,
    %c6_i32 = arith.constant 6 : i32
    %c16_i32_109 = arith.constant 16 : i32
    %234 = arith.muli %c6_i32, %c16_i32_109 : i32
    %235 = tpu.assume_multiple %234, 16 : i32
    %236 = arith.index_cast %235 : i32 to index
    %c0_110 = arith.constant 0 : index
    %237 = vector.load %arg8[%236, %c0_110] : memref<256x512xf32, #tpu.memory_space<vmem>>, vector<16x512xf32>
    %c0_111 = arith.constant 0 : index
    %c0_112 = arith.constant 0 : index
    %238 = vector.load %arg9[%c0_111, %c0_112] : memref<16x128xf32, #tpu.memory_space<vmem>>, vector<16x128xf32>
    %239 = arith.truncf %238 : vector<16x128xf32> to vector<16x128xbf16>
    %c0_113 = arith.constant 0 : index
    %c0_114 = arith.constant 0 : index
    %240 = vector.load %arg3[%c0_113, %c0_114] : memref<128x512xbf16, #tpu.memory_space<vmem>>, vector<128x512xbf16>
    %cst_115 = arith.constant dense<0.000000e+00> : vector<16x512xf32>
    %241 = tpu.matmul %239, %240, %cst_115 {dimension_numbers = #tpu.dot_dimension_numbers<[1], [0], [0], [1], [0, 0, 1, 1], [], []>} : vector<16x128xbf16>, vector<128x512xbf16>, vector<16x512xf32> -> vector<16x512xf32>
    %242 = arith.addf %237, %241 : vector<16x512xf32>
    %243 = vector.extract_strided_slice %242 {offsets = [0, 0], sizes = [16, 128], strides = [1, 1]} : vector<16x512xf32> to vector<16x128xf32>
    %244 = arith.negf %243 : vector<16x128xf32>
    %245 = math.exp %244 : vector<16x128xf32>
    %cst_116 = arith.constant 1.000000e+00 : f32
    %246 = vector.broadcast %cst_116 : f32 to vector<16x128xf32>
    %247 = arith.addf %246, %245 : vector<16x128xf32>
    %248 = arith.divf %246, %247 : vector<16x128xf32>
    %249 = vector.extract_strided_slice %242 {offsets = [0, 128], sizes = [16, 128], strides = [1, 1]} : vector<16x512xf32> to vector<16x128xf32>
    %250 = arith.negf %249 : vector<16x128xf32>
    %251 = math.exp %250 : vector<16x128xf32>
    %cst_117 = arith.constant 1.000000e+00 : f32
    %252 = vector.broadcast %cst_117 : f32 to vector<16x128xf32>
    %253 = arith.addf %252, %251 : vector<16x128xf32>
    %254 = arith.divf %252, %253 : vector<16x128xf32>
    %255 = vector.extract_strided_slice %242 {offsets = [0, 256], sizes = [16, 128], strides = [1, 1]} : vector<16x512xf32> to vector<16x128xf32>
    %256 = math.tanh %255 : vector<16x128xf32>
    %257 = vector.extract_strided_slice %242 {offsets = [0, 384], sizes = [16, 128], strides = [1, 1]} : vector<16x512xf32> to vector<16x128xf32>
    %258 = arith.negf %257 : vector<16x128xf32>
    %259 = math.exp %258 : vector<16x128xf32>
    %cst_118 = arith.constant 1.000000e+00 : f32
    %260 = vector.broadcast %cst_118 : f32 to vector<16x128xf32>
    %261 = arith.addf %260, %259 : vector<16x128xf32>
    %262 = arith.divf %260, %261 : vector<16x128xf32>
    %c0_119 = arith.constant 0 : index
    %c0_120 = arith.constant 0 : index
    %263 = vector.load %arg10[%c0_119, %c0_120] : memref<16x128xf32, #tpu.memory_space<vmem>>, vector<16x128xf32>
    %264 = arith.mulf %254, %263 : vector<16x128xf32>
    %265 = arith.mulf %248, %256 : vector<16x128xf32>
    %266 = arith.addf %264, %265 : vector<16x128xf32>
    %267 = math.tanh %266 : vector<16x128xf32>
    %268 = arith.mulf %262, %267 : vector<16x128xf32>
    %c0_121 = arith.constant 0 : index
    %c0_122 = arith.constant 0 : index
    %269 = vector.load %arg10[%c0_121, %c0_122] : memref<16x128xf32, #tpu.memory_space<vmem>>, vector<16x128xf32>
    tpu.vector_store %arg10[%c0_121, %c0_122], %266 {strides = array<i32>} : memref<16x128xf32, #tpu.memory_space<vmem>>, vector<16x128xf32>,
    %c0_123 = arith.constant 0 : index
    %c0_124 = arith.constant 0 : index
    %270 = vector.load %arg9[%c0_123, %c0_124] : memref<16x128xf32, #tpu.memory_space<vmem>>, vector<16x128xf32>
    tpu.vector_store %arg9[%c0_123, %c0_124], %268 {strides = array<i32>} : memref<16x128xf32, #tpu.memory_space<vmem>>, vector<16x128xf32>,
    %c7_i32 = arith.constant 7 : i32
    %c16_i32_125 = arith.constant 16 : i32
    %271 = arith.muli %c7_i32, %c16_i32_125 : i32
    %272 = tpu.assume_multiple %271, 16 : i32
    %273 = arith.index_cast %272 : i32 to index
    %c0_126 = arith.constant 0 : index
    %274 = vector.load %arg8[%273, %c0_126] : memref<256x512xf32, #tpu.memory_space<vmem>>, vector<16x512xf32>
    %c0_127 = arith.constant 0 : index
    %c0_128 = arith.constant 0 : index
    %275 = vector.load %arg9[%c0_127, %c0_128] : memref<16x128xf32, #tpu.memory_space<vmem>>, vector<16x128xf32>
    %276 = arith.truncf %275 : vector<16x128xf32> to vector<16x128xbf16>
    %c0_129 = arith.constant 0 : index
    %c0_130 = arith.constant 0 : index
    %277 = vector.load %arg3[%c0_129, %c0_130] : memref<128x512xbf16, #tpu.memory_space<vmem>>, vector<128x512xbf16>
    %cst_131 = arith.constant dense<0.000000e+00> : vector<16x512xf32>
    %278 = tpu.matmul %276, %277, %cst_131 {dimension_numbers = #tpu.dot_dimension_numbers<[1], [0], [0], [1], [0, 0, 1, 1], [], []>} : vector<16x128xbf16>, vector<128x512xbf16>, vector<16x512xf32> -> vector<16x512xf32>
    %279 = arith.addf %274, %278 : vector<16x512xf32>
    %280 = vector.extract_strided_slice %279 {offsets = [0, 0], sizes = [16, 128], strides = [1, 1]} : vector<16x512xf32> to vector<16x128xf32>
    %281 = arith.negf %280 : vector<16x128xf32>
    %282 = math.exp %281 : vector<16x128xf32>
    %cst_132 = arith.constant 1.000000e+00 : f32
    %283 = vector.broadcast %cst_132 : f32 to vector<16x128xf32>
    %284 = arith.addf %283, %282 : vector<16x128xf32>
    %285 = arith.divf %283, %284 : vector<16x128xf32>
    %286 = vector.extract_strided_slice %279 {offsets = [0, 128], sizes = [16, 128], strides = [1, 1]} : vector<16x512xf32> to vector<16x128xf32>
    %287 = arith.negf %286 : vector<16x128xf32>
    %288 = math.exp %287 : vector<16x128xf32>
    %cst_133 = arith.constant 1.000000e+00 : f32
    %289 = vector.broadcast %cst_133 : f32 to vector<16x128xf32>
    %290 = arith.addf %289, %288 : vector<16x128xf32>
    %291 = arith.divf %289, %290 : vector<16x128xf32>
    %292 = vector.extract_strided_slice %279 {offsets = [0, 256], sizes = [16, 128], strides = [1, 1]} : vector<16x512xf32> to vector<16x128xf32>
    %293 = math.tanh %292 : vector<16x128xf32>
    %294 = vector.extract_strided_slice %279 {offsets = [0, 384], sizes = [16, 128], strides = [1, 1]} : vector<16x512xf32> to vector<16x128xf32>
    %295 = arith.negf %294 : vector<16x128xf32>
    %296 = math.exp %295 : vector<16x128xf32>
    %cst_134 = arith.constant 1.000000e+00 : f32
    %297 = vector.broadcast %cst_134 : f32 to vector<16x128xf32>
    %298 = arith.addf %297, %296 : vector<16x128xf32>
    %299 = arith.divf %297, %298 : vector<16x128xf32>
    %c0_135 = arith.constant 0 : index
    %c0_136 = arith.constant 0 : index
    %300 = vector.load %arg10[%c0_135, %c0_136] : memref<16x128xf32, #tpu.memory_space<vmem>>, vector<16x128xf32>
    %301 = arith.mulf %291, %300 : vector<16x128xf32>
    %302 = arith.mulf %285, %293 : vector<16x128xf32>
    %303 = arith.addf %301, %302 : vector<16x128xf32>
    %304 = math.tanh %303 : vector<16x128xf32>
    %305 = arith.mulf %299, %304 : vector<16x128xf32>
    %c0_137 = arith.constant 0 : index
    %c0_138 = arith.constant 0 : index
    %306 = vector.load %arg10[%c0_137, %c0_138] : memref<16x128xf32, #tpu.memory_space<vmem>>, vector<16x128xf32>
    tpu.vector_store %arg10[%c0_137, %c0_138], %303 {strides = array<i32>} : memref<16x128xf32, #tpu.memory_space<vmem>>, vector<16x128xf32>,
    %c0_139 = arith.constant 0 : index
    %c0_140 = arith.constant 0 : index
    %307 = vector.load %arg9[%c0_139, %c0_140] : memref<16x128xf32, #tpu.memory_space<vmem>>, vector<16x128xf32>
    tpu.vector_store %arg9[%c0_139, %c0_140], %305 {strides = array<i32>} : memref<16x128xf32, #tpu.memory_space<vmem>>, vector<16x128xf32>,
    %c8_i32 = arith.constant 8 : i32
    %c16_i32_141 = arith.constant 16 : i32
    %308 = arith.muli %c8_i32, %c16_i32_141 : i32
    %309 = tpu.assume_multiple %308, 16 : i32
    %310 = arith.index_cast %309 : i32 to index
    %c0_142 = arith.constant 0 : index
    %311 = vector.load %arg8[%310, %c0_142] : memref<256x512xf32, #tpu.memory_space<vmem>>, vector<16x512xf32>
    %c0_143 = arith.constant 0 : index
    %c0_144 = arith.constant 0 : index
    %312 = vector.load %arg9[%c0_143, %c0_144] : memref<16x128xf32, #tpu.memory_space<vmem>>, vector<16x128xf32>
    %313 = arith.truncf %312 : vector<16x128xf32> to vector<16x128xbf16>
    %c0_145 = arith.constant 0 : index
    %c0_146 = arith.constant 0 : index
    %314 = vector.load %arg3[%c0_145, %c0_146] : memref<128x512xbf16, #tpu.memory_space<vmem>>, vector<128x512xbf16>
    %cst_147 = arith.constant dense<0.000000e+00> : vector<16x512xf32>
    %315 = tpu.matmul %313, %314, %cst_147 {dimension_numbers = #tpu.dot_dimension_numbers<[1], [0], [0], [1], [0, 0, 1, 1], [], []>} : vector<16x128xbf16>, vector<128x512xbf16>, vector<16x512xf32> -> vector<16x512xf32>
    %316 = arith.addf %311, %315 : vector<16x512xf32>
    %317 = vector.extract_strided_slice %316 {offsets = [0, 0], sizes = [16, 128], strides = [1, 1]} : vector<16x512xf32> to vector<16x128xf32>
    %318 = arith.negf %317 : vector<16x128xf32>
    %319 = math.exp %318 : vector<16x128xf32>
    %cst_148 = arith.constant 1.000000e+00 : f32
    %320 = vector.broadcast %cst_148 : f32 to vector<16x128xf32>
    %321 = arith.addf %320, %319 : vector<16x128xf32>
    %322 = arith.divf %320, %321 : vector<16x128xf32>
    %323 = vector.extract_strided_slice %316 {offsets = [0, 128], sizes = [16, 128], strides = [1, 1]} : vector<16x512xf32> to vector<16x128xf32>
    %324 = arith.negf %323 : vector<16x128xf32>
    %325 = math.exp %324 : vector<16x128xf32>
    %cst_149 = arith.constant 1.000000e+00 : f32
    %326 = vector.broadcast %cst_149 : f32 to vector<16x128xf32>
    %327 = arith.addf %326, %325 : vector<16x128xf32>
    %328 = arith.divf %326, %327 : vector<16x128xf32>
    %329 = vector.extract_strided_slice %316 {offsets = [0, 256], sizes = [16, 128], strides = [1, 1]} : vector<16x512xf32> to vector<16x128xf32>
    %330 = math.tanh %329 : vector<16x128xf32>
    %331 = vector.extract_strided_slice %316 {offsets = [0, 384], sizes = [16, 128], strides = [1, 1]} : vector<16x512xf32> to vector<16x128xf32>
    %332 = arith.negf %331 : vector<16x128xf32>
    %333 = math.exp %332 : vector<16x128xf32>
    %cst_150 = arith.constant 1.000000e+00 : f32
    %334 = vector.broadcast %cst_150 : f32 to vector<16x128xf32>
    %335 = arith.addf %334, %333 : vector<16x128xf32>
    %336 = arith.divf %334, %335 : vector<16x128xf32>
    %c0_151 = arith.constant 0 : index
    %c0_152 = arith.constant 0 : index
    %337 = vector.load %arg10[%c0_151, %c0_152] : memref<16x128xf32, #tpu.memory_space<vmem>>, vector<16x128xf32>
    %338 = arith.mulf %328, %337 : vector<16x128xf32>
    %339 = arith.mulf %322, %330 : vector<16x128xf32>
    %340 = arith.addf %338, %339 : vector<16x128xf32>
    %341 = math.tanh %340 : vector<16x128xf32>
    %342 = arith.mulf %336, %341 : vector<16x128xf32>
    %c0_153 = arith.constant 0 : index
    %c0_154 = arith.constant 0 : index
    %343 = vector.load %arg10[%c0_153, %c0_154] : memref<16x128xf32, #tpu.memory_space<vmem>>, vector<16x128xf32>
    tpu.vector_store %arg10[%c0_153, %c0_154], %340 {strides = array<i32>} : memref<16x128xf32, #tpu.memory_space<vmem>>, vector<16x128xf32>,
    %c0_155 = arith.constant 0 : index
    %c0_156 = arith.constant 0 : index
    %344 = vector.load %arg9[%c0_155, %c0_156] : memref<16x128xf32, #tpu.memory_space<vmem>>, vector<16x128xf32>
    tpu.vector_store %arg9[%c0_155, %c0_156], %342 {strides = array<i32>} : memref<16x128xf32, #tpu.memory_space<vmem>>, vector<16x128xf32>,
    %c9_i32 = arith.constant 9 : i32
    %c16_i32_157 = arith.constant 16 : i32
    %345 = arith.muli %c9_i32, %c16_i32_157 : i32
    %346 = tpu.assume_multiple %345, 16 : i32
    %347 = arith.index_cast %346 : i32 to index
    %c0_158 = arith.constant 0 : index
    %348 = vector.load %arg8[%347, %c0_158] : memref<256x512xf32, #tpu.memory_space<vmem>>, vector<16x512xf32>
    %c0_159 = arith.constant 0 : index
    %c0_160 = arith.constant 0 : index
    %349 = vector.load %arg9[%c0_159, %c0_160] : memref<16x128xf32, #tpu.memory_space<vmem>>, vector<16x128xf32>
    %350 = arith.truncf %349 : vector<16x128xf32> to vector<16x128xbf16>
    %c0_161 = arith.constant 0 : index
    %c0_162 = arith.constant 0 : index
    %351 = vector.load %arg3[%c0_161, %c0_162] : memref<128x512xbf16, #tpu.memory_space<vmem>>, vector<128x512xbf16>
    %cst_163 = arith.constant dense<0.000000e+00> : vector<16x512xf32>
    %352 = tpu.matmul %350, %351, %cst_163 {dimension_numbers = #tpu.dot_dimension_numbers<[1], [0], [0], [1], [0, 0, 1, 1], [], []>} : vector<16x128xbf16>, vector<128x512xbf16>, vector<16x512xf32> -> vector<16x512xf32>
    %353 = arith.addf %348, %352 : vector<16x512xf32>
    %354 = vector.extract_strided_slice %353 {offsets = [0, 0], sizes = [16, 128], strides = [1, 1]} : vector<16x512xf32> to vector<16x128xf32>
    %355 = arith.negf %354 : vector<16x128xf32>
    %356 = math.exp %355 : vector<16x128xf32>
    %cst_164 = arith.constant 1.000000e+00 : f32
    %357 = vector.broadcast %cst_164 : f32 to vector<16x128xf32>
    %358 = arith.addf %357, %356 : vector<16x128xf32>
    %359 = arith.divf %357, %358 : vector<16x128xf32>
    %360 = vector.extract_strided_slice %353 {offsets = [0, 128], sizes = [16, 128], strides = [1, 1]} : vector<16x512xf32> to vector<16x128xf32>
    %361 = arith.negf %360 : vector<16x128xf32>
    %362 = math.exp %361 : vector<16x128xf32>
    %cst_165 = arith.constant 1.000000e+00 : f32
    %363 = vector.broadcast %cst_165 : f32 to vector<16x128xf32>
    %364 = arith.addf %363, %362 : vector<16x128xf32>
    %365 = arith.divf %363, %364 : vector<16x128xf32>
    %366 = vector.extract_strided_slice %353 {offsets = [0, 256], sizes = [16, 128], strides = [1, 1]} : vector<16x512xf32> to vector<16x128xf32>
    %367 = math.tanh %366 : vector<16x128xf32>
    %368 = vector.extract_strided_slice %353 {offsets = [0, 384], sizes = [16, 128], strides = [1, 1]} : vector<16x512xf32> to vector<16x128xf32>
    %369 = arith.negf %368 : vector<16x128xf32>
    %370 = math.exp %369 : vector<16x128xf32>
    %cst_166 = arith.constant 1.000000e+00 : f32
    %371 = vector.broadcast %cst_166 : f32 to vector<16x128xf32>
    %372 = arith.addf %371, %370 : vector<16x128xf32>
    %373 = arith.divf %371, %372 : vector<16x128xf32>
    %c0_167 = arith.constant 0 : index
    %c0_168 = arith.constant 0 : index
    %374 = vector.load %arg10[%c0_167, %c0_168] : memref<16x128xf32, #tpu.memory_space<vmem>>, vector<16x128xf32>
    %375 = arith.mulf %365, %374 : vector<16x128xf32>
    %376 = arith.mulf %359, %367 : vector<16x128xf32>
    %377 = arith.addf %375, %376 : vector<16x128xf32>
    %378 = math.tanh %377 : vector<16x128xf32>
    %379 = arith.mulf %373, %378 : vector<16x128xf32>
    %c0_169 = arith.constant 0 : index
    %c0_170 = arith.constant 0 : index
    %380 = vector.load %arg10[%c0_169, %c0_170] : memref<16x128xf32, #tpu.memory_space<vmem>>, vector<16x128xf32>
    tpu.vector_store %arg10[%c0_169, %c0_170], %377 {strides = array<i32>} : memref<16x128xf32, #tpu.memory_space<vmem>>, vector<16x128xf32>,
    %c0_171 = arith.constant 0 : index
    %c0_172 = arith.constant 0 : index
    %381 = vector.load %arg9[%c0_171, %c0_172] : memref<16x128xf32, #tpu.memory_space<vmem>>, vector<16x128xf32>
    tpu.vector_store %arg9[%c0_171, %c0_172], %379 {strides = array<i32>} : memref<16x128xf32, #tpu.memory_space<vmem>>, vector<16x128xf32>,
    %c10_i32 = arith.constant 10 : i32
    %c16_i32_173 = arith.constant 16 : i32
    %382 = arith.muli %c10_i32, %c16_i32_173 : i32
    %383 = tpu.assume_multiple %382, 16 : i32
    %384 = arith.index_cast %383 : i32 to index
    %c0_174 = arith.constant 0 : index
    %385 = vector.load %arg8[%384, %c0_174] : memref<256x512xf32, #tpu.memory_space<vmem>>, vector<16x512xf32>
    %c0_175 = arith.constant 0 : index
    %c0_176 = arith.constant 0 : index
    %386 = vector.load %arg9[%c0_175, %c0_176] : memref<16x128xf32, #tpu.memory_space<vmem>>, vector<16x128xf32>
    %387 = arith.truncf %386 : vector<16x128xf32> to vector<16x128xbf16>
    %c0_177 = arith.constant 0 : index
    %c0_178 = arith.constant 0 : index
    %388 = vector.load %arg3[%c0_177, %c0_178] : memref<128x512xbf16, #tpu.memory_space<vmem>>, vector<128x512xbf16>
    %cst_179 = arith.constant dense<0.000000e+00> : vector<16x512xf32>
    %389 = tpu.matmul %387, %388, %cst_179 {dimension_numbers = #tpu.dot_dimension_numbers<[1], [0], [0], [1], [0, 0, 1, 1], [], []>} : vector<16x128xbf16>, vector<128x512xbf16>, vector<16x512xf32> -> vector<16x512xf32>
    %390 = arith.addf %385, %389 : vector<16x512xf32>
    %391 = vector.extract_strided_slice %390 {offsets = [0, 0], sizes = [16, 128], strides = [1, 1]} : vector<16x512xf32> to vector<16x128xf32>
    %392 = arith.negf %391 : vector<16x128xf32>
    %393 = math.exp %392 : vector<16x128xf32>
    %cst_180 = arith.constant 1.000000e+00 : f32
    %394 = vector.broadcast %cst_180 : f32 to vector<16x128xf32>
    %395 = arith.addf %394, %393 : vector<16x128xf32>
    %396 = arith.divf %394, %395 : vector<16x128xf32>
    %397 = vector.extract_strided_slice %390 {offsets = [0, 128], sizes = [16, 128], strides = [1, 1]} : vector<16x512xf32> to vector<16x128xf32>
    %398 = arith.negf %397 : vector<16x128xf32>
    %399 = math.exp %398 : vector<16x128xf32>
    %cst_181 = arith.constant 1.000000e+00 : f32
    %400 = vector.broadcast %cst_181 : f32 to vector<16x128xf32>
    %401 = arith.addf %400, %399 : vector<16x128xf32>
    %402 = arith.divf %400, %401 : vector<16x128xf32>
    %403 = vector.extract_strided_slice %390 {offsets = [0, 256], sizes = [16, 128], strides = [1, 1]} : vector<16x512xf32> to vector<16x128xf32>
    %404 = math.tanh %403 : vector<16x128xf32>
    %405 = vector.extract_strided_slice %390 {offsets = [0, 384], sizes = [16, 128], strides = [1, 1]} : vector<16x512xf32> to vector<16x128xf32>
    %406 = arith.negf %405 : vector<16x128xf32>
    %407 = math.exp %406 : vector<16x128xf32>
    %cst_182 = arith.constant 1.000000e+00 : f32
    %408 = vector.broadcast %cst_182 : f32 to vector<16x128xf32>
    %409 = arith.addf %408, %407 : vector<16x128xf32>
    %410 = arith.divf %408, %409 : vector<16x128xf32>
    %c0_183 = arith.constant 0 : index
    %c0_184 = arith.constant 0 : index
    %411 = vector.load %arg10[%c0_183, %c0_184] : memref<16x128xf32, #tpu.memory_space<vmem>>, vector<16x128xf32>
    %412 = arith.mulf %402, %411 : vector<16x128xf32>
    %413 = arith.mulf %396, %404 : vector<16x128xf32>
    %414 = arith.addf %412, %413 : vector<16x128xf32>
    %415 = math.tanh %414 : vector<16x128xf32>
    %416 = arith.mulf %410, %415 : vector<16x128xf32>
    %c0_185 = arith.constant 0 : index
    %c0_186 = arith.constant 0 : index
    %417 = vector.load %arg10[%c0_185, %c0_186] : memref<16x128xf32, #tpu.memory_space<vmem>>, vector<16x128xf32>
    tpu.vector_store %arg10[%c0_185, %c0_186], %414 {strides = array<i32>} : memref<16x128xf32, #tpu.memory_space<vmem>>, vector<16x128xf32>,
    %c0_187 = arith.constant 0 : index
    %c0_188 = arith.constant 0 : index
    %418 = vector.load %arg9[%c0_187, %c0_188] : memref<16x128xf32, #tpu.memory_space<vmem>>, vector<16x128xf32>
    tpu.vector_store %arg9[%c0_187, %c0_188], %416 {strides = array<i32>} : memref<16x128xf32, #tpu.memory_space<vmem>>, vector<16x128xf32>,
    %c11_i32 = arith.constant 11 : i32
    %c16_i32_189 = arith.constant 16 : i32
    %419 = arith.muli %c11_i32, %c16_i32_189 : i32
    %420 = tpu.assume_multiple %419, 16 : i32
    %421 = arith.index_cast %420 : i32 to index
    %c0_190 = arith.constant 0 : index
    %422 = vector.load %arg8[%421, %c0_190] : memref<256x512xf32, #tpu.memory_space<vmem>>, vector<16x512xf32>
    %c0_191 = arith.constant 0 : index
    %c0_192 = arith.constant 0 : index
    %423 = vector.load %arg9[%c0_191, %c0_192] : memref<16x128xf32, #tpu.memory_space<vmem>>, vector<16x128xf32>
    %424 = arith.truncf %423 : vector<16x128xf32> to vector<16x128xbf16>
    %c0_193 = arith.constant 0 : index
    %c0_194 = arith.constant 0 : index
    %425 = vector.load %arg3[%c0_193, %c0_194] : memref<128x512xbf16, #tpu.memory_space<vmem>>, vector<128x512xbf16>
    %cst_195 = arith.constant dense<0.000000e+00> : vector<16x512xf32>
    %426 = tpu.matmul %424, %425, %cst_195 {dimension_numbers = #tpu.dot_dimension_numbers<[1], [0], [0], [1], [0, 0, 1, 1], [], []>} : vector<16x128xbf16>, vector<128x512xbf16>, vector<16x512xf32> -> vector<16x512xf32>
    %427 = arith.addf %422, %426 : vector<16x512xf32>
    %428 = vector.extract_strided_slice %427 {offsets = [0, 0], sizes = [16, 128], strides = [1, 1]} : vector<16x512xf32> to vector<16x128xf32>
    %429 = arith.negf %428 : vector<16x128xf32>
    %430 = math.exp %429 : vector<16x128xf32>
    %cst_196 = arith.constant 1.000000e+00 : f32
    %431 = vector.broadcast %cst_196 : f32 to vector<16x128xf32>
    %432 = arith.addf %431, %430 : vector<16x128xf32>
    %433 = arith.divf %431, %432 : vector<16x128xf32>
    %434 = vector.extract_strided_slice %427 {offsets = [0, 128], sizes = [16, 128], strides = [1, 1]} : vector<16x512xf32> to vector<16x128xf32>
    %435 = arith.negf %434 : vector<16x128xf32>
    %436 = math.exp %435 : vector<16x128xf32>
    %cst_197 = arith.constant 1.000000e+00 : f32
    %437 = vector.broadcast %cst_197 : f32 to vector<16x128xf32>
    %438 = arith.addf %437, %436 : vector<16x128xf32>
    %439 = arith.divf %437, %438 : vector<16x128xf32>
    %440 = vector.extract_strided_slice %427 {offsets = [0, 256], sizes = [16, 128], strides = [1, 1]} : vector<16x512xf32> to vector<16x128xf32>
    %441 = math.tanh %440 : vector<16x128xf32>
    %442 = vector.extract_strided_slice %427 {offsets = [0, 384], sizes = [16, 128], strides = [1, 1]} : vector<16x512xf32> to vector<16x128xf32>
    %443 = arith.negf %442 : vector<16x128xf32>
    %444 = math.exp %443 : vector<16x128xf32>
    %cst_198 = arith.constant 1.000000e+00 : f32
    %445 = vector.broadcast %cst_198 : f32 to vector<16x128xf32>
    %446 = arith.addf %445, %444 : vector<16x128xf32>
    %447 = arith.divf %445, %446 : vector<16x128xf32>
    %c0_199 = arith.constant 0 : index
    %c0_200 = arith.constant 0 : index
    %448 = vector.load %arg10[%c0_199, %c0_200] : memref<16x128xf32, #tpu.memory_space<vmem>>, vector<16x128xf32>
    %449 = arith.mulf %439, %448 : vector<16x128xf32>
    %450 = arith.mulf %433, %441 : vector<16x128xf32>
    %451 = arith.addf %449, %450 : vector<16x128xf32>
    %452 = math.tanh %451 : vector<16x128xf32>
    %453 = arith.mulf %447, %452 : vector<16x128xf32>
    %c0_201 = arith.constant 0 : index
    %c0_202 = arith.constant 0 : index
    %454 = vector.load %arg10[%c0_201, %c0_202] : memref<16x128xf32, #tpu.memory_space<vmem>>, vector<16x128xf32>
    tpu.vector_store %arg10[%c0_201, %c0_202], %451 {strides = array<i32>} : memref<16x128xf32, #tpu.memory_space<vmem>>, vector<16x128xf32>,
    %c0_203 = arith.constant 0 : index
    %c0_204 = arith.constant 0 : index
    %455 = vector.load %arg9[%c0_203, %c0_204] : memref<16x128xf32, #tpu.memory_space<vmem>>, vector<16x128xf32>
    tpu.vector_store %arg9[%c0_203, %c0_204], %453 {strides = array<i32>} : memref<16x128xf32, #tpu.memory_space<vmem>>, vector<16x128xf32>,
    %c12_i32 = arith.constant 12 : i32
    %c16_i32_205 = arith.constant 16 : i32
    %456 = arith.muli %c12_i32, %c16_i32_205 : i32
    %457 = tpu.assume_multiple %456, 16 : i32
    %458 = arith.index_cast %457 : i32 to index
    %c0_206 = arith.constant 0 : index
    %459 = vector.load %arg8[%458, %c0_206] : memref<256x512xf32, #tpu.memory_space<vmem>>, vector<16x512xf32>
    %c0_207 = arith.constant 0 : index
    %c0_208 = arith.constant 0 : index
    %460 = vector.load %arg9[%c0_207, %c0_208] : memref<16x128xf32, #tpu.memory_space<vmem>>, vector<16x128xf32>
    %461 = arith.truncf %460 : vector<16x128xf32> to vector<16x128xbf16>
    %c0_209 = arith.constant 0 : index
    %c0_210 = arith.constant 0 : index
    %462 = vector.load %arg3[%c0_209, %c0_210] : memref<128x512xbf16, #tpu.memory_space<vmem>>, vector<128x512xbf16>
    %cst_211 = arith.constant dense<0.000000e+00> : vector<16x512xf32>
    %463 = tpu.matmul %461, %462, %cst_211 {dimension_numbers = #tpu.dot_dimension_numbers<[1], [0], [0], [1], [0, 0, 1, 1], [], []>} : vector<16x128xbf16>, vector<128x512xbf16>, vector<16x512xf32> -> vector<16x512xf32>
    %464 = arith.addf %459, %463 : vector<16x512xf32>
    %465 = vector.extract_strided_slice %464 {offsets = [0, 0], sizes = [16, 128], strides = [1, 1]} : vector<16x512xf32> to vector<16x128xf32>
    %466 = arith.negf %465 : vector<16x128xf32>
    %467 = math.exp %466 : vector<16x128xf32>
    %cst_212 = arith.constant 1.000000e+00 : f32
    %468 = vector.broadcast %cst_212 : f32 to vector<16x128xf32>
    %469 = arith.addf %468, %467 : vector<16x128xf32>
    %470 = arith.divf %468, %469 : vector<16x128xf32>
    %471 = vector.extract_strided_slice %464 {offsets = [0, 128], sizes = [16, 128], strides = [1, 1]} : vector<16x512xf32> to vector<16x128xf32>
    %472 = arith.negf %471 : vector<16x128xf32>
    %473 = math.exp %472 : vector<16x128xf32>
    %cst_213 = arith.constant 1.000000e+00 : f32
    %474 = vector.broadcast %cst_213 : f32 to vector<16x128xf32>
    %475 = arith.addf %474, %473 : vector<16x128xf32>
    %476 = arith.divf %474, %475 : vector<16x128xf32>
    %477 = vector.extract_strided_slice %464 {offsets = [0, 256], sizes = [16, 128], strides = [1, 1]} : vector<16x512xf32> to vector<16x128xf32>
    %478 = math.tanh %477 : vector<16x128xf32>
    %479 = vector.extract_strided_slice %464 {offsets = [0, 384], sizes = [16, 128], strides = [1, 1]} : vector<16x512xf32> to vector<16x128xf32>
    %480 = arith.negf %479 : vector<16x128xf32>
    %481 = math.exp %480 : vector<16x128xf32>
    %cst_214 = arith.constant 1.000000e+00 : f32
    %482 = vector.broadcast %cst_214 : f32 to vector<16x128xf32>
    %483 = arith.addf %482, %481 : vector<16x128xf32>
    %484 = arith.divf %482, %483 : vector<16x128xf32>
    %c0_215 = arith.constant 0 : index
    %c0_216 = arith.constant 0 : index
    %485 = vector.load %arg10[%c0_215, %c0_216] : memref<16x128xf32, #tpu.memory_space<vmem>>, vector<16x128xf32>
    %486 = arith.mulf %476, %485 : vector<16x128xf32>
    %487 = arith.mulf %470, %478 : vector<16x128xf32>
    %488 = arith.addf %486, %487 : vector<16x128xf32>
    %489 = math.tanh %488 : vector<16x128xf32>
    %490 = arith.mulf %484, %489 : vector<16x128xf32>
    %c0_217 = arith.constant 0 : index
    %c0_218 = arith.constant 0 : index
    %491 = vector.load %arg10[%c0_217, %c0_218] : memref<16x128xf32, #tpu.memory_space<vmem>>, vector<16x128xf32>
    tpu.vector_store %arg10[%c0_217, %c0_218], %488 {strides = array<i32>} : memref<16x128xf32, #tpu.memory_space<vmem>>, vector<16x128xf32>,
    %c0_219 = arith.constant 0 : index
    %c0_220 = arith.constant 0 : index
    %492 = vector.load %arg9[%c0_219, %c0_220] : memref<16x128xf32, #tpu.memory_space<vmem>>, vector<16x128xf32>
    tpu.vector_store %arg9[%c0_219, %c0_220], %490 {strides = array<i32>} : memref<16x128xf32, #tpu.memory_space<vmem>>, vector<16x128xf32>,
    %c13_i32 = arith.constant 13 : i32
    %c16_i32_221 = arith.constant 16 : i32
    %493 = arith.muli %c13_i32, %c16_i32_221 : i32
    %494 = tpu.assume_multiple %493, 16 : i32
    %495 = arith.index_cast %494 : i32 to index
    %c0_222 = arith.constant 0 : index
    %496 = vector.load %arg8[%495, %c0_222] : memref<256x512xf32, #tpu.memory_space<vmem>>, vector<16x512xf32>
    %c0_223 = arith.constant 0 : index
    %c0_224 = arith.constant 0 : index
    %497 = vector.load %arg9[%c0_223, %c0_224] : memref<16x128xf32, #tpu.memory_space<vmem>>, vector<16x128xf32>
    %498 = arith.truncf %497 : vector<16x128xf32> to vector<16x128xbf16>
    %c0_225 = arith.constant 0 : index
    %c0_226 = arith.constant 0 : index
    %499 = vector.load %arg3[%c0_225, %c0_226] : memref<128x512xbf16, #tpu.memory_space<vmem>>, vector<128x512xbf16>
    %cst_227 = arith.constant dense<0.000000e+00> : vector<16x512xf32>
    %500 = tpu.matmul %498, %499, %cst_227 {dimension_numbers = #tpu.dot_dimension_numbers<[1], [0], [0], [1], [0, 0, 1, 1], [], []>} : vector<16x128xbf16>, vector<128x512xbf16>, vector<16x512xf32> -> vector<16x512xf32>
    %501 = arith.addf %496, %500 : vector<16x512xf32>
    %502 = vector.extract_strided_slice %501 {offsets = [0, 0], sizes = [16, 128], strides = [1, 1]} : vector<16x512xf32> to vector<16x128xf32>
    %503 = arith.negf %502 : vector<16x128xf32>
    %504 = math.exp %503 : vector<16x128xf32>
    %cst_228 = arith.constant 1.000000e+00 : f32
    %505 = vector.broadcast %cst_228 : f32 to vector<16x128xf32>
    %506 = arith.addf %505, %504 : vector<16x128xf32>
    %507 = arith.divf %505, %506 : vector<16x128xf32>
    %508 = vector.extract_strided_slice %501 {offsets = [0, 128], sizes = [16, 128], strides = [1, 1]} : vector<16x512xf32> to vector<16x128xf32>
    %509 = arith.negf %508 : vector<16x128xf32>
    %510 = math.exp %509 : vector<16x128xf32>
    %cst_229 = arith.constant 1.000000e+00 : f32
    %511 = vector.broadcast %cst_229 : f32 to vector<16x128xf32>
    %512 = arith.addf %511, %510 : vector<16x128xf32>
    %513 = arith.divf %511, %512 : vector<16x128xf32>
    %514 = vector.extract_strided_slice %501 {offsets = [0, 256], sizes = [16, 128], strides = [1, 1]} : vector<16x512xf32> to vector<16x128xf32>
    %515 = math.tanh %514 : vector<16x128xf32>
    %516 = vector.extract_strided_slice %501 {offsets = [0, 384], sizes = [16, 128], strides = [1, 1]} : vector<16x512xf32> to vector<16x128xf32>
    %517 = arith.negf %516 : vector<16x128xf32>
    %518 = math.exp %517 : vector<16x128xf32>
    %cst_230 = arith.constant 1.000000e+00 : f32
    %519 = vector.broadcast %cst_230 : f32 to vector<16x128xf32>
    %520 = arith.addf %519, %518 : vector<16x128xf32>
    %521 = arith.divf %519, %520 : vector<16x128xf32>
    %c0_231 = arith.constant 0 : index
    %c0_232 = arith.constant 0 : index
    %522 = vector.load %arg10[%c0_231, %c0_232] : memref<16x128xf32, #tpu.memory_space<vmem>>, vector<16x128xf32>
    %523 = arith.mulf %513, %522 : vector<16x128xf32>
    %524 = arith.mulf %507, %515 : vector<16x128xf32>
    %525 = arith.addf %523, %524 : vector<16x128xf32>
    %526 = math.tanh %525 : vector<16x128xf32>
    %527 = arith.mulf %521, %526 : vector<16x128xf32>
    %c0_233 = arith.constant 0 : index
    %c0_234 = arith.constant 0 : index
    %528 = vector.load %arg10[%c0_233, %c0_234] : memref<16x128xf32, #tpu.memory_space<vmem>>, vector<16x128xf32>
    tpu.vector_store %arg10[%c0_233, %c0_234], %525 {strides = array<i32>} : memref<16x128xf32, #tpu.memory_space<vmem>>, vector<16x128xf32>,
    %c0_235 = arith.constant 0 : index
    %c0_236 = arith.constant 0 : index
    %529 = vector.load %arg9[%c0_235, %c0_236] : memref<16x128xf32, #tpu.memory_space<vmem>>, vector<16x128xf32>
    tpu.vector_store %arg9[%c0_235, %c0_236], %527 {strides = array<i32>} : memref<16x128xf32, #tpu.memory_space<vmem>>, vector<16x128xf32>,
    %c14_i32 = arith.constant 14 : i32
    %c16_i32_237 = arith.constant 16 : i32
    %530 = arith.muli %c14_i32, %c16_i32_237 : i32
    %531 = tpu.assume_multiple %530, 16 : i32
    %532 = arith.index_cast %531 : i32 to index
    %c0_238 = arith.constant 0 : index
    %533 = vector.load %arg8[%532, %c0_238] : memref<256x512xf32, #tpu.memory_space<vmem>>, vector<16x512xf32>
    %c0_239 = arith.constant 0 : index
    %c0_240 = arith.constant 0 : index
    %534 = vector.load %arg9[%c0_239, %c0_240] : memref<16x128xf32, #tpu.memory_space<vmem>>, vector<16x128xf32>
    %535 = arith.truncf %534 : vector<16x128xf32> to vector<16x128xbf16>
    %c0_241 = arith.constant 0 : index
    %c0_242 = arith.constant 0 : index
    %536 = vector.load %arg3[%c0_241, %c0_242] : memref<128x512xbf16, #tpu.memory_space<vmem>>, vector<128x512xbf16>
    %cst_243 = arith.constant dense<0.000000e+00> : vector<16x512xf32>
    %537 = tpu.matmul %535, %536, %cst_243 {dimension_numbers = #tpu.dot_dimension_numbers<[1], [0], [0], [1], [0, 0, 1, 1], [], []>} : vector<16x128xbf16>, vector<128x512xbf16>, vector<16x512xf32> -> vector<16x512xf32>
    %538 = arith.addf %533, %537 : vector<16x512xf32>
    %539 = vector.extract_strided_slice %538 {offsets = [0, 0], sizes = [16, 128], strides = [1, 1]} : vector<16x512xf32> to vector<16x128xf32>
    %540 = arith.negf %539 : vector<16x128xf32>
    %541 = math.exp %540 : vector<16x128xf32>
    %cst_244 = arith.constant 1.000000e+00 : f32
    %542 = vector.broadcast %cst_244 : f32 to vector<16x128xf32>
    %543 = arith.addf %542, %541 : vector<16x128xf32>
    %544 = arith.divf %542, %543 : vector<16x128xf32>
    %545 = vector.extract_strided_slice %538 {offsets = [0, 128], sizes = [16, 128], strides = [1, 1]} : vector<16x512xf32> to vector<16x128xf32>
    %546 = arith.negf %545 : vector<16x128xf32>
    %547 = math.exp %546 : vector<16x128xf32>
    %cst_245 = arith.constant 1.000000e+00 : f32
    %548 = vector.broadcast %cst_245 : f32 to vector<16x128xf32>
    %549 = arith.addf %548, %547 : vector<16x128xf32>
    %550 = arith.divf %548, %549 : vector<16x128xf32>
    %551 = vector.extract_strided_slice %538 {offsets = [0, 256], sizes = [16, 128], strides = [1, 1]} : vector<16x512xf32> to vector<16x128xf32>
    %552 = math.tanh %551 : vector<16x128xf32>
    %553 = vector.extract_strided_slice %538 {offsets = [0, 384], sizes = [16, 128], strides = [1, 1]} : vector<16x512xf32> to vector<16x128xf32>
    %554 = arith.negf %553 : vector<16x128xf32>
    %555 = math.exp %554 : vector<16x128xf32>
    %cst_246 = arith.constant 1.000000e+00 : f32
    %556 = vector.broadcast %cst_246 : f32 to vector<16x128xf32>
    %557 = arith.addf %556, %555 : vector<16x128xf32>
    %558 = arith.divf %556, %557 : vector<16x128xf32>
    %c0_247 = arith.constant 0 : index
    %c0_248 = arith.constant 0 : index
    %559 = vector.load %arg10[%c0_247, %c0_248] : memref<16x128xf32, #tpu.memory_space<vmem>>, vector<16x128xf32>
    %560 = arith.mulf %550, %559 : vector<16x128xf32>
    %561 = arith.mulf %544, %552 : vector<16x128xf32>
    %562 = arith.addf %560, %561 : vector<16x128xf32>
    %563 = math.tanh %562 : vector<16x128xf32>
    %564 = arith.mulf %558, %563 : vector<16x128xf32>
    %c0_249 = arith.constant 0 : index
    %c0_250 = arith.constant 0 : index
    %565 = vector.load %arg10[%c0_249, %c0_250] : memref<16x128xf32, #tpu.memory_space<vmem>>, vector<16x128xf32>
    tpu.vector_store %arg10[%c0_249, %c0_250], %562 {strides = array<i32>} : memref<16x128xf32, #tpu.memory_space<vmem>>, vector<16x128xf32>,
    %c0_251 = arith.constant 0 : index
    %c0_252 = arith.constant 0 : index
    %566 = vector.load %arg9[%c0_251, %c0_252] : memref<16x128xf32, #tpu.memory_space<vmem>>, vector<16x128xf32>
    tpu.vector_store %arg9[%c0_251, %c0_252], %564 {strides = array<i32>} : memref<16x128xf32, #tpu.memory_space<vmem>>, vector<16x128xf32>,
    %c15_i32 = arith.constant 15 : i32
    %c16_i32_253 = arith.constant 16 : i32
    %567 = arith.muli %c15_i32, %c16_i32_253 : i32
    %568 = tpu.assume_multiple %567, 16 : i32
    %569 = arith.index_cast %568 : i32 to index
    %c0_254 = arith.constant 0 : index
    %570 = vector.load %arg8[%569, %c0_254] : memref<256x512xf32, #tpu.memory_space<vmem>>, vector<16x512xf32>
    %c0_255 = arith.constant 0 : index
    %c0_256 = arith.constant 0 : index
    %571 = vector.load %arg9[%c0_255, %c0_256] : memref<16x128xf32, #tpu.memory_space<vmem>>, vector<16x128xf32>
    %572 = arith.truncf %571 : vector<16x128xf32> to vector<16x128xbf16>
    %c0_257 = arith.constant 0 : index
    %c0_258 = arith.constant 0 : index
    %573 = vector.load %arg3[%c0_257, %c0_258] : memref<128x512xbf16, #tpu.memory_space<vmem>>, vector<128x512xbf16>
    %cst_259 = arith.constant dense<0.000000e+00> : vector<16x512xf32>
    %574 = tpu.matmul %572, %573, %cst_259 {dimension_numbers = #tpu.dot_dimension_numbers<[1], [0], [0], [1], [0, 0, 1, 1], [], []>} : vector<16x128xbf16>, vector<128x512xbf16>, vector<16x512xf32> -> vector<16x512xf32>
    %575 = arith.addf %570, %574 : vector<16x512xf32>
    %576 = vector.extract_strided_slice %575 {offsets = [0, 0], sizes = [16, 128], strides = [1, 1]} : vector<16x512xf32> to vector<16x128xf32>
    %577 = arith.negf %576 : vector<16x128xf32>
    %578 = math.exp %577 : vector<16x128xf32>
    %cst_260 = arith.constant 1.000000e+00 : f32
    %579 = vector.broadcast %cst_260 : f32 to vector<16x128xf32>
    %580 = arith.addf %579, %578 : vector<16x128xf32>
    %581 = arith.divf %579, %580 : vector<16x128xf32>
    %582 = vector.extract_strided_slice %575 {offsets = [0, 128], sizes = [16, 128], strides = [1, 1]} : vector<16x512xf32> to vector<16x128xf32>
    %583 = arith.negf %582 : vector<16x128xf32>
    %584 = math.exp %583 : vector<16x128xf32>
    %cst_261 = arith.constant 1.000000e+00 : f32
    %585 = vector.broadcast %cst_261 : f32 to vector<16x128xf32>
    %586 = arith.addf %585, %584 : vector<16x128xf32>
    %587 = arith.divf %585, %586 : vector<16x128xf32>
    %588 = vector.extract_strided_slice %575 {offsets = [0, 256], sizes = [16, 128], strides = [1, 1]} : vector<16x512xf32> to vector<16x128xf32>
    %589 = math.tanh %588 : vector<16x128xf32>
    %590 = vector.extract_strided_slice %575 {offsets = [0, 384], sizes = [16, 128], strides = [1, 1]} : vector<16x512xf32> to vector<16x128xf32>
    %591 = arith.negf %590 : vector<16x128xf32>
    %592 = math.exp %591 : vector<16x128xf32>
    %cst_262 = arith.constant 1.000000e+00 : f32
    %593 = vector.broadcast %cst_262 : f32 to vector<16x128xf32>
    %594 = arith.addf %593, %592 : vector<16x128xf32>
    %595 = arith.divf %593, %594 : vector<16x128xf32>
    %c0_263 = arith.constant 0 : index
    %c0_264 = arith.constant 0 : index
    %596 = vector.load %arg10[%c0_263, %c0_264] : memref<16x128xf32, #tpu.memory_space<vmem>>, vector<16x128xf32>
    %597 = arith.mulf %587, %596 : vector<16x128xf32>
    %598 = arith.mulf %581, %589 : vector<16x128xf32>
    %599 = arith.addf %597, %598 : vector<16x128xf32>
    %600 = math.tanh %599 : vector<16x128xf32>
    %601 = arith.mulf %595, %600 : vector<16x128xf32>
    %c0_265 = arith.constant 0 : index
    %c0_266 = arith.constant 0 : index
    %602 = vector.load %arg10[%c0_265, %c0_266] : memref<16x128xf32, #tpu.memory_space<vmem>>, vector<16x128xf32>
    tpu.vector_store %arg10[%c0_265, %c0_266], %599 {strides = array<i32>} : memref<16x128xf32, #tpu.memory_space<vmem>>, vector<16x128xf32>,
    %c0_267 = arith.constant 0 : index
    %c0_268 = arith.constant 0 : index
    %603 = vector.load %arg9[%c0_267, %c0_268] : memref<16x128xf32, #tpu.memory_space<vmem>>, vector<16x128xf32>
    tpu.vector_store %arg9[%c0_267, %c0_268], %601 {strides = array<i32>} : memref<16x128xf32, #tpu.memory_space<vmem>>, vector<16x128xf32>,
    %c16_i32_269 = arith.constant 16 : i32
    %c0_270 = arith.constant 0 : index
    %c0_271 = arith.constant 0 : index
    %604 = vector.load %arg9[%c0_270, %c0_271] : memref<16x128xf32, #tpu.memory_space<vmem>>, vector<16x128xf32>
    %605 = arith.truncf %604 : vector<16x128xf32> to vector<16x128xbf16>
    %c0_272 = arith.constant 0 : index
    %c0_273 = arith.constant 0 : index
    %606 = vector.load %arg5[%c0_272, %c0_273] : memref<128x128xbf16, #tpu.memory_space<vmem>>, vector<128x128xbf16>
    %cst_274 = arith.constant dense<0.000000e+00> : vector<16x128xf32>
    %607 = tpu.matmul %605, %606, %cst_274 {dimension_numbers = #tpu.dot_dimension_numbers<[1], [0], [0], [1], [0, 0, 1, 1], [], []>} : vector<16x128xbf16>, vector<128x128xbf16>, vector<16x128xf32> -> vector<16x128xf32>
    %c0_275 = arith.constant 0 : index
    %c0_276 = arith.constant 0 : index
    %608 = vector.load %arg6[%c0_275, %c0_276] : memref<1x128xf32, #tpu.memory_space<vmem>>, vector<1x128xf32>
    %609 = vector.broadcast %608 : vector<1x128xf32> to vector<16x128xf32>
    %610 = arith.addf %607, %609 : vector<16x128xf32>
    %c0_277 = arith.constant 0 : index
    %c0_278 = arith.constant 0 : index
    %611 = vector.load %arg7[%c0_277, %c0_278] : memref<16x128xf32, #tpu.memory_space<vmem>>, vector<16x128xf32>
    tpu.vector_store %arg7[%c0_277, %c0_278], %610 {strides = array<i32>} : memref<16x128xf32, #tpu.memory_space<vmem>>, vector<16x128xf32>,
    return
  }
  func.func @transform_0(%arg0: i32) -> (i32, i32, i32) {
    %c0_i32 = arith.constant 0 : i32
    %c0_i32_0 = arith.constant 0 : i32
    %c0_i32_1 = arith.constant 0 : i32
    return %c0_i32, %arg0, %c0_i32_0 : i32, i32, i32
  }
  func.func @transform_1(%arg0: i32) -> (i32, i32) {
    %c0_i32 = arith.constant 0 : i32
    %c0_i32_0 = arith.constant 0 : i32
    %c0_i32_1 = arith.constant 0 : i32
    return %c0_i32, %c0_i32_0 : i32, i32
  }
  func.func @transform_2(%arg0: i32) -> (i32, i32) {
    %c0_i32 = arith.constant 0 : i32
    %c0_i32_0 = arith.constant 0 : i32
    %c0_i32_1 = arith.constant 0 : i32
    return %c0_i32, %c0_i32_0 : i32, i32
  }
  func.func @transform_3(%arg0: i32) -> (i32, i32) {
    %c0_i32 = arith.constant 0 : i32
    %c0_i32_0 = arith.constant 0 : i32
    %c0_i32_1 = arith.constant 0 : i32
    return %c0_i32, %c0_i32_0 : i32, i32
  }
  func.func @transform_4(%arg0: i32) -> (i32, i32) {
    %c0_i32 = arith.constant 0 : i32
    %c0_i32_0 = arith.constant 0 : i32
    %c0_i32_1 = arith.constant 0 : i32
    return %c0_i32, %c0_i32_0 : i32, i32
  }
  func.func @transform_5(%arg0: i32) -> (i32, i32) {
    %c0_i32 = arith.constant 0 : i32
    %c0_i32_0 = arith.constant 0 : i32
    %c0_i32_1 = arith.constant 0 : i32
    return %c0_i32, %c0_i32_0 : i32, i32
  }
  func.func @transform_6(%arg0: i32) -> (i32, i32) {
    %c0_i32 = arith.constant 0 : i32
    %c0_i32_0 = arith.constant 0 : i32
    return %arg0, %c0_i32 : i32, i32
  }
}

</mosaic_0001>

<bundles_post_ra>
// kernel: lstm_sentiment_forward.1
= control target key start
LH: loop header
LB: loop body
LE: loop exit
PB: predicated region body
PF: predicated region fallthrough
CT: control target
= control target key end

     0   :  { %s11384_s21 = smov 0   ;;  %s11386_s22 = smov 0   ;;  %s16874_s0 = inlined_call_operand.vmem [shape: bf16[16,32,128], index: 0, kind: input, shape index: {}]   ;;  %s16875_s1 = inlined_call_operand.vmem [shape: bf16[128,512], index: 1, kind: input, shape index: {}]   ;;  %s16876_s2 = inlined_call_operand.vmem [shape: bf16[128,512], index: 2, kind: input, shape index: {}]   ;;  %s16877_s3 = inlined_call_operand.vmem [shape: f32[1,512], index: 3, kind: input, shape index: {}]   ;;  %s16878_s4 = inlined_call_operand.vmem [shape: bf16[128,128], index: 4, kind: input, shape index: {}]   ;;  %s16879_s5 = inlined_call_operand.vmem [shape: f32[1,128], index: 5, kind: input, shape index: {}]   ;;  %s16880_s6 = inlined_call_operand.vmem [shape: f32[32,128], index: 6, kind: output, shape index: {}]  }
   0x1   :  { %s11388_s23 = smov 0  }
   0x2 LB: > { %s7836_s24 = sadd.s32 4294967295, %s11346_s23   ;;  %s11401_s25 = sadd.s32 1, %s11346_s23   ;;  %s11346_s23 = sphi %s11388_s23, %s17183_s23   ;;  %s11342_s22 = sphi %s11386_s22, %s17182_s22   ;;  %s11338_s21 = sphi %s11384_s21, %s17181_s21  }
   0x3   : > { %s20_s26 = ssub.s32 %s11346_s23, %s11401_s25  ;;  %s23_s27 = sadd.s32 1, %s11342_s22 }
   0x4   : > { %p21_p0 = scmp.eq.s32.totalorder %s20_s26, 0  ;;  %p30_p1 = scmp.ne.s32.totalorder %s11342_s22, %s11338_s21 }
   0x5   : > { %p31_p2 = scmp.eq.s32.totalorder %s11346_s23, 0  ;;  %p7839_p4 = scmp.ge.s32.totalorder %s11346_s23, 2 }
   0x6   : > { %s11410_s28 = scalar_select %p21_p0, %s11342_s22, %s23_s27  }
   0x7   : > { %p32_p3 = por %p31_p2, %p30_p1  ;;  %202 = sbr.rel (%p7839_p4) target bundleno = 32 (0x20), region = 36 }
   0xc   : > { %205 = sbr.rel (!%p32_p3) target bundleno = 32 (0x20), region = 40  ;;  %s207_s29 = sand.u32 (%p32_p3), 1, %s11342_s22  }
   0xd   : > { %s10217_s30 = sshll.u32 (%p32_p3), %s11346_s23, 3  ;;  %s7840_s7 = sshll.u32 (%p32_p3), %s207_s29, 7 }
   0xe   : > { %s11418_s10 = scalar_lea.vmem (%p32_p3), %s16874_s0, %s10217_s30  ;;  %s209_s11 = scalar_lea.vmem (%p32_p3), [#allocation5], %s7840_s7 }
   0xf   : > { %v229_v0 = vld [vmem:[%s11418_s10] sm:$0xff] (%p32_p3)   ;;  %v233_v1 = vld [vmem:[%s11418_s10 + $0x10] sm:$0xff] (%p32_p3)  }
  0x10   : > { %v237_v2 = vld [vmem:[%s11418_s10 + $0x20] sm:$0xff] (%p32_p3)   ;;  %230 = vst [vmem:[%s209_s11] sm:$0xff] (%p32_p3), %v229_v0   ;;  %v241_v3 = vld [vmem:[%s11418_s10 + $0x30] sm:$0xff] (%p32_p3)  }
  0x11   : > { %234 = vst [vmem:[%s209_s11 + $0x8] sm:$0xff] %v233_v1   ;;  %v245_v4 = vld [vmem:[%s11418_s10 + $0x40] sm:$0xff]   ;;  %v249_v5 = vld [vmem:[%s11418_s10 + $0x50] sm:$0xff]  }
  0x12   : > { %238 = vst [vmem:[%s209_s11 + $0x10] sm:$0xff] %v237_v2   ;;  %v253_v6 = vld [vmem:[%s11418_s10 + $0x60] sm:$0xff]   ;;  %v257_v7 = vld [vmem:[%s11418_s10 + $0x70] sm:$0xff]  }
  0x13   : > { %242 = vst [vmem:[%s209_s11 + $0x18] sm:$0xff] %v241_v3   ;;  %v261_v8 = vld [vmem:[%s11418_s10 + $0x80] sm:$0xff]   ;;  %v265_v9 = vld [vmem:[%s11418_s10 + $0x90] sm:$0xff]  }
  0x14   : > { %246 = vst [vmem:[%s209_s11 + $0x20] sm:$0xff] %v245_v4   ;;  %v269_v10 = vld [vmem:[%s11418_s10 + $0xa0] sm:$0xff]   ;;  %v273_v11 = vld [vmem:[%s11418_s10 + $0xb0] sm:$0xff]  }
  0x15   : > { %250 = vst [vmem:[%s209_s11 + $0x28] sm:$0xff] %v249_v5   ;;  %v277_v12 = vld [vmem:[%s11418_s10 + $0xc0] sm:$0xff]   ;;  %v281_v13 = vld [vmem:[%s11418_s10 + $0xd0] sm:$0xff]  }
  0x16   : > { %254 = vst [vmem:[%s209_s11 + $0x30] sm:$0xff] %v253_v6   ;;  %v285_v14 = vld [vmem:[%s11418_s10 + $0xe0] sm:$0xff]   ;;  %v289_v15 = vld [vmem:[%s11418_s10 + $0xf0] sm:$0xff]  }
  0x17   : > { %258 = vst [vmem:[%s209_s11 + $0x38] sm:$0xff] %v257_v7  }
  0x18   : > { %262 = vst [vmem:[%s209_s11 + $0x40] sm:$0xff] %v261_v8  }
  0x19   : > { %266 = vst [vmem:[%s209_s11 + $0x48] sm:$0xff] %v265_v9  }
  0x1a   : > { %270 = vst [vmem:[%s209_s11 + $0x50] sm:$0xff] %v269_v10  }
  0x1b   : > { %274 = vst [vmem:[%s209_s11 + $0x58] sm:$0xff] %v273_v11  }
  0x1c   : > { %278 = vst [vmem:[%s209_s11 + $0x60] sm:$0xff] %v277_v12  }
  0x1d   : > { %282 = vst [vmem:[%s209_s11 + $0x68] sm:$0xff] %v281_v13  }
  0x1e   : > { %286 = vst [vmem:[%s209_s11 + $0x70] sm:$0xff] %v285_v14  }
  0x1f   : > { %290 = vst [vmem:[%s209_s11 + $0x78] sm:$0xff] %v289_v15  }
  0x20 PF: > { %p7843_p5 = scmp.ge.s32.totalorder %s11346_s23, 1  ;;  %p379_p6 = scmp.lt.s32.totalorder %s11346_s23, 3 }
  0x22   : > { %p380_p7 = pnand %p7843_p5, %p379_p6 }
  0x24   : > { %383 = sbr.rel (%p380_p7) target bundleno = 3383 (0xd37), region = 81 }
  0x29   : > { %v8025_v16 = vld [vmem:[%s16875_s1 + $0xe0] sm:$0xf]  ;;  %v10264_v17 = vld [vmem:[%s16875_s1 + $0xec] sm:$0xf0]  ;;  %v10262_v18 = vld [vmem:[%s16875_s1 + $0xe4] sm:$0xf] }
  0x2a   : > { %v8026_v19 = vor.u32 %v10264_v17, %v8025_v16  ;;  %v8027_v20 = vld [vmem:[%s16875_s1 + $0xf0] sm:$0xf0]  ;;  %v8033_v21 = vld [vmem:[%s16875_s1 + $0xe8] sm:$0xf]  ;;  %v10265_v22 = vld [vmem:[%s16875_s1 + $0xf4] sm:$0xf0] }
  0x2b   : > { %v8030_v23 = vor.u32 %v10262_v18, %v8027_v20  ;;  %v8034_v24 = vor.u32 %v10265_v22, %v8033_v21  ;;  %v10263_v25 = vld [vmem:[%s16875_s1 + $0xec] sm:$0xf]  ;;  %v8035_v26 = vld [vmem:[%s16875_s1 + $0xf8] sm:$0xf0]  ;;  %v8009_v27 = vld [vmem:[%s16875_s1 + $0xc0] sm:$0xf] }
  0x2c   : > { %752 = vmatpush.bf16.msra.mxu0 %v8026_v19  ;;  %v8038_v28 = vor.u32 %v10263_v25, %v8035_v26  ;;  %v10260_v29 = vld [vmem:[%s16875_s1 + $0xcc] sm:$0xf0]  ;;  %v10258_v30 = vld [vmem:[%s16875_s1 + $0xc4] sm:$0xf]  ;;  %v8011_v31 = vld [vmem:[%s16875_s1 + $0xd0] sm:$0xf0] }
  0x2d   : > { %841 = vmatpush.bf16.msra.mxu1 %v8030_v23  ;;  %930 = vmatpush.bf16.msra.mxu2 %v8034_v24  ;;  %v8010_v32 = vor.u32 %v10260_v29, %v8009_v27  ;;  %v8014_v33 = vor.u32 %v10258_v30, %v8011_v31  ;;  %v8017_v34 = vld [vmem:[%s16875_s1 + $0xc8] sm:$0xf]  ;;  %v10261_v35 = vld [vmem:[%s16875_s1 + $0xd4] sm:$0xf0]  ;;  %v10259_v36 = vld [vmem:[%s16875_s1 + $0xcc] sm:$0xf] }
  0x2e   : > { %1019 = vmatpush.bf16.msra.mxu3 %v8038_v28  ;;  %v8018_v37 = vor.u32 %v10261_v35, %v8017_v34  ;;  %v8019_v38 = vld [vmem:[%s16875_s1 + $0xd8] sm:$0xf0]  ;;  %v7993_v39 = vld [vmem:[%s16875_s1 + $0xa0] sm:$0xf]  ;;  %v10256_v40 = vld [vmem:[%s16875_s1 + $0xac] sm:$0xf0] }
  0x2f   : > { %v8022_v41 = vor.u32 %v10259_v36, %v8019_v38  ;;  %v10254_v42 = vld [vmem:[%s16875_s1 + $0xa4] sm:$0xf]  ;;  %v7995_v43 = vld [vmem:[%s16875_s1 + $0xb0] sm:$0xf0]  ;;  %v8001_v44 = vld [vmem:[%s16875_s1 + $0xa8] sm:$0xf]  ;;  %v7994_v45 = vor.u32 %v10256_v40, %v7993_v39 }
  0x30   : > { %753 = vmatpush.bf16.msra.mxu0 %v8010_v32  ;;  %v10257_v46 = vld [vmem:[%s16875_s1 + $0xb4] sm:$0xf0]  ;;  %v10255_v47 = vld [vmem:[%s16875_s1 + $0xac] sm:$0xf]  ;;  %v8003_v48 = vld [vmem:[%s16875_s1 + $0xb8] sm:$0xf0]  ;;  %v7998_v49 = vor.u32 %v10254_v42, %v7995_v43 }
  0x31   : > { %842 = vmatpush.bf16.msra.mxu1 %v8014_v33  ;;  %931 = vmatpush.bf16.msra.mxu2 %v8018_v37  ;;  %v8002_v50 = vor.u32 %v10257_v46, %v8001_v44  ;;  %v7977_v51 = vld [vmem:[%s16875_s1 + $0x80] sm:$0xf]  ;;  %v10252_v52 = vld [vmem:[%s16875_s1 + $0x8c] sm:$0xf0]  ;;  %v10250_v53 = vld [vmem:[%s16875_s1 + $0x84] sm:$0xf]  ;;  %v8006_v54 = vor.u32 %v10255_v47, %v8003_v48 }
  0x32   : > { %1020 = vmatpush.bf16.msra.mxu3 %v8022_v41  ;;  %v7979_v55 = vld [vmem:[%s16875_s1 + $0x90] sm:$0xf0]  ;;  %v7985_v56 = vld [vmem:[%s16875_s1 + $0x88] sm:$0xf]  ;;  %v10253_v57 = vld [vmem:[%s16875_s1 + $0x94] sm:$0xf0]  ;;  %v7978_v60 = vor.u32 %v10252_v52, %v7977_v51 }
  0x33   : > { %v10251_v58 = vld [vmem:[%s16875_s1 + $0x8c] sm:$0xf]  ;;  %v7987_v59 = vld [vmem:[%s16875_s1 + $0x98] sm:$0xf0]  ;;  %v7982_v61 = vor.u32 %v10250_v53, %v7979_v55  ;;  %v7986_v62 = vor.u32 %v10253_v57, %v7985_v56  ;;  %v7961_v63 = vld [vmem:[%s16875_s1 + $0x60] sm:$0xf] }
  0x34   : > { %754 = vmatpush.bf16.msra.mxu0 %v7994_v45  ;;  %v10248_v0 = vld [vmem:[%s16875_s1 + $0x6c] sm:$0xf0]  ;;  %v10246_v1 = vld [vmem:[%s16875_s1 + $0x64] sm:$0xf]  ;;  %v7990_v2 = vor.u32 %v10251_v58, %v7987_v59  ;;  %v7963_v3 = vld [vmem:[%s16875_s1 + $0x70] sm:$0xf0] }
  0x35   : > { %843 = vmatpush.bf16.msra.mxu1 %v7998_v49  ;;  %932 = vmatpush.bf16.msra.mxu2 %v8002_v50  ;;  %v7969_v4 = vld [vmem:[%s16875_s1 + $0x68] sm:$0xf]  ;;  %v10249_v5 = vld [vmem:[%s16875_s1 + $0x74] sm:$0xf0]  ;;  %v10247_v6 = vld [vmem:[%s16875_s1 + $0x6c] sm:$0xf]  ;;  %v7962_v8 = vor.u32 %v10248_v0, %v7961_v63  ;;  %v7966_v9 = vor.u32 %v10246_v1, %v7963_v3 }
  0x36   : > { %1021 = vmatpush.bf16.msra.mxu3 %v8006_v54  ;;  %v7971_v7 = vld [vmem:[%s16875_s1 + $0x78] sm:$0xf0]  ;;  %v7970_v10 = vor.u32 %v10249_v5, %v7969_v4  ;;  %v7945_v11 = vld [vmem:[%s16875_s1 + $0x40] sm:$0xf]  ;;  %v10244_v12 = vld [vmem:[%s16875_s1 + $0x4c] sm:$0xf0] }
  0x37   : > { %v10242_v13 = vld [vmem:[%s16875_s1 + $0x44] sm:$0xf]  ;;  %v7974_v14 = vor.u32 %v10247_v6, %v7971_v7  ;;  %v7947_v15 = vld [vmem:[%s16875_s1 + $0x50] sm:$0xf0]  ;;  %v7953_v16 = vld [vmem:[%s16875_s1 + $0x48] sm:$0xf]  ;;  %v7946_v20 = vor.u32 %v10244_v12, %v7945_v11 }
  0x38   : > { %755 = vmatpush.bf16.msra.mxu0 %v7978_v60  ;;  %v10245_v17 = vld [vmem:[%s16875_s1 + $0x54] sm:$0xf0]  ;;  %v10243_v18 = vld [vmem:[%s16875_s1 + $0x4c] sm:$0xf]  ;;  %v7955_v19 = vld [vmem:[%s16875_s1 + $0x58] sm:$0xf0]  ;;  %v7950_v22 = vor.u32 %v10242_v13, %v7947_v15 }
  0x39   : > { %844 = vmatpush.bf16.msra.mxu1 %v7982_v61  ;;  %933 = vmatpush.bf16.msra.mxu2 %v7986_v62  ;;  %v7929_v21 = vld [vmem:[%s16875_s1 + $0x20] sm:$0xf]  ;;  %v7954_v23 = vor.u32 %v10245_v17, %v7953_v16  ;;  %v10240_v24 = vld [vmem:[%s16875_s1 + $0x2c] sm:$0xf0]  ;;  %v10238_v25 = vld [vmem:[%s16875_s1 + $0x24] sm:$0xf]  ;;  %v7958_v27 = vor.u32 %v10243_v18, %v7955_v19 }
  0x3a   : > { %1022 = vmatpush.bf16.msra.mxu3 %v7990_v2  ;;  %v7931_v26 = vld [vmem:[%s16875_s1 + $0x30] sm:$0xf0]  ;;  %v7937_v28 = vld [vmem:[%s16875_s1 + $0x28] sm:$0xf]  ;;  %v10241_v29 = vld [vmem:[%s16875_s1 + $0x34] sm:$0xf0]  ;;  %v7930_v32 = vor.u32 %v10240_v24, %v7929_v21 }
  0x3b   : > { %s386_s12 = sand.u32 1, %s11338_s21   ;;  %v10239_v30 = vld [vmem:[%s16875_s1 + $0x2c] sm:$0xf]  ;;  %v7939_v31 = vld [vmem:[%s16875_s1 + $0x38] sm:$0xf0]  ;;  %v7934_v36 = vor.u32 %v10238_v25, %v7931_v26  ;;  %v7938_v37 = vor.u32 %v10241_v29, %v7937_v28 }
  0x3c   : > { %756 = vmatpush.bf16.msra.mxu0 %v7962_v8  ;;  %v7913_v33 = vld [vmem:[%s16875_s1] sm:$0xf]  ;;  %v10236_v34 = vld [vmem:[%s16875_s1 + $0xc] sm:$0xf0]  ;;  %v10234_v35 = vld [vmem:[%s16875_s1 + $0x4] sm:$0xf]  ;;  %v7942_v40 = vor.u32 %v10239_v30, %v7939_v31 }
  0x3d   : > { %845 = vmatpush.bf16.msra.mxu1 %v7966_v9  ;;  %934 = vmatpush.bf16.msra.mxu2 %v7970_v10  ;;  %v7915_v38 = vld [vmem:[%s16875_s1 + $0x10] sm:$0xf0]  ;;  %v7921_v39 = vld [vmem:[%s16875_s1 + $0x8] sm:$0xf]  ;;  %s7844_s8 = sshll.u32 %s386_s12, 7  ;;  %v7914_v46 = vor.u32 %v10236_v34, %v7913_v33 }
  0x3e   : > { %1023 = vmatpush.bf16.msra.mxu3 %v7974_v14  ;;  %v10237_v41 = vld [vmem:[%s16875_s1 + $0x14] sm:$0xf0]  ;;  %v10235_v42 = vld [vmem:[%s16875_s1 + $0xc] sm:$0xf]  ;;  %v7923_v43 = vld [vmem:[%s16875_s1 + $0x18] sm:$0xf0]  ;;  %v7918_v49 = vor.u32 %v10234_v35, %v7915_v38 }
  0x3f   : > { %v8153_v44 = vld [vmem:[%s16876_s2 + $0xe0] sm:$0xf]  ;;  %v10296_v45 = vld [vmem:[%s16876_s2 + $0xec] sm:$0xf0]  ;;  %v10294_v47 = vld [vmem:[%s16876_s2 + $0xe4] sm:$0xf]  ;;  %v7922_v50 = vor.u32 %v10237_v41, %v7921_v39  ;;  %v7926_v51 = vor.u32 %v10235_v42, %v7923_v43 }
  0x40   : > { %757 = vmatpush.bf16.msra.mxu0 %v7946_v20  ;;  %v8155_v48 = vld [vmem:[%s16876_s2 + $0xf0] sm:$0xf0]  ;;  %v8154_v52 = vor.u32 %v10296_v45, %v8153_v44  ;;  %v8161_v53 = vld [vmem:[%s16876_s2 + $0xe8] sm:$0xf]  ;;  %v10297_v54 = vld [vmem:[%s16876_s2 + $0xf4] sm:$0xf0] }
  0x41   : > { %846 = vmatpush.bf16.msra.mxu1 %v7950_v22  ;;  %935 = vmatpush.bf16.msra.mxu2 %v7954_v23  ;;  %s11649_s9 = scalar_lea.vmem [#allocation5], %s7844_s8  ;;  %v8158_v56 = vor.u32 %v10294_v47, %v8155_v48  ;;  %v10295_v57 = vld [vmem:[%s16876_s2 + $0xec] sm:$0xf]  ;;  %v8163_v58 = vld [vmem:[%s16876_s2 + $0xf8] sm:$0xf0]  ;;  %v8162_v59 = vor.u32 %v10297_v54, %v8161_v53 }
  0x42   : > { %1024 = vmatpush.bf16.msra.mxu3 %v7958_v27  ;;  %v10218_v55 = vld [vmem:[%s11649_s9] sm:$0xff]  ;;  %v8166_v60 = vor.u32 %v10295_v57, %v8163_v58  ;;  %v10292_v62 = vld [vmem:[%s16876_s2 + $0xcc] sm:$0xf0]  ;;  %v8139_v1 = vld [vmem:[%s16876_s2 + $0xd0] sm:$0xf0] }
  0x43   : > { %v8137_v61 = vld [vmem:[%s16876_s2 + $0xc0] sm:$0xf]  ;;  %v10290_v63 = vld [vmem:[%s16876_s2 + $0xc4] sm:$0xf]  ;;  %v10291_v2 = vld [vmem:[%s16876_s2 + $0xcc] sm:$0xf] }
  0x44   : > { %758 = vmatpush.bf16.msra.mxu0 %v7930_v32  ;;  %v8138_v0 = vor.u32 %v10292_v62, %v8137_v61  ;;  %v8147_v3 = vld [vmem:[%s16876_s2 + $0xd8] sm:$0xf0]  ;;  %v8142_v4 = vor.u32 %v10290_v63, %v8139_v1  ;;  %v8145_v6 = vld [vmem:[%s16876_s2 + $0xc8] sm:$0xf]  ;;  %v10293_v7 = vld [vmem:[%s16876_s2 + $0xd4] sm:$0xf0] }
  0x45   : > { %847 = vmatpush.bf16.msra.mxu1 %v7934_v36  ;;  %936 = vmatpush.bf16.msra.mxu2 %v7938_v37  ;;  %v8150_v5 = vor.u32 %v10291_v2, %v8147_v3  ;;  %v8146_v8 = vor.u32 %v10293_v7, %v8145_v6  ;;  %v10219_v9 = vld [vmem:[%s11649_s9 + $0x8] sm:$0xff]  ;;  %v10220_v10 = vld [vmem:[%s11649_s9 + $0x10] sm:$0xff]  ;;  %v8121_v11 = vld [vmem:[%s16876_s2 + $0xa0] sm:$0xf] }
  0x46   : > { %1025 = vmatpush.bf16.msra.mxu3 %v7942_v40  ;;  %v10288_v12 = vld [vmem:[%s16876_s2 + $0xac] sm:$0xf0]  ;;  %v10286_v13 = vld [vmem:[%s16876_s2 + $0xa4] sm:$0xf]  ;;  %v8123_v15 = vld [vmem:[%s16876_s2 + $0xb0] sm:$0xf0] }
  0x47   : > { %v8122_v14 = vor.u32 %v10288_v12, %v8121_v11  ;;  %v10287_v16 = vld [vmem:[%s16876_s2 + $0xac] sm:$0xf]  ;;  %v8131_v17 = vld [vmem:[%s16876_s2 + $0xb8] sm:$0xf0]  ;;  %v8126_v18 = vor.u32 %v10286_v13, %v8123_v15  ;;  %v8129_v20 = vld [vmem:[%s16876_s2 + $0xa8] sm:$0xf] }
  0x48   : > { %759 = vmatpush.bf16.msra.mxu0 %v7914_v46  ;;  %v8134_v19 = vor.u32 %v10287_v16, %v8131_v17  ;;  %v10289_v21 = vld [vmem:[%s16876_s2 + $0xb4] sm:$0xf0]  ;;  %v10222_v24 = vld [vmem:[%s11649_s9 + $0x20] sm:$0xff]  ;;  %v10284_v26 = vld [vmem:[%s16876_s2 + $0x8c] sm:$0xf0] }
  0x49   : > { %848 = vmatpush.bf16.msra.mxu1 %v7918_v49  ;;  %937 = vmatpush.bf16.msra.mxu2 %v7922_v50  ;;  %v8130_v22 = vor.u32 %v10289_v21, %v8129_v20  ;;  %v10221_v23 = vld [vmem:[%s11649_s9 + $0x18] sm:$0xff]  ;;  %v8105_v25 = vld [vmem:[%s16876_s2 + $0x80] sm:$0xf]  ;;  %v10282_v27 = vld [vmem:[%s16876_s2 + $0x84] sm:$0xf] }
  0x4a   : > { %1026 = vmatpush.bf16.msra.mxu3 %v7926_v51  ;;  %v8106_v28 = vor.u32 %v10284_v26, %v8105_v25  ;;  %v8107_v29 = vld [vmem:[%s16876_s2 + $0x90] sm:$0xf0]  ;;  %v10283_v30 = vld [vmem:[%s16876_s2 + $0x8c] sm:$0xf]  ;;  %v8115_v31 = vld [vmem:[%s16876_s2 + $0x98] sm:$0xf0] }
  0x4b   : > { %760 = vmatmul.bf16.vlgmr.msra.gmra.mxu0 %v10218_v55  ;;  %v8110_v32 = vor.u32 %v10282_v27, %v8107_v29  ;;  %v8118_v33 = vor.u32 %v10283_v30, %v8115_v31  ;;  %v8113_v34 = vld [vmem:[%s16876_s2 + $0x88] sm:$0xf]  ;;  %v10285_v35 = vld [vmem:[%s16876_s2 + $0x94] sm:$0xf0]  ;;  %v10224_v38 = vld [vmem:[%s11649_s9 + $0x30] sm:$0xff] }
  0x4c   : > { %1446 = vmatpush.bf16.msrb.mxu0 %v8154_v52  ;;  %849 = vmatmul.bf16.vlgmr.msra.gmra.mxu1 %v10218_v55  ;;  %v8114_v36 = vor.u32 %v10285_v35, %v8113_v34  ;;  %v10223_v37 = vld [vmem:[%s11649_s9 + $0x28] sm:$0xff]  ;;  %v8089_v39 = vld [vmem:[%s16876_s2 + $0x60] sm:$0xf]  ;;  %v10280_v40 = vld [vmem:[%s16876_s2 + $0x6c] sm:$0xf0] }
  0x4d   : > { %1460 = vmatpush.bf16.msrb.mxu1 %v8158_v56  ;;  %938 = vmatmul.bf16.vlgmr.msra.gmra.mxu2 %v10218_v55  ;;  %v10278_v41 = vld [vmem:[%s16876_s2 + $0x64] sm:$0xf]  ;;  %v8090_v42 = vor.u32 %v10280_v40, %v8089_v39  ;;  %v8091_v43 = vld [vmem:[%s16876_s2 + $0x70] sm:$0xf0]  ;;  %v10279_v45 = vld [vmem:[%s16876_s2 + $0x6c] sm:$0xf] }
  0x4e   : > { %1027 = vmatmul.bf16.vlgmr.msra.gmra.mxu3 %v10218_v55  ;;  %1474 = vmatpush.bf16.msrb.mxu2 %v8162_v59  ;;  %v8094_v44 = vor.u32 %v10278_v41, %v8091_v43  ;;  %v8099_v46 = vld [vmem:[%s16876_s2 + $0x78] sm:$0xf0]  ;;  %v8097_v49 = vld [vmem:[%s16876_s2 + $0x68] sm:$0xf]  ;;  %v10281_v50 = vld [vmem:[%s16876_s2 + $0x74] sm:$0xf0] }
  0x4f   : > { %1488 = vmatpush.bf16.msrb.mxu3 %v8166_v60  ;;  %v8102_v47 = vor.u32 %v10279_v45, %v8099_v46  ;;  %v10225_v48 = vld [vmem:[%s11649_s9 + $0x38] sm:$0xff]  ;;  %v8098_v51 = vor.u32 %v10281_v50, %v8097_v49  ;;  %v10226_v52 = vld [vmem:[%s11649_s9 + $0x40] sm:$0xff]  ;;  %v10276_v56 = vld [vmem:[%s16876_s2 + $0x4c] sm:$0xf0] }
  0x50   : > { %1447 = vmatpush.bf16.msrb.mxu0 %v8138_v0  ;;  %v8073_v55 = vld [vmem:[%s16876_s2 + $0x40] sm:$0xf]  ;;  %v10274_v57 = vld [vmem:[%s16876_s2 + $0x44] sm:$0xf]  ;;  %v8075_v59 = vld [vmem:[%s16876_s2 + $0x50] sm:$0xf0] }
  0x51   : > { %1461 = vmatpush.bf16.msrb.mxu1 %v8142_v4  ;;  %v8074_v58 = vor.u32 %v10276_v56, %v8073_v55  ;;  %v8078_v61 = vor.u32 %v10274_v57, %v8075_v59  ;;  %v10275_v1 = vld [vmem:[%s16876_s2 + $0x4c] sm:$0xf]  ;;  %v8083_v2 = vld [vmem:[%s16876_s2 + $0x58] sm:$0xf0]  ;;  %v10228_v17 = vld [vmem:[%s11649_s9 + $0x50] sm:$0xff] }
  0x52   : > { %1475 = vmatpush.bf16.msrb.mxu2 %v8146_v8  ;;  %v8086_v3 = vor.u32 %v10275_v1, %v8083_v2  ;;  %v8057_v21 = vld [vmem:[%s16876_s2 + $0x20] sm:$0xf]  ;;  %v8059_v25 = vld [vmem:[%s16876_s2 + $0x30] sm:$0xf0]  ;;  %v10271_v31 = vld [vmem:[%s16876_s2 + $0x2c] sm:$0xf] }
  0x53   : > { %1489 = vmatpush.bf16.msrb.mxu3 %v8150_v5  ;;  %v10227_v5 = vld [vmem:[%s11649_s9 + $0x48] sm:$0xff]  ;;  %v10229_v35 = vld [vmem:[%s11649_s9 + $0x58] sm:$0xff]  ;;  %v10266_v55 = vld [vmem:[%s16876_s2 + $0x4] sm:$0xf] }
  0x54   : > { %1448 = vmatpush.bf16.msrb.mxu0 %v8122_v14  ;;  %v8065_v39 = vld [vmem:[%s16876_s2 + $0x28] sm:$0xf]  ;;  %v10273_v40 = vld [vmem:[%s16876_s2 + $0x34] sm:$0xf0]  ;;  %v8043_v57 = vld [vmem:[%s16876_s2 + $0x10] sm:$0xf0] }
  0x55   : > { %1462 = vmatpush.bf16.msrb.mxu1 %v8126_v18  ;;  %v8066_v41 = vor.u32 %v10273_v40, %v8065_v39  ;;  %v8046_v59 = vor.u32 %v10266_v55, %v8043_v57  ;;  %v10232_v39 = vld [vmem:[%s11649_s9 + $0x70] sm:$0xff] }
  0x56   : > { %1476 = vmatpush.bf16.msrb.mxu2 %v8130_v22  ;;  %v10272_v22 = vld [vmem:[%s16876_s2 + $0x2c] sm:$0xf0] }
  0x57   : > { %1490 = vmatpush.bf16.msrb.mxu3 %v8134_v19 }
  0x58   : > { %1449 = vmatpush.bf16.msrb.mxu0 %v8106_v28 }
  0x59   : > { %1463 = vmatpush.bf16.msrb.mxu1 %v8110_v32  ;;  %v8067_v32 = vld [vmem:[%s16876_s2 + $0x38] sm:$0xf0] }
  0x5a   : > { %1477 = vmatpush.bf16.msrb.mxu2 %v8114_v36 }
  0x5b   : > { %765 = vmatmul.bf16.gmra.mxu0 %v10219_v9  ;;  %1491 = vmatpush.bf16.msrb.mxu3 %v8118_v33  ;;  %v8070_v33 = vor.u32 %v10271_v31, %v8067_v32 }
  0x5c   : > { %854 = vmatmul.bf16.gmra.mxu1 %v10219_v9  ;;  %1450 = vmatpush.bf16.msrb.mxu0 %v8090_v42 }
  0x5d   : > { %943 = vmatmul.bf16.gmra.mxu2 %v10219_v9  ;;  %1464 = vmatpush.bf16.msrb.mxu1 %v8094_v44 }
  0x5e   : > { %1032 = vmatmul.bf16.gmra.mxu3 %v10219_v9  ;;  %1478 = vmatpush.bf16.msrb.mxu2 %v8098_v51  ;;  %v8081_v9 = vld [vmem:[%s16876_s2 + $0x48] sm:$0xf]  ;;  %v8041_v51 = vld [vmem:[%s16876_s2] sm:$0xf] }
  0x5f   : > { %1492 = vmatpush.bf16.msrb.mxu3 %v8102_v47  ;;  %v10230_v47 = vld [vmem:[%s11649_s9 + $0x60] sm:$0xff] }
  0x60   : > { %1451 = vmatpush.bf16.msrb.mxu0 %v8074_v58 }
  0x61   : > { %1465 = vmatpush.bf16.msrb.mxu1 %v8078_v61 }
  0x63   : > { %1493 = vmatpush.bf16.msrb.mxu3 %v8086_v3  ;;  %v10267_v3 = vld [vmem:[%s16876_s2 + $0xc] sm:$0xf] }
  0x67   : > { %1494 = vmatpush.bf16.msrb.mxu3 %v8070_v33 }
  0x6b   : > { %770 = vmatmul.bf16.gmra.mxu0 %v10220_v10 }
  0x6c   : > { %859 = vmatmul.bf16.gmra.mxu1 %v10220_v10 }
  0x6d   : > { %948 = vmatmul.bf16.gmra.mxu2 %v10220_v10 }
  0x6e   : > { %1037 = vmatmul.bf16.gmra.mxu3 %v10220_v10  ;;  %v10277_v10 = vld [vmem:[%s16876_s2 + $0x54] sm:$0xf0] }
  0x6f   : > { %v8082_v11 = vor.u32 %v10277_v10, %v8081_v9 }
  0x71   : > { %1479 = vmatpush.bf16.msrb.mxu2 %v8082_v11  ;;  %v10231_v11 = vld [vmem:[%s11649_s9 + $0x68] sm:$0xff] }
  0x75   : > { %1480 = vmatpush.bf16.msrb.mxu2 %v8066_v41 }
  0x7b   : > { %775 = vmatmul.bf16.gmra.mxu0 %v10221_v23 }
  0x7c   : > { %864 = vmatmul.bf16.gmra.mxu1 %v10221_v23 }
  0x7d   : > { %953 = vmatmul.bf16.gmra.mxu2 %v10221_v23 }
  0x7e   : > { %1042 = vmatmul.bf16.gmra.mxu3 %v10221_v23  ;;  %v10270_v23 = vld [vmem:[%s16876_s2 + $0x24] sm:$0xf] }
  0x7f   : > { %v8062_v27 = vor.u32 %v10270_v23, %v8059_v25  ;;  %v8049_v23 = vld [vmem:[%s16876_s2 + $0x8] sm:$0xf] }
  0x81   : > { %1466 = vmatpush.bf16.msrb.mxu1 %v8062_v27 }
  0x85   : > { %1467 = vmatpush.bf16.msrb.mxu1 %v8046_v59  ;;  %v10233_v59 = vld [vmem:[%s11649_s9 + $0x78] sm:$0xff]  ;;  %s7845_s9 = sshll.u32 %s7836_s24, 1 }
  0x86   : > { %p417_p8 = scmp.lt.s32.totalorder %s7845_s9, 3 }
  0x88   : > { %s17185_s9 = smov (!%p417_p8, %s7845_s9), 3 }
  0x89   : > { %s7846_s18 = sshll.u32 %s17185_s9, 3 }
  0x8a   : > { %s420_s21 = scalar_lea.vmem %s16880_s6, %s7846_s18 }
  0x8b   : > { %780 = vmatmul.bf16.gmra.mxu0 %v10222_v24 }
  0x8c   : > { %869 = vmatmul.bf16.gmra.mxu1 %v10222_v24 }
  0x8d   : > { %958 = vmatmul.bf16.gmra.mxu2 %v10222_v24 }
  0x8e   : > { %1047 = vmatmul.bf16.gmra.mxu3 %v10222_v24  ;;  %v8058_v24 = vor.u32 %v10272_v22, %v8057_v21 }
  0x90   : > { %1452 = vmatpush.bf16.msrb.mxu0 %v8058_v24  ;;  %v10269_v24 = vld [vmem:[%s16876_s2 + $0x14] sm:$0xf0] }
  0x91   : > { %v8050_v25 = vor.u32 %v10269_v24, %v8049_v23 }
  0x93   : > { %1481 = vmatpush.bf16.msrb.mxu2 %v8050_v25 }
  0x9b   : > { %785 = vmatmul.bf16.gmra.mxu0 %v10223_v37 }
  0x9c   : > { %874 = vmatmul.bf16.gmra.mxu1 %v10223_v37 }
  0x9d   : > { %963 = vmatmul.bf16.gmra.mxu2 %v10223_v37 }
  0x9e   : > { %1052 = vmatmul.bf16.gmra.mxu3 %v10223_v37 }
  0xab   : > { %790 = vmatmul.bf16.gmra.mxu0 %v10224_v38 }
  0xac   : > { %879 = vmatmul.bf16.gmra.mxu1 %v10224_v38 }
  0xad   : > { %968 = vmatmul.bf16.gmra.mxu2 %v10224_v38 }
  0xae   : > { %1057 = vmatmul.bf16.gmra.mxu3 %v10224_v38 }
  0xbb   : > { %795 = vmatmul.bf16.gmra.mxu0 %v10225_v48 }
  0xbc   : > { %884 = vmatmul.bf16.gmra.mxu1 %v10225_v48 }
  0xbd   : > { %973 = vmatmul.bf16.gmra.mxu2 %v10225_v48 }
  0xbe   : > { %1062 = vmatmul.bf16.gmra.mxu3 %v10225_v48 }
  0xc8   : > { %v11762_v53 = vpop.f32.mrf.mxu0 }
  0xc9   : > { %v11764_v54 = vpop.f32.mrf.mxu1 }
  0xcb   : > { %800 = vmatmul.bf16.gmra.mxu0 %v10226_v52 }
  0xcc   : > { %889 = vmatmul.bf16.gmra.mxu1 %v10226_v52 }
  0xcd   : > { %978 = vmatmul.bf16.gmra.mxu2 %v10226_v52 }
  0xce   : > { %1067 = vmatmul.bf16.gmra.mxu3 %v10226_v52  ;;  %v10268_v52 = vld [vmem:[%s16876_s2 + $0xc] sm:$0xf0] }
  0xcf   : > { %v8042_v56 = vor.u32 %v10268_v52, %v8041_v51 }
  0xd0   : > { %v11778_v60 = vpop.f32.mrf.mxu2  ;;  %v11782_v63 = vpop.f32.mrf.mxu0 }
  0xd1   : > { %v11780_v62 = vpop.f32.mrf.mxu3  ;;  %v11784_v0 = vpop.f32.mrf.mxu1  ;;  %1453 = vmatpush.bf16.msrb.mxu0 %v8042_v56 }
  0xd8   : > { %v11792_v4 = vpop.f32.mrf.mxu2  ;;  %v11797_v7 = vpop.f32.mrf.mxu0 }
  0xd9   : > { %v11795_v6 = vpop.f32.mrf.mxu3  ;;  %v11799_v8 = vpop.f32.mrf.mxu1 }
  0xdb   : > { %805 = vmatmul.bf16.gmra.mxu0 %v10227_v5 }
  0xdc   : > { %894 = vmatmul.bf16.gmra.mxu1 %v10227_v5 }
  0xdd   : > { %983 = vmatmul.bf16.gmra.mxu2 %v10227_v5 }
  0xde   : > { %1072 = vmatmul.bf16.gmra.mxu3 %v10227_v5  ;;  %v8051_v5 = vld [vmem:[%s16876_s2 + $0x18] sm:$0xf0] }
  0xdf   : > { %v8054_v9 = vor.u32 %v10267_v3, %v8051_v5 }
  0xe0   : > { %v11807_v12 = vpop.f32.mrf.mxu2  ;;  %v11811_v14 = vpop.f32.mrf.mxu0 }
  0xe1   : > { %v11809_v13 = vpop.f32.mrf.mxu3  ;;  %v11813_v15 = vpop.f32.mrf.mxu1  ;;  %1495 = vmatpush.bf16.msrb.mxu3 %v8054_v9 }
  0xe8   : > { %v11815_v16 = vpop.f32.mrf.mxu2  ;;  %v11820_v19 = vpop.f32.mrf.mxu0 }
  0xe9   : > { %v11818_v18 = vpop.f32.mrf.mxu3  ;;  %v11822_v20 = vpop.f32.mrf.mxu1 }
  0xeb   : > { %810 = vmatmul.bf16.gmra.mxu0 %v10228_v17 }
  0xec   : > { %899 = vmatmul.bf16.gmra.mxu1 %v10228_v17 }
  0xed   : > { %988 = vmatmul.bf16.gmra.mxu2 %v10228_v17 }
  0xee   : > { %1077 = vmatmul.bf16.gmra.mxu3 %v10228_v17 }
  0xf0   : > { %v11836_v26 = vpop.f32.mrf.mxu2  ;;  %v11840_v29 = vpop.f32.mrf.mxu0 }
  0xf1   : > { %v11838_v28 = vpop.f32.mrf.mxu3  ;;  %v11842_v30 = vpop.f32.mrf.mxu1 }
  0xf8   : > { %v11850_v34 = vpop.f32.mrf.mxu2  ;;  %v11855_v37 = vpop.f32.mrf.mxu0 }
  0xf9   : > { %v11853_v36 = vpop.f32.mrf.mxu3  ;;  %v11857_v38 = vpop.f32.mrf.mxu1 }
  0xfb   : > { %815 = vmatmul.bf16.gmra.mxu0 %v10229_v35 }
  0xfc   : > { %904 = vmatmul.bf16.gmra.mxu1 %v10229_v35 }
  0xfd   : > { %993 = vmatmul.bf16.gmra.mxu2 %v10229_v35 }
  0xfe   : > { %1082 = vmatmul.bf16.gmra.mxu3 %v10229_v35 }
 0x100   : > { %v11865_v42 = vpop.f32.mrf.mxu2  ;;  %v11869_v44 = vpop.f32.mrf.mxu0 }
 0x101   : > { %v11867_v43 = vpop.f32.mrf.mxu3  ;;  %v11871_v45 = vpop.f32.mrf.mxu1 }
 0x108   : > { %v11873_v46 = vpop.f32.mrf.mxu2  ;;  %v11878_v49 = vpop.f32.mrf.mxu0 }
 0x109   : > { %v11876_v48 = vpop.f32.mrf.mxu3  ;;  %v11880_v50 = vpop.f32.mrf.mxu1 }
 0x10b   : > { %820 = vmatmul.bf16.gmra.mxu0 %v10230_v47 }
 0x10c   : > { %909 = vmatmul.bf16.gmra.mxu1 %v10230_v47 }
 0x10d   : > { %998 = vmatmul.bf16.gmra.mxu2 %v10230_v47 }
 0x10e   : > { %1087 = vmatmul.bf16.gmra.mxu3 %v10230_v47 }
 0x110   : > { %v11894_v58 = vpop.f32.mrf.mxu2  ;;  %v11898_v1 = vpop.f32.mrf.mxu0 }
 0x111   : > { %16881 = vst [vmem:[#allocation6_spill] sm:$0xff] %v11894_v58  ;;  %v11896_v61 = vpop.f32.mrf.mxu3  ;;  %v11900_v2 = vpop.f32.mrf.mxu1 }
 0x112   : > { %16882 = vst [vmem:[#allocation7_spill] sm:$0xff] %v11898_v1 }
 0x113   : > { %16883 = vst [vmem:[#allocation8_spill] sm:$0xff] %v11900_v2 }
 0x118   : > { %v11908_v10 = vpop.f32.mrf.mxu2  ;;  %v11913_v21 = vpop.f32.mrf.mxu0 }
 0x119   : > { %16884 = vst [vmem:[#allocation9_spill] sm:$0xff] %v11908_v10  ;;  %v11911_v17 = vpop.f32.mrf.mxu3  ;;  %v11915_v22 = vpop.f32.mrf.mxu1 }
 0x11a   : > { %16885 = vst [vmem:[#allocation10_spill] sm:$0xff] %v11911_v17 }
 0x11b   : > { %16886 = vst [vmem:[#allocation11_spill] sm:$0xff] %v11913_v21  ;;  %825 = vmatmul.bf16.gmra.mxu0 %v10231_v11 }
 0x11c   : > { %16887 = vst [vmem:[#allocation12_spill] sm:$0xff] %v11915_v22  ;;  %914 = vmatmul.bf16.gmra.mxu1 %v10231_v11 }
 0x11d   : > { %1003 = vmatmul.bf16.gmra.mxu2 %v10231_v11 }
 0x11e   : > { %1092 = vmatmul.bf16.gmra.mxu3 %v10231_v11 }
 0x120   : > { %v11923_v27 = vpop.f32.mrf.mxu2  ;;  %v11927_v32 = vpop.f32.mrf.mxu0 }
 0x121   : > { %16888 = vst [vmem:[#allocation13_spill] sm:$0xff] %v11923_v27  ;;  %v11925_v31 = vpop.f32.mrf.mxu3  ;;  %v11929_v33 = vpop.f32.mrf.mxu1 }
 0x122   : > { %16889 = vst [vmem:[#allocation14_spill] sm:$0xff] %v11925_v31 }
 0x123   : > { %16890 = vst [vmem:[#allocation15_spill] sm:$0xff] %v11927_v32 }
 0x124   : > { %16891 = vst [vmem:[#allocation16_spill] sm:$0xff] %v11929_v33 }
 0x128   : > { %v11931_v35 = vpop.f32.mrf.mxu2  ;;  %v11936_v41 = vpop.f32.mrf.mxu0 }
 0x129   : > { %16892 = vst [vmem:[#allocation17_spill] sm:$0xff] %v11931_v35  ;;  %v11934_v40 = vpop.f32.mrf.mxu3  ;;  %v11938_v47 = vpop.f32.mrf.mxu1 }
 0x12a   : > { %16893 = vst [vmem:[#allocation18_spill] sm:$0xff] %v11934_v40 }
 0x12b   : > { %16894 = vst [vmem:[#allocation19_spill] sm:$0xff] %v11936_v41  ;;  %830 = vmatmul.bf16.gmra.mxu0 %v10232_v39 }
 0x12c   : > { %16895 = vst [vmem:[#allocation20_spill] sm:$0xff] %v11938_v47  ;;  %919 = vmatmul.bf16.gmra.mxu1 %v10232_v39  ;;  %v8281_v47 = vld [vmem:[%s16876_s2 + $0xd8] sm:$0xf0] }
 0x12d   : > { %1008 = vmatmul.bf16.gmra.mxu2 %v10232_v39 }
 0x12e   : > { %1097 = vmatmul.bf16.gmra.mxu3 %v10232_v39 }
 0x130   : > { %v11940_v51 = vpop.f32.mrf.mxu2  ;;  %v11944_v55 = vpop.f32.mrf.mxu0 }
 0x131   : > { %16896 = vst [vmem:[#allocation21_spill] sm:$0xff] %v11940_v51  ;;  %v11942_v52 = vpop.f32.mrf.mxu3  ;;  %v11946_v56 = vpop.f32.mrf.mxu1 }
 0x132   : > { %16897 = vst [vmem:[#allocation22_spill] sm:$0xff] %v11942_v52  ;;  %v8271_v52 = vld [vmem:[%s16876_s2 + $0xc0] sm:$0xf] }
 0x133   : > { %16898 = vst [vmem:[#allocation23_spill] sm:$0xff] %v11944_v55 }
 0x134   : > { %16899 = vst [vmem:[#allocation24_spill] sm:$0xff] %v11946_v56 }
 0x138   : > { %v11948_v57 = vpop.f32.mrf.mxu2  ;;  %v11953_v5 = vpop.f32.mrf.mxu0 }
 0x139   : > { %16900 = vst [vmem:[#allocation25_spill] sm:$0xff] %v11948_v57  ;;  %v11951_v3 = vpop.f32.mrf.mxu3  ;;  %v11955_v9 = vpop.f32.mrf.mxu1 }
 0x13a   : > { %16901 = vst [vmem:[#allocation26_spill] sm:$0xff] %v11951_v3 }
 0x13b   : > { %16902 = vst [vmem:[#allocation27_spill] sm:$0xff] %v11953_v5  ;;  %835 = vmatmul.bf16.gmra.mxu0 %v10233_v59 }
 0x13c   : > { %16903 = vst [vmem:[#allocation28_spill] sm:$0xff] %v11955_v9  ;;  %924 = vmatmul.bf16.gmra.mxu1 %v10233_v59  ;;  %v11348_v9 = vmov 0.0|0.0  }
 0x13d   : > { %1013 = vmatmul.bf16.gmra.mxu2 %v10233_v59 }
 0x13e   : > { %1102 = vmatmul.bf16.gmra.mxu3 %v10233_v59 }
 0x140   : > { %v11957_v11 = vpop.f32.mrf.mxu2  ;;  %v11961_v24 = vpop.f32.mrf.mxu0 }
 0x141   : > { %16904 = vst [vmem:[#allocation29_spill] sm:$0xff] %v11957_v11  ;;  %v11959_v23 = vpop.f32.mrf.mxu3  ;;  %v11963_v25 = vpop.f32.mrf.mxu1 }
 0x142   : > { %16905 = vst [vmem:[#allocation30_spill] sm:$0xff] %v11959_v23 }
 0x143   : > { %16906 = vst [vmem:[#allocation31_spill] sm:$0xff] %v11961_v24 }
 0x144   : > { %16907 = vst [vmem:[#allocation32_spill] sm:$0xff] %v11963_v25 }
 0x148   : > { %v11965_v39 = vpop.f32.mrf.mxu2  ;;  %v11969_v3 = vpop.f32.mrf.mxu0 }
 0x149   : > { %16908 = vst [vmem:[#allocation33_spill] sm:$0xff] %v11965_v39  ;;  %v11967_v57 = vpop.f32.mrf.mxu3  ;;  %v11971_v5 = vpop.f32.mrf.mxu1 }
 0x14a   : > { %16909 = vst [vmem:[#allocation34_spill] sm:$0xff] %v11967_v57 }
 0x14b   : > { %16910 = vst [vmem:[#allocation35_spill] sm:$0xff] %v11969_v3  ;;  %1454 = vmatmul.bf16.vlgmr.msrb.gmra.mxu0 %v11348_v9 }
 0x14c   : > { %16911 = vst [vmem:[#allocation36_spill] sm:$0xff] %v11971_v5  ;;  %1468 = vmatmul.bf16.vlgmr.msrb.gmra.mxu1 %v11348_v9 }
 0x14d   : > { %1482 = vmatmul.bf16.vlgmr.msrb.gmra.mxu2 %v11348_v9 }
 0x14e   : > { %1496 = vmatmul.bf16.vlgmr.msrb.gmra.mxu3 %v11348_v9 }
 0x150   : > { %v11973_v59 = vpop.f32.mrf.mxu2  ;;  %v11977_v24 = vpop.f32.mrf.mxu0 }
 0x151   : > { %16912 = vst [vmem:[#allocation37_spill] sm:$0xff] %v11973_v59  ;;  %v11975_v11 = vpop.f32.mrf.mxu3  ;;  %v11979_v25 = vpop.f32.mrf.mxu1 }
 0x152   : > { %16913 = vst [vmem:[#allocation38_spill] sm:$0xff] %v11975_v11 }
 0x153   : > { %16914 = vst [vmem:[#allocation39_spill] sm:$0xff] %v11977_v24 }
 0x154   : > { %16915 = vst [vmem:[#allocation40_spill] sm:$0xff] %v11979_v25 }
 0x158   : > { %v11981_v39 = vpop.f32.mrf.mxu2  ;;  %v11985_v3 = vpop.f32.mrf.mxu0 }
 0x159   : > { %16916 = vst [vmem:[#allocation41_spill] sm:$0xff] %v11981_v39  ;;  %v11983_v57 = vpop.f32.mrf.mxu3  ;;  %v11987_v5 = vpop.f32.mrf.mxu1 }
 0x15a   : > { %16917 = vst [vmem:[#allocation42_spill] sm:$0xff] %v11983_v57 }
 0x15b   : > { %16918 = vst [vmem:[#allocation43_spill] sm:$0xff] %v11985_v3 }
 0x15c   : > { %16919 = vst [vmem:[#allocation44_spill] sm:$0xff] %v11987_v5 }
 0x160   : > { %v11989_v23 = vpop.f32.mrf.mxu2  ;;  %v11993_v9 = vpop.f32.mrf.mxu0 }
 0x161   : > { %16920 = vst [vmem:[#allocation45_spill] sm:$0xff] %v11989_v23  ;;  %v11991_v51 = vpop.f32.mrf.mxu3  ;;  %v11995_v59 = vpop.f32.mrf.mxu1 }
 0x162   : > { %16921 = vst [vmem:[#allocation46_spill] sm:$0xff] %v11991_v51 }
 0x163   : > { %16922 = vst [vmem:[#allocation47_spill] sm:$0xff] %v11993_v9 }
 0x164   : > { %16923 = vst [vmem:[#allocation48_spill] sm:$0xff] %v11995_v59 }
 0x168   : > { %v11997_v11 = vpop.f32.mrf.mxu2  ;;  %v12001_v25 = vpop.f32.mrf.mxu0 }
 0x169   : > { %16924 = vst [vmem:[#allocation49_spill] sm:$0xff] %v11997_v11  ;;  %v11999_v24 = vpop.f32.mrf.mxu3  ;;  %v12003_v39 = vpop.f32.mrf.mxu1 }
 0x16a   : > { %16925 = vst [vmem:[#allocation50_spill] sm:$0xff] %v11999_v24 }
 0x16b   : > { %16926 = vst [vmem:[#allocation51_spill] sm:$0xff] %v12001_v25 }
 0x16c   : > { %16927 = vst [vmem:[#allocation52_spill] sm:$0xff] %v12003_v39 }
 0x170   : > { %v12005_v57 = vpop.f32.mrf.mxu2  ;;  %v12009_v5 = vpop.f32.mrf.mxu0 }
 0x171   : > { %16928 = vst [vmem:[#allocation53_spill] sm:$0xff] %v12005_v57  ;;  %v12007_v3 = vpop.f32.mrf.mxu3  ;;  %v12011_v23 = vpop.f32.mrf.mxu1 }
 0x172   : > { %16929 = vst [vmem:[#allocation54_spill] sm:$0xff] %v12007_v3 }
 0x173   : > { %16930 = vst [vmem:[#allocation55_spill] sm:$0xff] %v12009_v5 }
 0x174   : > { %16931 = vst [vmem:[#allocation56_spill] sm:$0xff] %v12011_v23 }
 0x178   : > { %v12013_v51 = vpop.f32.mrf.mxu2  ;;  %v12017_v59 = vpop.f32.mrf.mxu0 }
 0x179   : > { %16932 = vst [vmem:[#allocation57_spill] sm:$0xff] %v12013_v51  ;;  %v12015_v9 = vpop.f32.mrf.mxu3  ;;  %v12019_v11 = vpop.f32.mrf.mxu1 }
 0x17a   : > { %16933 = vst [vmem:[#allocation58_spill] sm:$0xff] %v12015_v9 }
 0x17b   : > { %16934 = vst [vmem:[#allocation59_spill] sm:$0xff] %v12017_v59 }
 0x17c   : > { %16935 = vst [vmem:[#allocation60_spill] sm:$0xff] %v12019_v11 }
 0x180   : > { %v12021_v24 = vpop.f32.mrf.mxu2  ;;  %v12025_v39 = vpop.f32.mrf.mxu0 }
 0x181   : > { %16936 = vst [vmem:[#allocation61_spill] sm:$0xff] %v12021_v24  ;;  %v12023_v25 = vpop.f32.mrf.mxu3  ;;  %v12027_v57 = vpop.f32.mrf.mxu1 }
 0x182   : > { %16937 = vst [vmem:[#allocation62_spill] sm:$0xff] %v12023_v25 }
 0x183   : > { %16938 = vst [vmem:[#allocation63_spill] sm:$0xff] %v12025_v39 }
 0x184   : > { %16939 = vst [vmem:[#allocation64_spill] sm:$0xff] %v12027_v57 }
 0x188   : > { %v12029_v3 = vpop.f32.mrf.mxu2  ;;  %v12033_v23 = vpop.f32.mrf.mxu0 }
 0x189   : > { %16940 = vst [vmem:[#allocation65_spill] sm:$0xff] %v12029_v3  ;;  %v12031_v5 = vpop.f32.mrf.mxu3  ;;  %v12035_v51 = vpop.f32.mrf.mxu1 }
 0x18a   : > { %16941 = vst [vmem:[#allocation66_spill] sm:$0xff] %v12031_v5 }
 0x18b   : > { %16942 = vst [vmem:[#allocation67_spill] sm:$0xff] %v12033_v23 }
 0x18c   : > { %16943 = vst [vmem:[#allocation68_spill] sm:$0xff] %v12035_v51 }
 0x190   : > { %v12037_v9 = vpop.f32.mrf.mxu2  ;;  %v12041_v11 = vpop.f32.mrf.mxu0 }
 0x191   : > { %16944 = vst [vmem:[#allocation69_spill] sm:$0xff] %v12037_v9  ;;  %v12039_v59 = vpop.f32.mrf.mxu3  ;;  %v12043_v24 = vpop.f32.mrf.mxu1 }
 0x192   : > { %16945 = vst [vmem:[#allocation70_spill] sm:$0xff] %v12039_v59 }
 0x193   : > { %16946 = vst [vmem:[#allocation71_spill] sm:$0xff] %v12041_v11 }
 0x194   : > { %16947 = vst [vmem:[#allocation72_spill] sm:$0xff] %v12043_v24 }
 0x198   : > { %v12045_v25 = vpop.f32.mrf.mxu2  ;;  %v12049_v57 = vpop.f32.mrf.mxu0 }
 0x199   : > { %16948 = vst [vmem:[#allocation73_spill] sm:$0xff] %v12045_v25  ;;  %v12047_v39 = vpop.f32.mrf.mxu3  ;;  %v12051_v3 = vpop.f32.mrf.mxu1 }
 0x19a   : > { %16949 = vst [vmem:[#allocation74_spill] sm:$0xff] %v12047_v39 }
 0x19b   : > { %16950 = vst [vmem:[#allocation75_spill] sm:$0xff] %v12049_v57 }
 0x19c   : > { %16951 = vst [vmem:[#allocation76_spill] sm:$0xff] %v12051_v3 }
 0x1a0   : > { %v12053_v5 = vpop.f32.mrf.mxu2  ;;  %v12057_v51 = vpop.f32.mrf.mxu0 }
 0x1a1   : > { %16952 = vst [vmem:[#allocation77_spill] sm:$0xff] %v12053_v5  ;;  %v12055_v23 = vpop.f32.mrf.mxu3  ;;  %v12059_v9 = vpop.f32.mrf.mxu1 }
 0x1a2   : > { %16953 = vst [vmem:[#allocation78_spill] sm:$0xff] %v12055_v23 }
 0x1a3   : > { %16954 = vst [vmem:[#allocation79_spill] sm:$0xff] %v12057_v51 }
 0x1a4   : > { %16955 = vst [vmem:[#allocation80_spill] sm:$0xff] %v12059_v9 }
 0x1a8   : > { %v12061_v59 = vpop.f32.mrf.mxu2  ;;  %v12065_v24 = vpop.f32.mrf.mxu0 }
 0x1a9   : > { %16956 = vst [vmem:[#allocation81_spill] sm:$0xff] %v12061_v59  ;;  %v12063_v11 = vpop.f32.mrf.mxu3  ;;  %v12067_v25 = vpop.f32.mrf.mxu1 }
 0x1aa   : > { %16957 = vst [vmem:[#allocation82_spill] sm:$0xff] %v12063_v11 }
 0x1ab   : > { %16958 = vst [vmem:[#allocation83_spill] sm:$0xff] %v12065_v24  ;;  %v10329_v24 = vld [vmem:[%s16876_s2 + $0xf4] sm:$0xf0] }
 0x1ac   : > { %16959 = vst [vmem:[#allocation84_spill] sm:$0xff] %v12067_v25  ;;  %v12088_v25 = vld [vmem:[%s16877_s3] sm:$0xf] }
 0x1ad   : > { %v12120_v11 = vperm.slane %v12088_v25, 1  ;;  %v12159_v41 = vperm.slane %v12088_v25, 3 }
 0x1b0   : > { %v12069_v39 = vpop.f32.mrf.mxu2  ;;  %v12073_v3 = vpop.f32.mrf.mxu0 }
 0x1b1   : > { %16960 = vst [vmem:[#allocation85_spill] sm:$0xff] %v12069_v39  ;;  %v12071_v57 = vpop.f32.mrf.mxu3  ;;  %v12075_v5 = vpop.f32.mrf.mxu1 }
 0x1b2   : > { %16961 = vst [vmem:[#allocation86_spill] sm:$0xff] %v12071_v57 }
 0x1b3   : > { %16962 = vst [vmem:[#allocation87_spill] sm:$0xff] %v12073_v3  ;;  %v12095_v3 = vperm.slane %v12088_v25, 0 }
 0x1b4   : > { %16963 = vst [vmem:[#allocation88_spill] sm:$0xff] %v12075_v5 }
 0x1b8   : > { %v12079_v51 = vpop.f32.mrf.mxu0  ;;  %v12081_v9 = vpop.f32.mrf.mxu2 }
 0x1b9   : > { %v12077_v23 = vpop.f32.mrf.mxu3  ;;  %16965 = vst [vmem:[#allocation90_spill] sm:$0xff] %v12079_v51  ;;  %v12083_v59 = vpop.f32.mrf.mxu1  ;;  %v8287_v51 = vld [vmem:[%s16876_s2 + $0xe0] sm:$0xf] }
 0x1ba   : > { %16964 = vst [vmem:[#allocation89_spill] sm:$0xff] %v12077_v23  ;;  %v8289_v23 = vld [vmem:[%s16876_s2 + $0xf0] sm:$0xf0] }
 0x1bb   : > { %16966 = vst [vmem:[#allocation91_spill] sm:$0xff] %v12081_v9  ;;  %v10326_v9 = vld [vmem:[%s16876_s2 + $0xe4] sm:$0xf] }
 0x1bc   : > { %16967 = vst [vmem:[#allocation92_spill] sm:$0xff] %v12083_v59  ;;  %v10328_v59 = vld [vmem:[%s16876_s2 + $0xec] sm:$0xf0]  ;;  %v8292_v56 = vor.u32 %v10326_v9, %v8289_v23  ;;  %v10322_v23 = vld [vmem:[%s16876_s2 + $0xc4] sm:$0xf] }
 0x1bd   : > { %v10325_v9 = vld [vmem:[%s16876_s2 + $0xd4] sm:$0xf0] }
 0x1be   : > { %1862 = vmatpush.bf16.msra.mxu1 %v8292_v56  ;;  %v8279_v56 = vld [vmem:[%s16876_s2 + $0xc8] sm:$0xf] }
 0x1c0   : > { %v12092_v57 = vpop.f32.mrf.mxu0 }
 0x1c1   : > { %v12090_v39 = vpop.f32.mrf.mxu3  ;;  %16969 = vst [vmem:[#allocation94_spill] sm:$0xff] %v12092_v57  ;;  %v12097_v5 = vpop.f32.mrf.mxu1  ;;  %v8288_v57 = vor.u32 %v10328_v59, %v8287_v51  ;;  %v10327_v51 = vld [vmem:[%s16876_s2 + $0xec] sm:$0xf]  ;;  %v8297_v59 = vld [vmem:[%s16876_s2 + $0xf8] sm:$0xf0] }
 0x1c2   : > { %16968 = vst [vmem:[#allocation93_spill] sm:$0xff] %v12090_v39  ;;  %v12108_v39 = vpop.f32.mrf.mxu2 }
 0x1c3   : > { %16970 = vst [vmem:[#allocation95_spill] sm:$0xff] %v12097_v5  ;;  %v8295_v5 = vld [vmem:[%s16876_s2 + $0xe8] sm:$0xf]  ;;  %1848 = vmatpush.bf16.msra.mxu0 %v8288_v57 }
 0x1c4   : > { %16971 = vst [vmem:[#allocation96_spill] sm:$0xff] %v12108_v39  ;;  %v8296_v55 = vor.u32 %v10329_v24, %v8295_v5  ;;  %v8300_v39 = vor.u32 %v10327_v51, %v8297_v59  ;;  %v10324_v5 = vld [vmem:[%s16876_s2 + $0xcc] sm:$0xf0]  ;;  %v762_v24 = vadd.f32 %v11762_v53, %v12095_v3  ;;  %v851_v51 = vadd.f32 %v11764_v54, %v12120_v11 }
 0x1c5   : > { %v8272_v57 = vor.u32 %v10324_v5, %v8271_v52  ;;  %v8280_v52 = vor.u32 %v10325_v9, %v8279_v56  ;;  %v10323_v5 = vld [vmem:[%s16876_s2 + $0xcc] sm:$0xf]  ;;  %v10318_v56 = vld [vmem:[%s16876_s2 + $0xa4] sm:$0xf] }
 0x1c6   : > { %1876 = vmatpush.bf16.msra.mxu2 %v8296_v55  ;;  %1890 = vmatpush.bf16.msra.mxu3 %v8300_v39  ;;  %v8273_v55 = vld [vmem:[%s16876_s2 + $0xd0] sm:$0xf0]  ;;  %v8284_v54 = vor.u32 %v10323_v5, %v8281_v47  ;;  %v8263_v47 = vld [vmem:[%s16876_s2 + $0xa8] sm:$0xf]  ;;  %v8265_v5 = vld [vmem:[%s16876_s2 + $0xb8] sm:$0xf0] }
 0x1c7   : > { %v8276_v39 = vor.u32 %v10322_v23, %v8273_v55  ;;  %1849 = vmatpush.bf16.msra.mxu0 %v8272_v57  ;;  %v8255_v23 = vld [vmem:[%s16876_s2 + $0xa0] sm:$0xf]  ;;  %v10320_v55 = vld [vmem:[%s16876_s2 + $0xac] sm:$0xf0] }
 0x1c8   : > { %v1455_v53 = vpop.f32.mrf.mxu0 }
 0x1c9   : > { %v12150_v59 = vpop.f32.mrf.mxu3  ;;  %v1502_v35 = vadd.f32 %v1455_v53, %v762_v24  ;;  %v1469_v40 = vpop.f32.mrf.mxu1  ;;  %1863 = vmatpush.bf16.msra.mxu1 %v8276_v39  ;;  %v8256_v24 = vor.u32 %v10320_v55, %v8255_v23  ;;  %v10321_v53 = vld [vmem:[%s16876_s2 + $0xb4] sm:$0xf0]  ;;  %v10316_v23 = vld [vmem:[%s16876_s2 + $0x8c] sm:$0xf0]  ;;  %v10314_v55 = vld [vmem:[%s16876_s2 + $0x84] sm:$0xf] }
 0x1ca   : > { %16972 = vst [vmem:[#allocation97_spill] sm:$0xff] %v12150_v59  ;;  %v1503_v27 = vadd.f32 %v1469_v40, %v851_v51  ;;  %1877 = vmatpush.bf16.msra.mxu2 %v8280_v52  ;;  %1891 = vmatpush.bf16.msra.mxu3 %v8284_v54  ;;  %v8257_v40 = vld [vmem:[%s16876_s2 + $0xb0] sm:$0xf0]  ;;  %v12182_v39 = vpop.f32.mrf.mxu2  ;;  %v8264_v52 = vor.u32 %v10321_v53, %v8263_v47  ;;  %v8239_v54 = vld [vmem:[%s16876_s2 + $0x80] sm:$0xf] }
 0x1cb   : > { %v8167_v9 = vmul.f32 -1.442695, %v1502_v35  ;;  %v8260_v51 = vor.u32 %v10318_v56, %v8257_v40  ;;  %v10319_v35 = vld [vmem:[%s16876_s2 + $0xac] sm:$0xf]  ;;  %16973 = vst [vmem:[#allocation98_spill] sm:$0xff] %v12182_v39  ;;  %1850 = vmatpush.bf16.msra.mxu0 %v8256_v24  ;;  %v1029_v56 = vadd.f32 %v11780_v62, %v12159_v41  ;;  %v8240_v24 = vor.u32 %v10316_v23, %v8239_v54 }
 0x1cc   : > { %v8169_v57 = vmul.f32 -1.442695, %v1503_v27  ;;  %v8268_v27 = vor.u32 %v10319_v35, %v8265_v5  ;;  %v8241_v40 = vld [vmem:[%s16876_s2 + $0x90] sm:$0xf0]  ;;  %v8247_v47 = vld [vmem:[%s16876_s2 + $0x88] sm:$0xf]  ;;  %v853_v62 = vadd.f32 %v11784_v0, %v12120_v11 }
 0x1cd   : > { %10812 = vpow2.f32 %v8167_v9  ;;  %1864 = vmatpush.bf16.msra.mxu1 %v8260_v51  ;;  %v764_v9 = vadd.f32 %v11782_v63, %v12095_v3  ;;  %v8244_v63 = vor.u32 %v10314_v55, %v8241_v40  ;;  %v8249_v5 = vld [vmem:[%s16876_s2 + $0x98] sm:$0xf0]  ;;  %v8223_v0 = vld [vmem:[%s16876_s2 + $0x60] sm:$0xf]  ;;  %v10310_v55 = vld [vmem:[%s16876_s2 + $0x64] sm:$0xf] }
 0x1ce   : > { %10814 = vpow2.f32 %v8169_v57  ;;  %1878 = vmatpush.bf16.msra.mxu2 %v8264_v52  ;;  %v10317_v57 = vld [vmem:[%s16876_s2 + $0x94] sm:$0xf0]  ;;  %1892 = vmatpush.bf16.msra.mxu3 %v8268_v27  ;;  %v10315_v52 = vld [vmem:[%s16876_s2 + $0x8c] sm:$0xf]  ;;  %v10312_v27 = vld [vmem:[%s16876_s2 + $0x6c] sm:$0xf0] }
 0x1cf   : > { %v8248_v35 = vor.u32 %v10317_v57, %v8247_v47  ;;  %1851 = vmatpush.bf16.msra.mxu0 %v8240_v24  ;;  %v8252_v59 = vor.u32 %v10315_v52, %v8249_v5  ;;  %v12230_v47 = vperm.slane %v12088_v25, 2  ;;  %v10313_v25 = vld [vmem:[%s16876_s2 + $0x74] sm:$0xf0]  ;;  %v8233_v5 = vld [vmem:[%s16876_s2 + $0x78] sm:$0xf0] }
 0x1d0   : > { %v1457_v53 = vpop.f32.mrf.mxu0 }
 0x1d1   : > { %v1497_v51 = vpop.f32.mrf.mxu3  ;;  %v1506_v23 = vadd.f32 %v1457_v53, %v764_v9  ;;  %v1471_v39 = vpop.f32.mrf.mxu1  ;;  %1865 = vmatpush.bf16.msra.mxu1 %v8244_v63  ;;  %v8224_v9 = vor.u32 %v10312_v27, %v8223_v0  ;;  %v10308_v0 = vld [vmem:[%s16876_s2 + $0x4c] sm:$0xf0]  ;;  %v10306_v27 = vld [vmem:[%s16876_s2 + $0x44] sm:$0xf] }
 0x1d2   : > { %v1505_v54 = vadd.f32 %v1497_v51, %v1029_v56  ;;  %v1507_v33 = vadd.f32 %v1471_v39, %v853_v62  ;;  %1879 = vmatpush.bf16.msra.mxu2 %v8248_v35  ;;  %v8225_v39 = vld [vmem:[%s16876_s2 + $0x70] sm:$0xf0]  ;;  %1893 = vmatpush.bf16.msra.mxu3 %v8252_v59  ;;  %v8231_v35 = vld [vmem:[%s16876_s2 + $0x68] sm:$0xf]  ;;  %v1031_v59 = vadd.f32 %v11795_v6, %v12159_v41  ;;  %v1483_v52 = vpop.f32.mrf.mxu2 }
 0x1d3   : > { %v10813_v40 = vpop.eup %10812  ;;  %v8168_v62 = vmul.f32 -1.442695, %v1506_v23  ;;  %v8228_v51 = vor.u32 %v10310_v55, %v8225_v39  ;;  %1852 = vmatpush.bf16.msra.mxu0 %v8224_v9  ;;  %v940_v23 = vadd.f32 %v11778_v60, %v12230_v47  ;;  %v8215_v60 = vld [vmem:[%s16876_s2 + $0x48] sm:$0xf]  ;;  %v8232_v9 = vor.u32 %v10313_v25, %v8231_v35  ;;  %v8191_v35 = vld [vmem:[%s16876_s2 + $0x20] sm:$0xf] }
 0x1d4   : > { %v8171_v56 = vmul.f32 -1.442695, %v1505_v54  ;;  %v10815_v24 = vpop.eup %10814  ;;  %v12232_v57 = vadd.f32 1.0, %v10813_v40  ;;  %v8170_v63 = vmul.f32 -1.442695, %v1507_v33 }
 0x1d5   : > { %v12234_v53 = vadd.f32 1.0, %v10815_v24  ;;  %1866 = vmatpush.bf16.msra.mxu1 %v8228_v51  ;;  %v10311_v33 = vld [vmem:[%s16876_s2 + $0x6c] sm:$0xf]  ;;  %v8207_v54 = vld [vmem:[%s16876_s2 + $0x40] sm:$0xf] }
 0x1d6   : > { %10816 = vpow2.f32 %v8171_v56  ;;  %v8209_v40 = vld [vmem:[%s16876_s2 + $0x50] sm:$0xf0]  ;;  %v1504_v56 = vadd.f32 %v1483_v52, %v940_v23  ;;  %v8236_v39 = vor.u32 %v10311_v33, %v8233_v5  ;;  %v8208_v24 = vor.u32 %v10308_v0, %v8207_v54  ;;  %v10307_v51 = vld [vmem:[%s16876_s2 + $0x4c] sm:$0xf]  ;;  %v10304_v25 = vld [vmem:[%s16876_s2 + $0x2c] sm:$0xf0]  ;;  %1880 = vmatpush.bf16.msra.mxu2 %v8232_v9 }
 0x1d7   : > { %10818 = vrcp.f32 %v12232_v57  ;;  %v8212_v32 = vor.u32 %v10306_v27, %v8209_v40  ;;  %v10302_v23 = vld [vmem:[%s16876_s2 + $0x24] sm:$0xf]  ;;  %v8193_v0 = vld [vmem:[%s16876_s2 + $0x30] sm:$0xf0]  ;;  %v8192_v40 = vor.u32 %v10304_v25, %v8191_v35  ;;  %v1529_v35 = vand.u32 2147483648, %v12232_v57 }
 0x1d8   : > { %10820 = vrcp.f32 %v12234_v53  ;;  %1894 = vmatpush.bf16.msra.mxu3 %v8236_v39  ;;  %1853 = vmatpush.bf16.msra.mxu0 %v8208_v24  ;;  %v8196_v9 = vor.u32 %v10302_v23, %v8193_v0  ;;  %v10305_v39 = vld [vmem:[%s16876_s2 + $0x34] sm:$0xf0]  ;;  %v1527_v24 = vand.u32 2147483647, %v12232_v57  ;;  %vm1523_vm2 = vweird.f32 %v12232_v57 }
 0x1d9   : > { %10822 = vpow2.f32 %v8168_v62  ;;  %v1499_v6 = vpop.f32.mrf.mxu3  ;;  %v10309_v62 = vld [vmem:[%s16876_s2 + $0x54] sm:$0xf0]  ;;  %1867 = vmatpush.bf16.msra.mxu1 %v8212_v32  ;;  %v8201_v32 = vld [vmem:[%s16876_s2 + $0x38] sm:$0xf0]  ;;  %vm1561_vm3 = vweird.f32 %v12234_v53 }
 0x1da   : > { %10824 = vpow2.f32 %v8170_v63  ;;  %v1509_v55 = vadd.f32 %v1499_v6, %v1031_v59  ;;  %v8217_v63 = vld [vmem:[%s16876_s2 + $0x58] sm:$0xf0]  ;;  %v8216_v5 = vor.u32 %v10309_v62, %v8215_v60  ;;  %v8199_v60 = vld [vmem:[%s16876_s2 + $0x28] sm:$0xf]  ;;  %v10303_v62 = vld [vmem:[%s16876_s2 + $0x2c] sm:$0xf] }
 0x1db   : > { %v8220_v54 = vor.u32 %v10307_v51, %v8217_v63  ;;  %v8200_v31 = vor.u32 %v10305_v39, %v8199_v60  ;;  %v8204_v22 = vor.u32 %v10303_v62, %v8201_v32  ;;  %v942_v60 = vadd.f32 %v11792_v4, %v12230_v47 }
 0x1dc   : > { %v10817_v59 = vpop.eup %10816  ;;  %v8172_v6 = vmul.f32 -1.442695, %v1509_v55  ;;  %1881 = vmatpush.bf16.msra.mxu2 %v8216_v5  ;;  %1854 = vmatpush.bf16.msra.mxu0 %v8192_v40  ;;  %v1485_v5 = vpop.f32.mrf.mxu2  ;;  %v1530_v40 = vor.u32 1.1754944e-38, %v1529_v35  ;;  %vm1528_vm5 = vcmp.eq.f32.partialorder %v1527_v24, 8.507059e+37 }
 0x1dd   : > { %v12284_v52 = vpop.eup %10818  ;;  %v12286_v33 = vadd.f32 1.0, %v10817_v59  ;;  %1895 = vmatpush.bf16.msra.mxu3 %v8220_v54  ;;  %1868 = vmatpush.bf16.msra.mxu1 %v8196_v9 }
 0x1de   : > { %v10821_v27 = vpop.eup %10820  ;;  %v1519_v55 = vmul.f32 %v12284_v52, %v12232_v57  ;;  %10826 = vpow2.f32 %v8172_v6  ;;  %vm1524_vm0 = vweird.f32 %v12284_v52 }
 0x1df   : > { %v10823_v51 = vpop.eup %10822  ;;  %v1557_v63 = vmul.f32 %v10821_v27, %v12234_v53  ;;  %10828 = vtanh.f32 %v1504_v56  ;;  %v1567_v56 = vand.u32 2147483648, %v12234_v53  ;;  %vm1562_vm1 = vweird.f32 %v10821_v27  ;;  %vm1525_vm4 = vmor %vm1523_vm2, %vm1524_vm0 }
 0x1e0   : > { %v10825_v59 = vpop.eup %10824  ;;  %v1520_v6 = vsub.f32 1.0, %v1519_v55  ;;  %10830 = vrcp.f32 %v12286_v33  ;;  %v12312_v25 = vadd.f32 1.0, %v10823_v51  ;;  %v1565_v51 = vand.u32 2147483647, %v12234_v53  ;;  %1882 = vmatpush.bf16.msra.mxu2 %v8200_v31  ;;  %vm1563_vm6 = vmor %vm1561_vm3, %vm1562_vm1 }
 0x1e1   : > { %v1558_v23 = vsub.f32 1.0, %v1557_v63  ;;  %v12314_v0 = vadd.f32 1.0, %v10825_v59  ;;  %1896 = vmatpush.bf16.msra.mxu3 %v8204_v22  ;;  %v1568_v59 = vor.u32 1.1754944e-38, %v1567_v56  ;;  %v10300_v22 = vld [vmem:[%s16876_s2 + $0xc] sm:$0xf0]  ;;  %vm1601_vm2 = vweird.f32 %v12286_v33 }
 0x1e2   : > { %v1521_v21 = vmul.f32 %v12284_v52, %v1520_v6  ;;  %10832 = vrcp.f32 %v12312_v25  ;;  %vm1566_vm7 = vcmp.eq.f32.partialorder %v1565_v51, 8.507059e+37  ;;  %v8175_v6 = vld [vmem:[%s16876_s2] sm:$0xf]  ;;  %v8183_v51 = vld [vmem:[%s16876_s2 + $0x8] sm:$0xf]  ;;  %vm1538_vm10 = vweird.f32 %v12312_v25 }
 0x1e3   : > { %v1559_v55 = vmul.f32 %v10821_v27, %v1558_v23  ;;  %10834 = vrcp.f32 %v12314_v0  ;;  %v1542_v17 = vand.u32 2147483647, %v12312_v25  ;;  %vm1576_vm11 = vweird.f32 %v12314_v0 }
 0x1e4   : > { %v10827_v54 = vpop.eup %10826  ;;  %v1522_v39 = vadd.f32 %v12284_v52, %v1521_v21  ;;  %v1508_v21 = vadd.f32 %v1485_v5, %v942_v60  ;;  %v10301_v5 = vld [vmem:[%s16876_s2 + $0x14] sm:$0xf0]  ;;  %v1582_v60 = vand.u32 2147483648, %v12314_v0 }
 0x1e5   : > { %v10829_v62 = vpop.eup %10828  ;;  %v1560_v9 = vadd.f32 %v10821_v27, %v1559_v55  ;;  %v12329_v63 = vadd.f32 1.0, %v10827_v54  ;;  %vm1543_vm13 = vcmp.eq.f32.partialorder %v1542_v17, 8.507059e+37 }
 0x1e6   : > { %v12331_v32 = vpop.eup %10830  ;;  %v1526_v4 = vsel %vm1525_vm4, %v12284_v52, %v1522_v39  ;;  %v10298_v52 = vld [vmem:[%s16876_s2 + $0x4] sm:$0xf]  ;;  %v10299_v39 = vld [vmem:[%s16876_s2 + $0xc] sm:$0xf] }
 0x1e7   : > { %v1531_v57 = vsel %vm1528_vm5, %v1530_v40, %v1526_v4  ;;  %v1564_v53 = vsel %vm1563_vm6, %v10821_v27, %v1560_v9  ;;  %10836 = vrcp.f32 %v12329_v63  ;;  %v8177_v27 = vld [vmem:[%s16876_s2 + $0x10] sm:$0xf0]  ;;  %v1597_v9 = vmul.f32 %v12331_v32, %v12286_v33 }
 0x1e8   : > { %v10833_v35 = vpop.eup %10832  ;;  %v1569_v23 = vsel %vm1566_vm7, %v1568_v59, %v1564_v53  ;;  %v1630_v31 = vmul.f32 %v10829_v62, %v1531_v57  ;;  %10838 = vtanh.f32 %v1508_v21  ;;  %v8185_v62 = vld [vmem:[%s16876_s2 + $0x18] sm:$0xf0]  ;;  %v8176_v4 = vor.u32 %v10300_v22, %v8175_v6 }
 0x1e9   : > { %v10835_v24 = vpop.eup %10834  ;;  %v1628_v56 = vmul.f32 0.0, %v1569_v23  ;;  %v1534_v55 = vmul.f32 %v10833_v35, %v12312_v25  ;;  %v1544_v53 = vand.u32 2147483648, %v12312_v25  ;;  %v8180_v23 = vor.u32 %v10298_v52, %v8177_v27 }
 0x1ea   : > { %v1572_v54 = vmul.f32 %v10835_v24, %v12314_v0  ;;  %v8184_v21 = vor.u32 %v10301_v5, %v8183_v51  ;;  %vm1539_vm8 = vweird.f32 %v10833_v35  ;;  %1855 = vmatpush.bf16.msra.mxu0 %v8176_v4  ;;  %v8188_v58 = vor.u32 %v10299_v39, %v8185_v62 }
 0x1eb   : > { %v12363_v40 = vadd.f32 %v1630_v31, %v1628_v56  ;;  %v1535_v59 = vsub.f32 1.0, %v1534_v55  ;;  %vm1577_vm9 = vweird.f32 %v10835_v24  ;;  %v1580_v31 = vand.u32 2147483647, %v12314_v0  ;;  %1869 = vmatpush.bf16.msra.mxu1 %v8180_v23  ;;  %vm1540_vm12 = vmor %vm1538_vm10, %vm1539_vm8 }
 0x1ec   : > { %v1573_v57 = vsub.f32 1.0, %v1572_v54  ;;  %1883 = vmatpush.bf16.msra.mxu2 %v8184_v21  ;;  %v1598_v56 = vsub.f32 1.0, %v1597_v9  ;;  %1897 = vmatpush.bf16.msra.mxu3 %v8188_v58  ;;  %v1545_v27 = vor.u32 1.1754944e-38, %v1544_v53  ;;  %v1583_v51 = vor.u32 1.1754944e-38, %v1582_v60  ;;  %vm1578_vm14 = vmor %vm1576_vm11, %vm1577_vm9 }
 0x1ed   : > { %v1536_v10 = vmul.f32 %v10833_v35, %v1535_v59  ;;  %v10837_v2 = vpop.eup %10836  ;;  %vm1581_vm15 = vcmp.eq.f32.partialorder %v1580_v31, 8.507059e+37  ;;  %10840 = vtanh.f32 %v12363_v40  ;;  %vm1602_vm0 = vweird.f32 %v12331_v32 }
 0x1ee   : > { %v1574_v1 = vmul.f32 %v10835_v24, %v1573_v57  ;;  %v1612_v22 = vmul.f32 %v10837_v2, %v12329_v63  ;;  %v10839_v52 = vpop.eup %10838  ;;  %v1599_v25 = vmul.f32 %v12331_v32, %v1598_v56  ;;  %vm1617_vm1 = vweird.f32 %v10837_v2  ;;  %vm1603_vm3 = vmor %vm1601_vm2, %vm1602_vm0 }
 0x1ef   : > { %v1537_v6 = vadd.f32 %v10833_v35, %v1536_v10  ;;  %v1605_v60 = vand.u32 2147483647, %v12286_v33  ;;  %vm1616_vm4 = vweird.f32 %v12329_v63  ;;  %v1620_v4 = vand.u32 2147483647, %v12329_v63 }
 0x1f0   : > { %v1575_v55 = vadd.f32 %v10835_v24, %v1574_v1  ;;  %v1613_v54 = vsub.f32 1.0, %v1612_v22  ;;  %v1600_v17 = vadd.f32 %v12331_v32, %v1599_v25  ;;  %vm1618_vm5 = vmor %vm1616_vm4, %vm1617_vm1 }
 0x1f1   : > { %v1541_v5 = vsel %vm1540_vm12, %v10833_v35, %v1537_v6  ;;  %v1607_v35 = vand.u32 2147483648, %v12286_v33  ;;  %vm1606_vm6 = vcmp.eq.f32.partialorder %v1605_v60, 8.507059e+37  ;;  %vm1621_vm7 = vcmp.eq.f32.partialorder %v1620_v4, 8.507059e+37  ;;  %v8421_v33 = vld [vmem:[%s16876_s2 + $0xe0] sm:$0xf] }
 0x1f2   : > { %v1546_v39 = vsel %vm1543_vm13, %v1545_v27, %v1541_v5  ;;  %v1579_v10 = vsel %vm1578_vm14, %v10835_v24, %v1575_v55  ;;  %v1614_v9 = vmul.f32 %v10837_v2, %v1613_v54  ;;  %v1622_v24 = vand.u32 2147483648, %v12329_v63  ;;  %v10358_v63 = vld [vmem:[%s16876_s2 + $0xe4] sm:$0xf]  ;;  %v8429_v5 = vld [vmem:[%s16876_s2 + $0xe8] sm:$0xf] }
 0x1f3   : > { %v1584_v62 = vsel %vm1581_vm15, %v1583_v51, %v1579_v10  ;;  %v1631_v58 = vmul.f32 %v10839_v52, %v1546_v39  ;;  %v1604_v57 = vsel %vm1603_vm3, %v12331_v32, %v1600_v17  ;;  %v10841_v23 = vpop.eup %10840  ;;  %v1608_v21 = vor.u32 1.1754944e-38, %v1607_v35  ;;  %v8423_v51 = vld [vmem:[%s16876_s2 + $0xf0] sm:$0xf0]  ;;  %v10361_v54 = vld [vmem:[%s16876_s2 + $0xf4] sm:$0xf0] }
 0x1f4   : > { %v1629_v59 = vmul.f32 0.0, %v1584_v62  ;;  %v1615_v0 = vadd.f32 %v10837_v2, %v1614_v9  ;;  %v1623_v31 = vor.u32 1.1754944e-38, %v1622_v24  ;;  %v767_v39 = vadd.f32 %v11797_v7, %v12095_v3  ;;  %v8431_v9 = vld [vmem:[%s16876_s2 + $0xf8] sm:$0xf0]  ;;  %v8405_v7 = vld [vmem:[%s16876_s2 + $0xc0] sm:$0xf] }
 0x1f5   : > { %v1609_v6 = vsel %vm1606_vm6, %v1608_v21, %v1604_v57  ;;  %v856_v10 = vadd.f32 %v11799_v8, %v12120_v11  ;;  %v8426_v25 = vor.u32 %v10358_v63, %v8423_v51  ;;  %v8430_v62 = vor.u32 %v10361_v54, %v8429_v5  ;;  %v10356_v8 = vld [vmem:[%s16876_s2 + $0xcc] sm:$0xf0]  ;;  %v10354_v60 = vld [vmem:[%s16876_s2 + $0xc4] sm:$0xf]  ;;  %v8407_v57 = vld [vmem:[%s16876_s2 + $0xd0] sm:$0xf0] }
 0x1f6   : > { %v12378_v1 = vadd.f32 %v1631_v58, %v1629_v59  ;;  %v1619_v53 = vsel %vm1618_vm5, %v10837_v2, %v1615_v0  ;;  %v1636_v52 = vmul.f32 %v10841_v23, %v1609_v6  ;;  %v10360_v2 = vld [vmem:[%s16876_s2 + $0xec] sm:$0xf0]  ;;  %v10359_v58 = vld [vmem:[%s16876_s2 + $0xec] sm:$0xf]  ;;  %v8406_v4 = vor.u32 %v10356_v8, %v8405_v7  ;;  %v10357_v23 = vld [vmem:[%s16876_s2 + $0xd4] sm:$0xf0] }
 0x1f7   : > { %v1624_v22 = vsel %vm1621_vm7, %v1623_v31, %v1619_v53  ;;  %v8422_v32 = vor.u32 %v10360_v2, %v8421_v33  ;;  %v8434_v0 = vor.u32 %v10359_v58, %v8431_v9  ;;  %2264 = vmatpush.bf16.msrb.mxu1 %v8426_v25  ;;  %2278 = vmatpush.bf16.msrb.mxu2 %v8430_v62  ;;  %v8413_v53 = vld [vmem:[%s16876_s2 + $0xc8] sm:$0xf]  ;;  %v10352_v33 = vld [vmem:[%s16876_s2 + $0xac] sm:$0xf0]  ;;  %v10350_v2 = vld [vmem:[%s16876_s2 + $0xa4] sm:$0xf] }
 0x1f8   : > { %10842 = vtanh.f32 %v12378_v1  ;;  %v8414_v6 = vor.u32 %v10357_v23, %v8413_v53  ;;  %v1034_v63 = vadd.f32 %v11809_v13, %v12159_v41  ;;  %v8391_v51 = vld [vmem:[%s16876_s2 + $0xb0] sm:$0xf0]  ;;  %v8397_v5 = vld [vmem:[%s16876_s2 + $0xa8] sm:$0xf]  ;;  %v10353_v54 = vld [vmem:[%s16876_s2 + $0xb4] sm:$0xf0]  ;;  %v858_v13 = vadd.f32 %v11813_v15, %v12120_v11 }
 0x1f9   : > { %2250 = vmatpush.bf16.msrb.mxu0 %v8422_v32  ;;  %2292 = vmatpush.bf16.msrb.mxu3 %v8434_v0  ;;  %v8394_v25 = vor.u32 %v10350_v2, %v8391_v51  ;;  %v8398_v62 = vor.u32 %v10353_v54, %v8397_v5  ;;  %v10351_v58 = vld [vmem:[%s16876_s2 + $0xac] sm:$0xf]  ;;  %v8399_v9 = vld [vmem:[%s16876_s2 + $0xb8] sm:$0xf0]  ;;  %v8373_v15 = vld [vmem:[%s16876_s2 + $0x80] sm:$0xf] }
 0x1fa   : > { %v10348_v7 = vld [vmem:[%s16876_s2 + $0x8c] sm:$0xf0]  ;;  %v10346_v8 = vld [vmem:[%s16876_s2 + $0x84] sm:$0xf]  ;;  %v8381_v53 = vld [vmem:[%s16876_s2 + $0x88] sm:$0xf] }
 0x1fb   : > { %2279 = vmatpush.bf16.msrb.mxu2 %v8414_v6  ;;  %v10349_v6 = vld [vmem:[%s16876_s2 + $0x94] sm:$0xf0]  ;;  %v8357_v51 = vld [vmem:[%s16876_s2 + $0x60] sm:$0xf]  ;;  %v10344_v5 = vld [vmem:[%s16876_s2 + $0x6c] sm:$0xf0] }
 0x1fc   : > { %v10342_v54 = vld [vmem:[%s16876_s2 + $0x64] sm:$0xf] }
 0x1fd   : > { %2251 = vmatpush.bf16.msrb.mxu0 %v8406_v4  ;;  %v8374_v4 = vor.u32 %v10348_v7, %v8373_v15  ;;  %v8341_v15 = vld [vmem:[%s16876_s2 + $0x40] sm:$0xf]  ;;  %v10338_v7 = vld [vmem:[%s16876_s2 + $0x44] sm:$0xf] }
 0x1fe   : > { %v10843_v56 = vpop.eup %10842 }
 0x1ff   : > { %v1637_v27 = vmul.f32 %v10843_v56, %v1624_v22  ;;  %v8410_v56 = vor.u32 %v10354_v60, %v8407_v57  ;;  %v10355_v22 = vld [vmem:[%s16876_s2 + $0xcc] sm:$0xf]  ;;  %2280 = vmatpush.bf16.msrb.mxu2 %v8398_v62  ;;  %v8375_v57 = vld [vmem:[%s16876_s2 + $0x90] sm:$0xf0]  ;;  %v10345_v62 = vld [vmem:[%s16876_s2 + $0x74] sm:$0xf0] }
 0x201   : > { %v1655_v55 = vpack.c.bf16 %v1637_v27, %v1636_v52  ;;  %v8415_v52 = vld [vmem:[%s16876_s2 + $0xd8] sm:$0xf0]  ;;  %2265 = vmatpush.bf16.msrb.mxu1 %v8410_v56  ;;  %v8378_v56 = vor.u32 %v10346_v8, %v8375_v57  ;;  %v8343_v57 = vld [vmem:[%s16876_s2 + $0x50] sm:$0xf0] }
 0x202   : > { %v8418_v27 = vor.u32 %v10355_v22, %v8415_v52 }
 0x203   : > { %1856 = vmatmul.bf16.vlgmr.msra.gmra.mxu0 %v1655_v55  ;;  %1870 = vmatmul.bf16.vlgmr.msra.gmra.mxu1 %v1655_v55 }
 0x204   : > { %1884 = vmatmul.bf16.vlgmr.msra.gmra.mxu2 %v1655_v55  ;;  %1898 = vmatmul.bf16.vlgmr.msra.gmra.mxu3 %v1655_v55  ;;  %v8389_v55 = vld [vmem:[%s16876_s2 + $0xa0] sm:$0xf] }
 0x205   : > { %v8390_v32 = vor.u32 %v10352_v33, %v8389_v55  ;;  %2293 = vmatpush.bf16.msrb.mxu3 %v8418_v27  ;;  %2266 = vmatpush.bf16.msrb.mxu1 %v8394_v25  ;;  %v8382_v27 = vor.u32 %v10349_v6, %v8381_v53  ;;  %v10347_v55 = vld [vmem:[%s16876_s2 + $0x8c] sm:$0xf]  ;;  %v8383_v33 = vld [vmem:[%s16876_s2 + $0x98] sm:$0xf0]  ;;  %v8365_v25 = vld [vmem:[%s16876_s2 + $0x68] sm:$0xf] }
 0x207   : > { %2252 = vmatpush.bf16.msrb.mxu0 %v8390_v32  ;;  %v8386_v32 = vor.u32 %v10347_v55, %v8383_v33  ;;  %2281 = vmatpush.bf16.msrb.mxu2 %v8382_v27 }
 0x209   : > { %2267 = vmatpush.bf16.msrb.mxu1 %v8378_v56  ;;  %v8346_v56 = vor.u32 %v10338_v7, %v8343_v57  ;;  %v8327_v7 = vld [vmem:[%s16876_s2 + $0x30] sm:$0xf0] }
 0x20b   : > { %2253 = vmatpush.bf16.msrb.mxu0 %v8374_v4 }
 0x280   : > { %v1857_v59 = vpop.f32.mrf.mxu0  ;;  %v1871_v17 = vpop.f32.mrf.mxu1 }
 0x281   : > { %v1904_v35 = vadd.f32 %v1857_v59, %v767_v39  ;;  %v1905_v24 = vadd.f32 %v1871_v17, %v856_v10  ;;  %v769_v39 = vadd.f32 %v11811_v14, %v12095_v3  ;;  %v8402_v14 = vor.u32 %v10351_v58, %v8399_v9 }
 0x282   : > { %v1036_v58 = vadd.f32 %v11818_v18, %v12159_v41  ;;  %v8358_v9 = vor.u32 %v10344_v5, %v8357_v51  ;;  %v10340_v18 = vld [vmem:[%s16876_s2 + $0x4c] sm:$0xf0] }
 0x283   : > { %v8301_v21 = vmul.f32 -1.442695, %v1904_v35  ;;  %v8303_v31 = vmul.f32 -1.442695, %v1905_v24  ;;  %2294 = vmatpush.bf16.msrb.mxu3 %v8402_v14  ;;  %v8342_v4 = vor.u32 %v10340_v18, %v8341_v15  ;;  %v10334_v18 = vld [vmem:[%s16876_s2 + $0x24] sm:$0xf] }
 0x284   : > { %2254 = vmatpush.bf16.msrb.mxu0 %v8358_v9 }
 0x285   : > { %10844 = vpow2.f32 %v8301_v21 }
 0x286   : > { %10846 = vpow2.f32 %v8303_v31 }
 0x287   : > { %v1899_v10 = vpop.f32.mrf.mxu3  ;;  %2295 = vmatpush.bf16.msrb.mxu3 %v8386_v32 }
 0x288   : > { %v1907_v59 = vadd.f32 %v1899_v10, %v1034_v63  ;;  %v1859_v17 = vpop.f32.mrf.mxu0  ;;  %v1873_v0 = vpop.f32.mrf.mxu1  ;;  %2255 = vmatpush.bf16.msrb.mxu0 %v8342_v4 }
 0x289   : > { %v1908_v35 = vadd.f32 %v1859_v17, %v769_v39  ;;  %v1909_v24 = vadd.f32 %v1873_v0, %v858_v13  ;;  %v1885_v63 = vpop.f32.mrf.mxu2  ;;  %v8359_v39 = vld [vmem:[%s16876_s2 + $0x70] sm:$0xf0]  ;;  %v945_v13 = vadd.f32 %v11807_v12, %v12230_v47  ;;  %v8367_v12 = vld [vmem:[%s16876_s2 + $0x78] sm:$0xf0] }
 0x28a   : > { %v8305_v60 = vmul.f32 -1.442695, %v1907_v59  ;;  %v10343_v59 = vld [vmem:[%s16876_s2 + $0x6c] sm:$0xf]  ;;  %v8362_v14 = vor.u32 %v10342_v54, %v8359_v39 }
 0x28b   : > { %v10845_v23 = vpop.eup %10844  ;;  %v8302_v21 = vmul.f32 -1.442695, %v1908_v35  ;;  %v8304_v31 = vmul.f32 -1.442695, %v1909_v24  ;;  %v1906_v0 = vadd.f32 %v1885_v63, %v945_v13  ;;  %v8366_v35 = vor.u32 %v10345_v62, %v8365_v25  ;;  %v8349_v25 = vld [vmem:[%s16876_s2 + $0x48] sm:$0xf] }
 0x28c   : > { %v10847_v22 = vpop.eup %10846  ;;  %v12489_v52 = vadd.f32 1.0, %v10845_v23  ;;  %10848 = vpow2.f32 %v8305_v60  ;;  %v8370_v24 = vor.u32 %v10343_v59, %v8367_v12  ;;  %2268 = vmatpush.bf16.msrb.mxu1 %v8362_v14  ;;  %v10341_v62 = vld [vmem:[%s16876_s2 + $0x54] sm:$0xf0]  ;;  %v10339_v59 = vld [vmem:[%s16876_s2 + $0x4c] sm:$0xf] }
 0x28d   : > { %v12497_v2 = vadd.f32 1.0, %v10847_v22  ;;  %10850 = vpow2.f32 %v8302_v21  ;;  %2282 = vmatpush.bf16.msrb.mxu2 %v8366_v35  ;;  %v947_v22 = vadd.f32 %v11815_v16, %v12230_v47  ;;  %v8325_v14 = vld [vmem:[%s16876_s2 + $0x20] sm:$0xf]  ;;  %v10336_v35 = vld [vmem:[%s16876_s2 + $0x2c] sm:$0xf0] }
 0x28e   : > { %10852 = vrcp.f32 %v12489_v52  ;;  %v1929_v23 = vand.u32 2147483647, %v12489_v52  ;;  %v1931_v55 = vand.u32 2147483648, %v12489_v52  ;;  %2296 = vmatpush.bf16.msrb.mxu3 %v8370_v24  ;;  %vm1925_vm12 = vweird.f32 %v12489_v52 }
 0x28f   : > { %10854 = vrcp.f32 %v12497_v2  ;;  %v1901_v10 = vpop.f32.mrf.mxu3  ;;  %v1969_v32 = vand.u32 2147483648, %v12497_v2  ;;  %v1967_v51 = vand.u32 2147483647, %v12497_v2  ;;  %vm1963_vm11 = vweird.f32 %v12497_v2 }
 0x290   : > { %10856 = vpow2.f32 %v8304_v31  ;;  %v1911_v60 = vadd.f32 %v1901_v10, %v1036_v58  ;;  %vm12563_vm9 = vcmp.eq.f32.partialorder %v1929_v23, 8.507059e+37  ;;  %2269 = vmatpush.bf16.msrb.mxu1 %v8346_v56  ;;  %v1932_v9 = vor.u32 1.1754944e-38, %v1931_v55  ;;  %v10330_v10 = vld [vmem:[%s16876_s2 + $0x4] sm:$0xf] }
 0x291   : > { %10858 = vtanh.f32 %v1906_v0  ;;  %v1887_v16 = vpop.f32.mrf.mxu2  ;;  %v8351_v0 = vld [vmem:[%s16876_s2 + $0x58] sm:$0xf0]  ;;  %v1970_v24 = vor.u32 1.1754944e-38, %v1969_v32  ;;  %vm12612_vm15 = vcmp.eq.f32.partialorder %v1967_v51, 8.507059e+37  ;;  %v10337_v32 = vld [vmem:[%s16876_s2 + $0x34] sm:$0xf0] }
 0x292   : > { %v10849_v17 = vpop.eup %10848  ;;  %v8306_v39 = vmul.f32 -1.442695, %v1911_v60  ;;  %v10335_v51 = vld [vmem:[%s16876_s2 + $0x2c] sm:$0xf] }
 0x293   : > { %v10851_v8 = vpop.eup %10850  ;;  %v12544_v21 = vadd.f32 1.0, %v10849_v17  ;;  %v1910_v17 = vadd.f32 %v1887_v16, %v947_v22  ;;  %v8333_v22 = vld [vmem:[%s16876_s2 + $0x28] sm:$0xf] }
 0x294   : > { %v12541_v53 = vpop.eup %10852  ;;  %v12546_v31 = vadd.f32 1.0, %v10851_v8 }
 0x295   : > { %v12548_v6 = vpop.eup %10854  ;;  %v1921_v27 = vmul.f32 %v12541_v53, %v12489_v52  ;;  %vm1926_vm8 = vweird.f32 %v12541_v53  ;;  %v10331_v52 = vld [vmem:[%s16876_s2 + $0xc] sm:$0xf] }
 0x296   : > { %v10857_v33 = vpop.eup %10856  ;;  %v1959_v63 = vmul.f32 %v12548_v6, %v12497_v2  ;;  %10860 = vrcp.f32 %v12546_v31  ;;  %vm1964_vm10 = vweird.f32 %v12548_v6  ;;  %vm12595_vm13 = vmor %vm1925_vm12, %vm1926_vm8  ;;  %v8350_v2 = vor.u32 %v10341_v62, %v8349_v25  ;;  %v8309_v25 = vld [vmem:[%s16876_s2] sm:$0xf]  ;;  %v10332_v62 = vld [vmem:[%s16876_s2 + $0xc] sm:$0xf0] }
 0x297   : > { %v1922_v5 = vsub.f32 1.0, %v1921_v27  ;;  %v12560_v54 = vadd.f32 1.0, %v10857_v33  ;;  %10862 = vrcp.f32 %v12544_v21  ;;  %v10859_v8 = vpop.eup %10858  ;;  %vm12607_vm14 = vmor %vm1963_vm11, %vm1964_vm10  ;;  %v1944_v56 = vand.u32 2147483647, %v12546_v31 }
 0x298   : > { %v1960_v13 = vsub.f32 1.0, %v1959_v63  ;;  %2283 = vmatpush.bf16.msrb.mxu2 %v8350_v2  ;;  %v8354_v33 = vor.u32 %v10339_v59, %v8351_v0  ;;  %v8326_v63 = vor.u32 %v10336_v35, %v8325_v14  ;;  %vm1940_vm0 = vweird.f32 %v12546_v31  ;;  %v10333_v0 = vld [vmem:[%s16876_s2 + $0x14] sm:$0xf0]  ;;  %v8319_v2 = vld [vmem:[%s16876_s2 + $0x18] sm:$0xf0] }
 0x299   : > { %v1923_v58 = vmul.f32 %v12541_v53, %v1922_v5  ;;  %10864 = vrcp.f32 %v12560_v54  ;;  %v1984_v23 = vand.u32 2147483648, %v12560_v54  ;;  %v8335_v5 = vld [vmem:[%s16876_s2 + $0x38] sm:$0xf0]  ;;  %v8330_v59 = vor.u32 %v10334_v18, %v8327_v7 }
 0x29a   : > { %v1961_v12 = vmul.f32 %v12548_v6, %v1960_v13  ;;  %10866 = vpow2.f32 %v8306_v39  ;;  %2297 = vmatpush.bf16.msrb.mxu3 %v8354_v33  ;;  %2256 = vmatpush.bf16.msrb.mxu0 %v8326_v63  ;;  %v8310_v60 = vor.u32 %v10332_v62, %v8309_v25  ;;  %vm1978_vm3 = vweird.f32 %v12560_v54 }
 0x29b   : > { %v1924_v15 = vadd.f32 %v12541_v53, %v1923_v58  ;;  %10868 = vtanh.f32 %v1910_v17  ;;  %v8317_v17 = vld [vmem:[%s16876_s2 + $0x8] sm:$0xf]  ;;  %2270 = vmatpush.bf16.msrb.mxu1 %v8330_v59  ;;  %vm1945_vm5 = vcmp.eq.f32.partialorder %v1944_v56, 8.507059e+37  ;;  %v2009_v56 = vand.u32 2147483648, %v12544_v21 }
 0x29c   : > { %v1962_v4 = vadd.f32 %v12548_v6, %v1961_v12  ;;  %v12621_v27 = vpop.eup %10860  ;;  %v8311_v12 = vld [vmem:[%s16876_s2 + $0x10] sm:$0xf0] }
 0x29d   : > { %v1928_v55 = vsel %vm12595_vm13, %v12541_v53, %v1924_v15  ;;  %v12635_v16 = vpop.eup %10862  ;;  %v1936_v13 = vmul.f32 %v12621_v27, %v12546_v31  ;;  %v1946_v15 = vand.u32 2147483648, %v12546_v31  ;;  %vm1941_vm1 = vweird.f32 %v12621_v27 }
 0x29e   : > { %v1933_v53 = vsel %vm12563_vm9, %v1932_v9, %v1928_v55  ;;  %v1966_v39 = vsel %vm12607_vm14, %v12548_v6, %v1962_v4  ;;  %v1999_v7 = vmul.f32 %v12635_v16, %v12544_v21  ;;  %v8314_v63 = vor.u32 %v10330_v10, %v8311_v12  ;;  %2257 = vmatpush.bf16.msrb.mxu0 %v8310_v60  ;;  %vm1942_vm4 = vmor %vm1940_vm0, %vm1941_vm1 }
 0x29f   : > { %v10865_v58 = vpop.eup %10864  ;;  %v1971_v6 = vsel %vm12612_vm15, %v1970_v24, %v1966_v39  ;;  %v2032_v9 = vmul.f32 %v10859_v8, %v1933_v53  ;;  %v1937_v35 = vsub.f32 1.0, %v1936_v13  ;;  %v8334_v8 = vor.u32 %v10337_v32, %v8333_v22 }
 0x2a0   : > { %v2030_v14 = vmul.f32 %v1971_v6, %v12363_v40  ;;  %v1974_v24 = vmul.f32 %v10865_v58, %v12560_v54  ;;  %v10867_v18 = vpop.eup %10866  ;;  %v8338_v40 = vor.u32 %v10335_v51, %v8335_v5  ;;  %v8318_v53 = vor.u32 %v10333_v0, %v8317_v17  ;;  %2271 = vmatpush.bf16.msrb.mxu1 %v8314_v63 }
 0x2a1   : > { %v1938_v55 = vmul.f32 %v12621_v27, %v1937_v35  ;;  %v1997_v33 = vadd.f32 1.0, %v10867_v18  ;;  %2284 = vmatpush.bf16.msrb.mxu2 %v8334_v8  ;;  %v8322_v39 = vor.u32 %v10331_v52, %v8319_v2  ;;  %v10869_v13 = vpop.eup %10868  ;;  %vm1979_vm2 = vweird.f32 %v10865_v58 }
 0x2a2   : > { %v12676_v4 = vadd.f32 %v2032_v9, %v2030_v14  ;;  %v1975_v57 = vsub.f32 1.0, %v1974_v24  ;;  %2298 = vmatpush.bf16.msrb.mxu3 %v8338_v40  ;;  %v1982_v32 = vand.u32 2147483647, %v12560_v54  ;;  %v1947_v51 = vor.u32 1.1754944e-38, %v1946_v15  ;;  %vm1980_vm6 = vmor %vm1978_vm3, %vm1979_vm2 }
 0x2a3   : > { %v1939_v22 = vadd.f32 %v12621_v27, %v1938_v55  ;;  %10870 = vrcp.f32 %v1997_v33  ;;  %v2000_v5 = vsub.f32 1.0, %v1999_v7  ;;  %v1985_v10 = vor.u32 1.1754944e-38, %v1984_v23 }
 0x2a4   : > { %v1976_v6 = vmul.f32 %v10865_v58, %v1975_v57  ;;  %vm1983_vm7 = vcmp.eq.f32.partialorder %v1982_v32, 8.507059e+37  ;;  %10872 = vtanh.f32 %v12676_v4  ;;  %vm2004_vm8 = vweird.f32 %v12635_v16  ;;  %v10393_v32 = vld [vmem:[%s16876_s2 + $0xf4] sm:$0xf0] }
 0x2a5   : > { %v1943_v25 = vsel %vm1942_vm4, %v12621_v27, %v1939_v22  ;;  %2285 = vmatpush.bf16.msrb.mxu2 %v8318_v53  ;;  %v2001_v0 = vmul.f32 %v12635_v16, %v2000_v5  ;;  %vm2003_vm9 = vweird.f32 %v12544_v21  ;;  %v2022_v15 = vand.u32 2147483647, %v1997_v33  ;;  %v8563_v22 = vld [vmem:[%s16876_s2 + $0xe8] sm:$0xf] }
 0x2a6   : > { %v1977_v62 = vadd.f32 %v10865_v58, %v1976_v6  ;;  %v1948_v9 = vsel %vm1945_vm5, %v1947_v51, %v1943_v25  ;;  %2299 = vmatpush.bf16.msrb.mxu3 %v8322_v39  ;;  %vm2005_vm11 = vmor %vm2003_vm9, %vm2004_vm8  ;;  %vm2018_vm12 = vweird.f32 %v1997_v33  ;;  %v2010_v7 = vor.u32 1.1754944e-38, %v2009_v56  ;;  %v10390_v39 = vld [vmem:[%s16876_s2 + $0xe4] sm:$0xf]  ;;  %v8557_v6 = vld [vmem:[%s16876_s2 + $0xf0] sm:$0xf0] }
 0x2a7   : > { %v2033_v12 = vmul.f32 %v10869_v13, %v1948_v9  ;;  %v2002_v54 = vadd.f32 %v12635_v16, %v2001_v0  ;;  %vm2023_vm15 = vcmp.eq.f32.partialorder %v2022_v15, 8.507059e+37  ;;  %v772_v51 = vadd.f32 %v11820_v19, %v12095_v3  ;;  %v8565_v9 = vld [vmem:[%s16876_s2 + $0xf8] sm:$0xf0]  ;;  %v8539_v19 = vld [vmem:[%s16876_s2 + $0xc0] sm:$0xf] }
 0x2a8   : > { %v1981_v59 = vsel %vm1980_vm6, %v10865_v58, %v1977_v62  ;;  %v2024_v58 = vand.u32 2147483648, %v1997_v33  ;;  %v861_v5 = vadd.f32 %v11822_v20, %v12120_v11  ;;  %v8560_v25 = vor.u32 %v10390_v39, %v8557_v6  ;;  %v10388_v20 = vld [vmem:[%s16876_s2 + $0xcc] sm:$0xf0]  ;;  %v10389_v56 = vld [vmem:[%s16876_s2 + $0xd4] sm:$0xf0] }
 0x2a9   : > { %v1986_v17 = vsel %vm1983_vm7, %v1985_v10, %v1981_v59  ;;  %v10871_v27 = vpop.eup %10870  ;;  %v2006_v2 = vsel %vm2005_vm11, %v12635_v16, %v2002_v54  ;;  %v8555_v16 = vld [vmem:[%s16876_s2 + $0xe0] sm:$0xf]  ;;  %v8564_v62 = vor.u32 %v10393_v32, %v8563_v22  ;;  %v10391_v10 = vld [vmem:[%s16876_s2 + $0xec] sm:$0xf]  ;;  %v8541_v54 = vld [vmem:[%s16876_s2 + $0xd0] sm:$0xf0] }
 0x2aa   : > { %v2031_v14 = vmul.f32 %v1986_v17, %v12378_v1  ;;  %v2014_v31 = vmul.f32 %v10871_v27, %v1997_v33  ;;  %v2007_v1 = vand.u32 2147483647, %v12544_v21  ;;  %vm2019_vm10 = vweird.f32 %v10871_v27  ;;  %v10873_v18 = vpop.eup %10872  ;;  %v10392_v33 = vld [vmem:[%s16876_s2 + $0xec] sm:$0xf0]  ;;  %2666 = vmatpush.bf16.msra.mxu1 %v8560_v25  ;;  %v8533_v6 = vld [vmem:[%s16876_s2 + $0xb8] sm:$0xf0] }
 0x2ab   : > { %vm2020_vm13 = vmor %vm2018_vm12, %vm2019_vm10  ;;  %v2025_v8 = vor.u32 1.1754944e-38, %v2024_v58  ;;  %v8556_v13 = vor.u32 %v10392_v33, %v8555_v16  ;;  %v8568_v17 = vor.u32 %v10391_v10, %v8565_v9  ;;  %2680 = vmatpush.bf16.msra.mxu2 %v8564_v62  ;;  %v10380_v62 = vld [vmem:[%s16876_s2 + $0x8c] sm:$0xf0]  ;;  %v10378_v10 = vld [vmem:[%s16876_s2 + $0x84] sm:$0xf] }
 0x2ac   : > { %v12692_v35 = vadd.f32 %v2033_v12, %v2031_v14  ;;  %v2015_v23 = vsub.f32 1.0, %v2014_v31  ;;  %vm2008_vm14 = vcmp.eq.f32.partialorder %v2007_v1, 8.507059e+37  ;;  %v8540_v31 = vor.u32 %v10388_v20, %v8539_v19 }
 0x2ad   : > { %v2011_v57 = vsel %vm2008_vm14, %v2010_v7, %v2006_v2  ;;  %2652 = vmatpush.bf16.msra.mxu0 %v8556_v13  ;;  %2694 = vmatpush.bf16.msra.mxu3 %v8568_v17  ;;  %v8549_v2 = vld [vmem:[%s16876_s2 + $0xd8] sm:$0xf0]  ;;  %v8523_v7 = vld [vmem:[%s16876_s2 + $0xa0] sm:$0xf]  ;;  %v10383_v13 = vld [vmem:[%s16876_s2 + $0xac] sm:$0xf] }
 0x2ae   : > { %10874 = vtanh.f32 %v12692_v35  ;;  %v2016_v24 = vmul.f32 %v10871_v27, %v2015_v23  ;;  %v2038_v63 = vmul.f32 %v10873_v18, %v2011_v57  ;;  %v8547_v23 = vld [vmem:[%s16876_s2 + $0xc8] sm:$0xf] }
 0x2af   : > { %v8548_v15 = vor.u32 %v10389_v56, %v8547_v23  ;;  %v8515_v17 = vld [vmem:[%s16876_s2 + $0x88] sm:$0xf]  ;;  %v10379_v56 = vld [vmem:[%s16876_s2 + $0x8c] sm:$0xf] }
 0x2b0   : > { %v2017_v52 = vadd.f32 %v10871_v27, %v2016_v24 }
 0x2b1   : > { %2653 = vmatpush.bf16.msra.mxu0 %v8540_v31  ;;  %2681 = vmatpush.bf16.msra.mxu2 %v8548_v15 }
 0x2b2   : > { %v2021_v60 = vsel %vm2020_vm13, %v10871_v27, %v2017_v52  ;;  %v10386_v27 = vld [vmem:[%s16876_s2 + $0xc4] sm:$0xf]  ;;  %v10387_v52 = vld [vmem:[%s16876_s2 + $0xcc] sm:$0xf] }
 0x2b3   : > { %v2026_v55 = vsel %vm2023_vm15, %v2025_v8, %v2021_v60  ;;  %v8544_v24 = vor.u32 %v10386_v27, %v8541_v54  ;;  %v8552_v18 = vor.u32 %v10387_v52, %v8549_v2  ;;  %v10384_v8 = vld [vmem:[%s16876_s2 + $0xac] sm:$0xf0]  ;;  %v1039_v60 = vadd.f32 %v11838_v28, %v12159_v41  ;;  %v10381_v27 = vld [vmem:[%s16876_s2 + $0x94] sm:$0xf0]  ;;  %v8491_v52 = vld [vmem:[%s16876_s2 + $0x60] sm:$0xf] }
 0x2b4   : > { %v10875_v40 = vpop.eup %10874  ;;  %v8524_v57 = vor.u32 %v10384_v8, %v8523_v7  ;;  %v863_v28 = vadd.f32 %v11842_v30, %v12120_v11  ;;  %v8507_v30 = vld [vmem:[%s16876_s2 + $0x80] sm:$0xf]  ;;  %v8516_v23 = vor.u32 %v10381_v27, %v8515_v17  ;;  %v10376_v2 = vld [vmem:[%s16876_s2 + $0x6c] sm:$0xf0]  ;;  %v8493_v7 = vld [vmem:[%s16876_s2 + $0x70] sm:$0xf0]  ;;  %v950_v8 = vadd.f32 %v11836_v26, %v12230_v47 }
 0x2b5   : > { %v2039_v21 = vmul.f32 %v10875_v40, %v2026_v55  ;;  %2667 = vmatpush.bf16.msra.mxu1 %v8544_v24  ;;  %v10382_v40 = vld [vmem:[%s16876_s2 + $0xa4] sm:$0xf]  ;;  %v8525_v55 = vld [vmem:[%s16876_s2 + $0xb0] sm:$0xf0]  ;;  %2695 = vmatpush.bf16.msra.mxu3 %v8552_v18  ;;  %v8501_v26 = vld [vmem:[%s16876_s2 + $0x78] sm:$0xf0] }
 0x2b6   : > { %v8528_v33 = vor.u32 %v10382_v40, %v8525_v55  ;;  %2654 = vmatpush.bf16.msra.mxu0 %v8524_v57  ;;  %v10374_v18 = vld [vmem:[%s16876_s2 + $0x64] sm:$0xf]  ;;  %v10377_v57 = vld [vmem:[%s16876_s2 + $0x74] sm:$0xf0]  ;;  %v1041_v55 = vadd.f32 %v11853_v36, %v12159_v41  ;;  %v10372_v36 = vld [vmem:[%s16876_s2 + $0x4c] sm:$0xf0] }
 0x2b7   : > { %v2057_v53 = vpack.c.bf16 %v2039_v21, %v2038_v63  ;;  %v8531_v63 = vld [vmem:[%s16876_s2 + $0xa8] sm:$0xf]  ;;  %v10385_v21 = vld [vmem:[%s16876_s2 + $0xb4] sm:$0xf0] }
 0x2b8   : > { %v8532_v39 = vor.u32 %v10385_v21, %v8531_v63  ;;  %v8492_v63 = vor.u32 %v10376_v2, %v8491_v52  ;;  %v10375_v21 = vld [vmem:[%s16876_s2 + $0x6c] sm:$0xf] }
 0x2b9   : > { %2258 = vmatmul.bf16.vlgmr.msrb.gmra.mxu0 %v2057_v53  ;;  %2272 = vmatmul.bf16.vlgmr.msrb.gmra.mxu1 %v2057_v53 }
 0x2ba   : > { %2286 = vmatmul.bf16.vlgmr.msrb.gmra.mxu2 %v2057_v53  ;;  %2300 = vmatmul.bf16.vlgmr.msrb.gmra.mxu3 %v2057_v53  ;;  %v774_v53 = vadd.f32 %v11840_v29, %v12095_v3  ;;  %v8536_v29 = vor.u32 %v10383_v13, %v8533_v6  ;;  %v8475_v13 = vld [vmem:[%s16876_s2 + $0x40] sm:$0xf]  ;;  %v10370_v6 = vld [vmem:[%s16876_s2 + $0x44] sm:$0xf] }
 0x2bb   : > { %2668 = vmatpush.bf16.msra.mxu1 %v8528_v33  ;;  %2682 = vmatpush.bf16.msra.mxu2 %v8532_v39  ;;  %v8504_v39 = vor.u32 %v10375_v21, %v8501_v26  ;;  %v10366_v21 = vld [vmem:[%s16876_s2 + $0x24] sm:$0xf]  ;;  %v8461_v26 = vld [vmem:[%s16876_s2 + $0x30] sm:$0xf0] }
 0x2bc   : > { %2696 = vmatpush.bf16.msra.mxu3 %v8536_v29  ;;  %v8477_v29 = vld [vmem:[%s16876_s2 + $0x50] sm:$0xf0] }
 0x2bf   : > { %2683 = vmatpush.bf16.msra.mxu2 %v8516_v23 }
 0x336   : > { %v2259_v59 = vpop.f32.mrf.mxu0  ;;  %v2273_v12 = vpop.f32.mrf.mxu1 }
 0x337   : > { %v2306_v0 = vadd.f32 %v2259_v59, %v772_v51  ;;  %v2307_v14 = vadd.f32 %v2273_v12, %v861_v5  ;;  %v8508_v59 = vor.u32 %v10380_v62, %v8507_v30  ;;  %v8509_v12 = vld [vmem:[%s16876_s2 + $0x90] sm:$0xf0] }
 0x338   : > { %v8512_v20 = vor.u32 %v10378_v10, %v8509_v12  ;;  %v8480_v10 = vor.u32 %v10370_v6, %v8477_v29  ;;  %v10369_v29 = vld [vmem:[%s16876_s2 + $0x34] sm:$0xf0] }
 0x339   : > { %v8435_v58 = vmul.f32 -1.442695, %v2306_v0  ;;  %v8437_v1 = vmul.f32 -1.442695, %v2307_v14  ;;  %2655 = vmatpush.bf16.msra.mxu0 %v8508_v59  ;;  %v952_v59 = vadd.f32 %v11850_v34, %v12230_v47 }
 0x33a   : > { %2669 = vmatpush.bf16.msra.mxu1 %v8512_v20 }
 0x33b   : > { %10876 = vpow2.f32 %v8435_v58  ;;  %v8517_v58 = vld [vmem:[%s16876_s2 + $0x98] sm:$0xf0] }
 0x33c   : > { %10878 = vpow2.f32 %v8437_v1  ;;  %v8520_v15 = vor.u32 %v10379_v56, %v8517_v58  ;;  %v10365_v58 = vld [vmem:[%s16876_s2 + $0x14] sm:$0xf0] }
 0x33d   : > { %v2301_v16 = vpop.f32.mrf.mxu3  ;;  %v2287_v24 = vpop.f32.mrf.mxu2  ;;  %2656 = vmatpush.bf16.msra.mxu0 %v8492_v63 }
 0x33e   : > { %v2309_v22 = vadd.f32 %v2301_v16, %v1039_v60  ;;  %v2261_v32 = vpop.f32.mrf.mxu0  ;;  %v2275_v51 = vpop.f32.mrf.mxu1  ;;  %2697 = vmatpush.bf16.msra.mxu3 %v8520_v15  ;;  %v8499_v60 = vld [vmem:[%s16876_s2 + $0x68] sm:$0xf]  ;;  %v8496_v16 = vor.u32 %v10374_v18, %v8493_v7  ;;  %v10373_v15 = vld [vmem:[%s16876_s2 + $0x54] sm:$0xf0]  ;;  %v10371_v18 = vld [vmem:[%s16876_s2 + $0x4c] sm:$0xf] }
 0x33f   : > { %v2310_v5 = vadd.f32 %v2261_v32, %v774_v53  ;;  %v2311_v25 = vadd.f32 %v2275_v51, %v863_v28  ;;  %v2308_v28 = vadd.f32 %v2287_v24, %v950_v8  ;;  %v8500_v33 = vor.u32 %v10377_v57, %v8499_v60  ;;  %v8483_v24 = vld [vmem:[%s16876_s2 + $0x48] sm:$0xf]  ;;  %v8459_v60 = vld [vmem:[%s16876_s2 + $0x20] sm:$0xf]  ;;  %v10368_v57 = vld [vmem:[%s16876_s2 + $0x2c] sm:$0xf0] }
 0x340   : > { %v8439_v9 = vmul.f32 -1.442695, %v2309_v22  ;;  %v8476_v51 = vor.u32 %v10372_v36, %v8475_v13  ;;  %2670 = vmatpush.bf16.msra.mxu1 %v8496_v16  ;;  %v8467_v36 = vld [vmem:[%s16876_s2 + $0x28] sm:$0xf] }
 0x341   : > { %v10877_v0 = vpop.eup %10876  ;;  %v8436_v14 = vmul.f32 -1.442695, %v2310_v5  ;;  %v8438_v19 = vmul.f32 -1.442695, %v2311_v25  ;;  %2684 = vmatpush.bf16.msra.mxu2 %v8500_v33 }
 0x342   : > { %v10879_v31 = vpop.eup %10878  ;;  %v12802_v54 = vadd.f32 1.0, %v10877_v0  ;;  %10880 = vpow2.f32 %v8439_v9  ;;  %2698 = vmatpush.bf16.msra.mxu3 %v8504_v39  ;;  %2657 = vmatpush.bf16.msra.mxu0 %v8476_v51  ;;  %v8460_v51 = vor.u32 %v10368_v57, %v8459_v60  ;;  %v8468_v60 = vor.u32 %v10369_v29, %v8467_v36 }
 0x343   : > { %v12810_v1 = vadd.f32 1.0, %v10879_v31  ;;  %10882 = vpow2.f32 %v8436_v14 }
 0x344   : > { %10884 = vrcp.f32 %v12802_v54  ;;  %v2331_v25 = vand.u32 2147483647, %v12802_v54  ;;  %v2333_v17 = vand.u32 2147483648, %v12802_v54  ;;  %2671 = vmatpush.bf16.msra.mxu1 %v8480_v10  ;;  %vm2327_vm4 = vweird.f32 %v12802_v54  ;;  %v8469_v10 = vld [vmem:[%s16876_s2 + $0x38] sm:$0xf0] }
 0x345   : > { %10886 = vrcp.f32 %v12810_v1  ;;  %v2303_v40 = vpop.f32.mrf.mxu3  ;;  %v2369_v20 = vand.u32 2147483647, %v12810_v1  ;;  %v2289_v34 = vpop.f32.mrf.mxu2  ;;  %vm2365_vm3 = vweird.f32 %v12810_v1 }
 0x346   : > { %10888 = vpow2.f32 %v8438_v19  ;;  %v2313_v32 = vadd.f32 %v2303_v40, %v1041_v55  ;;  %v2371_v19 = vand.u32 2147483648, %v12810_v1  ;;  %vm12876_vm1 = vcmp.eq.f32.partialorder %v2331_v25, 8.507059e+37  ;;  %v8485_v40 = vld [vmem:[%s16876_s2 + $0x58] sm:$0xf0]  ;;  %v10367_v25 = vld [vmem:[%s16876_s2 + $0x2c] sm:$0xf]  ;;  %2658 = vmatpush.bf16.msra.mxu0 %v8460_v51 }
 0x347   : > { %10890 = vtanh.f32 %v2308_v28  ;;  %v2334_v2 = vor.u32 1.1754944e-38, %v2333_v17  ;;  %v2312_v8 = vadd.f32 %v2289_v34, %v952_v59  ;;  %vm12925_vm7 = vcmp.eq.f32.partialorder %v2369_v20, 8.507059e+37 }
 0x348   : > { %v10881_v53 = vpop.eup %10880  ;;  %v8440_v23 = vmul.f32 -1.442695, %v2313_v32  ;;  %v2372_v55 = vor.u32 1.1754944e-38, %v2371_v19  ;;  %v8488_v32 = vor.u32 %v10371_v18, %v8485_v40  ;;  %v10362_v19 = vld [vmem:[%s16876_s2 + $0x4] sm:$0xf]  ;;  %v8464_v34 = vor.u32 %v10366_v21, %v8461_v26 }
 0x349   : > { %v10883_v22 = vpop.eup %10882  ;;  %v12857_v30 = vadd.f32 1.0, %v10881_v53  ;;  %v10363_v18 = vld [vmem:[%s16876_s2 + $0xc] sm:$0xf] }
 0x34a   : > { %v12854_v5 = vpop.eup %10884  ;;  %v12859_v62 = vadd.f32 1.0, %v10883_v22  ;;  %2699 = vmatpush.bf16.msra.mxu3 %v8488_v32  ;;  %2672 = vmatpush.bf16.msra.mxu1 %v8464_v34 }
 0x34b   : > { %v12861_v9 = vpop.eup %10886  ;;  %v2323_v12 = vmul.f32 %v12854_v5, %v12802_v54  ;;  %vm2328_vm0 = vweird.f32 %v12854_v5 }
 0x34c   : > { %v10889_v0 = vpop.eup %10888  ;;  %v2361_v14 = vmul.f32 %v12861_v9, %v12810_v1  ;;  %10892 = vrcp.f32 %v12859_v62  ;;  %vm2366_vm2 = vweird.f32 %v12861_v9  ;;  %vm12908_vm5 = vmor %vm2327_vm4, %vm2328_vm0  ;;  %v8484_v1 = vor.u32 %v10373_v15, %v8483_v24 }
 0x34d   : > { %v2324_v27 = vsub.f32 1.0, %v2323_v12  ;;  %v12873_v31 = vadd.f32 1.0, %v10889_v0  ;;  %10894 = vrcp.f32 %v12857_v30  ;;  %v10891_v53 = vpop.eup %10890  ;;  %vm12920_vm6 = vmor %vm2365_vm3, %vm2366_vm2  ;;  %v2346_v13 = vand.u32 2147483647, %v12859_v62  ;;  %v8443_v0 = vld [vmem:[%s16876_s2] sm:$0xf] }
 0x34e   : > { %v2362_v56 = vsub.f32 1.0, %v2361_v14  ;;  %2685 = vmatpush.bf16.msra.mxu2 %v8484_v1  ;;  %v10364_v14 = vld [vmem:[%s16876_s2 + $0xc] sm:$0xf0]  ;;  %vm2342_vm8 = vweird.f32 %v12859_v62 }
 0x34f   : > { %v2325_v52 = vmul.f32 %v12854_v5, %v2324_v27  ;;  %10896 = vrcp.f32 %v12873_v31  ;;  %v2386_v39 = vand.u32 2147483648, %v12873_v31  ;;  %v8444_v57 = vor.u32 %v10364_v14, %v8443_v0 }
 0x350   : > { %v2363_v7 = vmul.f32 %v12861_v9, %v2362_v56  ;;  %10898 = vpow2.f32 %v8440_v23  ;;  %v8445_v23 = vld [vmem:[%s16876_s2 + $0x10] sm:$0xf0]  ;;  %v8451_v56 = vld [vmem:[%s16876_s2 + $0x8] sm:$0xf]  ;;  %v2384_v36 = vand.u32 2147483647, %v12873_v31  ;;  %vm2380_vm11 = vweird.f32 %v12873_v31 }
 0x351   : > { %v2326_v63 = vadd.f32 %v12854_v5, %v2325_v52  ;;  %10900 = vtanh.f32 %v2312_v8  ;;  %v8448_v21 = vor.u32 %v10362_v19, %v8445_v23  ;;  %v8452_v26 = vor.u32 %v10365_v58, %v8451_v56  ;;  %2659 = vmatpush.bf16.msra.mxu0 %v8444_v57  ;;  %v8691_v57 = vld [vmem:[%s16876_s2 + $0xf0] sm:$0xf0] }
 0x352   : > { %v2364_v16 = vadd.f32 %v12861_v9, %v2363_v7  ;;  %v12934_v6 = vpop.eup %10892  ;;  %v8453_v7 = vld [vmem:[%s16876_s2 + $0x18] sm:$0xf0]  ;;  %2686 = vmatpush.bf16.msra.mxu2 %v8468_v60  ;;  %vm2347_vm13 = vcmp.eq.f32.partialorder %v2346_v13, 8.507059e+37  ;;  %vm2385_vm15 = vcmp.eq.f32.partialorder %v2384_v36, 8.507059e+37  ;;  %v2411_v13 = vand.u32 2147483648, %v12857_v30 }
 0x353   : > { %v2330_v22 = vsel %vm12908_vm5, %v12854_v5, %v2326_v63  ;;  %v12948_v59 = vpop.eup %10894  ;;  %v2338_v17 = vmul.f32 %v12934_v6, %v12859_v62  ;;  %vm2343_vm9 = vweird.f32 %v12934_v6  ;;  %2673 = vmatpush.bf16.msra.mxu1 %v8448_v21  ;;  %v10422_v60 = vld [vmem:[%s16876_s2 + $0xe4] sm:$0xf]  ;;  %v866_v21 = vadd.f32 %v11857_v38, %v12120_v11  ;;  %v10420_v38 = vld [vmem:[%s16876_s2 + $0xcc] sm:$0xf0] }
 0x354   : > { %v2335_v5 = vsel %vm12876_vm1, %v2334_v2, %v2330_v22  ;;  %v2368_v12 = vsel %vm12920_vm6, %v12861_v9, %v2364_v16  ;;  %v2348_v2 = vand.u32 2147483648, %v12859_v62  ;;  %v2401_v40 = vmul.f32 %v12948_v59, %v12857_v30  ;;  %vm2344_vm12 = vmor %vm2342_vm8, %vm2343_vm9 }
 0x355   : > { %v10897_v20 = vpop.eup %10896  ;;  %v2373_v9 = vsel %vm12925_vm7, %v2372_v55, %v2368_v12  ;;  %v2434_v27 = vmul.f32 %v10891_v53, %v2335_v5  ;;  %v2339_v15 = vsub.f32 1.0, %v2338_v17  ;;  %v8456_v53 = vor.u32 %v10363_v18, %v8453_v7 }
 0x356   : > { %v2432_v24 = vmul.f32 %v2373_v9, %v12676_v4  ;;  %v2376_v52 = vmul.f32 %v10897_v20, %v12873_v31  ;;  %v10899_v8 = vpop.eup %10898  ;;  %v8472_v4 = vor.u32 %v10367_v25, %v8469_v10  ;;  %vm2381_vm10 = vweird.f32 %v10897_v20  ;;  %2687 = vmatpush.bf16.msra.mxu2 %v8452_v26 }
 0x357   : > { %v2340_v54 = vmul.f32 %v12934_v6, %v2339_v15  ;;  %v2399_v1 = vadd.f32 1.0, %v10899_v8  ;;  %v10901_v28 = vpop.eup %10900  ;;  %v2349_v22 = vor.u32 1.1754944e-38, %v2348_v2  ;;  %v2402_v32 = vsub.f32 1.0, %v2401_v40  ;;  %vm2382_vm14 = vmor %vm2380_vm11, %vm2381_vm10  ;;  %v10424_v40 = vld [vmem:[%s16876_s2 + $0xec] sm:$0xf0] }
 0x358   : > { %v12989_v55 = vadd.f32 %v2434_v27, %v2432_v24  ;;  %v2377_v63 = vsub.f32 1.0, %v2376_v52  ;;  %2700 = vmatpush.bf16.msra.mxu3 %v8472_v4  ;;  %v2387_v25 = vor.u32 1.1754944e-38, %v2386_v39  ;;  %vm2406_vm0 = vweird.f32 %v12948_v59 }
 0x359   : > { %v2341_v33 = vadd.f32 %v12934_v6, %v2340_v54  ;;  %10902 = vrcp.f32 %v2399_v1  ;;  %v2403_v0 = vmul.f32 %v12948_v59, %v2402_v32  ;;  %vm2405_vm1 = vweird.f32 %v12857_v30  ;;  %v10425_v54 = vld [vmem:[%s16876_s2 + $0xf4] sm:$0xf0] }
 0x35a   : > { %v2378_v16 = vmul.f32 %v10897_v20, %v2377_v63  ;;  %10904 = vtanh.f32 %v12989_v55  ;;  %v2424_v27 = vand.u32 2147483647, %v2399_v1  ;;  %vm2407_vm3 = vmor %vm2405_vm1, %vm2406_vm0  ;;  %vm2420_vm4 = vweird.f32 %v2399_v1  ;;  %v8697_v63 = vld [vmem:[%s16876_s2 + $0xe8] sm:$0xf] }
 0x35b   : > { %v2345_v51 = vsel %vm2344_vm12, %v12934_v6, %v2341_v33  ;;  %v2404_v31 = vadd.f32 %v12948_v59, %v2403_v0  ;;  %v2412_v58 = vor.u32 1.1754944e-38, %v2411_v13  ;;  %v8694_v26 = vor.u32 %v10422_v60, %v8691_v57  ;;  %v8657_v13 = vld [vmem:[%s16876_s2 + $0xa0] sm:$0xf]  ;;  %v10412_v60 = vld [vmem:[%s16876_s2 + $0x8c] sm:$0xf0] }
 0x35c   : > { %v2379_v29 = vadd.f32 %v10897_v20, %v2378_v16  ;;  %v2350_v10 = vsel %vm2347_vm13, %v2349_v22, %v2345_v51  ;;  %2701 = vmatpush.bf16.msra.mxu3 %v8456_v53  ;;  %vm2425_vm7 = vcmp.eq.f32.partialorder %v2424_v27, 8.507059e+37  ;;  %v8698_v53 = vor.u32 %v10425_v54, %v8697_v63  ;;  %v8699_v16 = vld [vmem:[%s16876_s2 + $0xf8] sm:$0xf0]  ;;  %v8643_v54 = vld [vmem:[%s16876_s2 + $0x90] sm:$0xf0] }
 0x35d   : > { %v2435_v12 = vmul.f32 %v10901_v28, %v2350_v10  ;;  %v2408_v23 = vsel %vm2407_vm3, %v12948_v59, %v2404_v31  ;;  %v8689_v59 = vld [vmem:[%s16876_s2 + $0xe0] sm:$0xf]  ;;  %v10423_v28 = vld [vmem:[%s16876_s2 + $0xec] sm:$0xf]  ;;  %3068 = vmatpush.bf16.msrb.mxu1 %v8694_v26  ;;  %v8675_v10 = vld [vmem:[%s16876_s2 + $0xd0] sm:$0xf0] }
 0x35e   : > { %v2383_v5 = vsel %vm2382_vm14, %v10897_v20, %v2379_v29  ;;  %v2426_v20 = vand.u32 2147483648, %v2399_v1  ;;  %v8690_v4 = vor.u32 %v10424_v40, %v8689_v59  ;;  %v8702_v22 = vor.u32 %v10423_v28, %v8699_v16  ;;  %3082 = vmatpush.bf16.msrb.mxu2 %v8698_v53  ;;  %v10418_v29 = vld [vmem:[%s16876_s2 + $0xc4] sm:$0xf]  ;;  %v8683_v31 = vld [vmem:[%s16876_s2 + $0xd8] sm:$0xf0] }
 0x35f   : > { %v2388_v17 = vsel %vm2385_vm15, %v2387_v25, %v2383_v5  ;;  %v10903_v6 = vpop.eup %10902  ;;  %v8681_v5 = vld [vmem:[%s16876_s2 + $0xc8] sm:$0xf]  ;;  %v10413_v16 = vld [vmem:[%s16876_s2 + $0x94] sm:$0xf0] }
 0x360   : > { %v2433_v14 = vmul.f32 %v2388_v17, %v12692_v35  ;;  %v2416_v62 = vmul.f32 %v10903_v6, %v2399_v1  ;;  %v2409_v35 = vand.u32 2147483647, %v12857_v30  ;;  %vm2421_vm2 = vweird.f32 %v10903_v6  ;;  %v10905_v56 = vpop.eup %10904  ;;  %3054 = vmatpush.bf16.msrb.mxu0 %v8690_v4  ;;  %3096 = vmatpush.bf16.msrb.mxu3 %v8702_v22  ;;  %v10410_v4 = vld [vmem:[%s16876_s2 + $0x84] sm:$0xf] }
 0x361   : > { %vm2422_vm5 = vmor %vm2420_vm4, %vm2421_vm2  ;;  %v2427_v24 = vor.u32 1.1754944e-38, %v2426_v20  ;;  %v777_v1 = vadd.f32 %v11855_v37, %v12095_v3  ;;  %v8673_v37 = vld [vmem:[%s16876_s2 + $0xc0] sm:$0xf]  ;;  %v10416_v20 = vld [vmem:[%s16876_s2 + $0xac] sm:$0xf0]  ;;  %v8646_v28 = vor.u32 %v10410_v4, %v8643_v54 }
 0x362   : > { %v13005_v19 = vadd.f32 %v2435_v12, %v2433_v14  ;;  %v2417_v39 = vsub.f32 1.0, %v2416_v62  ;;  %vm2410_vm6 = vcmp.eq.f32.partialorder %v2409_v35, 8.507059e+37  ;;  %v8674_v25 = vor.u32 %v10420_v38, %v8673_v37  ;;  %v10421_v12 = vld [vmem:[%s16876_s2 + $0xd4] sm:$0xf0]  ;;  %v10419_v62 = vld [vmem:[%s16876_s2 + $0xcc] sm:$0xf] }
 0x363   : > { %v2413_v2 = vsel %vm2410_vm6, %v2412_v58, %v2408_v23  ;;  %v8678_v14 = vor.u32 %v10418_v29, %v8675_v10  ;;  %v10414_v35 = vld [vmem:[%s16876_s2 + $0xa4] sm:$0xf]  ;;  %v8658_v27 = vor.u32 %v10416_v20, %v8657_v13  ;;  %v8665_v23 = vld [vmem:[%s16876_s2 + $0xa8] sm:$0xf]  ;;  %v779_v58 = vadd.f32 %v11869_v44, %v12095_v3  ;;  %v10408_v10 = vld [vmem:[%s16876_s2 + $0x6c] sm:$0xf0] }
 0x364   : > { %10906 = vtanh.f32 %v13005_v19  ;;  %v2418_v9 = vmul.f32 %v10903_v6, %v2417_v39  ;;  %v2440_v7 = vmul.f32 %v10905_v56, %v2413_v2  ;;  %3055 = vmatpush.bf16.msrb.mxu0 %v8674_v25  ;;  %v8686_v39 = vor.u32 %v10419_v62, %v8683_v31  ;;  %v10417_v56 = vld [vmem:[%s16876_s2 + $0xb4] sm:$0xf0]  ;;  %v10415_v2 = vld [vmem:[%s16876_s2 + $0xac] sm:$0xf]  ;;  %v8625_v25 = vld [vmem:[%s16876_s2 + $0x60] sm:$0xf] }
 0x365   : > { %3069 = vmatpush.bf16.msrb.mxu1 %v8678_v14  ;;  %v8633_v14 = vld [vmem:[%s16876_s2 + $0x68] sm:$0xf]  ;;  %v1046_v62 = vadd.f32 %v11876_v48, %v12159_v41  ;;  %v8626_v31 = vor.u32 %v10408_v10, %v8625_v25  ;;  %v10404_v48 = vld [vmem:[%s16876_s2 + $0x4c] sm:$0xf0] }
 0x366   : > { %v2419_v34 = vadd.f32 %v10903_v6, %v2418_v9  ;;  %v1044_v9 = vadd.f32 %v11867_v43, %v12159_v41  ;;  %v868_v43 = vadd.f32 %v11871_v45, %v12120_v11  ;;  %3097 = vmatpush.bf16.msrb.mxu3 %v8686_v39  ;;  %v8641_v45 = vld [vmem:[%s16876_s2 + $0x80] sm:$0xf]  ;;  %v10407_v39 = vld [vmem:[%s16876_s2 + $0x6c] sm:$0xf] }
 0x367   : > { %v8642_v63 = vor.u32 %v10412_v60, %v8641_v45 }
 0x368   : > { %v2423_v52 = vsel %vm2422_vm5, %v10903_v6, %v2419_v34  ;;  %v8682_v6 = vor.u32 %v10421_v12, %v8681_v5  ;;  %v8659_v34 = vld [vmem:[%s16876_s2 + $0xb0] sm:$0xf0]  ;;  %3056 = vmatpush.bf16.msrb.mxu0 %v8658_v27  ;;  %v10406_v5 = vld [vmem:[%s16876_s2 + $0x64] sm:$0xf] }
 0x369   : > { %v2428_v18 = vsel %vm2425_vm7, %v2427_v24, %v2423_v52  ;;  %v8666_v52 = vor.u32 %v10417_v56, %v8665_v23  ;;  %v8627_v12 = vld [vmem:[%s16876_s2 + $0x70] sm:$0xf0]  ;;  %v10402_v23 = vld [vmem:[%s16876_s2 + $0x44] sm:$0xf] }
 0x36a   : > { %v10907_v15 = vpop.eup %10906  ;;  %3083 = vmatpush.bf16.msrb.mxu2 %v8682_v6  ;;  %v10409_v6 = vld [vmem:[%s16876_s2 + $0x74] sm:$0xf0] }
 0x36b   : > { %v2441_v30 = vmul.f32 %v10907_v15, %v2428_v18  ;;  %v8662_v15 = vor.u32 %v10414_v35, %v8659_v34  ;;  %v8667_v18 = vld [vmem:[%s16876_s2 + $0xb8] sm:$0xf0]  ;;  %v8630_v35 = vor.u32 %v10406_v5, %v8627_v12  ;;  %v8609_v34 = vld [vmem:[%s16876_s2 + $0x40] sm:$0xf]  ;;  %v10398_v5 = vld [vmem:[%s16876_s2 + $0x24] sm:$0xf] }
 0x36c   : > { %v8670_v44 = vor.u32 %v10415_v2, %v8667_v18  ;;  %3057 = vmatpush.bf16.msrb.mxu0 %v8642_v63  ;;  %v8595_v12 = vld [vmem:[%s16876_s2 + $0x30] sm:$0xf0] }
 0x36d   : > { %v2459_v8 = vpack.c.bf16 %v2441_v30, %v2440_v7  ;;  %3070 = vmatpush.bf16.msrb.mxu1 %v8662_v15 }
 0x36e   : > { %3084 = vmatpush.bf16.msrb.mxu2 %v8666_v52  ;;  %3098 = vmatpush.bf16.msrb.mxu3 %v8670_v44 }
 0x36f   : > { %2660 = vmatmul.bf16.vlgmr.msra.gmra.mxu0 %v2459_v8  ;;  %2674 = vmatmul.bf16.vlgmr.msra.gmra.mxu1 %v2459_v8 }
 0x370   : > { %2688 = vmatmul.bf16.vlgmr.msra.gmra.mxu2 %v2459_v8  ;;  %2702 = vmatmul.bf16.vlgmr.msra.gmra.mxu3 %v2459_v8 }
 0x371   : > { %3071 = vmatpush.bf16.msrb.mxu1 %v8646_v28  ;;  %3058 = vmatpush.bf16.msrb.mxu0 %v8626_v31 }
 0x375   : > { %3072 = vmatpush.bf16.msrb.mxu1 %v8630_v35 }
 0x3ec   : > { %v2661_v33 = vpop.f32.mrf.mxu0  ;;  %v2675_v36 = vpop.f32.mrf.mxu1 }
 0x3ed   : > { %v2708_v32 = vadd.f32 %v2661_v33, %v777_v1  ;;  %v2709_v51 = vadd.f32 %v2675_v36, %v866_v21  ;;  %v8649_v1 = vld [vmem:[%s16876_s2 + $0x88] sm:$0xf] }
 0x3ee   : > { %v8650_v22 = vor.u32 %v10413_v16, %v8649_v1 }
 0x3ef   : > { %v8569_v17 = vmul.f32 -1.442695, %v2708_v32  ;;  %v8571_v0 = vmul.f32 -1.442695, %v2709_v51  ;;  %v10411_v32 = vld [vmem:[%s16876_s2 + $0x8c] sm:$0xf] }
 0x3f0   : > { %v8651_v51 = vld [vmem:[%s16876_s2 + $0x98] sm:$0xf0]  ;;  %3085 = vmatpush.bf16.msrb.mxu2 %v8650_v22 }
 0x3f1   : > { %10908 = vpow2.f32 %v8569_v17  ;;  %v8654_v29 = vor.u32 %v10411_v32, %v8651_v51  ;;  %v955_v17 = vadd.f32 %v11865_v42, %v12230_v47  ;;  %v8635_v42 = vld [vmem:[%s16876_s2 + $0x78] sm:$0xf0] }
 0x3f2   : > { %10910 = vpow2.f32 %v8571_v0  ;;  %v8638_v27 = vor.u32 %v10407_v39, %v8635_v42  ;;  %v8619_v51 = vld [vmem:[%s16876_s2 + $0x58] sm:$0xf0]  ;;  %v8601_v39 = vld [vmem:[%s16876_s2 + $0x28] sm:$0xf] }
 0x3f3   : > { %v2703_v24 = vpop.f32.mrf.mxu3  ;;  %v2689_v38 = vpop.f32.mrf.mxu2  ;;  %3099 = vmatpush.bf16.msrb.mxu3 %v8654_v29  ;;  %v10400_v29 = vld [vmem:[%s16876_s2 + $0x2c] sm:$0xf0] }
 0x3f4   : > { %v2711_v7 = vadd.f32 %v2703_v24, %v1044_v9  ;;  %v2663_v30 = vpop.f32.mrf.mxu0  ;;  %v2677_v8 = vpop.f32.mrf.mxu1  ;;  %v2710_v20 = vadd.f32 %v2689_v38, %v955_v17  ;;  %v8634_v9 = vor.u32 %v10409_v6, %v8633_v14  ;;  %v8611_v24 = vld [vmem:[%s16876_s2 + $0x50] sm:$0xf0]  ;;  %v8593_v38 = vld [vmem:[%s16876_s2 + $0x20] sm:$0xf] }
 0x3f5   : > { %v2712_v59 = vadd.f32 %v2663_v30, %v779_v58  ;;  %v2713_v40 = vadd.f32 %v2677_v8, %v868_v43  ;;  %v8610_v43 = vor.u32 %v10404_v48, %v8609_v34  ;;  %v957_v8 = vadd.f32 %v11873_v46, %v12230_v47  ;;  %v8603_v34 = vld [vmem:[%s16876_s2 + $0x38] sm:$0xf0] }
 0x3f6   : > { %v8573_v57 = vmul.f32 -1.442695, %v2711_v7  ;;  %3086 = vmatpush.bf16.msrb.mxu2 %v8634_v9  ;;  %v8614_v7 = vor.u32 %v10402_v23, %v8611_v24  ;;  %v8594_v35 = vor.u32 %v10400_v29, %v8593_v38  ;;  %v10401_v9 = vld [vmem:[%s16876_s2 + $0x34] sm:$0xf0]  ;;  %v10396_v24 = vld [vmem:[%s16876_s2 + $0xc] sm:$0xf0] }
 0x3f7   : > { %v10909_v21 = vpop.eup %10908  ;;  %v8570_v26 = vmul.f32 -1.442695, %v2712_v59  ;;  %v8572_v53 = vmul.f32 -1.442695, %v2713_v40  ;;  %3100 = vmatpush.bf16.msrb.mxu3 %v8638_v27  ;;  %3059 = vmatpush.bf16.msrb.mxu0 %v8610_v43  ;;  %v10399_v27 = vld [vmem:[%s16876_s2 + $0x2c] sm:$0xf] }
 0x3f8   : > { %v10911_v33 = vpop.eup %10910  ;;  %v13115_v36 = vadd.f32 1.0, %v10909_v21  ;;  %10912 = vpow2.f32 %v8573_v57  ;;  %3073 = vmatpush.bf16.msrb.mxu1 %v8614_v7  ;;  %v8577_v43 = vld [vmem:[%s16876_s2] sm:$0xf] }
 0x3f9   : > { %v13123_v37 = vadd.f32 1.0, %v10911_v33  ;;  %10914 = vpow2.f32 %v8570_v26  ;;  %v8617_v26 = vld [vmem:[%s16876_s2 + $0x48] sm:$0xf]  ;;  %v10403_v33 = vld [vmem:[%s16876_s2 + $0x4c] sm:$0xf] }
 0x3fa   : > { %10916 = vrcp.f32 %v13115_v36  ;;  %v2733_v52 = vand.u32 2147483647, %v13115_v36  ;;  %v2735_v59 = vand.u32 2147483648, %v13115_v36  ;;  %vm2729_vm12 = vweird.f32 %v13115_v36 }
 0x3fb   : > { %10918 = vrcp.f32 %v13123_v37  ;;  %v2705_v0 = vpop.f32.mrf.mxu3  ;;  %v2773_v60 = vand.u32 2147483648, %v13123_v37  ;;  %v2771_v4 = vand.u32 2147483647, %v13123_v37  ;;  %v2691_v46 = vpop.f32.mrf.mxu2  ;;  %vm2767_vm11 = vweird.f32 %v13123_v37  ;;  %3060 = vmatpush.bf16.msrb.mxu0 %v8594_v35 }
 0x3fc   : > { %10920 = vpow2.f32 %v8572_v53  ;;  %v2715_v58 = vadd.f32 %v2705_v0, %v1046_v62  ;;  %vm13189_vm9 = vcmp.eq.f32.partialorder %v2733_v52, 8.507059e+37  ;;  %v10405_v53 = vld [vmem:[%s16876_s2 + $0x54] sm:$0xf0]  ;;  %v2736_v16 = vor.u32 1.1754944e-38, %v2735_v59  ;;  %v8585_v59 = vld [vmem:[%s16876_s2 + $0x8] sm:$0xf] }
 0x3fd   : > { %10922 = vtanh.f32 %v2710_v20  ;;  %v2714_v32 = vadd.f32 %v2691_v46, %v957_v8  ;;  %v2774_v25 = vor.u32 1.1754944e-38, %v2773_v60  ;;  %vm13238_vm15 = vcmp.eq.f32.partialorder %v2771_v4, 8.507059e+37  ;;  %v10395_v46 = vld [vmem:[%s16876_s2 + $0xc] sm:$0xf] }
 0x3fe   : > { %v10913_v13 = vpop.eup %10912  ;;  %v8574_v54 = vmul.f32 -1.442695, %v2715_v58  ;;  %v8622_v20 = vor.u32 %v10403_v33, %v8619_v51  ;;  %v8598_v8 = vor.u32 %v10398_v5, %v8595_v12 }
 0x3ff   : > { %v10915_v56 = vpop.eup %10914  ;;  %v13170_v2 = vadd.f32 1.0, %v10913_v13 }
 0x400   : > { %v13167_v15 = vpop.eup %10916  ;;  %v13172_v18 = vadd.f32 1.0, %v10915_v56  ;;  %3101 = vmatpush.bf16.msrb.mxu3 %v8622_v20  ;;  %3074 = vmatpush.bf16.msrb.mxu1 %v8598_v8 }
 0x401   : > { %v13174_v30 = vpop.eup %10918  ;;  %v2725_v44 = vmul.f32 %v13167_v15, %v13115_v36  ;;  %vm2730_vm8 = vweird.f32 %v13167_v15 }
 0x402   : > { %v10921_v40 = vpop.eup %10920  ;;  %v2763_v45 = vmul.f32 %v13174_v30, %v13123_v37  ;;  %10924 = vrcp.f32 %v13172_v18  ;;  %vm2768_vm10 = vweird.f32 %v13174_v30  ;;  %vm13221_vm13 = vmor %vm2729_vm12, %vm2730_vm8  ;;  %v8618_v37 = vor.u32 %v10405_v53, %v8617_v26 }
 0x403   : > { %v2726_v57 = vsub.f32 1.0, %v2725_v44  ;;  %v13186_v63 = vadd.f32 1.0, %v10921_v40  ;;  %10926 = vrcp.f32 %v13170_v2  ;;  %v10923_v17 = vpop.eup %10922  ;;  %vm13233_vm14 = vmor %vm2767_vm11, %vm2768_vm10  ;;  %v2748_v31 = vand.u32 2147483647, %v13172_v18  ;;  %v8579_v44 = vld [vmem:[%s16876_s2 + $0x10] sm:$0xf0] }
 0x404   : > { %v2764_v1 = vsub.f32 1.0, %v2763_v45  ;;  %3087 = vmatpush.bf16.msrb.mxu2 %v8618_v37  ;;  %vm2744_vm0 = vweird.f32 %v13172_v18  ;;  %v10397_v40 = vld [vmem:[%s16876_s2 + $0x14] sm:$0xf0]  ;;  %v8602_v26 = vor.u32 %v10401_v9, %v8601_v39  ;;  %v8578_v53 = vor.u32 %v10396_v24, %v8577_v43 }
 0x405   : > { %v2727_v28 = vmul.f32 %v13167_v15, %v2726_v57  ;;  %10928 = vrcp.f32 %v13186_v63  ;;  %v2788_v62 = vand.u32 2147483648, %v13186_v63  ;;  %v2750_v57 = vand.u32 2147483648, %v13172_v18 }
 0x406   : > { %v2765_v22 = vmul.f32 %v13174_v30, %v2764_v1  ;;  %10930 = vpow2.f32 %v8574_v54  ;;  %v8587_v54 = vld [vmem:[%s16876_s2 + $0x18] sm:$0xf0]  ;;  %v8586_v51 = vor.u32 %v10397_v40, %v8585_v59  ;;  %v2786_v36 = vand.u32 2147483647, %v13186_v63  ;;  %3061 = vmatpush.bf16.msrb.mxu0 %v8578_v53  ;;  %v10456_v40 = vld [vmem:[%s16876_s2 + $0xec] sm:$0xf0] }
 0x407   : > { %v2728_v10 = vadd.f32 %v13167_v15, %v2727_v28  ;;  %10932 = vtanh.f32 %v2714_v32  ;;  %v8590_v38 = vor.u32 %v10395_v46, %v8587_v54  ;;  %vm2782_vm3 = vweird.f32 %v13186_v63  ;;  %v10457_v46 = vld [vmem:[%s16876_s2 + $0xf4] sm:$0xf0]  ;;  %v8833_v53 = vld [vmem:[%s16876_s2 + $0xf8] sm:$0xf0] }
 0x408   : > { %v2766_v14 = vadd.f32 %v13174_v30, %v2765_v22  ;;  %v13247_v42 = vpop.eup %10924  ;;  %3088 = vmatpush.bf16.msrb.mxu2 %v8602_v26  ;;  %v2751_v37 = vor.u32 1.1754944e-38, %v2750_v57  ;;  %vm2749_vm5 = vcmp.eq.f32.partialorder %v2748_v31, 8.507059e+37  ;;  %v2789_v0 = vor.u32 1.1754944e-38, %v2788_v62  ;;  %v8831_v57 = vld [vmem:[%s16876_s2 + $0xe8] sm:$0xf] }
 0x409   : > { %v2732_v13 = vsel %vm13221_vm13, %v13167_v15, %v2728_v10  ;;  %v13261_v48 = vpop.eup %10926  ;;  %v2740_v58 = vmul.f32 %v13247_v42, %v13172_v18  ;;  %v10394_v15 = vld [vmem:[%s16876_s2 + $0x4] sm:$0xf]  ;;  %vm2745_vm1 = vweird.f32 %v13247_v42  ;;  %vm2787_vm7 = vcmp.eq.f32.partialorder %v2786_v36, 8.507059e+37  ;;  %v10453_v36 = vld [vmem:[%s16876_s2 + $0xd4] sm:$0xf0] }
 0x40a   : > { %v2737_v23 = vsel %vm13189_vm9, %v2736_v16, %v2732_v13  ;;  %v2770_v56 = vsel %vm13233_vm14, %v13174_v30, %v2766_v14  ;;  %v2803_v21 = vmul.f32 %v13261_v48, %v13170_v2  ;;  %v8582_v32 = vor.u32 %v10394_v15, %v8579_v44  ;;  %vm2746_vm4 = vmor %vm2744_vm0, %vm2745_vm1 }
 0x40b   : > { %v10929_v52 = vpop.eup %10928  ;;  %v2775_v7 = vsel %vm13238_vm15, %v2774_v25, %v2770_v56  ;;  %v2836_v30 = vmul.f32 %v10923_v17, %v2737_v23  ;;  %v2741_v60 = vsub.f32 1.0, %v2740_v58  ;;  %vm2808_vm8 = vweird.f32 %v13261_v48 }
 0x40c   : > { %v2834_v45 = vmul.f32 %v2775_v7, %v12989_v55  ;;  %v2778_v4 = vmul.f32 %v10929_v52, %v13186_v63  ;;  %v10931_v1 = vpop.eup %10930  ;;  %v8606_v55 = vor.u32 %v10399_v27, %v8603_v34  ;;  %vm2783_vm2 = vweird.f32 %v10929_v52  ;;  %3075 = vmatpush.bf16.msrb.mxu1 %v8582_v32  ;;  %3089 = vmatpush.bf16.msrb.mxu2 %v8586_v51 }
 0x40d   : > { %v2742_v33 = vmul.f32 %v13247_v42, %v2741_v60  ;;  %v2801_v22 = vadd.f32 1.0, %v10931_v1  ;;  %v10933_v29 = vpop.eup %10932  ;;  %v2804_v5 = vsub.f32 1.0, %v2803_v21  ;;  %vm2784_vm6 = vmor %vm2782_vm3, %vm2783_vm2  ;;  %vm2807_vm9 = vweird.f32 %v13170_v2 }
 0x40e   : > { %v13302_v28 = vadd.f32 %v2836_v30, %v2834_v45  ;;  %v2779_v16 = vsub.f32 1.0, %v2778_v4  ;;  %3102 = vmatpush.bf16.msrb.mxu3 %v8606_v55  ;;  %v2813_v31 = vand.u32 2147483648, %v13170_v2  ;;  %vm2809_vm11 = vmor %vm2807_vm9, %vm2808_vm8  ;;  %v10454_v45 = vld [vmem:[%s16876_s2 + $0xe4] sm:$0xf]  ;;  %v8825_v4 = vld [vmem:[%s16876_s2 + $0xf0] sm:$0xf0]  ;;  %v782_v54 = vadd.f32 %v11878_v49, %v12095_v3 }
 0x40f   : > { %v2743_v10 = vadd.f32 %v13247_v42, %v2742_v33  ;;  %10934 = vrcp.f32 %v2801_v22  ;;  %v2805_v20 = vmul.f32 %v13261_v48, %v2804_v5  ;;  %v2828_v27 = vand.u32 2147483648, %v2801_v22  ;;  %v10455_v55 = vld [vmem:[%s16876_s2 + $0xec] sm:$0xf]  ;;  %v8807_v49 = vld [vmem:[%s16876_s2 + $0xc0] sm:$0xf] }
 0x410   : > { %v2780_v25 = vmul.f32 %v10929_v52, %v2779_v16  ;;  %10936 = vtanh.f32 %v13302_v28  ;;  %v2826_v23 = vand.u32 2147483647, %v2801_v22  ;;  %vm2822_vm12 = vweird.f32 %v2801_v22 }
 0x411   : > { %v2747_v12 = vsel %vm2746_vm4, %v13247_v42, %v2743_v10  ;;  %v2806_v63 = vadd.f32 %v13261_v48, %v2805_v20  ;;  %v2814_v24 = vor.u32 1.1754944e-38, %v2813_v31  ;;  %v2829_v15 = vor.u32 1.1754944e-38, %v2828_v27  ;;  %v8815_v10 = vld [vmem:[%s16876_s2 + $0xc8] sm:$0xf]  ;;  %v10446_v20 = vld [vmem:[%s16876_s2 + $0xa4] sm:$0xf] }
 0x412   : > { %v2781_v17 = vadd.f32 %v10929_v52, %v2780_v25  ;;  %v2752_v14 = vsel %vm2749_vm5, %v2751_v37, %v2747_v12  ;;  %3103 = vmatpush.bf16.msrb.mxu3 %v8590_v38  ;;  %vm2827_vm15 = vcmp.eq.f32.partialorder %v2826_v23, 8.507059e+37  ;;  %v871_v1 = vadd.f32 %v11880_v50, %v12120_v11  ;;  %v10452_v50 = vld [vmem:[%s16876_s2 + $0xcc] sm:$0xf0]  ;;  %v10450_v38 = vld [vmem:[%s16876_s2 + $0xc4] sm:$0xf]  ;;  %v16998_v31 = vld [vmem:[#allocation7_spill] sm:$0xff] }
 0x413   : > { %v2837_v39 = vmul.f32 %v10933_v29, %v2752_v14  ;;  %v2810_v58 = vsel %vm2809_vm11, %v13261_v48, %v2806_v63  ;;  %v8823_v48 = vld [vmem:[%s16876_s2 + $0xe0] sm:$0xf]  ;;  %v8828_v21 = vor.u32 %v10454_v45, %v8825_v4  ;;  %v8832_v26 = vor.u32 %v10457_v46, %v8831_v57  ;;  %v8809_v25 = vld [vmem:[%s16876_s2 + $0xd0] sm:$0xf0]  ;;  %v8817_v14 = vld [vmem:[%s16876_s2 + $0xd8] sm:$0xf0] }
 0x414   : > { %v2785_v6 = vsel %vm2784_vm6, %v10929_v52, %v2781_v17  ;;  %v8824_v60 = vor.u32 %v10456_v40, %v8823_v48  ;;  %v8808_v29 = vor.u32 %v10452_v50, %v8807_v49  ;;  %v8812_v12 = vor.u32 %v10450_v38, %v8809_v25  ;;  %v8799_v63 = vld [vmem:[%s16876_s2 + $0xa8] sm:$0xf]  ;;  %v8777_v45 = vld [vmem:[%s16876_s2 + $0x90] sm:$0xf0]  ;;  %v10440_v49 = vld [vmem:[%s16876_s2 + $0x6c] sm:$0xf0] }
 0x415   : > { %v2790_v13 = vsel %vm2787_vm7, %v2789_v0, %v2785_v6  ;;  %v10935_v42 = vpop.eup %10934  ;;  %3470 = vmatpush.bf16.msra.mxu1 %v8828_v21  ;;  %3484 = vmatpush.bf16.msra.mxu2 %v8832_v26  ;;  %v8816_v17 = vor.u32 %v10453_v36, %v8815_v10  ;;  %v10451_v0 = vld [vmem:[%s16876_s2 + $0xcc] sm:$0xf]  ;;  %v784_v27 = vadd.f32 %v16998_v31, %v12095_v3  ;;  %v10438_v50 = vld [vmem:[%s16876_s2 + $0x64] sm:$0xf]  ;;  %v8761_v38 = vld [vmem:[%s16876_s2 + $0x70] sm:$0xf0] }
 0x416   : > { %v2835_v35 = vmul.f32 %v2790_v13, %v13005_v19  ;;  %v2818_v18 = vmul.f32 %v10935_v42, %v2801_v22  ;;  %v2811_v19 = vand.u32 2147483647, %v13170_v2  ;;  %vm2823_vm10 = vweird.f32 %v10935_v42  ;;  %v10937_v43 = vpop.eup %10936  ;;  %3456 = vmatpush.bf16.msra.mxu0 %v8824_v60  ;;  %v10448_v13 = vld [vmem:[%s16876_s2 + $0xac] sm:$0xf0]  ;;  %v8783_v60 = vld [vmem:[%s16876_s2 + $0x88] sm:$0xf] }
 0x417   : > { %vm2824_vm13 = vmor %vm2822_vm12, %vm2823_vm10  ;;  %v8836_v22 = vor.u32 %v10455_v55, %v8833_v53  ;;  %v8820_v6 = vor.u32 %v10451_v0, %v8817_v14  ;;  %v10443_v53 = vld [vmem:[%s16876_s2 + $0x8c] sm:$0xf]  ;;  %v8767_v36 = vld [vmem:[%s16876_s2 + $0x68] sm:$0xf] }
 0x418   : > { %v13318_v9 = vadd.f32 %v2837_v39, %v2835_v35  ;;  %v2819_v62 = vsub.f32 1.0, %v2818_v18  ;;  %vm2812_vm14 = vcmp.eq.f32.partialorder %v2811_v19, 8.507059e+37  ;;  %v8791_v39 = vld [vmem:[%s16876_s2 + $0xa0] sm:$0xf]  ;;  %v1049_v35 = vadd.f32 %v11896_v61, %v12159_v41  ;;  %v8793_v18 = vld [vmem:[%s16876_s2 + $0xb0] sm:$0xf0] }
 0x419   : > { %v2815_v30 = vsel %vm2812_vm14, %v2814_v24, %v2810_v58  ;;  %3498 = vmatpush.bf16.msra.mxu3 %v8836_v22  ;;  %3471 = vmatpush.bf16.msra.mxu1 %v8812_v12  ;;  %v16999_v19 = vld [vmem:[#allocation8_spill] sm:$0xff]  ;;  %v8796_v23 = vor.u32 %v10446_v20, %v8793_v18  ;;  %v10447_v58 = vld [vmem:[%s16876_s2 + $0xac] sm:$0xf]  ;;  %v8769_v14 = vld [vmem:[%s16876_s2 + $0x78] sm:$0xf0] }
 0x41a   : > { %10938 = vtanh.f32 %v13318_v9  ;;  %v2820_v34 = vmul.f32 %v10935_v42, %v2819_v62  ;;  %v2842_v44 = vmul.f32 %v10937_v43, %v2815_v30  ;;  %3457 = vmatpush.bf16.msra.mxu0 %v8808_v29  ;;  %3485 = vmatpush.bf16.msra.mxu2 %v8816_v17  ;;  %v10449_v62 = vld [vmem:[%s16876_s2 + $0xb4] sm:$0xf0]  ;;  %v873_v61 = vadd.f32 %v16999_v19, %v12120_v11  ;;  %v8801_v43 = vld [vmem:[%s16876_s2 + $0xb8] sm:$0xf0]  ;;  %v17000_v29 = vld [vmem:[#allocation6_spill] sm:$0xff] }
 0x41b   : > { %v960_v25 = vadd.f32 %v17000_v29, %v12230_v47  ;;  %v10439_v0 = vld [vmem:[%s16876_s2 + $0x6c] sm:$0xf]  ;;  %v10436_v18 = vld [vmem:[%s16876_s2 + $0x4c] sm:$0xf0]  ;;  %v8745_v19 = vld [vmem:[%s16876_s2 + $0x50] sm:$0xf0] }
 0x41c   : > { %v2821_v56 = vadd.f32 %v10935_v42, %v2820_v34 }
 0x41d   : > { %3499 = vmatpush.bf16.msra.mxu3 %v8820_v6  ;;  %3472 = vmatpush.bf16.msra.mxu1 %v8796_v23 }
 0x41e   : > { %v2825_v7 = vsel %vm2824_vm13, %v10935_v42, %v2821_v56  ;;  %v8792_v42 = vor.u32 %v10448_v13, %v8791_v39  ;;  %v8800_v56 = vor.u32 %v10449_v62, %v8799_v63  ;;  %v8764_v13 = vor.u32 %v10438_v50, %v8761_v38  ;;  %v10434_v63 = vld [vmem:[%s16876_s2 + $0x44] sm:$0xf]  ;;  %v8729_v38 = vld [vmem:[%s16876_s2 + $0x30] sm:$0xf0] }
 0x41f   : > { %v2830_v8 = vsel %vm2827_vm15, %v2829_v15, %v2825_v7  ;;  %v8804_v7 = vor.u32 %v10447_v58, %v8801_v43  ;;  %v8748_v58 = vor.u32 %v10434_v63, %v8745_v19  ;;  %v10430_v50 = vld [vmem:[%s16876_s2 + $0x24] sm:$0xf] }
 0x420   : > { %v10939_v52 = vpop.eup %10938  ;;  %3458 = vmatpush.bf16.msra.mxu0 %v8792_v42  ;;  %3486 = vmatpush.bf16.msra.mxu2 %v8800_v56  ;;  %v8743_v42 = vld [vmem:[%s16876_s2 + $0x40] sm:$0xf] }
 0x421   : > { %v2843_v2 = vmul.f32 %v10939_v52, %v2830_v8  ;;  %3500 = vmatpush.bf16.msra.mxu3 %v8804_v7 }
 0x423   : > { %v2861_v59 = vpack.c.bf16 %v2843_v2, %v2842_v44  ;;  %v8775_v44 = vld [vmem:[%s16876_s2 + $0x80] sm:$0xf]  ;;  %v10444_v2 = vld [vmem:[%s16876_s2 + $0x8c] sm:$0xf0] }
 0x424   : > { %v8776_v40 = vor.u32 %v10444_v2, %v8775_v44 }
 0x425   : > { %3062 = vmatmul.bf16.vlgmr.msrb.gmra.mxu0 %v2861_v59  ;;  %3076 = vmatmul.bf16.vlgmr.msrb.gmra.mxu1 %v2861_v59 }
 0x426   : > { %3090 = vmatmul.bf16.vlgmr.msrb.gmra.mxu2 %v2861_v59  ;;  %3104 = vmatmul.bf16.vlgmr.msrb.gmra.mxu3 %v2861_v59  ;;  %v10442_v59 = vld [vmem:[%s16876_s2 + $0x84] sm:$0xf] }
 0x427   : > { %3459 = vmatpush.bf16.msra.mxu0 %v8776_v40 }
 0x4a2   : > { %v3063_v16 = vpop.f32.mrf.mxu0  ;;  %v3077_v33 = vpop.f32.mrf.mxu1 }
 0x4a3   : > { %v3110_v32 = vadd.f32 %v3063_v16, %v782_v54  ;;  %v3111_v51 = vadd.f32 %v3077_v33, %v871_v1  ;;  %v8780_v54 = vor.u32 %v10442_v59, %v8777_v45  ;;  %v10445_v1 = vld [vmem:[%s16876_s2 + $0x94] sm:$0xf0]  ;;  %v8785_v16 = vld [vmem:[%s16876_s2 + $0x98] sm:$0xf0] }
 0x4a4   : > { %v8784_v55 = vor.u32 %v10445_v1, %v8783_v60 }
 0x4a5   : > { %v8703_v37 = vmul.f32 -1.442695, %v3110_v32  ;;  %v8705_v5 = vmul.f32 -1.442695, %v3111_v51  ;;  %3473 = vmatpush.bf16.msra.mxu1 %v8780_v54  ;;  %v8788_v32 = vor.u32 %v10443_v53, %v8785_v16  ;;  %v8759_v51 = vld [vmem:[%s16876_s2 + $0x60] sm:$0xf] }
 0x4a6   : > { %3487 = vmatpush.bf16.msra.mxu2 %v8784_v55  ;;  %v8760_v17 = vor.u32 %v10440_v49, %v8759_v51  ;;  %v8753_v16 = vld [vmem:[%s16876_s2 + $0x58] sm:$0xf0] }
 0x4a7   : > { %10940 = vpow2.f32 %v8703_v37  ;;  %3501 = vmatpush.bf16.msra.mxu3 %v8788_v32  ;;  %v10441_v37 = vld [vmem:[%s16876_s2 + $0x74] sm:$0xf0]  ;;  %v10432_v32 = vld [vmem:[%s16876_s2 + $0x2c] sm:$0xf0] }
 0x4a8   : > { %10942 = vpow2.f32 %v8705_v5  ;;  %v17001_v5 = vld [vmem:[#allocation10_spill] sm:$0xff]  ;;  %v8768_v20 = vor.u32 %v10441_v37, %v8767_v36  ;;  %3460 = vmatpush.bf16.msra.mxu0 %v8760_v17 }
 0x4a9   : > { %v3105_v34 = vpop.f32.mrf.mxu3  ;;  %v3091_v22 = vpop.f32.mrf.mxu2  ;;  %v1051_v12 = vadd.f32 %v17001_v5, %v12159_v41  ;;  %3474 = vmatpush.bf16.msra.mxu1 %v8764_v13  ;;  %v10431_v13 = vld [vmem:[%s16876_s2 + $0x2c] sm:$0xf] }
 0x4aa   : > { %v3113_v24 = vadd.f32 %v3105_v34, %v1049_v35  ;;  %v3065_v15 = vpop.f32.mrf.mxu0  ;;  %v3079_v52 = vpop.f32.mrf.mxu1  ;;  %v3112_v39 = vadd.f32 %v3091_v22, %v960_v25  ;;  %v8772_v35 = vor.u32 %v10439_v0, %v8769_v14  ;;  %3488 = vmatpush.bf16.msra.mxu2 %v8768_v20  ;;  %v8727_v22 = vld [vmem:[%s16876_s2 + $0x20] sm:$0xf]  ;;  %v8737_v20 = vld [vmem:[%s16876_s2 + $0x38] sm:$0xf0] }
 0x4ab   : > { %v3114_v30 = vadd.f32 %v3065_v15, %v784_v27  ;;  %v3115_v8 = vadd.f32 %v3079_v52, %v873_v61  ;;  %v8744_v27 = vor.u32 %v10436_v18, %v8743_v42 }
 0x4ac   : > { %v8707_v48 = vmul.f32 -1.442695, %v3113_v24  ;;  %v17002_v24 = vld [vmem:[#allocation9_spill] sm:$0xff]  ;;  %3502 = vmatpush.bf16.msra.mxu3 %v8772_v35 }
 0x4ad   : > { %v10941_v4 = vpop.eup %10940  ;;  %v8704_v57 = vmul.f32 -1.442695, %v3114_v30  ;;  %v8706_v46 = vmul.f32 -1.442695, %v3115_v8  ;;  %v962_v15 = vadd.f32 %v17002_v24, %v12230_v47  ;;  %3461 = vmatpush.bf16.msra.mxu0 %v8744_v27  ;;  %3475 = vmatpush.bf16.msra.mxu1 %v8748_v58  ;;  %v10426_v27 = vld [vmem:[%s16876_s2 + $0x4] sm:$0xf]  ;;  %v8732_v58 = vor.u32 %v10430_v50, %v8729_v38 }
 0x4ae   : > { %v10943_v21 = vpop.eup %10942  ;;  %v13428_v26 = vadd.f32 1.0, %v10941_v4  ;;  %10944 = vpow2.f32 %v8707_v48  ;;  %v8719_v24 = vld [vmem:[%s16876_s2 + $0x8] sm:$0xf] }
 0x4af   : > { %v13436_v33 = vadd.f32 1.0, %v10943_v21  ;;  %10946 = vpow2.f32 %v8704_v57  ;;  %v8751_v57 = vld [vmem:[%s16876_s2 + $0x48] sm:$0xf]  ;;  %v10435_v21 = vld [vmem:[%s16876_s2 + $0x4c] sm:$0xf] }
 0x4b0   : > { %10948 = vrcp.f32 %v13428_v26  ;;  %v3135_v34 = vand.u32 2147483647, %v13428_v26  ;;  %v3137_v7 = vand.u32 2147483648, %v13428_v26  ;;  %vm3131_vm4 = vweird.f32 %v13428_v26 }
 0x4b1   : > { %10950 = vrcp.f32 %v13436_v33  ;;  %v3107_v10 = vpop.f32.mrf.mxu3  ;;  %v3175_v44 = vand.u32 2147483648, %v13436_v33  ;;  %v3173_v2 = vand.u32 2147483647, %v13436_v33  ;;  %v3093_v40 = vpop.f32.mrf.mxu2  ;;  %vm3169_vm3 = vweird.f32 %v13436_v33  ;;  %3476 = vmatpush.bf16.msra.mxu1 %v8732_v58  ;;  %v10488_v58 = vld [vmem:[%s16876_s2 + $0xec] sm:$0xf0] }
 0x4b2   : > { %10952 = vpow2.f32 %v8706_v46  ;;  %v3117_v31 = vadd.f32 %v3107_v10, %v1051_v12  ;;  %vm13502_vm1 = vcmp.eq.f32.partialorder %v3135_v34, 8.507059e+37  ;;  %v10437_v46 = vld [vmem:[%s16876_s2 + $0x54] sm:$0xf0]  ;;  %v3138_v1 = vor.u32 1.1754944e-38, %v3137_v7  ;;  %v8735_v12 = vld [vmem:[%s16876_s2 + $0x28] sm:$0xf] }
 0x4b3   : > { %10954 = vtanh.f32 %v3112_v39  ;;  %v3116_v53 = vadd.f32 %v3093_v40, %v962_v15  ;;  %v3176_v51 = vor.u32 1.1754944e-38, %v3175_v44  ;;  %vm13551_vm7 = vcmp.eq.f32.partialorder %v3173_v2, 8.507059e+37  ;;  %v10433_v39 = vld [vmem:[%s16876_s2 + $0x34] sm:$0xf0]  ;;  %v10427_v44 = vld [vmem:[%s16876_s2 + $0xc] sm:$0xf] }
 0x4b4   : > { %v10945_v6 = vpop.eup %10944  ;;  %v8708_v45 = vmul.f32 -1.442695, %v3117_v31  ;;  %v8756_v14 = vor.u32 %v10435_v21, %v8753_v16  ;;  %v10428_v31 = vld [vmem:[%s16876_s2 + $0xc] sm:$0xf0]  ;;  %v10429_v15 = vld [vmem:[%s16876_s2 + $0x14] sm:$0xf0] }
 0x4b5   : > { %v10947_v62 = vpop.eup %10946  ;;  %v13483_v23 = vadd.f32 1.0, %v10945_v6  ;;  %v8728_v6 = vor.u32 %v10432_v32, %v8727_v22  ;;  %v8721_v2 = vld [vmem:[%s16876_s2 + $0x18] sm:$0xf0]  ;;  %v8720_v21 = vor.u32 %v10429_v15, %v8719_v24  ;;  %v8959_v15 = vld [vmem:[%s16876_s2 + $0xf0] sm:$0xf0] }
 0x4b6   : > { %v13480_v61 = vpop.eup %10948  ;;  %v13485_v56 = vadd.f32 1.0, %v10947_v62  ;;  %v8711_v62 = vld [vmem:[%s16876_s2] sm:$0xf]  ;;  %3503 = vmatpush.bf16.msra.mxu3 %v8756_v14 }
 0x4b7   : > { %v13487_v43 = vpop.eup %10950  ;;  %v3127_v52 = vmul.f32 %v13480_v61, %v13428_v26  ;;  %vm3132_vm0 = vweird.f32 %v13480_v61  ;;  %3462 = vmatpush.bf16.msra.mxu0 %v8728_v6 }
 0x4b8   : > { %v10953_v30 = vpop.eup %10952  ;;  %v3165_v8 = vmul.f32 %v13487_v43, %v13436_v33  ;;  %10956 = vrcp.f32 %v13485_v56  ;;  %vm3170_vm2 = vweird.f32 %v13487_v43  ;;  %vm13534_vm5 = vmor %vm3131_vm4, %vm3132_vm0  ;;  %v8752_v33 = vor.u32 %v10437_v46, %v8751_v57 }
 0x4b9   : > { %v3128_v59 = vsub.f32 1.0, %v3127_v52  ;;  %v13499_v48 = vadd.f32 1.0, %v10953_v30  ;;  %10958 = vrcp.f32 %v13483_v23  ;;  %v10955_v29 = vpop.eup %10954  ;;  %vm13546_vm6 = vmor %vm3169_vm3, %vm3170_vm2  ;;  %v3150_v5 = vand.u32 2147483647, %v13485_v56 }
 0x4ba   : > { %v3166_v60 = vsub.f32 1.0, %v3165_v8  ;;  %3489 = vmatpush.bf16.msra.mxu2 %v8752_v33  ;;  %vm3146_vm8 = vweird.f32 %v13485_v56  ;;  %v3152_v8 = vand.u32 2147483648, %v13485_v56 }
 0x4bb   : > { %v3129_v54 = vmul.f32 %v13480_v61, %v3128_v59  ;;  %10960 = vrcp.f32 %v13499_v48  ;;  %v3190_v37 = vand.u32 2147483648, %v13499_v48  ;;  %v3188_v32 = vand.u32 2147483647, %v13499_v48 }
 0x4bc   : > { %v3167_v55 = vmul.f32 %v13487_v43, %v3166_v60  ;;  %10962 = vpow2.f32 %v8708_v45  ;;  %v8736_v45 = vor.u32 %v10433_v39, %v8735_v12  ;;  %v8712_v60 = vor.u32 %v10428_v31, %v8711_v62 }
 0x4bd   : > { %v3130_v49 = vadd.f32 %v13480_v61, %v3129_v54  ;;  %10964 = vtanh.f32 %v3116_v53  ;;  %vm3184_vm11 = vweird.f32 %v13499_v48  ;;  %vm3151_vm13 = vcmp.eq.f32.partialorder %v3150_v5, 8.507059e+37 }
 0x4be   : > { %v3168_v10 = vadd.f32 %v13487_v43, %v3167_v55  ;;  %v13560_v17 = vpop.eup %10956  ;;  %3490 = vmatpush.bf16.msra.mxu2 %v8736_v45  ;;  %v8724_v55 = vor.u32 %v10427_v44, %v8721_v2  ;;  %3463 = vmatpush.bf16.msra.mxu0 %v8712_v60  ;;  %v3191_v50 = vor.u32 1.1754944e-38, %v3190_v37  ;;  %vm3189_vm15 = vcmp.eq.f32.partialorder %v3188_v32, 8.507059e+37  ;;  %v17012_v44 = vld [vmem:[#allocation12_spill] sm:$0xff]  ;;  %v10487_v45 = vld [vmem:[%s16876_s2 + $0xec] sm:$0xf] }
 0x4bf   : > { %v3134_v0 = vsel %vm13534_vm5, %v13480_v61, %v3130_v49  ;;  %v13574_v35 = vpop.eup %10958  ;;  %v3142_v63 = vmul.f32 %v13560_v17, %v13485_v56  ;;  %vm3147_vm9 = vweird.f32 %v13560_v17  ;;  %v3215_v5 = vand.u32 2147483648, %v13483_v23  ;;  %v8949_v32 = vld [vmem:[%s16876_s2 + $0xc8] sm:$0xf] }
 0x4c0   : > { %v3139_v42 = vsel %vm13502_vm1, %v3138_v1, %v3134_v0  ;;  %v3172_v18 = vsel %vm13546_vm6, %v13487_v43, %v3168_v10  ;;  %v8713_v43 = vld [vmem:[%s16876_s2 + $0x10] sm:$0xf0]  ;;  %v3205_v40 = vmul.f32 %v13574_v35, %v13483_v23  ;;  %vm3148_vm12 = vmor %vm3146_vm8, %vm3147_vm9  ;;  %vm3210_vm0 = vweird.f32 %v13574_v35 }
 0x4c1   : > { %v10961_v19 = vpop.eup %10960  ;;  %v3177_v61 = vsel %vm13551_vm7, %v3176_v51, %v3172_v18  ;;  %v3238_v34 = vmul.f32 %v10955_v29, %v3139_v42  ;;  %v3143_v7 = vsub.f32 1.0, %v3142_v63  ;;  %v8716_v1 = vor.u32 %v10426_v27, %v8713_v43  ;;  %v10486_v43 = vld [vmem:[%s16876_s2 + $0xe4] sm:$0xf] }
 0x4c2   : > { %v3236_v52 = vmul.f32 %v3177_v61, %v13302_v28  ;;  %v3180_v30 = vmul.f32 %v10961_v19, %v13499_v48  ;;  %v10963_v59 = vpop.eup %10962  ;;  %v8740_v28 = vor.u32 %v10431_v13, %v8737_v20  ;;  %vm3185_vm10 = vweird.f32 %v10961_v19  ;;  %3491 = vmatpush.bf16.msra.mxu2 %v8720_v21  ;;  %v8941_v21 = vld [vmem:[%s16876_s2 + $0xc0] sm:$0xf] }
 0x4c3   : > { %v3144_v46 = vmul.f32 %v13560_v17, %v3143_v7  ;;  %v3203_v54 = vadd.f32 1.0, %v10963_v59  ;;  %v10965_v53 = vpop.eup %10964  ;;  %v3153_v51 = vor.u32 1.1754944e-38, %v3152_v8  ;;  %3477 = vmatpush.bf16.msra.mxu1 %v8716_v1  ;;  %v3206_v49 = vsub.f32 1.0, %v3205_v40  ;;  %vm3186_vm14 = vmor %vm3184_vm11, %vm3185_vm10  ;;  %v10489_v7 = vld [vmem:[%s16876_s2 + $0xf4] sm:$0xf0] }
 0x4c4   : > { %v13615_v4 = vadd.f32 %v3238_v34, %v3236_v52  ;;  %v3181_v57 = vsub.f32 1.0, %v3180_v30  ;;  %3504 = vmatpush.bf16.msra.mxu3 %v8740_v28  ;;  %vm3209_vm1 = vweird.f32 %v13483_v23  ;;  %v3216_v18 = vor.u32 1.1754944e-38, %v3215_v5  ;;  %v8965_v52 = vld [vmem:[%s16876_s2 + $0xe8] sm:$0xf]  ;;  %v8967_v28 = vld [vmem:[%s16876_s2 + $0xf8] sm:$0xf0] }
 0x4c5   : > { %v3145_v22 = vadd.f32 %v13560_v17, %v3144_v46  ;;  %10966 = vrcp.f32 %v3203_v54  ;;  %v3207_v36 = vmul.f32 %v13574_v35, %v3206_v49  ;;  %v3230_v14 = vand.u32 2147483648, %v3203_v54  ;;  %vm3211_vm3 = vmor %vm3209_vm1, %vm3210_vm0  ;;  %v17011_v30 = vld [vmem:[#allocation11_spill] sm:$0xff] }
 0x4c6   : > { %v3182_v16 = vmul.f32 %v10961_v19, %v3181_v57  ;;  %10968 = vtanh.f32 %v13615_v4  ;;  %v3228_v39 = vand.u32 2147483647, %v3203_v54  ;;  %vm3224_vm4 = vweird.f32 %v3203_v54  ;;  %v8933_v5 = vld [vmem:[%s16876_s2 + $0xa8] sm:$0xf] }
 0x4c7   : > { %v3149_v26 = vsel %vm3148_vm12, %v13560_v17, %v3145_v22  ;;  %v3208_v48 = vadd.f32 %v13574_v35, %v3207_v36  ;;  %v3231_v63 = vor.u32 1.1754944e-38, %v3230_v14  ;;  %v787_v8 = vadd.f32 %v17011_v30, %v12095_v3  ;;  %v8943_v22 = vld [vmem:[%s16876_s2 + $0xd0] sm:$0xf0]  ;;  %v10480_v36 = vld [vmem:[%s16876_s2 + $0xac] sm:$0xf0] }
 0x4c8   : > { %v3183_v33 = vadd.f32 %v10961_v19, %v3182_v16  ;;  %v3154_v38 = vsel %vm3151_vm13, %v3153_v51, %v3149_v26  ;;  %3505 = vmatpush.bf16.msra.mxu3 %v8724_v55  ;;  %vm3229_vm7 = vcmp.eq.f32.partialorder %v3228_v39, 8.507059e+37  ;;  %v876_v2 = vadd.f32 %v17012_v44, %v12120_v11  ;;  %v10484_v55 = vld [vmem:[%s16876_s2 + $0xcc] sm:$0xf0]  ;;  %v10485_v51 = vld [vmem:[%s16876_s2 + $0xd4] sm:$0xf0] }
 0x4c9   : > { %v3239_v25 = vmul.f32 %v10965_v53, %v3154_v38  ;;  %v3212_v20 = vsel %vm3211_vm3, %v13574_v35, %v3208_v48  ;;  %v8957_v35 = vld [vmem:[%s16876_s2 + $0xe0] sm:$0xf]  ;;  %v8962_v59 = vor.u32 %v10486_v43, %v8959_v15  ;;  %v8966_v40 = vor.u32 %v10489_v7, %v8965_v52  ;;  %v10482_v53 = vld [vmem:[%s16876_s2 + $0xc4] sm:$0xf]  ;;  %v10483_v38 = vld [vmem:[%s16876_s2 + $0xcc] sm:$0xf] }
 0x4ca   : > { %v3187_v29 = vsel %vm3186_vm14, %v10961_v19, %v3183_v33  ;;  %v8958_v24 = vor.u32 %v10488_v58, %v8957_v35  ;;  %v8970_v46 = vor.u32 %v10487_v45, %v8967_v28  ;;  %v8942_v16 = vor.u32 %v10484_v55, %v8941_v21  ;;  %v10481_v14 = vld [vmem:[%s16876_s2 + $0xb4] sm:$0xf0]  ;;  %v17015_v39 = vld [vmem:[#allocation16_spill] sm:$0xff]  ;;  %v8909_v35 = vld [vmem:[%s16876_s2 + $0x80] sm:$0xf] }
 0x4cb   : > { %v3192_v10 = vsel %vm3189_vm15, %v3191_v50, %v3187_v29  ;;  %v10967_v17 = vpop.eup %10966  ;;  %3872 = vmatpush.bf16.msrb.mxu1 %v8962_v59  ;;  %3886 = vmatpush.bf16.msrb.mxu2 %v8966_v40  ;;  %v8946_v33 = vor.u32 %v10482_v53, %v8943_v22  ;;  %v8950_v50 = vor.u32 %v10485_v51, %v8949_v32  ;;  %v8951_v29 = vld [vmem:[%s16876_s2 + $0xd8] sm:$0xf0]  ;;  %v10476_v58 = vld [vmem:[%s16876_s2 + $0x8c] sm:$0xf0]  ;;  %v10474_v43 = vld [vmem:[%s16876_s2 + $0x84] sm:$0xf] }
 0x4cc   : > { %v3237_v12 = vmul.f32 %v3192_v10, %v13318_v9  ;;  %v3220_v56 = vmul.f32 %v10967_v17, %v3203_v54  ;;  %v3213_v9 = vand.u32 2147483647, %v13483_v23  ;;  %vm3225_vm2 = vweird.f32 %v10967_v17  ;;  %v10969_v42 = vpop.eup %10968  ;;  %3858 = vmatpush.bf16.msrb.mxu0 %v8958_v24  ;;  %3900 = vmatpush.bf16.msrb.mxu3 %v8970_v46  ;;  %v8925_v10 = vld [vmem:[%s16876_s2 + $0xa0] sm:$0xf]  ;;  %v8911_v52 = vld [vmem:[%s16876_s2 + $0x90] sm:$0xf0] }
 0x4cd   : > { %vm3226_vm5 = vmor %vm3224_vm4, %vm3225_vm2  ;;  %v8926_v48 = vor.u32 %v10480_v36, %v8925_v10  ;;  %v8910_v15 = vor.u32 %v10476_v58, %v8909_v35  ;;  %v8917_v7 = vld [vmem:[%s16876_s2 + $0x88] sm:$0xf]  ;;  %v10477_v59 = vld [vmem:[%s16876_s2 + $0x94] sm:$0xf0] }
 0x4ce   : > { %v13631_v0 = vadd.f32 %v3239_v25, %v3237_v12  ;;  %v3221_v37 = vsub.f32 1.0, %v3220_v56  ;;  %vm3214_vm6 = vcmp.eq.f32.partialorder %v3213_v9, 8.507059e+37  ;;  %v8954_v25 = vor.u32 %v10483_v38, %v8951_v29  ;;  %v10478_v12 = vld [vmem:[%s16876_s2 + $0xa4] sm:$0xf]  ;;  %v17014_v9 = vld [vmem:[#allocation15_spill] sm:$0xff]  ;;  %v17016_v22 = vld [vmem:[#allocation13_spill] sm:$0xff] }
 0x4cf   : > { %v3217_v27 = vsel %vm3214_vm6, %v3216_v18, %v3212_v20  ;;  %3873 = vmatpush.bf16.msrb.mxu1 %v8946_v33  ;;  %3887 = vmatpush.bf16.msrb.mxu2 %v8950_v50  ;;  %v8934_v18 = vor.u32 %v10481_v14, %v8933_v5  ;;  %v8918_v28 = vor.u32 %v10477_v59, %v8917_v7  ;;  %v8893_v21 = vld [vmem:[%s16876_s2 + $0x60] sm:$0xf]  ;;  %v10472_v55 = vld [vmem:[%s16876_s2 + $0x6c] sm:$0xf0]  ;;  %v10470_v53 = vld [vmem:[%s16876_s2 + $0x64] sm:$0xf] }
 0x4d0   : > { %10970 = vtanh.f32 %v13631_v0  ;;  %v3222_v6 = vmul.f32 %v10967_v17, %v3221_v37  ;;  %v3244_v61 = vmul.f32 %v10969_v42, %v3217_v27  ;;  %3859 = vmatpush.bf16.msrb.mxu0 %v8942_v16  ;;  %v8927_v37 = vld [vmem:[%s16876_s2 + $0xb0] sm:$0xf0]  ;;  %3901 = vmatpush.bf16.msrb.mxu3 %v8954_v25  ;;  %v965_v32 = vadd.f32 %v17016_v22, %v12230_v47  ;;  %v17017_v33 = vld [vmem:[#allocation18_spill] sm:$0xff]  ;;  %v10471_v29 = vld [vmem:[%s16876_s2 + $0x6c] sm:$0xf] }
 0x4d1   : > { %v8930_v42 = vor.u32 %v10478_v12, %v8927_v37  ;;  %v8895_v16 = vld [vmem:[%s16876_s2 + $0x70] sm:$0xf0]  ;;  %v1056_v50 = vadd.f32 %v17017_v33, %v12159_v41  ;;  %v8894_v38 = vor.u32 %v10472_v55, %v8893_v21  ;;  %v8903_v25 = vld [vmem:[%s16876_s2 + $0x78] sm:$0xf0]  ;;  %v10468_v37 = vld [vmem:[%s16876_s2 + $0x4c] sm:$0xf0] }
 0x4d2   : > { %v3223_v13 = vadd.f32 %v10967_v17, %v3222_v6  ;;  %v789_v6 = vadd.f32 %v17014_v9, %v12095_v3  ;;  %v8898_v12 = vor.u32 %v10470_v53, %v8895_v16  ;;  %v10466_v5 = vld [vmem:[%s16876_s2 + $0x44] sm:$0xf]  ;;  %v8863_v16 = vld [vmem:[%s16876_s2 + $0x30] sm:$0xf0] }
 0x4d3   : > { %3874 = vmatpush.bf16.msrb.mxu1 %v8930_v42  ;;  %3888 = vmatpush.bf16.msrb.mxu2 %v8934_v18  ;;  %v10462_v53 = vld [vmem:[%s16876_s2 + $0x24] sm:$0xf] }
 0x4d4   : > { %v3227_v31 = vsel %vm3226_vm5, %v10967_v17, %v3223_v13  ;;  %v17013_v17 = vld [vmem:[#allocation14_spill] sm:$0xff]  ;;  %v878_v13 = vadd.f32 %v17015_v39, %v12120_v11  ;;  %3860 = vmatpush.bf16.msrb.mxu0 %v8926_v48  ;;  %v8879_v39 = vld [vmem:[%s16876_s2 + $0x50] sm:$0xf0] }
 0x4d5   : > { %v3232_v19 = vsel %vm3229_vm7, %v3231_v63, %v3227_v31  ;;  %v1054_v56 = vadd.f32 %v17013_v17, %v12159_v41  ;;  %v10479_v63 = vld [vmem:[%s16876_s2 + $0xac] sm:$0xf]  ;;  %v8877_v48 = vld [vmem:[%s16876_s2 + $0x40] sm:$0xf] }
 0x4d6   : > { %v10971_v62 = vpop.eup %10970 }
 0x4d7   : > { %v3245_v23 = vmul.f32 %v10971_v62, %v3232_v19  ;;  %v8935_v62 = vld [vmem:[%s16876_s2 + $0xb8] sm:$0xf0]  ;;  %3889 = vmatpush.bf16.msrb.mxu2 %v8918_v28 }
 0x4d8   : > { %3861 = vmatpush.bf16.msrb.mxu0 %v8910_v15 }
 0x4d9   : > { %v3263_v34 = vpack.c.bf16 %v3245_v23, %v3244_v61  ;;  %v8938_v61 = vor.u32 %v10479_v63, %v8935_v62  ;;  %v8882_v63 = vor.u32 %v10466_v5, %v8879_v39 }
 0x4db   : > { %3464 = vmatmul.bf16.vlgmr.msra.gmra.mxu0 %v3263_v34  ;;  %3478 = vmatmul.bf16.vlgmr.msra.gmra.mxu1 %v3263_v34 }
 0x4dc   : > { %3492 = vmatmul.bf16.vlgmr.msra.gmra.mxu2 %v3263_v34  ;;  %3506 = vmatmul.bf16.vlgmr.msra.gmra.mxu3 %v3263_v34 }
 0x4dd   : > { %3902 = vmatpush.bf16.msrb.mxu3 %v8938_v61  ;;  %3862 = vmatpush.bf16.msrb.mxu0 %v8894_v38 }
 0x558   : > { %v3465_v60 = vpop.f32.mrf.mxu0  ;;  %v3479_v57 = vpop.f32.mrf.mxu1 }
 0x559   : > { %v3512_v54 = vadd.f32 %v3465_v60, %v787_v8  ;;  %v3513_v1 = vadd.f32 %v3479_v57, %v876_v2  ;;  %v8914_v2 = vor.u32 %v10474_v43, %v8911_v52  ;;  %v10475_v60 = vld [vmem:[%s16876_s2 + $0x8c] sm:$0xf]  ;;  %v8919_v57 = vld [vmem:[%s16876_s2 + $0x98] sm:$0xf0] }
 0x55b   : > { %v8837_v49 = vmul.f32 -1.442695, %v3512_v54  ;;  %v8839_v26 = vmul.f32 -1.442695, %v3513_v1  ;;  %3875 = vmatpush.bf16.msrb.mxu1 %v8914_v2  ;;  %v8922_v1 = vor.u32 %v10475_v60, %v8919_v57  ;;  %v8887_v57 = vld [vmem:[%s16876_s2 + $0x58] sm:$0xf0] }
 0x55d   : > { %10972 = vpow2.f32 %v8837_v49  ;;  %3903 = vmatpush.bf16.msrb.mxu3 %v8922_v1  ;;  %v8901_v49 = vld [vmem:[%s16876_s2 + $0x68] sm:$0xf]  ;;  %v10464_v1 = vld [vmem:[%s16876_s2 + $0x2c] sm:$0xf0] }
 0x55e   : > { %10974 = vpow2.f32 %v8839_v26  ;;  %v10473_v26 = vld [vmem:[%s16876_s2 + $0x74] sm:$0xf0] }
 0x55f   : > { %v3507_v20 = vpop.f32.mrf.mxu3  ;;  %v3493_v54 = vpop.f32.mrf.mxu2  ;;  %v8902_v17 = vor.u32 %v10473_v26, %v8901_v49  ;;  %3876 = vmatpush.bf16.msrb.mxu1 %v8898_v12  ;;  %v10463_v12 = vld [vmem:[%s16876_s2 + $0x2c] sm:$0xf] }
 0x560   : > { %v3515_v31 = vadd.f32 %v3507_v20, %v1054_v56  ;;  %v3467_v27 = vpop.f32.mrf.mxu0  ;;  %v3481_v19 = vpop.f32.mrf.mxu1  ;;  %v3514_v36 = vadd.f32 %v3493_v54, %v965_v32  ;;  %v8906_v56 = vor.u32 %v10471_v29, %v8903_v25  ;;  %v8861_v54 = vld [vmem:[%s16876_s2 + $0x20] sm:$0xf] }
 0x561   : > { %v3516_v23 = vadd.f32 %v3467_v27, %v789_v6  ;;  %v3517_v34 = vadd.f32 %v3481_v19, %v878_v13  ;;  %v8878_v6 = vor.u32 %v10468_v37, %v8877_v48  ;;  %3890 = vmatpush.bf16.msrb.mxu2 %v8902_v17  ;;  %v8871_v17 = vld [vmem:[%s16876_s2 + $0x38] sm:$0xf0] }
 0x562   : > { %v8841_v24 = vmul.f32 -1.442695, %v3515_v31  ;;  %v17018_v31 = vld [vmem:[#allocation17_spill] sm:$0xff]  ;;  %3904 = vmatpush.bf16.msrb.mxu3 %v8906_v56 }
 0x563   : > { %v10973_v30 = vpop.eup %10972  ;;  %v8838_v8 = vmul.f32 -1.442695, %v3516_v23  ;;  %v8840_v44 = vmul.f32 -1.442695, %v3517_v34  ;;  %v967_v27 = vadd.f32 %v17018_v31, %v12230_v47  ;;  %3863 = vmatpush.bf16.msrb.mxu0 %v8878_v6  ;;  %3877 = vmatpush.bf16.msrb.mxu1 %v8882_v63  ;;  %v10458_v6 = vld [vmem:[%s16876_s2 + $0x4] sm:$0xf]  ;;  %v8866_v63 = vor.u32 %v10462_v53, %v8863_v16 }
 0x564   : > { %v10975_v40 = vpop.eup %10974  ;;  %v13741_v45 = vadd.f32 1.0, %v10973_v30  ;;  %10976 = vpow2.f32 %v8841_v24  ;;  %v8853_v31 = vld [vmem:[%s16876_s2 + $0x8] sm:$0xf] }
 0x565   : > { %v13749_v46 = vadd.f32 1.0, %v10975_v40  ;;  %10978 = vpow2.f32 %v8838_v8  ;;  %v8885_v8 = vld [vmem:[%s16876_s2 + $0x48] sm:$0xf]  ;;  %v10467_v40 = vld [vmem:[%s16876_s2 + $0x4c] sm:$0xf] }
 0x566   : > { %10980 = vrcp.f32 %v13741_v45  ;;  %v3537_v20 = vand.u32 2147483647, %v13741_v45  ;;  %v3539_v61 = vand.u32 2147483648, %v13741_v45  ;;  %vm3533_vm12 = vweird.f32 %v13741_v45 }
 0x567   : > { %10982 = vrcp.f32 %v13749_v46  ;;  %v3509_v51 = vpop.f32.mrf.mxu3  ;;  %v3577_v35 = vand.u32 2147483648, %v13749_v46  ;;  %v3575_v58 = vand.u32 2147483647, %v13749_v46  ;;  %v3495_v15 = vpop.f32.mrf.mxu2  ;;  %vm3571_vm11 = vweird.f32 %v13749_v46  ;;  %3878 = vmatpush.bf16.msrb.mxu1 %v8866_v63  ;;  %v10520_v63 = vld [vmem:[%s16876_s2 + $0xec] sm:$0xf0] }
 0x568   : > { %10984 = vpow2.f32 %v8840_v44  ;;  %v3519_v9 = vadd.f32 %v3509_v51, %v1056_v50  ;;  %vm13815_vm9 = vcmp.eq.f32.partialorder %v3537_v20, 8.507059e+37  ;;  %v10469_v44 = vld [vmem:[%s16876_s2 + $0x54] sm:$0xf0]  ;;  %v3540_v59 = vor.u32 1.1754944e-38, %v3539_v61  ;;  %v8869_v50 = vld [vmem:[%s16876_s2 + $0x28] sm:$0xf] }
 0x569   : > { %10986 = vtanh.f32 %v3514_v36  ;;  %v3518_v60 = vadd.f32 %v3495_v15, %v967_v27  ;;  %v3578_v21 = vor.u32 1.1754944e-38, %v3577_v35  ;;  %vm13864_vm15 = vcmp.eq.f32.partialorder %v3575_v58, 8.507059e+37  ;;  %v10465_v36 = vld [vmem:[%s16876_s2 + $0x34] sm:$0xf0]  ;;  %v10459_v35 = vld [vmem:[%s16876_s2 + $0xc] sm:$0xf] }
 0x56a   : > { %v10977_v10 = vpop.eup %10976  ;;  %v8842_v52 = vmul.f32 -1.442695, %v3519_v9  ;;  %v8890_v25 = vor.u32 %v10467_v40, %v8887_v57  ;;  %v10460_v9 = vld [vmem:[%s16876_s2 + $0xc] sm:$0xf0]  ;;  %v10461_v27 = vld [vmem:[%s16876_s2 + $0x14] sm:$0xf0] }
 0x56b   : > { %v10979_v14 = vpop.eup %10978  ;;  %v13796_v42 = vadd.f32 1.0, %v10977_v10  ;;  %v8862_v10 = vor.u32 %v10464_v1, %v8861_v54  ;;  %v8855_v58 = vld [vmem:[%s16876_s2 + $0x18] sm:$0xf0]  ;;  %v8854_v40 = vor.u32 %v10461_v27, %v8853_v31  ;;  %v9093_v27 = vld [vmem:[%s16876_s2 + $0xf0] sm:$0xf0] }
 0x56c   : > { %v13793_v13 = vpop.eup %10980  ;;  %v13798_v18 = vadd.f32 1.0, %v10979_v14  ;;  %v8845_v14 = vld [vmem:[%s16876_s2] sm:$0xf]  ;;  %3905 = vmatpush.bf16.msrb.mxu3 %v8890_v25 }
 0x56d   : > { %v13800_v62 = vpop.eup %10982  ;;  %v3529_v19 = vmul.f32 %v13793_v13, %v13741_v45  ;;  %vm3534_vm8 = vweird.f32 %v13793_v13  ;;  %3864 = vmatpush.bf16.msrb.mxu0 %v8862_v10 }
 0x56e   : > { %v10985_v23 = vpop.eup %10984  ;;  %v3567_v34 = vmul.f32 %v13800_v62, %v13749_v46  ;;  %10988 = vrcp.f32 %v13798_v18  ;;  %vm3572_vm10 = vweird.f32 %v13800_v62  ;;  %vm13847_vm13 = vmor %vm3533_vm12, %vm3534_vm8  ;;  %v8886_v46 = vor.u32 %v10469_v44, %v8885_v8 }
 0x56f   : > { %v3530_v43 = vsub.f32 1.0, %v3529_v19  ;;  %v13812_v24 = vadd.f32 1.0, %v10985_v23  ;;  %10990 = vrcp.f32 %v13796_v42  ;;  %v10987_v22 = vpop.eup %10986  ;;  %vm13859_vm14 = vmor %vm3571_vm11, %vm3572_vm10  ;;  %v3552_v33 = vand.u32 2147483647, %v13798_v18 }
 0x570   : > { %v3568_v7 = vsub.f32 1.0, %v3567_v34  ;;  %3891 = vmatpush.bf16.msrb.mxu2 %v8886_v46  ;;  %vm3548_vm0 = vweird.f32 %v13798_v18  ;;  %v3554_v34 = vand.u32 2147483648, %v13798_v18 }
 0x571   : > { %v3531_v2 = vmul.f32 %v13793_v13, %v3530_v43  ;;  %10992 = vrcp.f32 %v13812_v24  ;;  %v3592_v26 = vand.u32 2147483648, %v13812_v24  ;;  %v3590_v1 = vand.u32 2147483647, %v13812_v24 }
 0x572   : > { %v3569_v28 = vmul.f32 %v13800_v62, %v3568_v7  ;;  %10994 = vpow2.f32 %v8842_v52  ;;  %v8870_v52 = vor.u32 %v10465_v36, %v8869_v50  ;;  %v8846_v7 = vor.u32 %v10460_v9, %v8845_v14 }
 0x573   : > { %v3532_v55 = vadd.f32 %v13793_v13, %v3531_v2  ;;  %10996 = vtanh.f32 %v3518_v60  ;;  %vm3586_vm3 = vweird.f32 %v13812_v24  ;;  %vm3553_vm5 = vcmp.eq.f32.partialorder %v3552_v33, 8.507059e+37 }
 0x574   : > { %v3570_v51 = vadd.f32 %v13800_v62, %v3569_v28  ;;  %v13873_v38 = vpop.eup %10988  ;;  %3892 = vmatpush.bf16.msrb.mxu2 %v8870_v52  ;;  %v8858_v28 = vor.u32 %v10459_v35, %v8855_v58  ;;  %3865 = vmatpush.bf16.msrb.mxu0 %v8846_v7  ;;  %v3593_v53 = vor.u32 1.1754944e-38, %v3592_v26  ;;  %vm3591_vm7 = vcmp.eq.f32.partialorder %v3590_v1, 8.507059e+37  ;;  %v17028_v35 = vld [vmem:[#allocation20_spill] sm:$0xff]  ;;  %v10519_v52 = vld [vmem:[%s16876_s2 + $0xec] sm:$0xf] }
 0x575   : > { %v3536_v29 = vsel %vm13847_vm13, %v13793_v13, %v3532_v55  ;;  %v13887_v56 = vpop.eup %10990  ;;  %v3544_v5 = vmul.f32 %v13873_v38, %v13798_v18  ;;  %vm3549_vm1 = vweird.f32 %v13873_v38  ;;  %v3617_v33 = vand.u32 2147483648, %v13796_v42  ;;  %v9083_v1 = vld [vmem:[%s16876_s2 + $0xc8] sm:$0xf] }
 0x576   : > { %v3541_v48 = vsel %vm13815_vm9, %v3540_v59, %v3536_v29  ;;  %v3574_v37 = vsel %vm13859_vm14, %v13800_v62, %v3570_v51  ;;  %v8847_v62 = vld [vmem:[%s16876_s2 + $0x10] sm:$0xf0]  ;;  %v3607_v15 = vmul.f32 %v13887_v56, %v13796_v42  ;;  %vm3550_vm4 = vmor %vm3548_vm0, %vm3549_vm1  ;;  %vm3612_vm8 = vweird.f32 %v13887_v56 }
 0x577   : > { %v10993_v39 = vpop.eup %10992  ;;  %v3579_v13 = vsel %vm13864_vm15, %v3578_v21, %v3574_v37  ;;  %v3640_v20 = vmul.f32 %v10987_v22, %v3541_v48  ;;  %v3545_v61 = vsub.f32 1.0, %v3544_v5  ;;  %v8850_v59 = vor.u32 %v10458_v6, %v8847_v62  ;;  %v10518_v62 = vld [vmem:[%s16876_s2 + $0xe4] sm:$0xf] }
 0x578   : > { %v3638_v19 = vmul.f32 %v3579_v13, %v13615_v4  ;;  %v3582_v23 = vmul.f32 %v10993_v39, %v13812_v24  ;;  %v10995_v43 = vpop.eup %10994  ;;  %v8874_v4 = vor.u32 %v10463_v12, %v8871_v17  ;;  %vm3587_vm2 = vweird.f32 %v10993_v39  ;;  %3893 = vmatpush.bf16.msrb.mxu2 %v8854_v40  ;;  %v9075_v40 = vld [vmem:[%s16876_s2 + $0xc0] sm:$0xf] }
 0x579   : > { %v3546_v44 = vmul.f32 %v13873_v38, %v3545_v61  ;;  %v3605_v2 = vadd.f32 1.0, %v10995_v43  ;;  %v10997_v60 = vpop.eup %10996  ;;  %v3555_v21 = vor.u32 1.1754944e-38, %v3554_v34  ;;  %3879 = vmatpush.bf16.msrb.mxu1 %v8850_v59  ;;  %v3608_v55 = vsub.f32 1.0, %v3607_v15  ;;  %vm3588_vm6 = vmor %vm3586_vm3, %vm3587_vm2  ;;  %v10521_v61 = vld [vmem:[%s16876_s2 + $0xf4] sm:$0xf0] }
 0x57a   : > { %v13928_v30 = vadd.f32 %v3640_v20, %v3638_v19  ;;  %v3583_v8 = vsub.f32 1.0, %v3582_v23  ;;  %3906 = vmatpush.bf16.msrb.mxu3 %v8874_v4  ;;  %vm3611_vm9 = vweird.f32 %v13796_v42  ;;  %v3618_v37 = vor.u32 1.1754944e-38, %v3617_v33  ;;  %v9099_v19 = vld [vmem:[%s16876_s2 + $0xe8] sm:$0xf]  ;;  %v9101_v4 = vld [vmem:[%s16876_s2 + $0xf8] sm:$0xf0] }
 0x57b   : > { %v3547_v54 = vadd.f32 %v13873_v38, %v3546_v44  ;;  %10998 = vrcp.f32 %v3605_v2  ;;  %v3609_v49 = vmul.f32 %v13887_v56, %v3608_v55  ;;  %v3632_v25 = vand.u32 2147483648, %v3605_v2  ;;  %vm3613_vm11 = vmor %vm3611_vm9, %vm3612_vm8  ;;  %v17027_v23 = vld [vmem:[#allocation19_spill] sm:$0xff] }
 0x57c   : > { %v3584_v57 = vmul.f32 %v10993_v39, %v3583_v8  ;;  %11000 = vtanh.f32 %v13928_v30  ;;  %v3630_v36 = vand.u32 2147483647, %v3605_v2  ;;  %vm3626_vm12 = vweird.f32 %v3605_v2  ;;  %v9067_v33 = vld [vmem:[%s16876_s2 + $0xa8] sm:$0xf] }
 0x57d   : > { %v3551_v45 = vsel %vm3550_vm4, %v13873_v38, %v3547_v54  ;;  %v3610_v24 = vadd.f32 %v13887_v56, %v3609_v49  ;;  %v3633_v5 = vor.u32 1.1754944e-38, %v3632_v25  ;;  %v792_v34 = vadd.f32 %v17027_v23, %v12095_v3  ;;  %v9077_v54 = vld [vmem:[%s16876_s2 + $0xd0] sm:$0xf0]  ;;  %v10512_v49 = vld [vmem:[%s16876_s2 + $0xac] sm:$0xf0] }
 0x57e   : > { %v3585_v46 = vadd.f32 %v10993_v39, %v3584_v57  ;;  %v3556_v16 = vsel %vm3553_vm5, %v3555_v21, %v3551_v45  ;;  %3907 = vmatpush.bf16.msrb.mxu3 %v8858_v28  ;;  %vm3631_vm15 = vcmp.eq.f32.partialorder %v3630_v36, 8.507059e+37  ;;  %v881_v58 = vadd.f32 %v17028_v35, %v12120_v11  ;;  %v10516_v28 = vld [vmem:[%s16876_s2 + $0xcc] sm:$0xf0]  ;;  %v10517_v21 = vld [vmem:[%s16876_s2 + $0xd4] sm:$0xf0] }
 0x57f   : > { %v3641_v32 = vmul.f32 %v10997_v60, %v3556_v16  ;;  %v3614_v17 = vsel %vm3613_vm11, %v13887_v56, %v3610_v24  ;;  %v9091_v56 = vld [vmem:[%s16876_s2 + $0xe0] sm:$0xf]  ;;  %v9096_v43 = vor.u32 %v10518_v62, %v9093_v27  ;;  %v9100_v15 = vor.u32 %v10521_v61, %v9099_v19  ;;  %v10514_v60 = vld [vmem:[%s16876_s2 + $0xc4] sm:$0xf]  ;;  %v10515_v16 = vld [vmem:[%s16876_s2 + $0xcc] sm:$0xf] }
 0x580   : > { %v3589_v22 = vsel %vm3588_vm6, %v10993_v39, %v3585_v46  ;;  %v9092_v31 = vor.u32 %v10520_v63, %v9091_v56  ;;  %v9104_v44 = vor.u32 %v10519_v52, %v9101_v4  ;;  %v9076_v57 = vor.u32 %v10516_v28, %v9075_v40  ;;  %v10513_v25 = vld [vmem:[%s16876_s2 + $0xb4] sm:$0xf0]  ;;  %v17031_v36 = vld [vmem:[#allocation24_spill] sm:$0xff]  ;;  %v9043_v56 = vld [vmem:[%s16876_s2 + $0x80] sm:$0xf] }
 0x581   : > { %v3594_v51 = vsel %vm3591_vm7, %v3593_v53, %v3589_v22  ;;  %v10999_v38 = vpop.eup %10998  ;;  %4274 = vmatpush.bf16.msra.mxu1 %v9096_v43  ;;  %4288 = vmatpush.bf16.msra.mxu2 %v9100_v15  ;;  %v9080_v46 = vor.u32 %v10514_v60, %v9077_v54  ;;  %v9084_v53 = vor.u32 %v10517_v21, %v9083_v1  ;;  %v9085_v22 = vld [vmem:[%s16876_s2 + $0xd8] sm:$0xf0]  ;;  %v10508_v63 = vld [vmem:[%s16876_s2 + $0x8c] sm:$0xf0]  ;;  %v10506_v62 = vld [vmem:[%s16876_s2 + $0x84] sm:$0xf] }
 0x582   : > { %v3639_v50 = vmul.f32 %v3594_v51, %v13631_v0  ;;  %v3622_v18 = vmul.f32 %v10999_v38, %v3605_v2  ;;  %v3615_v0 = vand.u32 2147483647, %v13796_v42  ;;  %vm3627_vm10 = vweird.f32 %v10999_v38  ;;  %v11001_v48 = vpop.eup %11000  ;;  %4260 = vmatpush.bf16.msra.mxu0 %v9092_v31  ;;  %4302 = vmatpush.bf16.msra.mxu3 %v9104_v44  ;;  %v9059_v51 = vld [vmem:[%s16876_s2 + $0xa0] sm:$0xf]  ;;  %v9045_v19 = vld [vmem:[%s16876_s2 + $0x90] sm:$0xf0] }
 0x583   : > { %vm3628_vm13 = vmor %vm3626_vm12, %vm3627_vm10  ;;  %v9060_v24 = vor.u32 %v10512_v49, %v9059_v51  ;;  %v9044_v27 = vor.u32 %v10508_v63, %v9043_v56  ;;  %v9051_v61 = vld [vmem:[%s16876_s2 + $0x88] sm:$0xf]  ;;  %v10509_v43 = vld [vmem:[%s16876_s2 + $0x94] sm:$0xf0] }
 0x584   : > { %v13944_v29 = vadd.f32 %v3641_v32, %v3639_v50  ;;  %v3623_v26 = vsub.f32 1.0, %v3622_v18  ;;  %vm3616_vm14 = vcmp.eq.f32.partialorder %v3615_v0, 8.507059e+37  ;;  %v9088_v32 = vor.u32 %v10515_v16, %v9085_v22  ;;  %v10510_v50 = vld [vmem:[%s16876_s2 + $0xa4] sm:$0xf]  ;;  %v17030_v0 = vld [vmem:[#allocation23_spill] sm:$0xff]  ;;  %v17032_v54 = vld [vmem:[#allocation21_spill] sm:$0xff] }
 0x585   : > { %v3619_v6 = vsel %vm3616_vm14, %v3618_v37, %v3614_v17  ;;  %4275 = vmatpush.bf16.msra.mxu1 %v9080_v46  ;;  %4289 = vmatpush.bf16.msra.mxu2 %v9084_v53  ;;  %v9068_v37 = vor.u32 %v10513_v25, %v9067_v33  ;;  %v9052_v4 = vor.u32 %v10509_v43, %v9051_v61  ;;  %v9027_v40 = vld [vmem:[%s16876_s2 + $0x60] sm:$0xf]  ;;  %v10504_v28 = vld [vmem:[%s16876_s2 + $0x6c] sm:$0xf0]  ;;  %v10502_v60 = vld [vmem:[%s16876_s2 + $0x64] sm:$0xf] }
 0x586   : > { %11002 = vtanh.f32 %v13944_v29  ;;  %v3624_v10 = vmul.f32 %v10999_v38, %v3623_v26  ;;  %v3646_v13 = vmul.f32 %v11001_v48, %v3619_v6  ;;  %4261 = vmatpush.bf16.msra.mxu0 %v9076_v57  ;;  %v9061_v26 = vld [vmem:[%s16876_s2 + $0xb0] sm:$0xf0]  ;;  %4303 = vmatpush.bf16.msra.mxu3 %v9088_v32  ;;  %v970_v1 = vadd.f32 %v17032_v54, %v12230_v47  ;;  %v17033_v46 = vld [vmem:[#allocation26_spill] sm:$0xff]  ;;  %v10503_v22 = vld [vmem:[%s16876_s2 + $0x6c] sm:$0xf] }
 0x587   : > { %v9064_v48 = vor.u32 %v10510_v50, %v9061_v26  ;;  %v9029_v57 = vld [vmem:[%s16876_s2 + $0x70] sm:$0xf0]  ;;  %v1061_v53 = vadd.f32 %v17033_v46, %v12159_v41  ;;  %v9028_v16 = vor.u32 %v10504_v28, %v9027_v40  ;;  %v9037_v32 = vld [vmem:[%s16876_s2 + $0x78] sm:$0xf0]  ;;  %v10500_v26 = vld [vmem:[%s16876_s2 + $0x4c] sm:$0xf0] }
 0x588   : > { %v3625_v12 = vadd.f32 %v10999_v38, %v3624_v10  ;;  %v794_v10 = vadd.f32 %v17030_v0, %v12095_v3  ;;  %v9032_v50 = vor.u32 %v10502_v60, %v9029_v57  ;;  %v10498_v33 = vld [vmem:[%s16876_s2 + $0x44] sm:$0xf]  ;;  %v8997_v57 = vld [vmem:[%s16876_s2 + $0x30] sm:$0xf0] }
 0x589   : > { %4276 = vmatpush.bf16.msra.mxu1 %v9064_v48  ;;  %4290 = vmatpush.bf16.msra.mxu2 %v9068_v37  ;;  %v10494_v60 = vld [vmem:[%s16876_s2 + $0x24] sm:$0xf] }
 0x58a   : > { %v3629_v9 = vsel %vm3628_vm13, %v10999_v38, %v3625_v12  ;;  %v17029_v38 = vld [vmem:[#allocation22_spill] sm:$0xff]  ;;  %v883_v12 = vadd.f32 %v17031_v36, %v12120_v11  ;;  %4262 = vmatpush.bf16.msra.mxu0 %v9060_v24  ;;  %v9013_v36 = vld [vmem:[%s16876_s2 + $0x50] sm:$0xf0] }
 0x58b   : > { %v3634_v39 = vsel %vm3631_vm15, %v3633_v5, %v3629_v9  ;;  %v1059_v18 = vadd.f32 %v17029_v38, %v12159_v41  ;;  %v10511_v5 = vld [vmem:[%s16876_s2 + $0xac] sm:$0xf]  ;;  %v9011_v24 = vld [vmem:[%s16876_s2 + $0x40] sm:$0xf] }
 0x58c   : > { %v11003_v14 = vpop.eup %11002 }
 0x58d   : > { %v3647_v42 = vmul.f32 %v11003_v14, %v3634_v39  ;;  %v9069_v14 = vld [vmem:[%s16876_s2 + $0xb8] sm:$0xf0]  ;;  %4291 = vmatpush.bf16.msra.mxu2 %v9052_v4 }
 0x58e   : > { %4263 = vmatpush.bf16.msra.mxu0 %v9044_v27 }
 0x58f   : > { %v3665_v20 = vpack.c.bf16 %v3647_v42, %v3646_v13  ;;  %v9072_v13 = vor.u32 %v10511_v5, %v9069_v14  ;;  %v9016_v5 = vor.u32 %v10498_v33, %v9013_v36 }
 0x591   : > { %3866 = vmatmul.bf16.vlgmr.msrb.gmra.mxu0 %v3665_v20  ;;  %3880 = vmatmul.bf16.vlgmr.msrb.gmra.mxu1 %v3665_v20 }
 0x592   : > { %3894 = vmatmul.bf16.vlgmr.msrb.gmra.mxu2 %v3665_v20  ;;  %3908 = vmatmul.bf16.vlgmr.msrb.gmra.mxu3 %v3665_v20 }
 0x593   : > { %4304 = vmatpush.bf16.msra.mxu3 %v9072_v13  ;;  %4264 = vmatpush.bf16.msra.mxu0 %v9028_v16 }
 0x60e   : > { %v3867_v7 = vpop.f32.mrf.mxu0  ;;  %v3881_v8 = vpop.f32.mrf.mxu1 }
 0x60f   : > { %v3914_v2 = vadd.f32 %v3867_v7, %v792_v34  ;;  %v3915_v59 = vadd.f32 %v3881_v8, %v881_v58  ;;  %v9048_v58 = vor.u32 %v10506_v62, %v9045_v19  ;;  %v10507_v7 = vld [vmem:[%s16876_s2 + $0x8c] sm:$0xf]  ;;  %v9053_v8 = vld [vmem:[%s16876_s2 + $0x98] sm:$0xf0] }
 0x611   : > { %v8971_v55 = vmul.f32 -1.442695, %v3914_v2  ;;  %v8973_v45 = vmul.f32 -1.442695, %v3915_v59  ;;  %4277 = vmatpush.bf16.msra.mxu1 %v9048_v58  ;;  %v9056_v59 = vor.u32 %v10507_v7, %v9053_v8  ;;  %v9021_v8 = vld [vmem:[%s16876_s2 + $0x58] sm:$0xf0] }
 0x613   : > { %11004 = vpow2.f32 %v8971_v55  ;;  %4305 = vmatpush.bf16.msra.mxu3 %v9056_v59  ;;  %v9035_v55 = vld [vmem:[%s16876_s2 + $0x68] sm:$0xf]  ;;  %v10496_v59 = vld [vmem:[%s16876_s2 + $0x2c] sm:$0xf0] }
 0x614   : > { %11006 = vpow2.f32 %v8973_v45  ;;  %v10505_v45 = vld [vmem:[%s16876_s2 + $0x74] sm:$0xf0] }
 0x615   : > { %v3909_v17 = vpop.f32.mrf.mxu3  ;;  %v3895_v2 = vpop.f32.mrf.mxu2  ;;  %v9036_v38 = vor.u32 %v10505_v45, %v9035_v55  ;;  %4278 = vmatpush.bf16.msra.mxu1 %v9032_v50  ;;  %v10495_v50 = vld [vmem:[%s16876_s2 + $0x2c] sm:$0xf] }
 0x616   : > { %v3917_v9 = vadd.f32 %v3909_v17, %v1059_v18  ;;  %v3869_v6 = vpop.f32.mrf.mxu0  ;;  %v3883_v39 = vpop.f32.mrf.mxu1  ;;  %v3916_v49 = vadd.f32 %v3895_v2, %v970_v1  ;;  %v9040_v18 = vor.u32 %v10503_v22, %v9037_v32  ;;  %v8995_v2 = vld [vmem:[%s16876_s2 + $0x20] sm:$0xf] }
 0x617   : > { %v3918_v42 = vadd.f32 %v3869_v6, %v794_v10  ;;  %v3919_v20 = vadd.f32 %v3883_v39, %v883_v12  ;;  %v9012_v10 = vor.u32 %v10500_v26, %v9011_v24  ;;  %4292 = vmatpush.bf16.msra.mxu2 %v9036_v38  ;;  %v9005_v38 = vld [vmem:[%s16876_s2 + $0x38] sm:$0xf0] }
 0x618   : > { %v8975_v31 = vmul.f32 -1.442695, %v3917_v9  ;;  %v17034_v9 = vld [vmem:[#allocation25_spill] sm:$0xff]  ;;  %4306 = vmatpush.bf16.msra.mxu3 %v9040_v18 }
 0x619   : > { %v11005_v23 = vpop.eup %11004  ;;  %v8972_v34 = vmul.f32 -1.442695, %v3918_v42  ;;  %v8974_v35 = vmul.f32 -1.442695, %v3919_v20  ;;  %v972_v6 = vadd.f32 %v17034_v9, %v12230_v47  ;;  %4265 = vmatpush.bf16.msra.mxu0 %v9012_v10  ;;  %4279 = vmatpush.bf16.msra.mxu1 %v9016_v5  ;;  %v10490_v10 = vld [vmem:[%s16876_s2 + $0x4] sm:$0xf]  ;;  %v9000_v5 = vor.u32 %v10494_v60, %v8997_v57 }
 0x61a   : > { %v11007_v15 = vpop.eup %11006  ;;  %v14054_v52 = vadd.f32 1.0, %v11005_v23  ;;  %11008 = vpow2.f32 %v8975_v31  ;;  %v8987_v9 = vld [vmem:[%s16876_s2 + $0x8] sm:$0xf] }
 0x61b   : > { %v14062_v44 = vadd.f32 1.0, %v11007_v15  ;;  %11010 = vpow2.f32 %v8972_v34  ;;  %v9019_v34 = vld [vmem:[%s16876_s2 + $0x48] sm:$0xf]  ;;  %v10499_v15 = vld [vmem:[%s16876_s2 + $0x4c] sm:$0xf] }
 0x61c   : > { %11012 = vrcp.f32 %v14054_v52  ;;  %v3939_v17 = vand.u32 2147483647, %v14054_v52  ;;  %v3941_v13 = vand.u32 2147483648, %v14054_v52  ;;  %vm3935_vm4 = vweird.f32 %v14054_v52 }
 0x61d   : > { %11014 = vrcp.f32 %v14062_v44  ;;  %v3911_v21 = vpop.f32.mrf.mxu3  ;;  %v3979_v56 = vand.u32 2147483648, %v14062_v44  ;;  %v3977_v63 = vand.u32 2147483647, %v14062_v44  ;;  %v3897_v27 = vpop.f32.mrf.mxu2  ;;  %vm3973_vm3 = vweird.f32 %v14062_v44  ;;  %4280 = vmatpush.bf16.msra.mxu1 %v9000_v5  ;;  %v10552_v5 = vld [vmem:[%s16876_s2 + $0xec] sm:$0xf0] }
 0x61e   : > { %11016 = vpow2.f32 %v8974_v35  ;;  %v3921_v0 = vadd.f32 %v3911_v21, %v1061_v53  ;;  %vm14128_vm1 = vcmp.eq.f32.partialorder %v3939_v17, 8.507059e+37  ;;  %v10501_v35 = vld [vmem:[%s16876_s2 + $0x54] sm:$0xf0]  ;;  %v3942_v43 = vor.u32 1.1754944e-38, %v3941_v13  ;;  %v9003_v53 = vld [vmem:[%s16876_s2 + $0x28] sm:$0xf] }
 0x61f   : > { %11018 = vtanh.f32 %v3916_v49  ;;  %v3920_v7 = vadd.f32 %v3897_v27, %v972_v6  ;;  %v3980_v40 = vor.u32 1.1754944e-38, %v3979_v56  ;;  %vm14177_vm7 = vcmp.eq.f32.partialorder %v3977_v63, 8.507059e+37  ;;  %v10497_v49 = vld [vmem:[%s16876_s2 + $0x34] sm:$0xf0]  ;;  %v10491_v56 = vld [vmem:[%s16876_s2 + $0xc] sm:$0xf] }
 0x620   : > { %v11009_v51 = vpop.eup %11008  ;;  %v8976_v19 = vmul.f32 -1.442695, %v3921_v0  ;;  %v9024_v32 = vor.u32 %v10499_v15, %v9021_v8  ;;  %v10492_v0 = vld [vmem:[%s16876_s2 + $0xc] sm:$0xf0]  ;;  %v10493_v6 = vld [vmem:[%s16876_s2 + $0x14] sm:$0xf0] }
 0x621   : > { %v11011_v25 = vpop.eup %11010  ;;  %v14109_v48 = vadd.f32 1.0, %v11009_v51  ;;  %v8996_v51 = vor.u32 %v10496_v59, %v8995_v2  ;;  %v8989_v63 = vld [vmem:[%s16876_s2 + $0x18] sm:$0xf0]  ;;  %v8988_v15 = vor.u32 %v10493_v6, %v8987_v9  ;;  %v9227_v6 = vld [vmem:[%s16876_s2 + $0xf0] sm:$0xf0] }
 0x622   : > { %v14106_v12 = vpop.eup %11012  ;;  %v14111_v37 = vadd.f32 1.0, %v11011_v25  ;;  %v8979_v25 = vld [vmem:[%s16876_s2] sm:$0xf]  ;;  %4307 = vmatpush.bf16.msra.mxu3 %v9024_v32 }
 0x623   : > { %v14113_v14 = vpop.eup %11014  ;;  %v3931_v39 = vmul.f32 %v14106_v12, %v14054_v52  ;;  %vm3936_vm0 = vweird.f32 %v14106_v12  ;;  %4266 = vmatpush.bf16.msra.mxu0 %v8996_v51 }
 0x624   : > { %v11017_v42 = vpop.eup %11016  ;;  %v3969_v20 = vmul.f32 %v14113_v14, %v14062_v44  ;;  %11020 = vrcp.f32 %v14111_v37  ;;  %vm3974_vm2 = vweird.f32 %v14113_v14  ;;  %vm14160_vm5 = vmor %vm3935_vm4, %vm3936_vm0  ;;  %v9020_v44 = vor.u32 %v10501_v35, %v9019_v34 }
 0x625   : > { %v3932_v62 = vsub.f32 1.0, %v3931_v39  ;;  %v14125_v31 = vadd.f32 1.0, %v11017_v42  ;;  %11022 = vrcp.f32 %v14109_v48  ;;  %v11019_v54 = vpop.eup %11018  ;;  %vm14172_vm6 = vmor %vm3973_vm3, %vm3974_vm2  ;;  %v3954_v46 = vand.u32 2147483647, %v14111_v37 }
 0x626   : > { %v3970_v61 = vsub.f32 1.0, %v3969_v20  ;;  %4293 = vmatpush.bf16.msra.mxu2 %v9020_v44  ;;  %vm3950_vm8 = vweird.f32 %v14111_v37  ;;  %v3956_v20 = vand.u32 2147483648, %v14111_v37 }
 0x627   : > { %v3933_v58 = vmul.f32 %v14106_v12, %v3932_v62  ;;  %11024 = vrcp.f32 %v14125_v31  ;;  %v3994_v45 = vand.u32 2147483648, %v14125_v31  ;;  %v3992_v59 = vand.u32 2147483647, %v14125_v31 }
 0x628   : > { %v3971_v4 = vmul.f32 %v14113_v14, %v3970_v61  ;;  %11026 = vpow2.f32 %v8976_v19  ;;  %v9004_v19 = vor.u32 %v10497_v49, %v9003_v53  ;;  %v8980_v61 = vor.u32 %v10492_v0, %v8979_v25 }
 0x629   : > { %v3934_v28 = vadd.f32 %v14106_v12, %v3933_v58  ;;  %11028 = vtanh.f32 %v3920_v7  ;;  %vm3988_vm11 = vweird.f32 %v14125_v31  ;;  %vm3955_vm13 = vcmp.eq.f32.partialorder %v3954_v46, 8.507059e+37 }
 0x62a   : > { %v3972_v21 = vadd.f32 %v14113_v14, %v3971_v4  ;;  %v14186_v16 = vpop.eup %11020  ;;  %4294 = vmatpush.bf16.msra.mxu2 %v9004_v19  ;;  %v8992_v4 = vor.u32 %v10491_v56, %v8989_v63  ;;  %4267 = vmatpush.bf16.msra.mxu0 %v8980_v61  ;;  %v3995_v60 = vor.u32 1.1754944e-38, %v3994_v45  ;;  %vm3993_vm15 = vcmp.eq.f32.partialorder %v3992_v59, 8.507059e+37  ;;  %v17044_v56 = vld [vmem:[#allocation28_spill] sm:$0xff]  ;;  %v10551_v19 = vld [vmem:[%s16876_s2 + $0xec] sm:$0xf] }
 0x62b   : > { %v3938_v22 = vsel %vm14160_vm5, %v14106_v12, %v3934_v28  ;;  %v14200_v18 = vpop.eup %11022  ;;  %v3946_v33 = vmul.f32 %v14186_v16, %v14111_v37  ;;  %vm3951_vm9 = vweird.f32 %v14186_v16  ;;  %v4019_v46 = vand.u32 2147483648, %v14109_v48  ;;  %v9217_v59 = vld [vmem:[%s16876_s2 + $0xc8] sm:$0xf] }
 0x62c   : > { %v3943_v24 = vsel %vm14128_vm1, %v3942_v43, %v3938_v22  ;;  %v3976_v26 = vsel %vm14172_vm6, %v14113_v14, %v3972_v21  ;;  %v8981_v14 = vld [vmem:[%s16876_s2 + $0x10] sm:$0xf0]  ;;  %v4009_v27 = vmul.f32 %v14200_v18, %v14109_v48  ;;  %vm3952_vm12 = vmor %vm3950_vm8, %vm3951_vm9  ;;  %vm4014_vm0 = vweird.f32 %v14200_v18 }
 0x62d   : > { %v11025_v36 = vpop.eup %11024  ;;  %v3981_v12 = vsel %vm14177_vm7, %v3980_v40, %v3976_v26  ;;  %v4042_v17 = vmul.f32 %v11019_v54, %v3943_v24  ;;  %v3947_v13 = vsub.f32 1.0, %v3946_v33  ;;  %v8984_v43 = vor.u32 %v10490_v10, %v8981_v14  ;;  %v10550_v14 = vld [vmem:[%s16876_s2 + $0xe4] sm:$0xf] }
 0x62e   : > { %v4040_v39 = vmul.f32 %v3981_v12, %v13928_v30  ;;  %v3984_v42 = vmul.f32 %v11025_v36, %v14125_v31  ;;  %v11027_v62 = vpop.eup %11026  ;;  %v9008_v30 = vor.u32 %v10495_v50, %v9005_v38  ;;  %vm3989_vm10 = vweird.f32 %v11025_v36  ;;  %4295 = vmatpush.bf16.msra.mxu2 %v8988_v15  ;;  %v9209_v15 = vld [vmem:[%s16876_s2 + $0xc0] sm:$0xf] }
 0x62f   : > { %v3948_v35 = vmul.f32 %v14186_v16, %v3947_v13  ;;  %v4007_v58 = vadd.f32 1.0, %v11027_v62  ;;  %v11029_v7 = vpop.eup %11028  ;;  %v3957_v40 = vor.u32 1.1754944e-38, %v3956_v20  ;;  %4281 = vmatpush.bf16.msra.mxu1 %v8984_v43  ;;  %v4010_v28 = vsub.f32 1.0, %v4009_v27  ;;  %vm3990_vm14 = vmor %vm3988_vm11, %vm3989_vm10  ;;  %v10553_v13 = vld [vmem:[%s16876_s2 + $0xf4] sm:$0xf0] }
 0x630   : > { %v14241_v23 = vadd.f32 %v4042_v17, %v4040_v39  ;;  %v3985_v34 = vsub.f32 1.0, %v3984_v42  ;;  %4308 = vmatpush.bf16.msra.mxu3 %v9008_v30  ;;  %vm4013_vm1 = vweird.f32 %v14109_v48  ;;  %v4020_v26 = vor.u32 1.1754944e-38, %v4019_v46  ;;  %v9233_v39 = vld [vmem:[%s16876_s2 + $0xe8] sm:$0xf]  ;;  %v9235_v30 = vld [vmem:[%s16876_s2 + $0xf8] sm:$0xf0] }
 0x631   : > { %v3949_v2 = vadd.f32 %v14186_v16, %v3948_v35  ;;  %11030 = vrcp.f32 %v4007_v58  ;;  %v4011_v55 = vmul.f32 %v14200_v18, %v4010_v28  ;;  %v4034_v32 = vand.u32 2147483648, %v4007_v58  ;;  %vm4015_vm3 = vmor %vm4013_vm1, %vm4014_vm0  ;;  %v17043_v42 = vld [vmem:[#allocation27_spill] sm:$0xff] }
 0x632   : > { %v3986_v8 = vmul.f32 %v11025_v36, %v3985_v34  ;;  %11032 = vtanh.f32 %v14241_v23  ;;  %v4032_v49 = vand.u32 2147483647, %v4007_v58  ;;  %vm4028_vm4 = vweird.f32 %v4007_v58  ;;  %v9201_v46 = vld [vmem:[%s16876_s2 + $0xa8] sm:$0xf] }
 0x633   : > { %v3953_v52 = vsel %vm3952_vm12, %v14186_v16, %v3949_v2  ;;  %v4012_v31 = vadd.f32 %v14200_v18, %v4011_v55  ;;  %v4035_v33 = vor.u32 1.1754944e-38, %v4034_v32  ;;  %v797_v20 = vadd.f32 %v17043_v42, %v12095_v3  ;;  %v9211_v2 = vld [vmem:[%s16876_s2 + $0xd0] sm:$0xf0]  ;;  %v10544_v55 = vld [vmem:[%s16876_s2 + $0xac] sm:$0xf0] }
 0x634   : > { %v3987_v44 = vadd.f32 %v11025_v36, %v3986_v8  ;;  %v3958_v57 = vsel %vm3955_vm13, %v3957_v40, %v3953_v52  ;;  %4309 = vmatpush.bf16.msra.mxu3 %v8992_v4  ;;  %vm4033_vm7 = vcmp.eq.f32.partialorder %v4032_v49, 8.507059e+37  ;;  %v886_v63 = vadd.f32 %v17044_v56, %v12120_v11  ;;  %v10548_v4 = vld [vmem:[%s16876_s2 + $0xcc] sm:$0xf0]  ;;  %v10549_v40 = vld [vmem:[%s16876_s2 + $0xd4] sm:$0xf0] }
 0x635   : > { %v4043_v1 = vmul.f32 %v11029_v7, %v3958_v57  ;;  %v4016_v38 = vsel %vm4015_vm3, %v14200_v18, %v4012_v31  ;;  %v9225_v18 = vld [vmem:[%s16876_s2 + $0xe0] sm:$0xf]  ;;  %v9230_v62 = vor.u32 %v10550_v14, %v9227_v6  ;;  %v9234_v27 = vor.u32 %v10553_v13, %v9233_v39  ;;  %v10546_v7 = vld [vmem:[%s16876_s2 + $0xc4] sm:$0xf]  ;;  %v10547_v57 = vld [vmem:[%s16876_s2 + $0xcc] sm:$0xf] }
 0x636   : > { %v3991_v54 = vsel %vm3990_vm14, %v11025_v36, %v3987_v44  ;;  %v9226_v9 = vor.u32 %v10552_v5, %v9225_v18  ;;  %v9238_v35 = vor.u32 %v10551_v19, %v9235_v30  ;;  %v9210_v8 = vor.u32 %v10548_v4, %v9209_v15  ;;  %v10545_v32 = vld [vmem:[%s16876_s2 + $0xb4] sm:$0xf0]  ;;  %v17047_v49 = vld [vmem:[#allocation32_spill] sm:$0xff]  ;;  %v9177_v18 = vld [vmem:[%s16876_s2 + $0x80] sm:$0xf] }
 0x637   : > { %v3996_v21 = vsel %vm3993_vm15, %v3995_v60, %v3991_v54  ;;  %v11031_v16 = vpop.eup %11030  ;;  %4676 = vmatpush.bf16.msrb.mxu1 %v9230_v62  ;;  %4690 = vmatpush.bf16.msrb.mxu2 %v9234_v27  ;;  %v9214_v44 = vor.u32 %v10546_v7, %v9211_v2  ;;  %v9218_v60 = vor.u32 %v10549_v40, %v9217_v59  ;;  %v9219_v54 = vld [vmem:[%s16876_s2 + $0xd8] sm:$0xf0]  ;;  %v10540_v5 = vld [vmem:[%s16876_s2 + $0x8c] sm:$0xf0]  ;;  %v10538_v14 = vld [vmem:[%s16876_s2 + $0x84] sm:$0xf] }
 0x638   : > { %v4041_v53 = vmul.f32 %v3996_v21, %v13944_v29  ;;  %v4024_v37 = vmul.f32 %v11031_v16, %v4007_v58  ;;  %v4017_v29 = vand.u32 2147483647, %v14109_v48  ;;  %vm4029_vm2 = vweird.f32 %v11031_v16  ;;  %v11033_v24 = vpop.eup %11032  ;;  %4662 = vmatpush.bf16.msrb.mxu0 %v9226_v9  ;;  %4704 = vmatpush.bf16.msrb.mxu3 %v9238_v35  ;;  %v9193_v21 = vld [vmem:[%s16876_s2 + $0xa0] sm:$0xf]  ;;  %v9179_v39 = vld [vmem:[%s16876_s2 + $0x90] sm:$0xf0] }
 0x639   : > { %vm4030_vm5 = vmor %vm4028_vm4, %vm4029_vm2  ;;  %v9194_v31 = vor.u32 %v10544_v55, %v9193_v21  ;;  %v9178_v6 = vor.u32 %v10540_v5, %v9177_v18  ;;  %v9185_v13 = vld [vmem:[%s16876_s2 + $0x88] sm:$0xf]  ;;  %v10541_v62 = vld [vmem:[%s16876_s2 + $0x94] sm:$0xf0] }
 0x63a   : > { %v14257_v22 = vadd.f32 %v4043_v1, %v4041_v53  ;;  %v4025_v45 = vsub.f32 1.0, %v4024_v37  ;;  %vm4018_vm6 = vcmp.eq.f32.partialorder %v4017_v29, 8.507059e+37  ;;  %v9222_v1 = vor.u32 %v10547_v57, %v9219_v54  ;;  %v10542_v53 = vld [vmem:[%s16876_s2 + $0xa4] sm:$0xf]  ;;  %v17046_v29 = vld [vmem:[#allocation31_spill] sm:$0xff]  ;;  %v17048_v2 = vld [vmem:[#allocation29_spill] sm:$0xff] }
 0x63b   : > { %v4021_v10 = vsel %vm4018_vm6, %v4020_v26, %v4016_v38  ;;  %4677 = vmatpush.bf16.msrb.mxu1 %v9214_v44  ;;  %4691 = vmatpush.bf16.msrb.mxu2 %v9218_v60  ;;  %v9202_v26 = vor.u32 %v10545_v32, %v9201_v46  ;;  %v9186_v30 = vor.u32 %v10541_v62, %v9185_v13  ;;  %v9161_v15 = vld [vmem:[%s16876_s2 + $0x60] sm:$0xf]  ;;  %v10536_v4 = vld [vmem:[%s16876_s2 + $0x6c] sm:$0xf0]  ;;  %v10534_v7 = vld [vmem:[%s16876_s2 + $0x64] sm:$0xf] }
 0x63c   : > { %11034 = vtanh.f32 %v14257_v22  ;;  %v4026_v51 = vmul.f32 %v11031_v16, %v4025_v45  ;;  %v4048_v12 = vmul.f32 %v11033_v24, %v4021_v10  ;;  %4663 = vmatpush.bf16.msrb.mxu0 %v9210_v8  ;;  %v9195_v45 = vld [vmem:[%s16876_s2 + $0xb0] sm:$0xf0]  ;;  %4705 = vmatpush.bf16.msrb.mxu3 %v9222_v1  ;;  %v975_v59 = vadd.f32 %v17048_v2, %v12230_v47  ;;  %v17049_v44 = vld [vmem:[#allocation34_spill] sm:$0xff]  ;;  %v10535_v54 = vld [vmem:[%s16876_s2 + $0x6c] sm:$0xf] }
 0x63d   : > { %v9198_v24 = vor.u32 %v10542_v53, %v9195_v45  ;;  %v9163_v8 = vld [vmem:[%s16876_s2 + $0x70] sm:$0xf0]  ;;  %v1066_v60 = vadd.f32 %v17049_v44, %v12159_v41  ;;  %v9162_v57 = vor.u32 %v10536_v4, %v9161_v15  ;;  %v9171_v1 = vld [vmem:[%s16876_s2 + $0x78] sm:$0xf0]  ;;  %v10532_v45 = vld [vmem:[%s16876_s2 + $0x4c] sm:$0xf0] }
 0x63e   : > { %v4027_v50 = vadd.f32 %v11031_v16, %v4026_v51  ;;  %v799_v51 = vadd.f32 %v17046_v29, %v12095_v3  ;;  %v9166_v53 = vor.u32 %v10534_v7, %v9163_v8  ;;  %v10530_v46 = vld [vmem:[%s16876_s2 + $0x44] sm:$0xf]  ;;  %v9131_v8 = vld [vmem:[%s16876_s2 + $0x30] sm:$0xf0] }
 0x63f   : > { %4678 = vmatpush.bf16.msrb.mxu1 %v9198_v24  ;;  %4692 = vmatpush.bf16.msrb.mxu2 %v9202_v26  ;;  %v10526_v7 = vld [vmem:[%s16876_s2 + $0x24] sm:$0xf] }
 0x640   : > { %v4031_v0 = vsel %vm4030_vm5, %v11031_v16, %v4027_v50  ;;  %v17045_v16 = vld [vmem:[#allocation30_spill] sm:$0xff]  ;;  %v888_v50 = vadd.f32 %v17047_v49, %v12120_v11  ;;  %4664 = vmatpush.bf16.msrb.mxu0 %v9194_v31  ;;  %v9147_v49 = vld [vmem:[%s16876_s2 + $0x50] sm:$0xf0] }
 0x641   : > { %v4036_v36 = vsel %vm4033_vm7, %v4035_v33, %v4031_v0  ;;  %v1064_v37 = vadd.f32 %v17045_v16, %v12159_v41  ;;  %v10543_v33 = vld [vmem:[%s16876_s2 + $0xac] sm:$0xf]  ;;  %v9145_v31 = vld [vmem:[%s16876_s2 + $0x40] sm:$0xf] }
 0x642   : > { %v11035_v25 = vpop.eup %11034 }
 0x643   : > { %v4049_v48 = vmul.f32 %v11035_v25, %v4036_v36  ;;  %v9203_v25 = vld [vmem:[%s16876_s2 + $0xb8] sm:$0xf0]  ;;  %4693 = vmatpush.bf16.msrb.mxu2 %v9186_v30 }
 0x644   : > { %4665 = vmatpush.bf16.msrb.mxu0 %v9178_v6 }
 0x645   : > { %v4067_v17 = vpack.c.bf16 %v4049_v48, %v4048_v12  ;;  %v9206_v12 = vor.u32 %v10543_v33, %v9203_v25  ;;  %v9150_v33 = vor.u32 %v10530_v46, %v9147_v49 }
 0x647   : > { %4268 = vmatmul.bf16.vlgmr.msra.gmra.mxu0 %v4067_v17  ;;  %4282 = vmatmul.bf16.vlgmr.msra.gmra.mxu1 %v4067_v17 }
 0x648   : > { %4296 = vmatmul.bf16.vlgmr.msra.gmra.mxu2 %v4067_v17  ;;  %4310 = vmatmul.bf16.vlgmr.msra.gmra.mxu3 %v4067_v17 }
 0x649   : > { %4706 = vmatpush.bf16.msrb.mxu3 %v9206_v12  ;;  %4666 = vmatpush.bf16.msrb.mxu0 %v9162_v57 }
 0x6c4   : > { %v4269_v61 = vpop.f32.mrf.mxu0  ;;  %v4283_v34 = vpop.f32.mrf.mxu1 }
 0x6c5   : > { %v4316_v58 = vadd.f32 %v4269_v61, %v797_v20  ;;  %v4317_v43 = vadd.f32 %v4283_v34, %v886_v63  ;;  %v9182_v63 = vor.u32 %v10538_v14, %v9179_v39  ;;  %v10539_v61 = vld [vmem:[%s16876_s2 + $0x8c] sm:$0xf]  ;;  %v9187_v34 = vld [vmem:[%s16876_s2 + $0x98] sm:$0xf0] }
 0x6c7   : > { %v9105_v28 = vmul.f32 -1.442695, %v4316_v58  ;;  %v9107_v52 = vmul.f32 -1.442695, %v4317_v43  ;;  %4679 = vmatpush.bf16.msrb.mxu1 %v9182_v63  ;;  %v9190_v43 = vor.u32 %v10539_v61, %v9187_v34  ;;  %v9155_v34 = vld [vmem:[%s16876_s2 + $0x58] sm:$0xf0] }
 0x6c9   : > { %11036 = vpow2.f32 %v9105_v28  ;;  %4707 = vmatpush.bf16.msrb.mxu3 %v9190_v43  ;;  %v9169_v28 = vld [vmem:[%s16876_s2 + $0x68] sm:$0xf]  ;;  %v10528_v43 = vld [vmem:[%s16876_s2 + $0x2c] sm:$0xf0] }
 0x6ca   : > { %11038 = vpow2.f32 %v9107_v52  ;;  %v10537_v52 = vld [vmem:[%s16876_s2 + $0x74] sm:$0xf0] }
 0x6cb   : > { %v4311_v38 = vpop.f32.mrf.mxu3  ;;  %v4297_v58 = vpop.f32.mrf.mxu2  ;;  %v9170_v16 = vor.u32 %v10537_v52, %v9169_v28  ;;  %4680 = vmatpush.bf16.msrb.mxu1 %v9166_v53  ;;  %v10527_v53 = vld [vmem:[%s16876_s2 + $0x2c] sm:$0xf] }
 0x6cc   : > { %v4319_v0 = vadd.f32 %v4311_v38, %v1064_v37  ;;  %v4271_v10 = vpop.f32.mrf.mxu0  ;;  %v4285_v36 = vpop.f32.mrf.mxu1  ;;  %v4318_v55 = vadd.f32 %v4297_v58, %v975_v59  ;;  %v9174_v37 = vor.u32 %v10535_v54, %v9171_v1  ;;  %v9129_v58 = vld [vmem:[%s16876_s2 + $0x20] sm:$0xf] }
 0x6cd   : > { %v4320_v48 = vadd.f32 %v4271_v10, %v799_v51  ;;  %v4321_v17 = vadd.f32 %v4285_v36, %v888_v50  ;;  %v9146_v51 = vor.u32 %v10532_v45, %v9145_v31  ;;  %4694 = vmatpush.bf16.msrb.mxu2 %v9170_v16  ;;  %v9139_v16 = vld [vmem:[%s16876_s2 + $0x38] sm:$0xf0] }
 0x6ce   : > { %v9109_v9 = vmul.f32 -1.442695, %v4319_v0  ;;  %v17050_v0 = vld [vmem:[#allocation33_spill] sm:$0xff]  ;;  %4708 = vmatpush.bf16.msrb.mxu3 %v9174_v37 }
 0x6cf   : > { %v11037_v42 = vpop.eup %11036  ;;  %v9106_v20 = vmul.f32 -1.442695, %v4320_v48  ;;  %v9108_v56 = vmul.f32 -1.442695, %v4321_v17  ;;  %v977_v10 = vadd.f32 %v17050_v0, %v12230_v47  ;;  %4667 = vmatpush.bf16.msrb.mxu0 %v9146_v51  ;;  %4681 = vmatpush.bf16.msrb.mxu1 %v9150_v33  ;;  %v10522_v51 = vld [vmem:[%s16876_s2 + $0x4] sm:$0xf]  ;;  %v9134_v33 = vor.u32 %v10526_v7, %v9131_v8 }
 0x6d0   : > { %v11039_v27 = vpop.eup %11038  ;;  %v14367_v19 = vadd.f32 1.0, %v11037_v42  ;;  %11040 = vpow2.f32 %v9109_v9  ;;  %v9121_v0 = vld [vmem:[%s16876_s2 + $0x8] sm:$0xf] }
 0x6d1   : > { %v14375_v35 = vadd.f32 1.0, %v11039_v27  ;;  %11042 = vpow2.f32 %v9106_v20  ;;  %v9153_v20 = vld [vmem:[%s16876_s2 + $0x48] sm:$0xf]  ;;  %v10531_v27 = vld [vmem:[%s16876_s2 + $0x4c] sm:$0xf] }
 0x6d2   : > { %11044 = vrcp.f32 %v14367_v19  ;;  %v4341_v38 = vand.u32 2147483647, %v14367_v19  ;;  %v4343_v12 = vand.u32 2147483648, %v14367_v19  ;;  %vm4337_vm12 = vweird.f32 %v14367_v19 }
 0x6d3   : > { %11046 = vrcp.f32 %v14375_v35  ;;  %v4313_v40 = vpop.f32.mrf.mxu3  ;;  %v4381_v18 = vand.u32 2147483648, %v14375_v35  ;;  %v4379_v5 = vand.u32 2147483647, %v14375_v35  ;;  %v4299_v6 = vpop.f32.mrf.mxu2  ;;  %vm4375_vm11 = vweird.f32 %v14375_v35  ;;  %4682 = vmatpush.bf16.msrb.mxu1 %v9134_v33  ;;  %v10584_v33 = vld [vmem:[%s16876_s2 + $0xec] sm:$0xf0] }
 0x6d4   : > { %11048 = vpow2.f32 %v9108_v56  ;;  %v4323_v29 = vadd.f32 %v4313_v40, %v1066_v60  ;;  %vm14441_vm9 = vcmp.eq.f32.partialorder %v4341_v38, 8.507059e+37  ;;  %v10533_v56 = vld [vmem:[%s16876_s2 + $0x54] sm:$0xf0]  ;;  %v4344_v62 = vor.u32 1.1754944e-38, %v4343_v12  ;;  %v9137_v60 = vld [vmem:[%s16876_s2 + $0x28] sm:$0xf] }
 0x6d5   : > { %11050 = vtanh.f32 %v4318_v55  ;;  %v4322_v61 = vadd.f32 %v4299_v6, %v977_v10  ;;  %v4382_v15 = vor.u32 1.1754944e-38, %v4381_v18  ;;  %vm14490_vm15 = vcmp.eq.f32.partialorder %v4379_v5, 8.507059e+37  ;;  %v10529_v55 = vld [vmem:[%s16876_s2 + $0x34] sm:$0xf0]  ;;  %v10523_v18 = vld [vmem:[%s16876_s2 + $0xc] sm:$0xf] }
 0x6d6   : > { %v11041_v21 = vpop.eup %11040  ;;  %v9110_v39 = vmul.f32 -1.442695, %v4323_v29  ;;  %v9158_v1 = vor.u32 %v10531_v27, %v9155_v34  ;;  %v10524_v29 = vld [vmem:[%s16876_s2 + $0xc] sm:$0xf0]  ;;  %v10525_v10 = vld [vmem:[%s16876_s2 + $0x14] sm:$0xf0] }
 0x6d7   : > { %v11043_v32 = vpop.eup %11042  ;;  %v14422_v24 = vadd.f32 1.0, %v11041_v21  ;;  %v9130_v21 = vor.u32 %v10528_v43, %v9129_v58  ;;  %v9123_v5 = vld [vmem:[%s16876_s2 + $0x18] sm:$0xf0]  ;;  %v9122_v27 = vor.u32 %v10525_v10, %v9121_v0  ;;  %v9361_v10 = vld [vmem:[%s16876_s2 + $0xf0] sm:$0xf0] }
 0x6d8   : > { %v14419_v50 = vpop.eup %11044  ;;  %v14424_v26 = vadd.f32 1.0, %v11043_v32  ;;  %v9113_v32 = vld [vmem:[%s16876_s2] sm:$0xf]  ;;  %4709 = vmatpush.bf16.msrb.mxu3 %v9158_v1 }
 0x6d9   : > { %v14426_v25 = vpop.eup %11046  ;;  %v4333_v36 = vmul.f32 %v14419_v50, %v14367_v19  ;;  %vm4338_vm8 = vweird.f32 %v14419_v50  ;;  %4668 = vmatpush.bf16.msrb.mxu0 %v9130_v21 }
 0x6da   : > { %v11049_v48 = vpop.eup %11048  ;;  %v4371_v17 = vmul.f32 %v14426_v25, %v14375_v35  ;;  %11052 = vrcp.f32 %v14424_v26  ;;  %vm4376_vm10 = vweird.f32 %v14426_v25  ;;  %vm14473_vm13 = vmor %vm4337_vm12, %vm4338_vm8  ;;  %v9154_v35 = vor.u32 %v10533_v56, %v9153_v20 }
 0x6db   : > { %v4334_v14 = vsub.f32 1.0, %v4333_v36  ;;  %v14438_v9 = vadd.f32 1.0, %v11049_v48  ;;  %11054 = vrcp.f32 %v14422_v24  ;;  %v11051_v2 = vpop.eup %11050  ;;  %vm14485_vm14 = vmor %vm4375_vm11, %vm4376_vm10  ;;  %v4356_v44 = vand.u32 2147483647, %v14424_v26 }
 0x6dc   : > { %v4372_v13 = vsub.f32 1.0, %v4371_v17  ;;  %4695 = vmatpush.bf16.msrb.mxu2 %v9154_v35  ;;  %vm4352_vm0 = vweird.f32 %v14424_v26  ;;  %v4358_v17 = vand.u32 2147483648, %v14424_v26 }
 0x6dd   : > { %v4335_v63 = vmul.f32 %v14419_v50, %v4334_v14  ;;  %11056 = vrcp.f32 %v14438_v9  ;;  %v4396_v52 = vand.u32 2147483648, %v14438_v9  ;;  %v4394_v43 = vand.u32 2147483647, %v14438_v9 }
 0x6de   : > { %v4373_v30 = vmul.f32 %v14426_v25, %v4372_v13  ;;  %11058 = vpow2.f32 %v9110_v39  ;;  %v9138_v39 = vor.u32 %v10529_v55, %v9137_v60  ;;  %v9114_v13 = vor.u32 %v10524_v29, %v9113_v32 }
 0x6df   : > { %v4336_v4 = vadd.f32 %v14419_v50, %v4335_v63  ;;  %11060 = vtanh.f32 %v4322_v61  ;;  %vm4390_vm3 = vweird.f32 %v14438_v9  ;;  %vm4357_vm5 = vcmp.eq.f32.partialorder %v4356_v44, 8.507059e+37 }
 0x6e0   : > { %v4374_v40 = vadd.f32 %v14426_v25, %v4373_v30  ;;  %v14499_v57 = vpop.eup %11052  ;;  %4696 = vmatpush.bf16.msrb.mxu2 %v9138_v39  ;;  %v9126_v30 = vor.u32 %v10523_v18, %v9123_v5  ;;  %4669 = vmatpush.bf16.msrb.mxu0 %v9114_v13  ;;  %v4397_v7 = vor.u32 1.1754944e-38, %v4396_v52  ;;  %vm4395_vm7 = vcmp.eq.f32.partialorder %v4394_v43, 8.507059e+37  ;;  %v17060_v18 = vld [vmem:[#allocation36_spill] sm:$0xff]  ;;  %v10583_v39 = vld [vmem:[%s16876_s2 + $0xec] sm:$0xf] }
 0x6e1   : > { %v4340_v54 = vsel %vm14473_vm13, %v14419_v50, %v4336_v4  ;;  %v14513_v37 = vpop.eup %11054  ;;  %v4348_v46 = vmul.f32 %v14499_v57, %v14424_v26  ;;  %vm4353_vm1 = vweird.f32 %v14499_v57  ;;  %v4421_v44 = vand.u32 2147483648, %v14422_v24  ;;  %v9351_v43 = vld [vmem:[%s16876_s2 + $0xc8] sm:$0xf] }
 0x6e2   : > { %v4345_v31 = vsel %vm14441_vm9, %v4344_v62, %v4340_v54  ;;  %v4378_v45 = vsel %vm14485_vm14, %v14426_v25, %v4374_v40  ;;  %v9115_v25 = vld [vmem:[%s16876_s2 + $0x10] sm:$0xf0]  ;;  %v4411_v6 = vmul.f32 %v14513_v37, %v14422_v24  ;;  %vm4354_vm4 = vmor %vm4352_vm0, %vm4353_vm1  ;;  %vm4416_vm8 = vweird.f32 %v14513_v37 }
 0x6e3   : > { %v11057_v49 = vpop.eup %11056  ;;  %v4383_v50 = vsel %vm14490_vm15, %v4382_v15, %v4378_v45  ;;  %v4444_v38 = vmul.f32 %v11051_v2, %v4345_v31  ;;  %v4349_v12 = vsub.f32 1.0, %v4348_v46  ;;  %v9118_v62 = vor.u32 %v10522_v51, %v9115_v25  ;;  %v10582_v25 = vld [vmem:[%s16876_s2 + $0xe4] sm:$0xf] }
 0x6e4   : > { %v4442_v36 = vmul.f32 %v4383_v50, %v14241_v23  ;;  %v4386_v48 = vmul.f32 %v11057_v49, %v14438_v9  ;;  %v11059_v14 = vpop.eup %11058  ;;  %v9142_v23 = vor.u32 %v10527_v53, %v9139_v16  ;;  %vm4391_vm2 = vweird.f32 %v11057_v49  ;;  %4697 = vmatpush.bf16.msrb.mxu2 %v9122_v27  ;;  %v9343_v27 = vld [vmem:[%s16876_s2 + $0xc0] sm:$0xf] }
 0x6e5   : > { %v4350_v56 = vmul.f32 %v14499_v57, %v4349_v12  ;;  %v4409_v63 = vadd.f32 1.0, %v11059_v14  ;;  %v11061_v61 = vpop.eup %11060  ;;  %v4359_v15 = vor.u32 1.1754944e-38, %v4358_v17  ;;  %4683 = vmatpush.bf16.msrb.mxu1 %v9118_v62  ;;  %v4412_v4 = vsub.f32 1.0, %v4411_v6  ;;  %vm4392_vm6 = vmor %vm4390_vm3, %vm4391_vm2  ;;  %v10585_v12 = vld [vmem:[%s16876_s2 + $0xf4] sm:$0xf0] }
 0x6e6   : > { %v14554_v42 = vadd.f32 %v4444_v38, %v4442_v36  ;;  %v4387_v20 = vsub.f32 1.0, %v4386_v48  ;;  %4710 = vmatpush.bf16.msrb.mxu3 %v9142_v23  ;;  %vm4415_vm9 = vweird.f32 %v14422_v24  ;;  %v4422_v45 = vor.u32 1.1754944e-38, %v4421_v44  ;;  %v9367_v36 = vld [vmem:[%s16876_s2 + $0xe8] sm:$0xf]  ;;  %v9369_v23 = vld [vmem:[%s16876_s2 + $0xf8] sm:$0xf0] }
 0x6e7   : > { %v4351_v58 = vadd.f32 %v14499_v57, %v4350_v56  ;;  %11062 = vrcp.f32 %v4409_v63  ;;  %v4413_v28 = vmul.f32 %v14513_v37, %v4412_v4  ;;  %v4436_v1 = vand.u32 2147483648, %v4409_v63  ;;  %vm4417_vm11 = vmor %vm4415_vm9, %vm4416_vm8  ;;  %v17059_v48 = vld [vmem:[#allocation35_spill] sm:$0xff] }
 0x6e8   : > { %v4388_v34 = vmul.f32 %v11057_v49, %v4387_v20  ;;  %11064 = vtanh.f32 %v14554_v42  ;;  %v4434_v55 = vand.u32 2147483647, %v4409_v63  ;;  %vm4430_vm12 = vweird.f32 %v4409_v63  ;;  %v9335_v44 = vld [vmem:[%s16876_s2 + $0xa8] sm:$0xf] }
 0x6e9   : > { %v4355_v19 = vsel %vm4354_vm4, %v14499_v57, %v4351_v58  ;;  %v4414_v9 = vadd.f32 %v14513_v37, %v4413_v28  ;;  %v4437_v46 = vor.u32 1.1754944e-38, %v4436_v1  ;;  %v802_v17 = vadd.f32 %v17059_v48, %v12095_v3  ;;  %v9345_v58 = vld [vmem:[%s16876_s2 + $0xd0] sm:$0xf0]  ;;  %v10576_v28 = vld [vmem:[%s16876_s2 + $0xac] sm:$0xf0] }
 0x6ea   : > { %v4389_v35 = vadd.f32 %v11057_v49, %v4388_v34  ;;  %v4360_v8 = vsel %vm4357_vm5, %v4359_v15, %v4355_v19  ;;  %4711 = vmatpush.bf16.msrb.mxu3 %v9126_v30  ;;  %vm4435_vm15 = vcmp.eq.f32.partialorder %v4434_v55, 8.507059e+37  ;;  %v891_v5 = vadd.f32 %v17060_v18, %v12120_v11  ;;  %v10580_v30 = vld [vmem:[%s16876_s2 + $0xcc] sm:$0xf0]  ;;  %v10581_v15 = vld [vmem:[%s16876_s2 + $0xd4] sm:$0xf0] }
 0x6eb   : > { %v4445_v59 = vmul.f32 %v11061_v61, %v4360_v8  ;;  %v4418_v16 = vsel %vm4417_vm11, %v14513_v37, %v4414_v9  ;;  %v9359_v37 = vld [vmem:[%s16876_s2 + $0xe0] sm:$0xf]  ;;  %v9364_v14 = vor.u32 %v10582_v25, %v9361_v10  ;;  %v9368_v6 = vor.u32 %v10585_v12, %v9367_v36  ;;  %v10578_v61 = vld [vmem:[%s16876_s2 + $0xc4] sm:$0xf]  ;;  %v10579_v8 = vld [vmem:[%s16876_s2 + $0xcc] sm:$0xf] }
 0x6ec   : > { %v4393_v2 = vsel %vm4392_vm6, %v11057_v49, %v4389_v35  ;;  %v9360_v0 = vor.u32 %v10584_v33, %v9359_v37  ;;  %v9372_v56 = vor.u32 %v10583_v39, %v9369_v23  ;;  %v9344_v34 = vor.u32 %v10580_v30, %v9343_v27  ;;  %v10577_v1 = vld [vmem:[%s16876_s2 + $0xb4] sm:$0xf0]  ;;  %v17063_v55 = vld [vmem:[#allocation40_spill] sm:$0xff]  ;;  %v9311_v37 = vld [vmem:[%s16876_s2 + $0x80] sm:$0xf] }
 0x6ed   : > { %v4398_v40 = vsel %vm4395_vm7, %v4397_v7, %v4393_v2  ;;  %v11063_v57 = vpop.eup %11062  ;;  %5078 = vmatpush.bf16.msra.mxu1 %v9364_v14  ;;  %5092 = vmatpush.bf16.msra.mxu2 %v9368_v6  ;;  %v9348_v35 = vor.u32 %v10578_v61, %v9345_v58  ;;  %v9352_v7 = vor.u32 %v10581_v15, %v9351_v43  ;;  %v9353_v2 = vld [vmem:[%s16876_s2 + $0xd8] sm:$0xf0]  ;;  %v10572_v33 = vld [vmem:[%s16876_s2 + $0x8c] sm:$0xf0]  ;;  %v10570_v25 = vld [vmem:[%s16876_s2 + $0x84] sm:$0xf] }
 0x6ee   : > { %v4443_v60 = vmul.f32 %v4398_v40, %v14257_v22  ;;  %v4426_v26 = vmul.f32 %v11063_v57, %v4409_v63  ;;  %v4419_v22 = vand.u32 2147483647, %v14422_v24  ;;  %vm4431_vm10 = vweird.f32 %v11063_v57  ;;  %v11065_v31 = vpop.eup %11064  ;;  %5064 = vmatpush.bf16.msra.mxu0 %v9360_v0  ;;  %5106 = vmatpush.bf16.msra.mxu3 %v9372_v56  ;;  %v9327_v40 = vld [vmem:[%s16876_s2 + $0xa0] sm:$0xf]  ;;  %v9313_v36 = vld [vmem:[%s16876_s2 + $0x90] sm:$0xf0] }
 0x6ef   : > { %vm4432_vm13 = vmor %vm4430_vm12, %vm4431_vm10  ;;  %v9328_v9 = vor.u32 %v10576_v28, %v9327_v40  ;;  %v9312_v10 = vor.u32 %v10572_v33, %v9311_v37  ;;  %v9319_v12 = vld [vmem:[%s16876_s2 + $0x88] sm:$0xf]  ;;  %v10573_v14 = vld [vmem:[%s16876_s2 + $0x94] sm:$0xf0] }
 0x6f0   : > { %v14570_v54 = vadd.f32 %v4445_v59, %v4443_v60  ;;  %v4427_v52 = vsub.f32 1.0, %v4426_v26  ;;  %vm4420_vm14 = vcmp.eq.f32.partialorder %v4419_v22, 8.507059e+37  ;;  %v9356_v59 = vor.u32 %v10579_v8, %v9353_v2  ;;  %v10574_v60 = vld [vmem:[%s16876_s2 + $0xa4] sm:$0xf]  ;;  %v17062_v22 = vld [vmem:[#allocation39_spill] sm:$0xff]  ;;  %v17064_v58 = vld [vmem:[#allocation37_spill] sm:$0xff] }
 0x6f1   : > { %v4423_v51 = vsel %vm4420_vm14, %v4422_v45, %v4418_v16  ;;  %5079 = vmatpush.bf16.msra.mxu1 %v9348_v35  ;;  %5093 = vmatpush.bf16.msra.mxu2 %v9352_v7  ;;  %v9336_v45 = vor.u32 %v10577_v1, %v9335_v44  ;;  %v9320_v23 = vor.u32 %v10573_v14, %v9319_v12  ;;  %v9295_v27 = vld [vmem:[%s16876_s2 + $0x60] sm:$0xf]  ;;  %v10568_v30 = vld [vmem:[%s16876_s2 + $0x6c] sm:$0xf0]  ;;  %v10566_v61 = vld [vmem:[%s16876_s2 + $0x64] sm:$0xf] }
 0x6f2   : > { %11066 = vtanh.f32 %v14570_v54  ;;  %v4428_v21 = vmul.f32 %v11063_v57, %v4427_v52  ;;  %v4450_v50 = vmul.f32 %v11065_v31, %v4423_v51  ;;  %5065 = vmatpush.bf16.msra.mxu0 %v9344_v34  ;;  %v9329_v52 = vld [vmem:[%s16876_s2 + $0xb0] sm:$0xf0]  ;;  %5107 = vmatpush.bf16.msra.mxu3 %v9356_v59  ;;  %v980_v43 = vadd.f32 %v17064_v58, %v12230_v47  ;;  %v17065_v35 = vld [vmem:[#allocation42_spill] sm:$0xff]  ;;  %v10567_v2 = vld [vmem:[%s16876_s2 + $0x6c] sm:$0xf] }
 0x6f3   : > { %v9332_v31 = vor.u32 %v10574_v60, %v9329_v52  ;;  %v9297_v34 = vld [vmem:[%s16876_s2 + $0x70] sm:$0xf0]  ;;  %v1071_v7 = vadd.f32 %v17065_v35, %v12159_v41  ;;  %v9296_v8 = vor.u32 %v10568_v30, %v9295_v27  ;;  %v9305_v59 = vld [vmem:[%s16876_s2 + $0x78] sm:$0xf0]  ;;  %v10564_v52 = vld [vmem:[%s16876_s2 + $0x4c] sm:$0xf0] }
 0x6f4   : > { %v4429_v53 = vadd.f32 %v11063_v57, %v4428_v21  ;;  %v804_v21 = vadd.f32 %v17062_v22, %v12095_v3  ;;  %v9300_v60 = vor.u32 %v10566_v61, %v9297_v34  ;;  %v10562_v44 = vld [vmem:[%s16876_s2 + $0x44] sm:$0xf]  ;;  %v9265_v34 = vld [vmem:[%s16876_s2 + $0x30] sm:$0xf0] }
 0x6f5   : > { %5080 = vmatpush.bf16.msra.mxu1 %v9332_v31  ;;  %5094 = vmatpush.bf16.msra.mxu2 %v9336_v45  ;;  %v10558_v61 = vld [vmem:[%s16876_s2 + $0x24] sm:$0xf] }
 0x6f6   : > { %v4433_v29 = vsel %vm4432_vm13, %v11063_v57, %v4429_v53  ;;  %v17061_v57 = vld [vmem:[#allocation38_spill] sm:$0xff]  ;;  %v893_v53 = vadd.f32 %v17063_v55, %v12120_v11  ;;  %5066 = vmatpush.bf16.msra.mxu0 %v9328_v9  ;;  %v9281_v55 = vld [vmem:[%s16876_s2 + $0x50] sm:$0xf0] }
 0x6f7   : > { %v4438_v49 = vsel %vm4435_vm15, %v4437_v46, %v4433_v29  ;;  %v1069_v26 = vadd.f32 %v17061_v57, %v12159_v41  ;;  %v10575_v46 = vld [vmem:[%s16876_s2 + $0xac] sm:$0xf]  ;;  %v9279_v9 = vld [vmem:[%s16876_s2 + $0x40] sm:$0xf] }
 0x6f8   : > { %v11067_v32 = vpop.eup %11066 }
 0x6f9   : > { %v4451_v24 = vmul.f32 %v11067_v32, %v4438_v49  ;;  %v9337_v32 = vld [vmem:[%s16876_s2 + $0xb8] sm:$0xf0]  ;;  %5095 = vmatpush.bf16.msra.mxu2 %v9320_v23 }
 0x6fa   : > { %5067 = vmatpush.bf16.msra.mxu0 %v9312_v10 }
 0x6fb   : > { %v4469_v38 = vpack.c.bf16 %v4451_v24, %v4450_v50  ;;  %v9340_v50 = vor.u32 %v10575_v46, %v9337_v32  ;;  %v9284_v46 = vor.u32 %v10562_v44, %v9281_v55 }
 0x6fd   : > { %4670 = vmatmul.bf16.vlgmr.msrb.gmra.mxu0 %v4469_v38  ;;  %4684 = vmatmul.bf16.vlgmr.msrb.gmra.mxu1 %v4469_v38 }
 0x6fe   : > { %4698 = vmatmul.bf16.vlgmr.msrb.gmra.mxu2 %v4469_v38  ;;  %4712 = vmatmul.bf16.vlgmr.msrb.gmra.mxu3 %v4469_v38 }
 0x6ff   : > { %5108 = vmatpush.bf16.msra.mxu3 %v9340_v50  ;;  %5068 = vmatpush.bf16.msra.mxu0 %v9296_v8 }
 0x77a   : > { %v4671_v13 = vpop.f32.mrf.mxu0  ;;  %v4685_v20 = vpop.f32.mrf.mxu1 }
 0x77b   : > { %v4718_v63 = vadd.f32 %v4671_v13, %v802_v17  ;;  %v4719_v62 = vadd.f32 %v4685_v20, %v891_v5  ;;  %v9316_v5 = vor.u32 %v10570_v25, %v9313_v36  ;;  %v10571_v13 = vld [vmem:[%s16876_s2 + $0x8c] sm:$0xf]  ;;  %v9321_v20 = vld [vmem:[%s16876_s2 + $0x98] sm:$0xf0] }
 0x77d   : > { %v9239_v4 = vmul.f32 -1.442695, %v4718_v63  ;;  %v9241_v19 = vmul.f32 -1.442695, %v4719_v62  ;;  %5081 = vmatpush.bf16.msra.mxu1 %v9316_v5  ;;  %v9324_v62 = vor.u32 %v10571_v13, %v9321_v20  ;;  %v9289_v20 = vld [vmem:[%s16876_s2 + $0x58] sm:$0xf0] }
 0x77f   : > { %11068 = vpow2.f32 %v9239_v4  ;;  %5109 = vmatpush.bf16.msra.mxu3 %v9324_v62  ;;  %v9303_v4 = vld [vmem:[%s16876_s2 + $0x68] sm:$0xf]  ;;  %v10560_v62 = vld [vmem:[%s16876_s2 + $0x2c] sm:$0xf0] }
 0x780   : > { %11070 = vpow2.f32 %v9241_v19  ;;  %v10569_v19 = vld [vmem:[%s16876_s2 + $0x74] sm:$0xf0] }
 0x781   : > { %v4713_v16 = vpop.f32.mrf.mxu3  ;;  %v4699_v63 = vpop.f32.mrf.mxu2  ;;  %v9304_v57 = vor.u32 %v10569_v19, %v9303_v4  ;;  %5082 = vmatpush.bf16.msra.mxu1 %v9300_v60  ;;  %v10559_v60 = vld [vmem:[%s16876_s2 + $0x2c] sm:$0xf] }
 0x782   : > { %v4721_v29 = vadd.f32 %v4713_v16, %v1069_v26  ;;  %v4673_v51 = vpop.f32.mrf.mxu0  ;;  %v4687_v49 = vpop.f32.mrf.mxu1  ;;  %v4720_v28 = vadd.f32 %v4699_v63, %v980_v43  ;;  %v9308_v26 = vor.u32 %v10567_v2, %v9305_v59  ;;  %v9263_v63 = vld [vmem:[%s16876_s2 + $0x20] sm:$0xf] }
 0x783   : > { %v4722_v24 = vadd.f32 %v4673_v51, %v804_v21  ;;  %v4723_v38 = vadd.f32 %v4687_v49, %v893_v53  ;;  %v9280_v21 = vor.u32 %v10564_v52, %v9279_v9  ;;  %5096 = vmatpush.bf16.msra.mxu2 %v9304_v57  ;;  %v9273_v57 = vld [vmem:[%s16876_s2 + $0x38] sm:$0xf0] }
 0x784   : > { %v9243_v0 = vmul.f32 -1.442695, %v4721_v29  ;;  %v17066_v29 = vld [vmem:[#allocation41_spill] sm:$0xff]  ;;  %5110 = vmatpush.bf16.msra.mxu3 %v9308_v26 }
 0x785   : > { %v11069_v48 = vpop.eup %11068  ;;  %v9240_v17 = vmul.f32 -1.442695, %v4722_v24  ;;  %v9242_v18 = vmul.f32 -1.442695, %v4723_v38  ;;  %v982_v51 = vadd.f32 %v17066_v29, %v12230_v47  ;;  %5069 = vmatpush.bf16.msra.mxu0 %v9280_v21  ;;  %5083 = vmatpush.bf16.msra.mxu1 %v9284_v46  ;;  %v10554_v21 = vld [vmem:[%s16876_s2 + $0x4] sm:$0xf]  ;;  %v9268_v46 = vor.u32 %v10558_v61, %v9265_v34 }
 0x786   : > { %v11071_v6 = vpop.eup %11070  ;;  %v14680_v39 = vadd.f32 1.0, %v11069_v48  ;;  %11072 = vpow2.f32 %v9243_v0  ;;  %v9255_v29 = vld [vmem:[%s16876_s2 + $0x8] sm:$0xf] }
 0x787   : > { %v14688_v56 = vadd.f32 1.0, %v11071_v6  ;;  %11074 = vpow2.f32 %v9240_v17  ;;  %v9287_v17 = vld [vmem:[%s16876_s2 + $0x48] sm:$0xf]  ;;  %v10563_v6 = vld [vmem:[%s16876_s2 + $0x4c] sm:$0xf] }
 0x788   : > { %11076 = vrcp.f32 %v14680_v39  ;;  %v4743_v16 = vand.u32 2147483647, %v14680_v39  ;;  %v4745_v50 = vand.u32 2147483648, %v14680_v39  ;;  %vm4739_vm4 = vweird.f32 %v14680_v39 }
 0x789   : > { %11078 = vrcp.f32 %v14688_v56  ;;  %v4715_v15 = vpop.f32.mrf.mxu3  ;;  %v4783_v37 = vand.u32 2147483648, %v14688_v56  ;;  %v4781_v33 = vand.u32 2147483647, %v14688_v56  ;;  %v4701_v10 = vpop.f32.mrf.mxu2  ;;  %vm4777_vm3 = vweird.f32 %v14688_v56  ;;  %5084 = vmatpush.bf16.msra.mxu1 %v9268_v46  ;;  %v10616_v46 = vld [vmem:[%s16876_s2 + $0xec] sm:$0xf0] }
 0x78a   : > { %11080 = vpow2.f32 %v9242_v18  ;;  %v4725_v22 = vadd.f32 %v4715_v15, %v1071_v7  ;;  %vm14754_vm1 = vcmp.eq.f32.partialorder %v4743_v16, 8.507059e+37  ;;  %v10565_v18 = vld [vmem:[%s16876_s2 + $0x54] sm:$0xf0]  ;;  %v4746_v14 = vor.u32 1.1754944e-38, %v4745_v50  ;;  %v9271_v7 = vld [vmem:[%s16876_s2 + $0x28] sm:$0xf] }
 0x78b   : > { %11082 = vtanh.f32 %v4720_v28  ;;  %v4724_v13 = vadd.f32 %v4701_v10, %v982_v51  ;;  %v4784_v27 = vor.u32 1.1754944e-38, %v4783_v37  ;;  %vm14803_vm7 = vcmp.eq.f32.partialorder %v4781_v33, 8.507059e+37  ;;  %v10561_v28 = vld [vmem:[%s16876_s2 + $0x34] sm:$0xf0]  ;;  %v10555_v37 = vld [vmem:[%s16876_s2 + $0xc] sm:$0xf] }
 0x78c   : > { %v11073_v40 = vpop.eup %11072  ;;  %v9244_v36 = vmul.f32 -1.442695, %v4725_v22  ;;  %v9292_v59 = vor.u32 %v10563_v6, %v9289_v20  ;;  %v10556_v22 = vld [vmem:[%s16876_s2 + $0xc] sm:$0xf0]  ;;  %v10557_v51 = vld [vmem:[%s16876_s2 + $0x14] sm:$0xf0] }
 0x78d   : > { %v11075_v1 = vpop.eup %11074  ;;  %v14735_v31 = vadd.f32 1.0, %v11073_v40  ;;  %v9264_v40 = vor.u32 %v10560_v62, %v9263_v63  ;;  %v9257_v33 = vld [vmem:[%s16876_s2 + $0x18] sm:$0xf0]  ;;  %v9256_v6 = vor.u32 %v10557_v51, %v9255_v29  ;;  %v9495_v51 = vld [vmem:[%s16876_s2 + $0xf0] sm:$0xf0] }
 0x78e   : > { %v14732_v53 = vpop.eup %11076  ;;  %v14737_v45 = vadd.f32 1.0, %v11075_v1  ;;  %v9247_v1 = vld [vmem:[%s16876_s2] sm:$0xf]  ;;  %5111 = vmatpush.bf16.msra.mxu3 %v9292_v59 }
 0x78f   : > { %v14739_v32 = vpop.eup %11078  ;;  %v4735_v49 = vmul.f32 %v14732_v53, %v14680_v39  ;;  %vm4740_vm0 = vweird.f32 %v14732_v53  ;;  %5070 = vmatpush.bf16.msra.mxu0 %v9264_v40 }
 0x790   : > { %v11081_v24 = vpop.eup %11080  ;;  %v4773_v38 = vmul.f32 %v14739_v32, %v14688_v56  ;;  %11084 = vrcp.f32 %v14737_v45  ;;  %vm4778_vm2 = vweird.f32 %v14739_v32  ;;  %vm14786_vm5 = vmor %vm4739_vm4, %vm4740_vm0  ;;  %v9288_v56 = vor.u32 %v10565_v18, %v9287_v17 }
 0x791   : > { %v4736_v25 = vsub.f32 1.0, %v4735_v49  ;;  %v14751_v0 = vadd.f32 1.0, %v11081_v24  ;;  %11086 = vrcp.f32 %v14735_v31  ;;  %v11083_v58 = vpop.eup %11082  ;;  %vm14798_vm6 = vmor %vm4777_vm3, %vm4778_vm2  ;;  %v4758_v35 = vand.u32 2147483647, %v14737_v45 }
 0x792   : > { %v4774_v12 = vsub.f32 1.0, %v4773_v38  ;;  %5097 = vmatpush.bf16.msra.mxu2 %v9288_v56  ;;  %vm4754_vm8 = vweird.f32 %v14737_v45  ;;  %v4760_v38 = vand.u32 2147483648, %v14737_v45 }
 0x793   : > { %v4737_v5 = vmul.f32 %v14732_v53, %v4736_v25  ;;  %11088 = vrcp.f32 %v14751_v0  ;;  %v4798_v19 = vand.u32 2147483648, %v14751_v0  ;;  %v4796_v62 = vand.u32 2147483647, %v14751_v0 }
 0x794   : > { %v4775_v23 = vmul.f32 %v14739_v32, %v4774_v12  ;;  %11090 = vpow2.f32 %v9244_v36  ;;  %v9272_v36 = vor.u32 %v10561_v28, %v9271_v7  ;;  %v9248_v12 = vor.u32 %v10556_v22, %v9247_v1 }
 0x795   : > { %v4738_v30 = vadd.f32 %v14732_v53, %v4737_v5  ;;  %11092 = vtanh.f32 %v4724_v13  ;;  %vm4792_vm11 = vweird.f32 %v14751_v0  ;;  %vm4759_vm13 = vcmp.eq.f32.partialorder %v4758_v35, 8.507059e+37 }
 0x796   : > { %v4776_v15 = vadd.f32 %v14739_v32, %v4775_v23  ;;  %v14812_v8 = vpop.eup %11084  ;;  %5098 = vmatpush.bf16.msra.mxu2 %v9272_v36  ;;  %v9260_v23 = vor.u32 %v10555_v37, %v9257_v33  ;;  %5071 = vmatpush.bf16.msra.mxu0 %v9248_v12  ;;  %v4799_v61 = vor.u32 1.1754944e-38, %v4798_v19  ;;  %vm4797_vm15 = vcmp.eq.f32.partialorder %v4796_v62, 8.507059e+37  ;;  %v17076_v37 = vld [vmem:[#allocation44_spill] sm:$0xff]  ;;  %v10615_v36 = vld [vmem:[%s16876_s2 + $0xec] sm:$0xf] }
 0x797   : > { %v4742_v2 = vsel %vm14786_vm5, %v14732_v53, %v4738_v30  ;;  %v14826_v26 = vpop.eup %11086  ;;  %v4750_v44 = vmul.f32 %v14812_v8, %v14737_v45  ;;  %vm4755_vm9 = vweird.f32 %v14812_v8  ;;  %v4823_v35 = vand.u32 2147483648, %v14735_v31  ;;  %v9485_v62 = vld [vmem:[%s16876_s2 + $0xc8] sm:$0xf] }
 0x798   : > { %v4747_v9 = vsel %vm14754_vm1, %v4746_v14, %v4742_v2  ;;  %v4780_v52 = vsel %vm14798_vm6, %v14739_v32, %v4776_v15  ;;  %v9249_v32 = vld [vmem:[%s16876_s2 + $0x10] sm:$0xf0]  ;;  %v4813_v10 = vmul.f32 %v14826_v26, %v14735_v31  ;;  %vm4756_vm12 = vmor %vm4754_vm8, %vm4755_vm9  ;;  %vm4818_vm0 = vweird.f32 %v14826_v26 }
 0x799   : > { %v11089_v55 = vpop.eup %11088  ;;  %v4785_v53 = vsel %vm14803_vm7, %v4784_v27, %v4780_v52  ;;  %v4846_v16 = vmul.f32 %v11083_v58, %v4747_v9  ;;  %v4751_v50 = vsub.f32 1.0, %v4750_v44  ;;  %v9252_v14 = vor.u32 %v10554_v21, %v9249_v32  ;;  %v10614_v32 = vld [vmem:[%s16876_s2 + $0xe4] sm:$0xf] }
 0x79a   : > { %v4844_v49 = vmul.f32 %v4785_v53, %v14554_v42  ;;  %v4788_v24 = vmul.f32 %v11089_v55, %v14751_v0  ;;  %v11091_v25 = vpop.eup %11090  ;;  %v9276_v42 = vor.u32 %v10559_v60, %v9273_v57  ;;  %vm4793_vm10 = vweird.f32 %v11089_v55  ;;  %5099 = vmatpush.bf16.msra.mxu2 %v9256_v6  ;;  %v9477_v6 = vld [vmem:[%s16876_s2 + $0xc0] sm:$0xf] }
 0x79b   : > { %v4752_v18 = vmul.f32 %v14812_v8, %v4751_v50  ;;  %v4811_v5 = vadd.f32 1.0, %v11091_v25  ;;  %v11093_v13 = vpop.eup %11092  ;;  %v4761_v27 = vor.u32 1.1754944e-38, %v4760_v38  ;;  %5085 = vmatpush.bf16.msra.mxu1 %v9252_v14  ;;  %v4814_v30 = vsub.f32 1.0, %v4813_v10  ;;  %vm4794_vm14 = vmor %vm4792_vm11, %vm4793_vm10  ;;  %v10617_v50 = vld [vmem:[%s16876_s2 + $0xf4] sm:$0xf0] }
 0x79c   : > { %v14867_v48 = vadd.f32 %v4846_v16, %v4844_v49  ;;  %v4789_v17 = vsub.f32 1.0, %v4788_v24  ;;  %5112 = vmatpush.bf16.msra.mxu3 %v9276_v42  ;;  %vm4817_vm1 = vweird.f32 %v14735_v31  ;;  %v4824_v52 = vor.u32 1.1754944e-38, %v4823_v35  ;;  %v9501_v49 = vld [vmem:[%s16876_s2 + $0xe8] sm:$0xf]  ;;  %v9503_v42 = vld [vmem:[%s16876_s2 + $0xf8] sm:$0xf0] }
 0x79d   : > { %v4753_v63 = vadd.f32 %v14812_v8, %v4752_v18  ;;  %11094 = vrcp.f32 %v4811_v5  ;;  %v4815_v4 = vmul.f32 %v14826_v26, %v4814_v30  ;;  %v4838_v59 = vand.u32 2147483648, %v4811_v5  ;;  %vm4819_vm3 = vmor %vm4817_vm1, %vm4818_vm0  ;;  %v17075_v24 = vld [vmem:[#allocation43_spill] sm:$0xff] }
 0x79e   : > { %v4790_v20 = vmul.f32 %v11089_v55, %v4789_v17  ;;  %11096 = vtanh.f32 %v14867_v48  ;;  %v4836_v28 = vand.u32 2147483647, %v4811_v5  ;;  %vm4832_vm4 = vweird.f32 %v4811_v5  ;;  %v9469_v35 = vld [vmem:[%s16876_s2 + $0xa8] sm:$0xf] }
 0x79f   : > { %v4757_v39 = vsel %vm4756_vm12, %v14812_v8, %v4753_v63  ;;  %v4816_v0 = vadd.f32 %v14826_v26, %v4815_v4  ;;  %v4839_v44 = vor.u32 1.1754944e-38, %v4838_v59  ;;  %v807_v38 = vadd.f32 %v17075_v24, %v12095_v3  ;;  %v9479_v63 = vld [vmem:[%s16876_s2 + $0xd0] sm:$0xf0]  ;;  %v10608_v4 = vld [vmem:[%s16876_s2 + $0xac] sm:$0xf0] }
 0x7a0   : > { %v4791_v56 = vadd.f32 %v11089_v55, %v4790_v20  ;;  %v4762_v34 = vsel %vm4759_vm13, %v4761_v27, %v4757_v39  ;;  %5113 = vmatpush.bf16.msra.mxu3 %v9260_v23  ;;  %vm4837_vm7 = vcmp.eq.f32.partialorder %v4836_v28, 8.507059e+37  ;;  %v896_v33 = vadd.f32 %v17076_v37, %v12120_v11  ;;  %v10612_v23 = vld [vmem:[%s16876_s2 + $0xcc] sm:$0xf0]  ;;  %v10613_v27 = vld [vmem:[%s16876_s2 + $0xd4] sm:$0xf0] }
 0x7a1   : > { %v4847_v43 = vmul.f32 %v11093_v13, %v4762_v34  ;;  %v4820_v57 = vsel %vm4819_vm3, %v14826_v26, %v4816_v0  ;;  %v9493_v26 = vld [vmem:[%s16876_s2 + $0xe0] sm:$0xf]  ;;  %v9498_v25 = vor.u32 %v10614_v32, %v9495_v51  ;;  %v9502_v10 = vor.u32 %v10617_v50, %v9501_v49  ;;  %v10610_v13 = vld [vmem:[%s16876_s2 + $0xc4] sm:$0xf]  ;;  %v10611_v34 = vld [vmem:[%s16876_s2 + $0xcc] sm:$0xf] }
 0x7a2   : > { %v4795_v58 = vsel %vm4794_vm14, %v11089_v55, %v4791_v56  ;;  %v9494_v29 = vor.u32 %v10616_v46, %v9493_v26  ;;  %v9506_v18 = vor.u32 %v10615_v36, %v9503_v42  ;;  %v9478_v20 = vor.u32 %v10612_v23, %v9477_v6  ;;  %v10609_v59 = vld [vmem:[%s16876_s2 + $0xb4] sm:$0xf0]  ;;  %v17079_v28 = vld [vmem:[#allocation48_spill] sm:$0xff]  ;;  %v9445_v26 = vld [vmem:[%s16876_s2 + $0x80] sm:$0xf] }
 0x7a3   : > { %v4800_v15 = vsel %vm4797_vm15, %v4799_v61, %v4795_v58  ;;  %v11095_v8 = vpop.eup %11094  ;;  %5480 = vmatpush.bf16.msrb.mxu1 %v9498_v25  ;;  %5494 = vmatpush.bf16.msrb.mxu2 %v9502_v10  ;;  %v9482_v56 = vor.u32 %v10610_v13, %v9479_v63  ;;  %v9486_v61 = vor.u32 %v10613_v27, %v9485_v62  ;;  %v9487_v58 = vld [vmem:[%s16876_s2 + $0xd8] sm:$0xf0]  ;;  %v10604_v46 = vld [vmem:[%s16876_s2 + $0x8c] sm:$0xf0]  ;;  %v10602_v32 = vld [vmem:[%s16876_s2 + $0x84] sm:$0xf] }
 0x7a4   : > { %v4845_v7 = vmul.f32 %v4800_v15, %v14570_v54  ;;  %v4828_v45 = vmul.f32 %v11095_v8, %v4811_v5  ;;  %v4821_v54 = vand.u32 2147483647, %v14735_v31  ;;  %vm4833_vm2 = vweird.f32 %v11095_v8  ;;  %v11097_v9 = vpop.eup %11096  ;;  %5466 = vmatpush.bf16.msrb.mxu0 %v9494_v29  ;;  %5508 = vmatpush.bf16.msrb.mxu3 %v9506_v18  ;;  %v9461_v15 = vld [vmem:[%s16876_s2 + $0xa0] sm:$0xf]  ;;  %v9447_v49 = vld [vmem:[%s16876_s2 + $0x90] sm:$0xf0] }
 0x7a5   : > { %vm4834_vm5 = vmor %vm4832_vm4, %vm4833_vm2  ;;  %v9462_v0 = vor.u32 %v10608_v4, %v9461_v15  ;;  %v9446_v51 = vor.u32 %v10604_v46, %v9445_v26  ;;  %v9453_v50 = vld [vmem:[%s16876_s2 + $0x88] sm:$0xf]  ;;  %v10605_v25 = vld [vmem:[%s16876_s2 + $0x94] sm:$0xf0] }
 0x7a6   : > { %v14883_v2 = vadd.f32 %v4847_v43, %v4845_v7  ;;  %v4829_v19 = vsub.f32 1.0, %v4828_v45  ;;  %vm4822_vm6 = vcmp.eq.f32.partialorder %v4821_v54, 8.507059e+37  ;;  %v9490_v43 = vor.u32 %v10611_v34, %v9487_v58  ;;  %v10606_v7 = vld [vmem:[%s16876_s2 + $0xa4] sm:$0xf]  ;;  %v17078_v54 = vld [vmem:[#allocation47_spill] sm:$0xff]  ;;  %v17080_v63 = vld [vmem:[#allocation45_spill] sm:$0xff] }
 0x7a7   : > { %v4825_v21 = vsel %vm4822_vm6, %v4824_v52, %v4820_v57  ;;  %5481 = vmatpush.bf16.msrb.mxu1 %v9482_v56  ;;  %5495 = vmatpush.bf16.msrb.mxu2 %v9486_v61  ;;  %v9470_v52 = vor.u32 %v10609_v59, %v9469_v35  ;;  %v9454_v42 = vor.u32 %v10605_v25, %v9453_v50  ;;  %v9429_v6 = vld [vmem:[%s16876_s2 + $0x60] sm:$0xf]  ;;  %v10600_v23 = vld [vmem:[%s16876_s2 + $0x6c] sm:$0xf0]  ;;  %v10598_v13 = vld [vmem:[%s16876_s2 + $0x64] sm:$0xf] }
 0x7a8   : > { %11098 = vtanh.f32 %v14883_v2  ;;  %v4830_v40 = vmul.f32 %v11095_v8, %v4829_v19  ;;  %v4852_v53 = vmul.f32 %v11097_v9, %v4825_v21  ;;  %5467 = vmatpush.bf16.msrb.mxu0 %v9478_v20  ;;  %v9463_v19 = vld [vmem:[%s16876_s2 + $0xb0] sm:$0xf0]  ;;  %5509 = vmatpush.bf16.msrb.mxu3 %v9490_v43  ;;  %v985_v62 = vadd.f32 %v17080_v63, %v12230_v47  ;;  %v17081_v56 = vld [vmem:[#allocation50_spill] sm:$0xff]  ;;  %v10599_v58 = vld [vmem:[%s16876_s2 + $0x6c] sm:$0xf] }
 0x7a9   : > { %v9466_v9 = vor.u32 %v10606_v7, %v9463_v19  ;;  %v9431_v20 = vld [vmem:[%s16876_s2 + $0x70] sm:$0xf0]  ;;  %v1076_v61 = vadd.f32 %v17081_v56, %v12159_v41  ;;  %v9430_v34 = vor.u32 %v10600_v23, %v9429_v6  ;;  %v9439_v43 = vld [vmem:[%s16876_s2 + $0x78] sm:$0xf0]  ;;  %v10596_v19 = vld [vmem:[%s16876_s2 + $0x4c] sm:$0xf0] }
 0x7aa   : > { %v4831_v60 = vadd.f32 %v11095_v8, %v4830_v40  ;;  %v809_v40 = vadd.f32 %v17078_v54, %v12095_v3  ;;  %v9434_v7 = vor.u32 %v10598_v13, %v9431_v20  ;;  %v10594_v35 = vld [vmem:[%s16876_s2 + $0x44] sm:$0xf]  ;;  %v9399_v20 = vld [vmem:[%s16876_s2 + $0x30] sm:$0xf0] }
 0x7ab   : > { %5482 = vmatpush.bf16.msrb.mxu1 %v9466_v9  ;;  %5496 = vmatpush.bf16.msrb.mxu2 %v9470_v52  ;;  %v10590_v13 = vld [vmem:[%s16876_s2 + $0x24] sm:$0xf] }
 0x7ac   : > { %v4835_v22 = vsel %vm4834_vm5, %v11095_v8, %v4831_v60  ;;  %v17077_v8 = vld [vmem:[#allocation46_spill] sm:$0xff]  ;;  %v898_v60 = vadd.f32 %v17079_v28, %v12120_v11  ;;  %5468 = vmatpush.bf16.msrb.mxu0 %v9462_v0  ;;  %v9415_v28 = vld [vmem:[%s16876_s2 + $0x50] sm:$0xf0] }
 0x7ad   : > { %v4840_v55 = vsel %vm4837_vm7, %v4839_v44, %v4835_v22  ;;  %v1074_v45 = vadd.f32 %v17077_v8, %v12159_v41  ;;  %v10607_v44 = vld [vmem:[%s16876_s2 + $0xac] sm:$0xf]  ;;  %v9413_v0 = vld [vmem:[%s16876_s2 + $0x40] sm:$0xf] }
 0x7ae   : > { %v11099_v1 = vpop.eup %11098 }
 0x7af   : > { %v4853_v31 = vmul.f32 %v11099_v1, %v4840_v55  ;;  %v9471_v1 = vld [vmem:[%s16876_s2 + $0xb8] sm:$0xf0]  ;;  %5497 = vmatpush.bf16.msrb.mxu2 %v9454_v42 }
 0x7b0   : > { %5469 = vmatpush.bf16.msrb.mxu0 %v9446_v51 }
 0x7b1   : > { %v4871_v16 = vpack.c.bf16 %v4853_v31, %v4852_v53  ;;  %v9474_v53 = vor.u32 %v10607_v44, %v9471_v1  ;;  %v9418_v44 = vor.u32 %v10594_v35, %v9415_v28 }
 0x7b3   : > { %5072 = vmatmul.bf16.vlgmr.msra.gmra.mxu0 %v4871_v16  ;;  %5086 = vmatmul.bf16.vlgmr.msra.gmra.mxu1 %v4871_v16 }
 0x7b4   : > { %5100 = vmatmul.bf16.vlgmr.msra.gmra.mxu2 %v4871_v16  ;;  %5114 = vmatmul.bf16.vlgmr.msra.gmra.mxu3 %v4871_v16 }
 0x7b5   : > { %5510 = vmatpush.bf16.msrb.mxu3 %v9474_v53  ;;  %5470 = vmatpush.bf16.msrb.mxu0 %v9430_v34 }
 0x830   : > { %v5073_v12 = vpop.f32.mrf.mxu0  ;;  %v5087_v17 = vpop.f32.mrf.mxu1 }
 0x831   : > { %v5120_v5 = vadd.f32 %v5073_v12, %v807_v38  ;;  %v5121_v14 = vadd.f32 %v5087_v17, %v896_v33  ;;  %v9450_v33 = vor.u32 %v10602_v32, %v9447_v49  ;;  %v10603_v12 = vld [vmem:[%s16876_s2 + $0x8c] sm:$0xf]  ;;  %v9455_v17 = vld [vmem:[%s16876_s2 + $0x98] sm:$0xf0] }
 0x833   : > { %v9373_v30 = vmul.f32 -1.442695, %v5120_v5  ;;  %v9375_v39 = vmul.f32 -1.442695, %v5121_v14  ;;  %5483 = vmatpush.bf16.msrb.mxu1 %v9450_v33  ;;  %v9458_v14 = vor.u32 %v10603_v12, %v9455_v17  ;;  %v9423_v17 = vld [vmem:[%s16876_s2 + $0x58] sm:$0xf0] }
 0x835   : > { %11100 = vpow2.f32 %v9373_v30  ;;  %5511 = vmatpush.bf16.msrb.mxu3 %v9458_v14  ;;  %v9437_v30 = vld [vmem:[%s16876_s2 + $0x68] sm:$0xf]  ;;  %v10592_v14 = vld [vmem:[%s16876_s2 + $0x2c] sm:$0xf0] }
 0x836   : > { %11102 = vpow2.f32 %v9375_v39  ;;  %v10601_v39 = vld [vmem:[%s16876_s2 + $0x74] sm:$0xf0] }
 0x837   : > { %v5115_v57 = vpop.f32.mrf.mxu3  ;;  %v5101_v5 = vpop.f32.mrf.mxu2  ;;  %v9438_v8 = vor.u32 %v10601_v39, %v9437_v30  ;;  %5484 = vmatpush.bf16.msrb.mxu1 %v9434_v7  ;;  %v10591_v7 = vld [vmem:[%s16876_s2 + $0x2c] sm:$0xf] }
 0x838   : > { %v5123_v22 = vadd.f32 %v5115_v57, %v1074_v45  ;;  %v5075_v21 = vpop.f32.mrf.mxu0  ;;  %v5089_v55 = vpop.f32.mrf.mxu1  ;;  %v5122_v4 = vadd.f32 %v5101_v5, %v985_v62  ;;  %v9442_v45 = vor.u32 %v10599_v58, %v9439_v43  ;;  %v9397_v5 = vld [vmem:[%s16876_s2 + $0x20] sm:$0xf] }
 0x839   : > { %v5124_v31 = vadd.f32 %v5075_v21, %v809_v40  ;;  %v5125_v16 = vadd.f32 %v5089_v55, %v898_v60  ;;  %v9414_v40 = vor.u32 %v10596_v19, %v9413_v0  ;;  %5498 = vmatpush.bf16.msrb.mxu2 %v9438_v8  ;;  %v9407_v8 = vld [vmem:[%s16876_s2 + $0x38] sm:$0xf0] }
 0x83a   : > { %v9377_v29 = vmul.f32 -1.442695, %v5123_v22  ;;  %v17082_v22 = vld [vmem:[#allocation49_spill] sm:$0xff]  ;;  %5512 = vmatpush.bf16.msrb.mxu3 %v9442_v45 }
 0x83b   : > { %v11101_v24 = vpop.eup %11100  ;;  %v9374_v38 = vmul.f32 -1.442695, %v5124_v31  ;;  %v9376_v37 = vmul.f32 -1.442695, %v5125_v16  ;;  %v987_v21 = vadd.f32 %v17082_v22, %v12230_v47  ;;  %5471 = vmatpush.bf16.msrb.mxu0 %v9414_v40  ;;  %5485 = vmatpush.bf16.msrb.mxu1 %v9418_v44  ;;  %v10586_v40 = vld [vmem:[%s16876_s2 + $0x4] sm:$0xf]  ;;  %v9402_v44 = vor.u32 %v10590_v13, %v9399_v20 }
 0x83c   : > { %v11103_v10 = vpop.eup %11102  ;;  %v14993_v36 = vadd.f32 1.0, %v11101_v24  ;;  %11104 = vpow2.f32 %v9377_v29  ;;  %v9389_v22 = vld [vmem:[%s16876_s2 + $0x8] sm:$0xf] }
 0x83d   : > { %v15001_v18 = vadd.f32 1.0, %v11103_v10  ;;  %11106 = vpow2.f32 %v9374_v38  ;;  %v9421_v38 = vld [vmem:[%s16876_s2 + $0x48] sm:$0xf]  ;;  %v10595_v10 = vld [vmem:[%s16876_s2 + $0x4c] sm:$0xf] }
 0x83e   : > { %11108 = vrcp.f32 %v14993_v36  ;;  %v5145_v57 = vand.u32 2147483647, %v14993_v36  ;;  %v5147_v53 = vand.u32 2147483648, %v14993_v36  ;;  %vm5141_vm12 = vweird.f32 %v14993_v36 }
 0x83f   : > { %11110 = vrcp.f32 %v15001_v18  ;;  %v5117_v27 = vpop.f32.mrf.mxu3  ;;  %v5185_v26 = vand.u32 2147483648, %v15001_v18  ;;  %v5183_v46 = vand.u32 2147483647, %v15001_v18  ;;  %v5103_v51 = vpop.f32.mrf.mxu2  ;;  %vm5179_vm11 = vweird.f32 %v15001_v18  ;;  %5486 = vmatpush.bf16.msrb.mxu1 %v9402_v44  ;;  %v10648_v44 = vld [vmem:[%s16876_s2 + $0xec] sm:$0xf0] }
 0x840   : > { %11112 = vpow2.f32 %v9376_v37  ;;  %v5127_v54 = vadd.f32 %v5117_v27, %v1076_v61  ;;  %vm15067_vm9 = vcmp.eq.f32.partialorder %v5145_v57, 8.507059e+37  ;;  %v10597_v37 = vld [vmem:[%s16876_s2 + $0x54] sm:$0xf0]  ;;  %v5148_v25 = vor.u32 1.1754944e-38, %v5147_v53  ;;  %v9405_v61 = vld [vmem:[%s16876_s2 + $0x28] sm:$0xf] }
 0x841   : > { %11114 = vtanh.f32 %v5122_v4  ;;  %v5126_v12 = vadd.f32 %v5103_v51, %v987_v21  ;;  %v5186_v6 = vor.u32 1.1754944e-38, %v5185_v26  ;;  %vm15116_vm15 = vcmp.eq.f32.partialorder %v5183_v46, 8.507059e+37  ;;  %v10593_v4 = vld [vmem:[%s16876_s2 + $0x34] sm:$0xf0]  ;;  %v10587_v26 = vld [vmem:[%s16876_s2 + $0xc] sm:$0xf] }
 0x842   : > { %v11105_v15 = vpop.eup %11104  ;;  %v9378_v49 = vmul.f32 -1.442695, %v5127_v54  ;;  %v9426_v43 = vor.u32 %v10595_v10, %v9423_v17  ;;  %v10588_v54 = vld [vmem:[%s16876_s2 + $0xc] sm:$0xf0]  ;;  %v10589_v21 = vld [vmem:[%s16876_s2 + $0x14] sm:$0xf0] }
 0x843   : > { %v11107_v59 = vpop.eup %11106  ;;  %v15048_v9 = vadd.f32 1.0, %v11105_v15  ;;  %v9398_v15 = vor.u32 %v10592_v14, %v9397_v5  ;;  %v9391_v46 = vld [vmem:[%s16876_s2 + $0x18] sm:$0xf0]  ;;  %v9390_v10 = vor.u32 %v10589_v21, %v9389_v22  ;;  %v9629_v21 = vld [vmem:[%s16876_s2 + $0xf0] sm:$0xf0] }
 0x844   : > { %v15045_v60 = vpop.eup %11108  ;;  %v15050_v52 = vadd.f32 1.0, %v11107_v59  ;;  %v9381_v59 = vld [vmem:[%s16876_s2] sm:$0xf]  ;;  %5513 = vmatpush.bf16.msrb.mxu3 %v9426_v43 }
 0x845   : > { %v15052_v1 = vpop.eup %11110  ;;  %v5137_v55 = vmul.f32 %v15045_v60, %v14993_v36  ;;  %vm5142_vm8 = vweird.f32 %v15045_v60  ;;  %5472 = vmatpush.bf16.msrb.mxu0 %v9398_v15 }
 0x846   : > { %v11113_v31 = vpop.eup %11112  ;;  %v5175_v16 = vmul.f32 %v15052_v1, %v15001_v18  ;;  %11116 = vrcp.f32 %v15050_v52  ;;  %vm5180_vm10 = vweird.f32 %v15052_v1  ;;  %vm15099_vm13 = vmor %vm5141_vm12, %vm5142_vm8  ;;  %v9422_v18 = vor.u32 %v10597_v37, %v9421_v38 }
 0x847   : > { %v5138_v32 = vsub.f32 1.0, %v5137_v55  ;;  %v15064_v29 = vadd.f32 1.0, %v11113_v31  ;;  %11118 = vrcp.f32 %v15048_v9  ;;  %v11115_v63 = vpop.eup %11114  ;;  %vm15111_vm14 = vmor %vm5179_vm11, %vm5180_vm10  ;;  %v5160_v56 = vand.u32 2147483647, %v15050_v52 }
 0x848   : > { %v5176_v50 = vsub.f32 1.0, %v5175_v16  ;;  %5499 = vmatpush.bf16.msrb.mxu2 %v9422_v18  ;;  %vm5156_vm0 = vweird.f32 %v15050_v52  ;;  %v5162_v16 = vand.u32 2147483648, %v15050_v52 }
 0x849   : > { %v5139_v33 = vmul.f32 %v15045_v60, %v5138_v32  ;;  %11120 = vrcp.f32 %v15064_v29  ;;  %v5200_v39 = vand.u32 2147483648, %v15064_v29  ;;  %v5198_v14 = vand.u32 2147483647, %v15064_v29 }
 0x84a   : > { %v5177_v42 = vmul.f32 %v15052_v1, %v5176_v50  ;;  %11122 = vpow2.f32 %v9378_v49  ;;  %v9406_v49 = vor.u32 %v10593_v4, %v9405_v61  ;;  %v9382_v50 = vor.u32 %v10588_v54, %v9381_v59 }
 0x84b   : > { %v5140_v23 = vadd.f32 %v15045_v60, %v5139_v33  ;;  %11124 = vtanh.f32 %v5126_v12  ;;  %vm5194_vm3 = vweird.f32 %v15064_v29  ;;  %vm5161_vm5 = vcmp.eq.f32.partialorder %v5160_v56, 8.507059e+37 }
 0x84c   : > { %v5178_v27 = vadd.f32 %v15052_v1, %v5177_v42  ;;  %v15125_v34 = vpop.eup %11116  ;;  %5500 = vmatpush.bf16.msrb.mxu2 %v9406_v49  ;;  %v9394_v42 = vor.u32 %v10587_v26, %v9391_v46  ;;  %5473 = vmatpush.bf16.msrb.mxu0 %v9382_v50  ;;  %v5201_v13 = vor.u32 1.1754944e-38, %v5200_v39  ;;  %vm5199_vm7 = vcmp.eq.f32.partialorder %v5198_v14, 8.507059e+37  ;;  %v17092_v26 = vld [vmem:[#allocation52_spill] sm:$0xff]  ;;  %v10647_v49 = vld [vmem:[%s16876_s2 + $0xec] sm:$0xf] }
 0x84d   : > { %v5144_v58 = vsel %vm15099_vm13, %v15045_v60, %v5140_v23  ;;  %v15139_v45 = vpop.eup %11118  ;;  %v5152_v35 = vmul.f32 %v15125_v34, %v15050_v52  ;;  %vm5157_vm1 = vweird.f32 %v15125_v34  ;;  %v5225_v56 = vand.u32 2147483648, %v15048_v9  ;;  %v9619_v14 = vld [vmem:[%s16876_s2 + $0xc8] sm:$0xf] }
 0x84e   : > { %v5149_v0 = vsel %vm15067_vm9, %v5148_v25, %v5144_v58  ;;  %v5182_v19 = vsel %vm15111_vm14, %v15052_v1, %v5178_v27  ;;  %v9383_v1 = vld [vmem:[%s16876_s2 + $0x10] sm:$0xf0]  ;;  %v5215_v51 = vmul.f32 %v15139_v45, %v15048_v9  ;;  %vm5158_vm4 = vmor %vm5156_vm0, %vm5157_vm1  ;;  %vm5220_vm8 = vweird.f32 %v15139_v45 }
 0x84f   : > { %v11121_v28 = vpop.eup %11120  ;;  %v5187_v60 = vsel %vm15116_vm15, %v5186_v6, %v5182_v19  ;;  %v5248_v57 = vmul.f32 %v11115_v63, %v5149_v0  ;;  %v5153_v53 = vsub.f32 1.0, %v5152_v35  ;;  %v9386_v25 = vor.u32 %v10586_v40, %v9383_v1  ;;  %v10646_v1 = vld [vmem:[%s16876_s2 + $0xe4] sm:$0xf] }
 0x850   : > { %v5246_v55 = vmul.f32 %v5187_v60, %v14867_v48  ;;  %v5190_v31 = vmul.f32 %v11121_v28, %v15064_v29  ;;  %v11123_v32 = vpop.eup %11122  ;;  %v9410_v48 = vor.u32 %v10591_v7, %v9407_v8  ;;  %vm5195_vm2 = vweird.f32 %v11121_v28  ;;  %5501 = vmatpush.bf16.msrb.mxu2 %v9390_v10  ;;  %v9611_v10 = vld [vmem:[%s16876_s2 + $0xc0] sm:$0xf] }
 0x851   : > { %v5154_v37 = vmul.f32 %v15125_v34, %v5153_v53  ;;  %v5213_v33 = vadd.f32 1.0, %v11123_v32  ;;  %v11125_v12 = vpop.eup %11124  ;;  %v5163_v6 = vor.u32 1.1754944e-38, %v5162_v16  ;;  %5487 = vmatpush.bf16.msrb.mxu1 %v9386_v25  ;;  %v5216_v23 = vsub.f32 1.0, %v5215_v51  ;;  %vm5196_vm6 = vmor %vm5194_vm3, %vm5195_vm2  ;;  %v10649_v53 = vld [vmem:[%s16876_s2 + $0xf4] sm:$0xf0] }
 0x852   : > { %v15180_v24 = vadd.f32 %v5248_v57, %v5246_v55  ;;  %v5191_v38 = vsub.f32 1.0, %v5190_v31  ;;  %5514 = vmatpush.bf16.msrb.mxu3 %v9410_v48  ;;  %vm5219_vm9 = vweird.f32 %v15048_v9  ;;  %v5226_v19 = vor.u32 1.1754944e-38, %v5225_v56  ;;  %v9635_v55 = vld [vmem:[%s16876_s2 + $0xe8] sm:$0xf]  ;;  %v9637_v48 = vld [vmem:[%s16876_s2 + $0xf8] sm:$0xf0] }
 0x853   : > { %v5155_v5 = vadd.f32 %v15125_v34, %v5154_v37  ;;  %11126 = vrcp.f32 %v5213_v33  ;;  %v5217_v30 = vmul.f32 %v15139_v45, %v5216_v23  ;;  %v5240_v43 = vand.u32 2147483648, %v5213_v33  ;;  %vm5221_vm11 = vmor %vm5219_vm9, %vm5220_vm8  ;;  %v17091_v31 = vld [vmem:[#allocation51_spill] sm:$0xff] }
 0x854   : > { %v5192_v17 = vmul.f32 %v11121_v28, %v5191_v38  ;;  %11128 = vtanh.f32 %v15180_v24  ;;  %v5238_v4 = vand.u32 2147483647, %v5213_v33  ;;  %vm5234_vm12 = vweird.f32 %v5213_v33  ;;  %v9603_v56 = vld [vmem:[%s16876_s2 + $0xa8] sm:$0xf] }
 0x855   : > { %v5159_v36 = vsel %vm5158_vm4, %v15125_v34, %v5155_v5  ;;  %v5218_v29 = vadd.f32 %v15139_v45, %v5217_v30  ;;  %v5241_v35 = vor.u32 1.1754944e-38, %v5240_v43  ;;  %v812_v16 = vadd.f32 %v17091_v31, %v12095_v3  ;;  %v9613_v5 = vld [vmem:[%s16876_s2 + $0xd0] sm:$0xf0]  ;;  %v10640_v30 = vld [vmem:[%s16876_s2 + $0xac] sm:$0xf0] }
 0x856   : > { %v5193_v18 = vadd.f32 %v11121_v28, %v5192_v17  ;;  %v5164_v20 = vsel %vm5161_vm5, %v5163_v6, %v5159_v36  ;;  %5515 = vmatpush.bf16.msrb.mxu3 %v9394_v42  ;;  %vm5239_vm15 = vcmp.eq.f32.partialorder %v5238_v4, 8.507059e+37  ;;  %v901_v46 = vadd.f32 %v17092_v26, %v12120_v11  ;;  %v10644_v42 = vld [vmem:[%s16876_s2 + $0xcc] sm:$0xf0]  ;;  %v10645_v6 = vld [vmem:[%s16876_s2 + $0xd4] sm:$0xf0] }
 0x857   : > { %v5249_v62 = vmul.f32 %v11125_v12, %v5164_v20  ;;  %v5222_v8 = vsel %vm5221_vm11, %v15139_v45, %v5218_v29  ;;  %v9627_v45 = vld [vmem:[%s16876_s2 + $0xe0] sm:$0xf]  ;;  %v9632_v32 = vor.u32 %v10646_v1, %v9629_v21  ;;  %v9636_v51 = vor.u32 %v10649_v53, %v9635_v55  ;;  %v10642_v12 = vld [vmem:[%s16876_s2 + $0xc4] sm:$0xf]  ;;  %v10643_v20 = vld [vmem:[%s16876_s2 + $0xcc] sm:$0xf] }
 0x858   : > { %v5197_v63 = vsel %vm5196_vm6, %v11121_v28, %v5193_v18  ;;  %v9628_v22 = vor.u32 %v10648_v44, %v9627_v45  ;;  %v9640_v37 = vor.u32 %v10647_v49, %v9637_v48  ;;  %v9612_v17 = vor.u32 %v10644_v42, %v9611_v10  ;;  %v10641_v43 = vld [vmem:[%s16876_s2 + $0xb4] sm:$0xf0]  ;;  %v17095_v4 = vld [vmem:[#allocation56_spill] sm:$0xff]  ;;  %v9579_v45 = vld [vmem:[%s16876_s2 + $0x80] sm:$0xf] }
 0x859   : > { %v5202_v27 = vsel %vm5199_vm7, %v5201_v13, %v5197_v63  ;;  %v11127_v34 = vpop.eup %11126  ;;  %5882 = vmatpush.bf16.msra.mxu1 %v9632_v32  ;;  %5896 = vmatpush.bf16.msra.mxu2 %v9636_v51  ;;  %v9616_v18 = vor.u32 %v10642_v12, %v9613_v5  ;;  %v9620_v13 = vor.u32 %v10645_v6, %v9619_v14  ;;  %v9621_v63 = vld [vmem:[%s16876_s2 + $0xd8] sm:$0xf0]  ;;  %v10636_v44 = vld [vmem:[%s16876_s2 + $0x8c] sm:$0xf0]  ;;  %v10634_v1 = vld [vmem:[%s16876_s2 + $0x84] sm:$0xf] }
 0x85a   : > { %v5247_v61 = vmul.f32 %v5202_v27, %v14883_v2  ;;  %v5230_v52 = vmul.f32 %v11127_v34, %v5213_v33  ;;  %v5223_v2 = vand.u32 2147483647, %v15048_v9  ;;  %vm5235_vm10 = vweird.f32 %v11127_v34  ;;  %v11129_v0 = vpop.eup %11128  ;;  %5868 = vmatpush.bf16.msra.mxu0 %v9628_v22  ;;  %5910 = vmatpush.bf16.msra.mxu3 %v9640_v37  ;;  %v9595_v27 = vld [vmem:[%s16876_s2 + $0xa0] sm:$0xf]  ;;  %v9581_v55 = vld [vmem:[%s16876_s2 + $0x90] sm:$0xf0] }
 0x85b   : > { %vm5236_vm13 = vmor %vm5234_vm12, %vm5235_vm10  ;;  %v9596_v29 = vor.u32 %v10640_v30, %v9595_v27  ;;  %v9580_v21 = vor.u32 %v10636_v44, %v9579_v45  ;;  %v9587_v53 = vld [vmem:[%s16876_s2 + $0x88] sm:$0xf]  ;;  %v10637_v32 = vld [vmem:[%s16876_s2 + $0x94] sm:$0xf0] }
 0x85c   : > { %v15196_v58 = vadd.f32 %v5249_v62, %v5247_v61  ;;  %v5231_v39 = vsub.f32 1.0, %v5230_v52  ;;  %vm5224_vm14 = vcmp.eq.f32.partialorder %v5223_v2, 8.507059e+37  ;;  %v9624_v62 = vor.u32 %v10643_v20, %v9621_v63  ;;  %v10638_v61 = vld [vmem:[%s16876_s2 + $0xa4] sm:$0xf]  ;;  %v17094_v2 = vld [vmem:[#allocation55_spill] sm:$0xff]  ;;  %v17096_v5 = vld [vmem:[#allocation53_spill] sm:$0xff] }
 0x85d   : > { %v5227_v40 = vsel %vm5224_vm14, %v5226_v19, %v5222_v8  ;;  %5883 = vmatpush.bf16.msra.mxu1 %v9616_v18  ;;  %5897 = vmatpush.bf16.msra.mxu2 %v9620_v13  ;;  %v9604_v19 = vor.u32 %v10641_v43, %v9603_v56  ;;  %v9588_v48 = vor.u32 %v10637_v32, %v9587_v53  ;;  %v9563_v10 = vld [vmem:[%s16876_s2 + $0x60] sm:$0xf]  ;;  %v10632_v42 = vld [vmem:[%s16876_s2 + $0x6c] sm:$0xf0]  ;;  %v10630_v12 = vld [vmem:[%s16876_s2 + $0x64] sm:$0xf] }
 0x85e   : > { %11130 = vtanh.f32 %v15196_v58  ;;  %v5232_v15 = vmul.f32 %v11127_v34, %v5231_v39  ;;  %v5254_v60 = vmul.f32 %v11129_v0, %v5227_v40  ;;  %5869 = vmatpush.bf16.msra.mxu0 %v9612_v17  ;;  %v9597_v39 = vld [vmem:[%s16876_s2 + $0xb0] sm:$0xf0]  ;;  %5911 = vmatpush.bf16.msra.mxu3 %v9624_v62  ;;  %v990_v14 = vadd.f32 %v17096_v5, %v12230_v47  ;;  %v17097_v18 = vld [vmem:[#allocation58_spill] sm:$0xff]  ;;  %v10631_v63 = vld [vmem:[%s16876_s2 + $0x6c] sm:$0xf] }
 0x85f   : > { %v9600_v0 = vor.u32 %v10638_v61, %v9597_v39  ;;  %v9565_v17 = vld [vmem:[%s16876_s2 + $0x70] sm:$0xf0]  ;;  %v1081_v13 = vadd.f32 %v17097_v18, %v12159_v41  ;;  %v9564_v20 = vor.u32 %v10632_v42, %v9563_v10  ;;  %v9573_v62 = vld [vmem:[%s16876_s2 + $0x78] sm:$0xf0]  ;;  %v10628_v39 = vld [vmem:[%s16876_s2 + $0x4c] sm:$0xf0] }
 0x860   : > { %v5233_v7 = vadd.f32 %v11127_v34, %v5232_v15  ;;  %v814_v15 = vadd.f32 %v17094_v2, %v12095_v3  ;;  %v9568_v61 = vor.u32 %v10630_v12, %v9565_v17  ;;  %v10626_v56 = vld [vmem:[%s16876_s2 + $0x44] sm:$0xf]  ;;  %v9533_v17 = vld [vmem:[%s16876_s2 + $0x30] sm:$0xf0] }
 0x861   : > { %5884 = vmatpush.bf16.msra.mxu1 %v9600_v0  ;;  %5898 = vmatpush.bf16.msra.mxu2 %v9604_v19  ;;  %v10622_v12 = vld [vmem:[%s16876_s2 + $0x24] sm:$0xf] }
 0x862   : > { %v5237_v54 = vsel %vm5236_vm13, %v11127_v34, %v5233_v7  ;;  %v17093_v34 = vld [vmem:[#allocation54_spill] sm:$0xff]  ;;  %v903_v7 = vadd.f32 %v17095_v4, %v12120_v11  ;;  %5870 = vmatpush.bf16.msra.mxu0 %v9596_v29  ;;  %v9549_v4 = vld [vmem:[%s16876_s2 + $0x50] sm:$0xf0] }
 0x863   : > { %v5242_v28 = vsel %vm5239_vm15, %v5241_v35, %v5237_v54  ;;  %v1079_v52 = vadd.f32 %v17093_v34, %v12159_v41  ;;  %v10639_v35 = vld [vmem:[%s16876_s2 + $0xac] sm:$0xf]  ;;  %v9547_v29 = vld [vmem:[%s16876_s2 + $0x40] sm:$0xf] }
 0x864   : > { %v11131_v59 = vpop.eup %11130 }
 0x865   : > { %v5255_v9 = vmul.f32 %v11131_v59, %v5242_v28  ;;  %v9605_v59 = vld [vmem:[%s16876_s2 + $0xb8] sm:$0xf0]  ;;  %5899 = vmatpush.bf16.msra.mxu2 %v9588_v48 }
 0x866   : > { %5871 = vmatpush.bf16.msra.mxu0 %v9580_v21 }
 0x867   : > { %v5273_v57 = vpack.c.bf16 %v5255_v9, %v5254_v60  ;;  %v9608_v60 = vor.u32 %v10639_v35, %v9605_v59  ;;  %v9552_v35 = vor.u32 %v10626_v56, %v9549_v4 }
 0x869   : > { %5474 = vmatmul.bf16.vlgmr.msrb.gmra.mxu0 %v5273_v57  ;;  %5488 = vmatmul.bf16.vlgmr.msrb.gmra.mxu1 %v5273_v57 }
 0x86a   : > { %5502 = vmatmul.bf16.vlgmr.msrb.gmra.mxu2 %v5273_v57  ;;  %5516 = vmatmul.bf16.vlgmr.msrb.gmra.mxu3 %v5273_v57 }
 0x86b   : > { %5912 = vmatpush.bf16.msra.mxu3 %v9608_v60  ;;  %5872 = vmatpush.bf16.msra.mxu0 %v9564_v20 }
 0x8e6   : > { %v5475_v50 = vpop.f32.mrf.mxu0  ;;  %v5489_v38 = vpop.f32.mrf.mxu1 }
 0x8e7   : > { %v5522_v33 = vadd.f32 %v5475_v50, %v812_v16  ;;  %v5523_v25 = vadd.f32 %v5489_v38, %v901_v46  ;;  %v9584_v46 = vor.u32 %v10634_v1, %v9581_v55  ;;  %v10635_v50 = vld [vmem:[%s16876_s2 + $0x8c] sm:$0xf]  ;;  %v9589_v38 = vld [vmem:[%s16876_s2 + $0x98] sm:$0xf0] }
 0x8e9   : > { %v9507_v23 = vmul.f32 -1.442695, %v5522_v33  ;;  %v9509_v36 = vmul.f32 -1.442695, %v5523_v25  ;;  %5885 = vmatpush.bf16.msra.mxu1 %v9584_v46  ;;  %v9592_v25 = vor.u32 %v10635_v50, %v9589_v38  ;;  %v9557_v38 = vld [vmem:[%s16876_s2 + $0x58] sm:$0xf0] }
 0x8eb   : > { %11132 = vpow2.f32 %v9507_v23  ;;  %5913 = vmatpush.bf16.msra.mxu3 %v9592_v25  ;;  %v9571_v23 = vld [vmem:[%s16876_s2 + $0x68] sm:$0xf]  ;;  %v10624_v25 = vld [vmem:[%s16876_s2 + $0x2c] sm:$0xf0] }
 0x8ec   : > { %11134 = vpow2.f32 %v9509_v36  ;;  %v10633_v36 = vld [vmem:[%s16876_s2 + $0x74] sm:$0xf0] }
 0x8ed   : > { %v5517_v8 = vpop.f32.mrf.mxu3  ;;  %v5503_v33 = vpop.f32.mrf.mxu2  ;;  %v9572_v34 = vor.u32 %v10633_v36, %v9571_v23  ;;  %5886 = vmatpush.bf16.msra.mxu1 %v9568_v61  ;;  %v10623_v61 = vld [vmem:[%s16876_s2 + $0x2c] sm:$0xf] }
 0x8ee   : > { %v5525_v54 = vadd.f32 %v5517_v8, %v1079_v52  ;;  %v5477_v40 = vpop.f32.mrf.mxu0  ;;  %v5491_v28 = vpop.f32.mrf.mxu1  ;;  %v5524_v30 = vadd.f32 %v5503_v33, %v990_v14  ;;  %v9576_v52 = vor.u32 %v10631_v63, %v9573_v62  ;;  %v9531_v33 = vld [vmem:[%s16876_s2 + $0x20] sm:$0xf] }
 0x8ef   : > { %v5526_v9 = vadd.f32 %v5477_v40, %v814_v15  ;;  %v5527_v57 = vadd.f32 %v5491_v28, %v903_v7  ;;  %v9548_v15 = vor.u32 %v10628_v39, %v9547_v29  ;;  %5900 = vmatpush.bf16.msra.mxu2 %v9572_v34  ;;  %v9541_v34 = vld [vmem:[%s16876_s2 + $0x38] sm:$0xf0] }
 0x8f0   : > { %v9511_v22 = vmul.f32 -1.442695, %v5525_v54  ;;  %v17098_v54 = vld [vmem:[#allocation57_spill] sm:$0xff]  ;;  %5914 = vmatpush.bf16.msra.mxu3 %v9576_v52 }
 0x8f1   : > { %v11133_v31 = vpop.eup %11132  ;;  %v9508_v16 = vmul.f32 -1.442695, %v5526_v9  ;;  %v9510_v26 = vmul.f32 -1.442695, %v5527_v57  ;;  %v992_v40 = vadd.f32 %v17098_v54, %v12230_v47  ;;  %5873 = vmatpush.bf16.msra.mxu0 %v9548_v15  ;;  %5887 = vmatpush.bf16.msra.mxu1 %v9552_v35  ;;  %v10618_v15 = vld [vmem:[%s16876_s2 + $0x4] sm:$0xf]  ;;  %v9536_v35 = vor.u32 %v10622_v12, %v9533_v17 }
 0x8f2   : > { %v11135_v51 = vpop.eup %11134  ;;  %v15306_v49 = vadd.f32 1.0, %v11133_v31  ;;  %11136 = vpow2.f32 %v9511_v22  ;;  %v9523_v54 = vld [vmem:[%s16876_s2 + $0x8] sm:$0xf] }
 0x8f3   : > { %v15314_v37 = vadd.f32 1.0, %v11135_v51  ;;  %11138 = vpow2.f32 %v9508_v16  ;;  %v9555_v16 = vld [vmem:[%s16876_s2 + $0x48] sm:$0xf]  ;;  %v10627_v51 = vld [vmem:[%s16876_s2 + $0x4c] sm:$0xf] }
 0x8f4   : > { %11140 = vrcp.f32 %v15306_v49  ;;  %v5547_v8 = vand.u32 2147483647, %v15306_v49  ;;  %v5549_v60 = vand.u32 2147483648, %v15306_v49  ;;  %vm5543_vm4 = vweird.f32 %v15306_v49 }
 0x8f5   : > { %11142 = vrcp.f32 %v15314_v37  ;;  %v5519_v6 = vpop.f32.mrf.mxu3  ;;  %v5587_v45 = vand.u32 2147483648, %v15314_v37  ;;  %v5585_v44 = vand.u32 2147483647, %v15314_v37  ;;  %v5505_v21 = vpop.f32.mrf.mxu2  ;;  %vm5581_vm3 = vweird.f32 %v15314_v37  ;;  %5888 = vmatpush.bf16.msra.mxu1 %v9536_v35  ;;  %v10680_v35 = vld [vmem:[%s16876_s2 + $0xec] sm:$0xf0] }
 0x8f6   : > { %11144 = vpow2.f32 %v9510_v26  ;;  %v5529_v2 = vadd.f32 %v5519_v6, %v1081_v13  ;;  %vm15380_vm1 = vcmp.eq.f32.partialorder %v5547_v8, 8.507059e+37  ;;  %v10629_v26 = vld [vmem:[%s16876_s2 + $0x54] sm:$0xf0]  ;;  %v5550_v32 = vor.u32 1.1754944e-38, %v5549_v60  ;;  %v9539_v13 = vld [vmem:[%s16876_s2 + $0x28] sm:$0xf] }
 0x8f7   : > { %11146 = vtanh.f32 %v5524_v30  ;;  %v5528_v50 = vadd.f32 %v5505_v21, %v992_v40  ;;  %v5588_v10 = vor.u32 1.1754944e-38, %v5587_v45  ;;  %vm15429_vm7 = vcmp.eq.f32.partialorder %v5585_v44, 8.507059e+37  ;;  %v10625_v30 = vld [vmem:[%s16876_s2 + $0x34] sm:$0xf0]  ;;  %v10619_v45 = vld [vmem:[%s16876_s2 + $0xc] sm:$0xf] }
 0x8f8   : > { %v11137_v27 = vpop.eup %11136  ;;  %v9512_v55 = vmul.f32 -1.442695, %v5529_v2  ;;  %v9560_v62 = vor.u32 %v10627_v51, %v9557_v38  ;;  %v10620_v2 = vld [vmem:[%s16876_s2 + $0xc] sm:$0xf0]  ;;  %v10621_v40 = vld [vmem:[%s16876_s2 + $0x14] sm:$0xf0] }
 0x8f9   : > { %v11139_v43 = vpop.eup %11138  ;;  %v15361_v0 = vadd.f32 1.0, %v11137_v27  ;;  %v9532_v27 = vor.u32 %v10624_v25, %v9531_v33  ;;  %v9525_v44 = vld [vmem:[%s16876_s2 + $0x18] sm:$0xf0]  ;;  %v9524_v51 = vor.u32 %v10621_v40, %v9523_v54  ;;  %v9763_v40 = vld [vmem:[%s16876_s2 + $0xf0] sm:$0xf0] }
 0x8fa   : > { %v15358_v7 = vpop.eup %11140  ;;  %v15363_v19 = vadd.f32 1.0, %v11139_v43  ;;  %v9515_v43 = vld [vmem:[%s16876_s2] sm:$0xf]  ;;  %5915 = vmatpush.bf16.msra.mxu3 %v9560_v62 }
 0x8fb   : > { %v15365_v59 = vpop.eup %11142  ;;  %v5539_v28 = vmul.f32 %v15358_v7, %v15306_v49  ;;  %vm5544_vm0 = vweird.f32 %v15358_v7  ;;  %5874 = vmatpush.bf16.msra.mxu0 %v9532_v27 }
 0x8fc   : > { %v11145_v9 = vpop.eup %11144  ;;  %v5577_v57 = vmul.f32 %v15365_v59, %v15314_v37  ;;  %11148 = vrcp.f32 %v15363_v19  ;;  %vm5582_vm2 = vweird.f32 %v15365_v59  ;;  %vm15412_vm5 = vmor %vm5543_vm4, %vm5544_vm0  ;;  %v9556_v37 = vor.u32 %v10629_v26, %v9555_v16 }
 0x8fd   : > { %v5540_v1 = vsub.f32 1.0, %v5539_v28  ;;  %v15377_v22 = vadd.f32 1.0, %v11145_v9  ;;  %11150 = vrcp.f32 %v15361_v0  ;;  %v11147_v5 = vpop.eup %11146  ;;  %vm15424_vm6 = vmor %vm5581_vm3, %vm5582_vm2  ;;  %v5562_v18 = vand.u32 2147483647, %v15363_v19 }
 0x8fe   : > { %v5578_v53 = vsub.f32 1.0, %v5577_v57  ;;  %5901 = vmatpush.bf16.msra.mxu2 %v9556_v37  ;;  %vm5558_vm8 = vweird.f32 %v15363_v19  ;;  %v5564_v57 = vand.u32 2147483648, %v15363_v19 }
 0x8ff   : > { %v5541_v46 = vmul.f32 %v15358_v7, %v5540_v1  ;;  %11152 = vrcp.f32 %v15377_v22  ;;  %v5602_v36 = vand.u32 2147483648, %v15377_v22  ;;  %v5600_v25 = vand.u32 2147483647, %v15377_v22 }
 0x900   : > { %v5579_v48 = vmul.f32 %v15365_v59, %v5578_v53  ;;  %11154 = vpow2.f32 %v9512_v55  ;;  %v9540_v55 = vor.u32 %v10625_v30, %v9539_v13  ;;  %v9516_v53 = vor.u32 %v10620_v2, %v9515_v43 }
 0x901   : > { %v5542_v42 = vadd.f32 %v15358_v7, %v5541_v46  ;;  %11156 = vtanh.f32 %v5528_v50  ;;  %vm5596_vm11 = vweird.f32 %v15377_v22  ;;  %vm5563_vm13 = vcmp.eq.f32.partialorder %v5562_v18, 8.507059e+37 }
 0x902   : > { %v5580_v6 = vadd.f32 %v15365_v59, %v5579_v48  ;;  %v15438_v20 = vpop.eup %11148  ;;  %5902 = vmatpush.bf16.msra.mxu2 %v9540_v55  ;;  %v9528_v48 = vor.u32 %v10619_v45, %v9525_v44  ;;  %5875 = vmatpush.bf16.msra.mxu0 %v9516_v53  ;;  %v5603_v12 = vor.u32 1.1754944e-38, %v5602_v36  ;;  %vm5601_vm15 = vcmp.eq.f32.partialorder %v5600_v25, 8.507059e+37  ;;  %v17108_v45 = vld [vmem:[#allocation60_spill] sm:$0xff]  ;;  %v10679_v55 = vld [vmem:[%s16876_s2 + $0xec] sm:$0xf] }
 0x903   : > { %v5546_v63 = vsel %vm15412_vm5, %v15358_v7, %v5542_v42  ;;  %v15452_v52 = vpop.eup %11150  ;;  %v5554_v56 = vmul.f32 %v15438_v20, %v15363_v19  ;;  %vm5559_vm9 = vweird.f32 %v15438_v20  ;;  %v5627_v18 = vand.u32 2147483648, %v15361_v0  ;;  %v9753_v25 = vld [vmem:[%s16876_s2 + $0xc8] sm:$0xf] }
 0x904   : > { %v5551_v29 = vsel %vm15380_vm1, %v5550_v32, %v5546_v63  ;;  %v5584_v39 = vsel %vm15424_vm6, %v15365_v59, %v5580_v6  ;;  %v9517_v59 = vld [vmem:[%s16876_s2 + $0x10] sm:$0xf0]  ;;  %v5617_v21 = vmul.f32 %v15452_v52, %v15361_v0  ;;  %vm5560_vm12 = vmor %vm5558_vm8, %vm5559_vm9  ;;  %vm5622_vm0 = vweird.f32 %v15452_v52 }
 0x905   : > { %v11153_v4 = vpop.eup %11152  ;;  %v5589_v7 = vsel %vm15429_vm7, %v5588_v10, %v5584_v39  ;;  %v5650_v8 = vmul.f32 %v11147_v5, %v5551_v29  ;;  %v5555_v60 = vsub.f32 1.0, %v5554_v56  ;;  %v9520_v32 = vor.u32 %v10618_v15, %v9517_v59  ;;  %v10678_v59 = vld [vmem:[%s16876_s2 + $0xe4] sm:$0xf] }
 0x906   : > { %v5648_v28 = vmul.f32 %v5589_v7, %v15180_v24  ;;  %v5592_v9 = vmul.f32 %v11153_v4, %v15377_v22  ;;  %v11155_v1 = vpop.eup %11154  ;;  %v9544_v24 = vor.u32 %v10623_v61, %v9541_v34  ;;  %vm5597_vm10 = vweird.f32 %v11153_v4  ;;  %5903 = vmatpush.bf16.msra.mxu2 %v9524_v51  ;;  %v9745_v51 = vld [vmem:[%s16876_s2 + $0xc0] sm:$0xf] }
 0x907   : > { %v5556_v26 = vmul.f32 %v15438_v20, %v5555_v60  ;;  %v5615_v46 = vadd.f32 1.0, %v11155_v1  ;;  %v11157_v50 = vpop.eup %11156  ;;  %v5565_v10 = vor.u32 1.1754944e-38, %v5564_v57  ;;  %5889 = vmatpush.bf16.msra.mxu1 %v9520_v32  ;;  %v5618_v42 = vsub.f32 1.0, %v5617_v21  ;;  %vm5598_vm14 = vmor %vm5596_vm11, %vm5597_vm10  ;;  %v10681_v60 = vld [vmem:[%s16876_s2 + $0xf4] sm:$0xf0] }
 0x908   : > { %v15493_v31 = vadd.f32 %v5650_v8, %v5648_v28  ;;  %v5593_v16 = vsub.f32 1.0, %v5592_v9  ;;  %5916 = vmatpush.bf16.msra.mxu3 %v9544_v24  ;;  %vm5621_vm1 = vweird.f32 %v15361_v0  ;;  %v5628_v39 = vor.u32 1.1754944e-38, %v5627_v18  ;;  %v9769_v28 = vld [vmem:[%s16876_s2 + $0xe8] sm:$0xf]  ;;  %v9771_v24 = vld [vmem:[%s16876_s2 + $0xf8] sm:$0xf0] }
 0x909   : > { %v5557_v33 = vadd.f32 %v15438_v20, %v5556_v26  ;;  %11158 = vrcp.f32 %v5615_v46  ;;  %v5619_v23 = vmul.f32 %v15452_v52, %v5618_v42  ;;  %v5642_v62 = vand.u32 2147483648, %v5615_v46  ;;  %vm5623_vm3 = vmor %vm5621_vm1, %vm5622_vm0  ;;  %v17107_v9 = vld [vmem:[#allocation59_spill] sm:$0xff] }
 0x90a   : > { %v5594_v38 = vmul.f32 %v11153_v4, %v5593_v16  ;;  %11160 = vtanh.f32 %v15493_v31  ;;  %v5640_v30 = vand.u32 2147483647, %v5615_v46  ;;  %vm5636_vm4 = vweird.f32 %v5615_v46  ;;  %v9737_v18 = vld [vmem:[%s16876_s2 + $0xa8] sm:$0xf] }
 0x90b   : > { %v5561_v49 = vsel %vm5560_vm12, %v15438_v20, %v5557_v33  ;;  %v5620_v22 = vadd.f32 %v15452_v52, %v5619_v23  ;;  %v5643_v56 = vor.u32 1.1754944e-38, %v5642_v62  ;;  %v817_v57 = vadd.f32 %v17107_v9, %v12095_v3  ;;  %v9747_v33 = vld [vmem:[%s16876_s2 + $0xd0] sm:$0xf0]  ;;  %v10672_v23 = vld [vmem:[%s16876_s2 + $0xac] sm:$0xf0] }
 0x90c   : > { %v5595_v37 = vadd.f32 %v11153_v4, %v5594_v38  ;;  %v5566_v17 = vsel %vm5563_vm13, %v5565_v10, %v5561_v49  ;;  %5917 = vmatpush.bf16.msra.mxu3 %v9528_v48  ;;  %vm5641_vm7 = vcmp.eq.f32.partialorder %v5640_v30, 8.507059e+37  ;;  %v906_v44 = vadd.f32 %v17108_v45, %v12120_v11  ;;  %v10676_v48 = vld [vmem:[%s16876_s2 + $0xcc] sm:$0xf0]  ;;  %v10677_v10 = vld [vmem:[%s16876_s2 + $0xd4] sm:$0xf0] }
 0x90d   : > { %v5651_v14 = vmul.f32 %v11157_v50, %v5566_v17  ;;  %v5624_v34 = vsel %vm5623_vm3, %v15452_v52, %v5620_v22  ;;  %v9761_v52 = vld [vmem:[%s16876_s2 + $0xe0] sm:$0xf]  ;;  %v9766_v1 = vor.u32 %v10678_v59, %v9763_v40  ;;  %v9770_v21 = vor.u32 %v10681_v60, %v9769_v28  ;;  %v10674_v50 = vld [vmem:[%s16876_s2 + $0xc4] sm:$0xf]  ;;  %v10675_v17 = vld [vmem:[%s16876_s2 + $0xcc] sm:$0xf] }
 0x90e   : > { %v5599_v5 = vsel %vm5598_vm14, %v11153_v4, %v5595_v37  ;;  %v9762_v54 = vor.u32 %v10680_v35, %v9761_v52  ;;  %v9774_v26 = vor.u32 %v10679_v55, %v9771_v24  ;;  %v9746_v38 = vor.u32 %v10676_v48, %v9745_v51  ;;  %v10673_v62 = vld [vmem:[%s16876_s2 + $0xb4] sm:$0xf0]  ;;  %v17111_v30 = vld [vmem:[#allocation64_spill] sm:$0xff]  ;;  %v9713_v52 = vld [vmem:[%s16876_s2 + $0x80] sm:$0xf] }
 0x90f   : > { %v5604_v6 = vsel %vm5601_vm15, %v5603_v12, %v5599_v5  ;;  %v11159_v20 = vpop.eup %11158  ;;  %6284 = vmatpush.bf16.msrb.mxu1 %v9766_v1  ;;  %6298 = vmatpush.bf16.msrb.mxu2 %v9770_v21  ;;  %v9750_v37 = vor.u32 %v10674_v50, %v9747_v33  ;;  %v9754_v12 = vor.u32 %v10677_v10, %v9753_v25  ;;  %v9755_v5 = vld [vmem:[%s16876_s2 + $0xd8] sm:$0xf0]  ;;  %v10668_v35 = vld [vmem:[%s16876_s2 + $0x8c] sm:$0xf0]  ;;  %v10666_v59 = vld [vmem:[%s16876_s2 + $0x84] sm:$0xf] }
 0x910   : > { %v5649_v13 = vmul.f32 %v5604_v6, %v15196_v58  ;;  %v5632_v19 = vmul.f32 %v11159_v20, %v5615_v46  ;;  %v5625_v58 = vand.u32 2147483647, %v15361_v0  ;;  %vm5637_vm2 = vweird.f32 %v11159_v20  ;;  %v11161_v29 = vpop.eup %11160  ;;  %6270 = vmatpush.bf16.msrb.mxu0 %v9762_v54  ;;  %6312 = vmatpush.bf16.msrb.mxu3 %v9774_v26  ;;  %v9729_v6 = vld [vmem:[%s16876_s2 + $0xa0] sm:$0xf]  ;;  %v9715_v28 = vld [vmem:[%s16876_s2 + $0x90] sm:$0xf0] }
 0x911   : > { %vm5638_vm5 = vmor %vm5636_vm4, %vm5637_vm2  ;;  %v9730_v22 = vor.u32 %v10672_v23, %v9729_v6  ;;  %v9714_v40 = vor.u32 %v10668_v35, %v9713_v52  ;;  %v9721_v60 = vld [vmem:[%s16876_s2 + $0x88] sm:$0xf]  ;;  %v10669_v1 = vld [vmem:[%s16876_s2 + $0x94] sm:$0xf0] }
 0x912   : > { %v15509_v63 = vadd.f32 %v5651_v14, %v5649_v13  ;;  %v5633_v36 = vsub.f32 1.0, %v5632_v19  ;;  %vm5626_vm6 = vcmp.eq.f32.partialorder %v5625_v58, 8.507059e+37  ;;  %v9758_v14 = vor.u32 %v10675_v17, %v9755_v5  ;;  %v10670_v13 = vld [vmem:[%s16876_s2 + $0xa4] sm:$0xf]  ;;  %v17110_v58 = vld [vmem:[#allocation63_spill] sm:$0xff]  ;;  %v17112_v33 = vld [vmem:[#allocation61_spill] sm:$0xff] }
 0x913   : > { %v5629_v15 = vsel %vm5626_vm6, %v5628_v39, %v5624_v34  ;;  %6285 = vmatpush.bf16.msrb.mxu1 %v9750_v37  ;;  %6299 = vmatpush.bf16.msrb.mxu2 %v9754_v12  ;;  %v9738_v39 = vor.u32 %v10673_v62, %v9737_v18  ;;  %v9722_v24 = vor.u32 %v10669_v1, %v9721_v60  ;;  %v9697_v51 = vld [vmem:[%s16876_s2 + $0x60] sm:$0xf]  ;;  %v10664_v48 = vld [vmem:[%s16876_s2 + $0x6c] sm:$0xf0]  ;;  %v10662_v50 = vld [vmem:[%s16876_s2 + $0x64] sm:$0xf] }
 0x914   : > { %11162 = vtanh.f32 %v15509_v63  ;;  %v5634_v27 = vmul.f32 %v11159_v20, %v5633_v36  ;;  %v5656_v7 = vmul.f32 %v11161_v29, %v5629_v15  ;;  %6271 = vmatpush.bf16.msrb.mxu0 %v9746_v38  ;;  %v9731_v36 = vld [vmem:[%s16876_s2 + $0xb0] sm:$0xf0]  ;;  %6313 = vmatpush.bf16.msrb.mxu3 %v9758_v14  ;;  %v995_v25 = vadd.f32 %v17112_v33, %v12230_v47  ;;  %v17113_v37 = vld [vmem:[#allocation66_spill] sm:$0xff]  ;;  %v10663_v5 = vld [vmem:[%s16876_s2 + $0x6c] sm:$0xf] }
 0x915   : > { %v9734_v29 = vor.u32 %v10670_v13, %v9731_v36  ;;  %v9699_v38 = vld [vmem:[%s16876_s2 + $0x70] sm:$0xf0]  ;;  %v1086_v12 = vadd.f32 %v17113_v37, %v12159_v41  ;;  %v9698_v17 = vor.u32 %v10664_v48, %v9697_v51  ;;  %v9707_v14 = vld [vmem:[%s16876_s2 + $0x78] sm:$0xf0]  ;;  %v10660_v36 = vld [vmem:[%s16876_s2 + $0x4c] sm:$0xf0] }
 0x916   : > { %v5635_v61 = vadd.f32 %v11159_v20, %v5634_v27  ;;  %v819_v27 = vadd.f32 %v17110_v58, %v12095_v3  ;;  %v9702_v13 = vor.u32 %v10662_v50, %v9699_v38  ;;  %v10658_v18 = vld [vmem:[%s16876_s2 + $0x44] sm:$0xf]  ;;  %v9667_v38 = vld [vmem:[%s16876_s2 + $0x30] sm:$0xf0] }
 0x917   : > { %6286 = vmatpush.bf16.msrb.mxu1 %v9734_v29  ;;  %6300 = vmatpush.bf16.msrb.mxu2 %v9738_v39  ;;  %v10654_v50 = vld [vmem:[%s16876_s2 + $0x24] sm:$0xf] }
 0x918   : > { %v5639_v2 = vsel %vm5638_vm5, %v11159_v20, %v5635_v61  ;;  %v17109_v20 = vld [vmem:[#allocation62_spill] sm:$0xff]  ;;  %v908_v61 = vadd.f32 %v17111_v30, %v12120_v11  ;;  %6272 = vmatpush.bf16.msrb.mxu0 %v9730_v22  ;;  %v9683_v30 = vld [vmem:[%s16876_s2 + $0x50] sm:$0xf0] }
 0x919   : > { %v5644_v4 = vsel %vm5641_vm7, %v5643_v56, %v5639_v2  ;;  %v1084_v19 = vadd.f32 %v17109_v20, %v12159_v41  ;;  %v10671_v56 = vld [vmem:[%s16876_s2 + $0xac] sm:$0xf]  ;;  %v9681_v22 = vld [vmem:[%s16876_s2 + $0x40] sm:$0xf] }
 0x91a   : > { %v11163_v43 = vpop.eup %11162 }
 0x91b   : > { %v5657_v0 = vmul.f32 %v11163_v43, %v5644_v4  ;;  %v9739_v43 = vld [vmem:[%s16876_s2 + $0xb8] sm:$0xf0]  ;;  %6301 = vmatpush.bf16.msrb.mxu2 %v9722_v24 }
 0x91c   : > { %6273 = vmatpush.bf16.msrb.mxu0 %v9714_v40 }
 0x91d   : > { %v5675_v8 = vpack.c.bf16 %v5657_v0, %v5656_v7  ;;  %v9742_v7 = vor.u32 %v10671_v56, %v9739_v43  ;;  %v9686_v56 = vor.u32 %v10658_v18, %v9683_v30 }
 0x91f   : > { %5876 = vmatmul.bf16.vlgmr.msra.gmra.mxu0 %v5675_v8  ;;  %5890 = vmatmul.bf16.vlgmr.msra.gmra.mxu1 %v5675_v8 }
 0x920   : > { %5904 = vmatmul.bf16.vlgmr.msra.gmra.mxu2 %v5675_v8  ;;  %5918 = vmatmul.bf16.vlgmr.msra.gmra.mxu3 %v5675_v8 }
 0x921   : > { %6314 = vmatpush.bf16.msrb.mxu3 %v9742_v7  ;;  %6274 = vmatpush.bf16.msrb.mxu0 %v9698_v17 }
 0x99c   : > { %v5877_v53 = vpop.f32.mrf.mxu0  ;;  %v5891_v16 = vpop.f32.mrf.mxu1 }
 0x99d   : > { %v5924_v46 = vadd.f32 %v5877_v53, %v817_v57  ;;  %v5925_v32 = vadd.f32 %v5891_v16, %v906_v44  ;;  %v9718_v44 = vor.u32 %v10666_v59, %v9715_v28  ;;  %v10667_v53 = vld [vmem:[%s16876_s2 + $0x8c] sm:$0xf]  ;;  %v9723_v16 = vld [vmem:[%s16876_s2 + $0x98] sm:$0xf0] }
 0x99f   : > { %v9641_v42 = vmul.f32 -1.442695, %v5924_v46  ;;  %v9643_v49 = vmul.f32 -1.442695, %v5925_v32  ;;  %6287 = vmatpush.bf16.msrb.mxu1 %v9718_v44  ;;  %v9726_v32 = vor.u32 %v10667_v53, %v9723_v16  ;;  %v9691_v16 = vld [vmem:[%s16876_s2 + $0x58] sm:$0xf0] }
 0x9a1   : > { %11164 = vpow2.f32 %v9641_v42  ;;  %6315 = vmatpush.bf16.msrb.mxu3 %v9726_v32  ;;  %v9705_v42 = vld [vmem:[%s16876_s2 + $0x68] sm:$0xf]  ;;  %v10656_v32 = vld [vmem:[%s16876_s2 + $0x2c] sm:$0xf0] }
 0x9a2   : > { %11166 = vpow2.f32 %v9643_v49  ;;  %v10665_v49 = vld [vmem:[%s16876_s2 + $0x74] sm:$0xf0] }
 0x9a3   : > { %v5919_v34 = vpop.f32.mrf.mxu3  ;;  %v5905_v46 = vpop.f32.mrf.mxu2  ;;  %v9706_v20 = vor.u32 %v10665_v49, %v9705_v42  ;;  %6288 = vmatpush.bf16.msrb.mxu1 %v9702_v13  ;;  %v10655_v13 = vld [vmem:[%s16876_s2 + $0x2c] sm:$0xf] }
 0x9a4   : > { %v5927_v2 = vadd.f32 %v5919_v34, %v1084_v19  ;;  %v5879_v15 = vpop.f32.mrf.mxu0  ;;  %v5893_v4 = vpop.f32.mrf.mxu1  ;;  %v5926_v23 = vadd.f32 %v5905_v46, %v995_v25  ;;  %v9710_v19 = vor.u32 %v10663_v5, %v9707_v14  ;;  %v9665_v46 = vld [vmem:[%s16876_s2 + $0x20] sm:$0xf] }
 0x9a5   : > { %v5928_v0 = vadd.f32 %v5879_v15, %v819_v27  ;;  %v5929_v8 = vadd.f32 %v5893_v4, %v908_v61  ;;  %v9682_v27 = vor.u32 %v10660_v36, %v9681_v22  ;;  %6302 = vmatpush.bf16.msrb.mxu2 %v9706_v20  ;;  %v9675_v20 = vld [vmem:[%s16876_s2 + $0x38] sm:$0xf0] }
 0x9a6   : > { %v9645_v54 = vmul.f32 -1.442695, %v5927_v2  ;;  %v17114_v2 = vld [vmem:[#allocation65_spill] sm:$0xff]  ;;  %6316 = vmatpush.bf16.msrb.mxu3 %v9710_v19 }
 0x9a7   : > { %v11165_v9 = vpop.eup %11164  ;;  %v9642_v57 = vmul.f32 -1.442695, %v5928_v0  ;;  %v9644_v45 = vmul.f32 -1.442695, %v5929_v8  ;;  %v997_v15 = vadd.f32 %v17114_v2, %v12230_v47  ;;  %6275 = vmatpush.bf16.msrb.mxu0 %v9682_v27  ;;  %6289 = vmatpush.bf16.msrb.mxu1 %v9686_v56  ;;  %v10650_v27 = vld [vmem:[%s16876_s2 + $0x4] sm:$0xf]  ;;  %v9670_v56 = vor.u32 %v10654_v50, %v9667_v38 }
 0x9a8   : > { %v11167_v21 = vpop.eup %11166  ;;  %v15619_v55 = vadd.f32 1.0, %v11165_v9  ;;  %11168 = vpow2.f32 %v9645_v54  ;;  %v9657_v2 = vld [vmem:[%s16876_s2 + $0x8] sm:$0xf] }
 0x9a9   : > { %v15627_v26 = vadd.f32 1.0, %v11167_v21  ;;  %11170 = vpow2.f32 %v9642_v57  ;;  %v9689_v57 = vld [vmem:[%s16876_s2 + $0x48] sm:$0xf]  ;;  %v10659_v21 = vld [vmem:[%s16876_s2 + $0x4c] sm:$0xf] }
 0x9aa   : > { %11172 = vrcp.f32 %v15619_v55  ;;  %v5949_v34 = vand.u32 2147483647, %v15619_v55  ;;  %v5951_v7 = vand.u32 2147483648, %v15619_v55  ;;  %vm5945_vm12 = vweird.f32 %v15619_v55 }
 0x9ab   : > { %11174 = vrcp.f32 %v15627_v26  ;;  %v5921_v10 = vpop.f32.mrf.mxu3  ;;  %v5989_v52 = vand.u32 2147483648, %v15627_v26  ;;  %v5987_v35 = vand.u32 2147483647, %v15627_v26  ;;  %v5907_v40 = vpop.f32.mrf.mxu2  ;;  %vm5983_vm11 = vweird.f32 %v15627_v26  ;;  %6290 = vmatpush.bf16.msrb.mxu1 %v9670_v56  ;;  %v10712_v56 = vld [vmem:[%s16876_s2 + $0xec] sm:$0xf0] }
 0x9ac   : > { %11176 = vpow2.f32 %v9644_v45  ;;  %v5931_v58 = vadd.f32 %v5921_v10, %v1086_v12  ;;  %vm15693_vm9 = vcmp.eq.f32.partialorder %v5949_v34, 8.507059e+37  ;;  %v10661_v45 = vld [vmem:[%s16876_s2 + $0x54] sm:$0xf0]  ;;  %v5952_v1 = vor.u32 1.1754944e-38, %v5951_v7  ;;  %v9673_v12 = vld [vmem:[%s16876_s2 + $0x28] sm:$0xf] }
 0x9ad   : > { %11178 = vtanh.f32 %v5926_v23  ;;  %v5930_v53 = vadd.f32 %v5907_v40, %v997_v15  ;;  %v5990_v51 = vor.u32 1.1754944e-38, %v5989_v52  ;;  %vm15742_vm15 = vcmp.eq.f32.partialorder %v5987_v35, 8.507059e+37  ;;  %v10657_v23 = vld [vmem:[%s16876_s2 + $0x34] sm:$0xf0]  ;;  %v10651_v52 = vld [vmem:[%s16876_s2 + $0xc] sm:$0xf] }
 0x9ae   : > { %v11169_v6 = vpop.eup %11168  ;;  %v9646_v28 = vmul.f32 -1.442695, %v5931_v58  ;;  %v9694_v14 = vor.u32 %v10659_v21, %v9691_v16  ;;  %v10652_v58 = vld [vmem:[%s16876_s2 + $0xc] sm:$0xf0]  ;;  %v10653_v15 = vld [vmem:[%s16876_s2 + $0x14] sm:$0xf0] }
 0x9af   : > { %v11171_v62 = vpop.eup %11170  ;;  %v15674_v29 = vadd.f32 1.0, %v11169_v6  ;;  %v9666_v6 = vor.u32 %v10656_v32, %v9665_v46  ;;  %v9659_v35 = vld [vmem:[%s16876_s2 + $0x18] sm:$0xf0]  ;;  %v9658_v21 = vor.u32 %v10653_v15, %v9657_v2  ;;  %v9897_v15 = vld [vmem:[%s16876_s2 + $0xf0] sm:$0xf0] }
 0x9b0   : > { %v15671_v61 = vpop.eup %11172  ;;  %v15676_v39 = vadd.f32 1.0, %v11171_v62  ;;  %v9649_v62 = vld [vmem:[%s16876_s2] sm:$0xf]  ;;  %6317 = vmatpush.bf16.msrb.mxu3 %v9694_v14 }
 0x9b1   : > { %v15678_v43 = vpop.eup %11174  ;;  %v5941_v4 = vmul.f32 %v15671_v61, %v15619_v55  ;;  %vm5946_vm8 = vweird.f32 %v15671_v61  ;;  %6276 = vmatpush.bf16.msrb.mxu0 %v9666_v6 }
 0x9b2   : > { %v11177_v0 = vpop.eup %11176  ;;  %v5979_v8 = vmul.f32 %v15678_v43, %v15627_v26  ;;  %11180 = vrcp.f32 %v15676_v39  ;;  %vm5984_vm10 = vweird.f32 %v15678_v43  ;;  %vm15725_vm13 = vmor %vm5945_vm12, %vm5946_vm8  ;;  %v9690_v26 = vor.u32 %v10661_v45, %v9689_v57 }
 0x9b3   : > { %v5942_v59 = vsub.f32 1.0, %v5941_v4  ;;  %v15690_v54 = vadd.f32 1.0, %v11177_v0  ;;  %11182 = vrcp.f32 %v15674_v29  ;;  %v11179_v33 = vpop.eup %11178  ;;  %vm15737_vm14 = vmor %vm5983_vm11, %vm5984_vm10  ;;  %v5964_v37 = vand.u32 2147483647, %v15676_v39 }
 0x9b4   : > { %v5980_v60 = vsub.f32 1.0, %v5979_v8  ;;  %6303 = vmatpush.bf16.msrb.mxu2 %v9690_v26  ;;  %vm5960_vm0 = vweird.f32 %v15676_v39  ;;  %v5966_v8 = vand.u32 2147483648, %v15676_v39 }
 0x9b5   : > { %v5943_v44 = vmul.f32 %v15671_v61, %v5942_v59  ;;  %11184 = vrcp.f32 %v15690_v54  ;;  %v6004_v49 = vand.u32 2147483648, %v15690_v54  ;;  %v6002_v32 = vand.u32 2147483647, %v15690_v54 }
 0x9b6   : > { %v5981_v24 = vmul.f32 %v15678_v43, %v5980_v60  ;;  %11186 = vpow2.f32 %v9646_v28  ;;  %v9674_v28 = vor.u32 %v10657_v23, %v9673_v12  ;;  %v9650_v60 = vor.u32 %v10652_v58, %v9649_v62 }
 0x9b7   : > { %v5944_v48 = vadd.f32 %v15671_v61, %v5943_v44  ;;  %11188 = vtanh.f32 %v5930_v53  ;;  %vm5998_vm3 = vweird.f32 %v15690_v54  ;;  %vm5965_vm5 = vcmp.eq.f32.partialorder %v5964_v37, 8.507059e+37 }
 0x9b8   : > { %v5982_v10 = vadd.f32 %v15678_v43, %v5981_v24  ;;  %v15751_v17 = vpop.eup %11180  ;;  %6304 = vmatpush.bf16.msrb.mxu2 %v9674_v28  ;;  %v9662_v24 = vor.u32 %v10651_v52, %v9659_v35  ;;  %6277 = vmatpush.bf16.msrb.mxu0 %v9650_v60  ;;  %v6005_v50 = vor.u32 1.1754944e-38, %v6004_v49  ;;  %vm6003_vm7 = vcmp.eq.f32.partialorder %v6002_v32, 8.507059e+37  ;;  %v17124_v52 = vld [vmem:[#allocation68_spill] sm:$0xff]  ;;  %v10711_v28 = vld [vmem:[%s16876_s2 + $0xec] sm:$0xf] }
 0x9b9   : > { %v5948_v5 = vsel %vm15725_vm13, %v15671_v61, %v5944_v48  ;;  %v15765_v19 = vpop.eup %11182  ;;  %v5956_v18 = vmul.f32 %v15751_v17, %v15676_v39  ;;  %vm5961_vm1 = vweird.f32 %v15751_v17  ;;  %v6029_v37 = vand.u32 2147483648, %v15674_v29  ;;  %v9887_v32 = vld [vmem:[%s16876_s2 + $0xc8] sm:$0xf] }
 0x9ba   : > { %v5953_v22 = vsel %vm15693_vm9, %v5952_v1, %v5948_v5  ;;  %v5986_v36 = vsel %vm15737_vm14, %v15678_v43, %v5982_v10  ;;  %v9651_v43 = vld [vmem:[%s16876_s2 + $0x10] sm:$0xf0]  ;;  %v6019_v40 = vmul.f32 %v15765_v19, %v15674_v29  ;;  %vm5962_vm4 = vmor %vm5960_vm0, %vm5961_vm1  ;;  %vm6024_vm8 = vweird.f32 %v15765_v19 }
 0x9bb   : > { %v11185_v30 = vpop.eup %11184  ;;  %v5991_v61 = vsel %vm15742_vm15, %v5990_v51, %v5986_v36  ;;  %v6052_v34 = vmul.f32 %v11179_v33, %v5953_v22  ;;  %v5957_v7 = vsub.f32 1.0, %v5956_v18  ;;  %v9654_v1 = vor.u32 %v10650_v27, %v9651_v43  ;;  %v10710_v43 = vld [vmem:[%s16876_s2 + $0xe4] sm:$0xf] }
 0x9bc   : > { %v6050_v4 = vmul.f32 %v5991_v61, %v15493_v31  ;;  %v5994_v0 = vmul.f32 %v11185_v30, %v15690_v54  ;;  %v11187_v59 = vpop.eup %11186  ;;  %v9678_v31 = vor.u32 %v10655_v13, %v9675_v20  ;;  %vm5999_vm2 = vweird.f32 %v11185_v30  ;;  %6305 = vmatpush.bf16.msrb.mxu2 %v9658_v21  ;;  %v9879_v21 = vld [vmem:[%s16876_s2 + $0xc0] sm:$0xf] }
 0x9bd   : > { %v5958_v45 = vmul.f32 %v15751_v17, %v5957_v7  ;;  %v6017_v44 = vadd.f32 1.0, %v11187_v59  ;;  %v11189_v53 = vpop.eup %11188  ;;  %v5967_v51 = vor.u32 1.1754944e-38, %v5966_v8  ;;  %6291 = vmatpush.bf16.msrb.mxu1 %v9654_v1  ;;  %v6020_v48 = vsub.f32 1.0, %v6019_v40  ;;  %vm6000_vm6 = vmor %vm5998_vm3, %vm5999_vm2  ;;  %v10713_v7 = vld [vmem:[%s16876_s2 + $0xf4] sm:$0xf0] }
 0x9be   : > { %v15806_v9 = vadd.f32 %v6052_v34, %v6050_v4  ;;  %v5995_v57 = vsub.f32 1.0, %v5994_v0  ;;  %6318 = vmatpush.bf16.msrb.mxu3 %v9678_v31  ;;  %vm6023_vm9 = vweird.f32 %v15674_v29  ;;  %v6030_v36 = vor.u32 1.1754944e-38, %v6029_v37  ;;  %v9903_v4 = vld [vmem:[%s16876_s2 + $0xe8] sm:$0xf]  ;;  %v9905_v31 = vld [vmem:[%s16876_s2 + $0xf8] sm:$0xf0] }
 0x9bf   : > { %v5959_v46 = vadd.f32 %v15751_v17, %v5958_v45  ;;  %11190 = vrcp.f32 %v6017_v44  ;;  %v6021_v42 = vmul.f32 %v15765_v19, %v6020_v48  ;;  %v6044_v14 = vand.u32 2147483648, %v6017_v44  ;;  %vm6025_vm11 = vmor %vm6023_vm9, %vm6024_vm8  ;;  %v17123_v0 = vld [vmem:[#allocation67_spill] sm:$0xff] }
 0x9c0   : > { %v5996_v16 = vmul.f32 %v11185_v30, %v5995_v57  ;;  %11192 = vtanh.f32 %v15806_v9  ;;  %v6042_v23 = vand.u32 2147483647, %v6017_v44  ;;  %vm6038_vm12 = vweird.f32 %v6017_v44  ;;  %v9871_v37 = vld [vmem:[%s16876_s2 + $0xa8] sm:$0xf] }
 0x9c1   : > { %v5963_v55 = vsel %vm5962_vm4, %v15751_v17, %v5959_v46  ;;  %v6022_v54 = vadd.f32 %v15765_v19, %v6021_v42  ;;  %v6045_v18 = vor.u32 1.1754944e-38, %v6044_v14  ;;  %v822_v8 = vadd.f32 %v17123_v0, %v12095_v3  ;;  %v9881_v46 = vld [vmem:[%s16876_s2 + $0xd0] sm:$0xf0]  ;;  %v10704_v42 = vld [vmem:[%s16876_s2 + $0xac] sm:$0xf0] }
 0x9c2   : > { %v5997_v26 = vadd.f32 %v11185_v30, %v5996_v16  ;;  %v5968_v38 = vsel %vm5965_vm5, %v5967_v51, %v5963_v55  ;;  %6319 = vmatpush.bf16.msrb.mxu3 %v9662_v24  ;;  %vm6043_vm15 = vcmp.eq.f32.partialorder %v6042_v23, 8.507059e+37  ;;  %v911_v35 = vadd.f32 %v17124_v52, %v12120_v11  ;;  %v10708_v24 = vld [vmem:[%s16876_s2 + $0xcc] sm:$0xf0]  ;;  %v10709_v51 = vld [vmem:[%s16876_s2 + $0xd4] sm:$0xf0] }
 0x9c3   : > { %v6053_v25 = vmul.f32 %v11189_v53, %v5968_v38  ;;  %v6026_v20 = vsel %vm6025_vm11, %v15765_v19, %v6022_v54  ;;  %v9895_v19 = vld [vmem:[%s16876_s2 + $0xe0] sm:$0xf]  ;;  %v9900_v59 = vor.u32 %v10710_v43, %v9897_v15  ;;  %v9904_v40 = vor.u32 %v10713_v7, %v9903_v4  ;;  %v10706_v53 = vld [vmem:[%s16876_s2 + $0xc4] sm:$0xf]  ;;  %v10707_v38 = vld [vmem:[%s16876_s2 + $0xcc] sm:$0xf] }
 0x9c4   : > { %v6001_v33 = vsel %vm6000_vm6, %v11185_v30, %v5997_v26  ;;  %v9896_v2 = vor.u32 %v10712_v56, %v9895_v19  ;;  %v9908_v45 = vor.u32 %v10711_v28, %v9905_v31  ;;  %v9880_v16 = vor.u32 %v10708_v24, %v9879_v21  ;;  %v10705_v14 = vld [vmem:[%s16876_s2 + $0xb4] sm:$0xf0]  ;;  %v17127_v23 = vld [vmem:[#allocation72_spill] sm:$0xff]  ;;  %v9847_v19 = vld [vmem:[%s16876_s2 + $0x80] sm:$0xf] }
 0x9c5   : > { %v6006_v10 = vsel %vm6003_vm7, %v6005_v50, %v6001_v33  ;;  %v11191_v17 = vpop.eup %11190  ;;  %6686 = vmatpush.bf16.msra.mxu1 %v9900_v59  ;;  %6700 = vmatpush.bf16.msra.mxu2 %v9904_v40  ;;  %v9884_v26 = vor.u32 %v10706_v53, %v9881_v46  ;;  %v9888_v50 = vor.u32 %v10709_v51, %v9887_v32  ;;  %v9889_v33 = vld [vmem:[%s16876_s2 + $0xd8] sm:$0xf0]  ;;  %v10700_v56 = vld [vmem:[%s16876_s2 + $0x8c] sm:$0xf0]  ;;  %v10698_v43 = vld [vmem:[%s16876_s2 + $0x84] sm:$0xf] }
 0x9c6   : > { %v6051_v12 = vmul.f32 %v6006_v10, %v15509_v63  ;;  %v6034_v39 = vmul.f32 %v11191_v17, %v6017_v44  ;;  %v6027_v63 = vand.u32 2147483647, %v15674_v29  ;;  %vm6039_vm10 = vweird.f32 %v11191_v17  ;;  %v11193_v22 = vpop.eup %11192  ;;  %6672 = vmatpush.bf16.msra.mxu0 %v9896_v2  ;;  %6714 = vmatpush.bf16.msra.mxu3 %v9908_v45  ;;  %v9863_v10 = vld [vmem:[%s16876_s2 + $0xa0] sm:$0xf]  ;;  %v9849_v4 = vld [vmem:[%s16876_s2 + $0x90] sm:$0xf0] }
 0x9c7   : > { %vm6040_vm13 = vmor %vm6038_vm12, %vm6039_vm10  ;;  %v9864_v54 = vor.u32 %v10704_v42, %v9863_v10  ;;  %v9848_v15 = vor.u32 %v10700_v56, %v9847_v19  ;;  %v9855_v7 = vld [vmem:[%s16876_s2 + $0x88] sm:$0xf]  ;;  %v10701_v59 = vld [vmem:[%s16876_s2 + $0x94] sm:$0xf0] }
 0x9c8   : > { %v15822_v5 = vadd.f32 %v6053_v25, %v6051_v12  ;;  %v6035_v49 = vsub.f32 1.0, %v6034_v39  ;;  %vm6028_vm14 = vcmp.eq.f32.partialorder %v6027_v63, 8.507059e+37  ;;  %v9892_v25 = vor.u32 %v10707_v38, %v9889_v33  ;;  %v10702_v12 = vld [vmem:[%s16876_s2 + $0xa4] sm:$0xf]  ;;  %v17126_v63 = vld [vmem:[#allocation71_spill] sm:$0xff]  ;;  %v17128_v46 = vld [vmem:[#allocation69_spill] sm:$0xff] }
 0x9c9   : > { %v6031_v27 = vsel %vm6028_vm14, %v6030_v36, %v6026_v20  ;;  %6687 = vmatpush.bf16.msra.mxu1 %v9884_v26  ;;  %6701 = vmatpush.bf16.msra.mxu2 %v9888_v50  ;;  %v9872_v36 = vor.u32 %v10705_v14, %v9871_v37  ;;  %v9856_v31 = vor.u32 %v10701_v59, %v9855_v7  ;;  %v9831_v21 = vld [vmem:[%s16876_s2 + $0x60] sm:$0xf]  ;;  %v10696_v24 = vld [vmem:[%s16876_s2 + $0x6c] sm:$0xf0]  ;;  %v10694_v53 = vld [vmem:[%s16876_s2 + $0x64] sm:$0xf] }
 0x9ca   : > { %11194 = vtanh.f32 %v15822_v5  ;;  %v6036_v6 = vmul.f32 %v11191_v17, %v6035_v49  ;;  %v6058_v61 = vmul.f32 %v11193_v22, %v6031_v27  ;;  %6673 = vmatpush.bf16.msra.mxu0 %v9880_v16  ;;  %v9865_v49 = vld [vmem:[%s16876_s2 + $0xb0] sm:$0xf0]  ;;  %6715 = vmatpush.bf16.msra.mxu3 %v9892_v25  ;;  %v1000_v32 = vadd.f32 %v17128_v46, %v12230_v47  ;;  %v17129_v26 = vld [vmem:[#allocation74_spill] sm:$0xff]  ;;  %v10695_v33 = vld [vmem:[%s16876_s2 + $0x6c] sm:$0xf] }
 0x9cb   : > { %v9868_v22 = vor.u32 %v10702_v12, %v9865_v49  ;;  %v9833_v16 = vld [vmem:[%s16876_s2 + $0x70] sm:$0xf0]  ;;  %v1091_v50 = vadd.f32 %v17129_v26, %v12159_v41  ;;  %v9832_v38 = vor.u32 %v10696_v24, %v9831_v21  ;;  %v9841_v25 = vld [vmem:[%s16876_s2 + $0x78] sm:$0xf0]  ;;  %v10692_v49 = vld [vmem:[%s16876_s2 + $0x4c] sm:$0xf0] }
 0x9cc   : > { %v6037_v13 = vadd.f32 %v11191_v17, %v6036_v6  ;;  %v824_v6 = vadd.f32 %v17126_v63, %v12095_v3  ;;  %v9836_v12 = vor.u32 %v10694_v53, %v9833_v16  ;;  %v10690_v37 = vld [vmem:[%s16876_s2 + $0x44] sm:$0xf]  ;;  %v9801_v16 = vld [vmem:[%s16876_s2 + $0x30] sm:$0xf0] }
 0x9cd   : > { %6688 = vmatpush.bf16.msra.mxu1 %v9868_v22  ;;  %6702 = vmatpush.bf16.msra.mxu2 %v9872_v36  ;;  %v10686_v53 = vld [vmem:[%s16876_s2 + $0x24] sm:$0xf] }
 0x9ce   : > { %v6041_v58 = vsel %vm6040_vm13, %v11191_v17, %v6037_v13  ;;  %v17125_v17 = vld [vmem:[#allocation70_spill] sm:$0xff]  ;;  %v913_v13 = vadd.f32 %v17127_v23, %v12120_v11  ;;  %6674 = vmatpush.bf16.msra.mxu0 %v9864_v54  ;;  %v9817_v23 = vld [vmem:[%s16876_s2 + $0x50] sm:$0xf0] }
 0x9cf   : > { %v6046_v30 = vsel %vm6043_vm15, %v6045_v18, %v6041_v58  ;;  %v1089_v39 = vadd.f32 %v17125_v17, %v12159_v41  ;;  %v10703_v18 = vld [vmem:[%s16876_s2 + $0xac] sm:$0xf]  ;;  %v9815_v54 = vld [vmem:[%s16876_s2 + $0x40] sm:$0xf] }
 0x9d0   : > { %v11195_v62 = vpop.eup %11194 }
 0x9d1   : > { %v6059_v29 = vmul.f32 %v11195_v62, %v6046_v30  ;;  %v9873_v62 = vld [vmem:[%s16876_s2 + $0xb8] sm:$0xf0]  ;;  %6703 = vmatpush.bf16.msra.mxu2 %v9856_v31 }
 0x9d2   : > { %6675 = vmatpush.bf16.msra.mxu0 %v9848_v15 }
 0x9d3   : > { %v6077_v34 = vpack.c.bf16 %v6059_v29, %v6058_v61  ;;  %v9876_v61 = vor.u32 %v10703_v18, %v9873_v62  ;;  %v9820_v18 = vor.u32 %v10690_v37, %v9817_v23 }
 0x9d5   : > { %6278 = vmatmul.bf16.vlgmr.msrb.gmra.mxu0 %v6077_v34  ;;  %6292 = vmatmul.bf16.vlgmr.msrb.gmra.mxu1 %v6077_v34 }
 0x9d6   : > { %6306 = vmatmul.bf16.vlgmr.msrb.gmra.mxu2 %v6077_v34  ;;  %6320 = vmatmul.bf16.vlgmr.msrb.gmra.mxu3 %v6077_v34 }
 0x9d7   : > { %6716 = vmatpush.bf16.msra.mxu3 %v9876_v61  ;;  %6676 = vmatpush.bf16.msra.mxu0 %v9832_v38 }
 0xa52   : > { %v6279_v60 = vpop.f32.mrf.mxu0  ;;  %v6293_v57 = vpop.f32.mrf.mxu1 }
 0xa53   : > { %v6326_v44 = vadd.f32 %v6279_v60, %v822_v8  ;;  %v6327_v1 = vadd.f32 %v6293_v57, %v911_v35  ;;  %v9852_v35 = vor.u32 %v10698_v43, %v9849_v4  ;;  %v10699_v60 = vld [vmem:[%s16876_s2 + $0x8c] sm:$0xf]  ;;  %v9857_v57 = vld [vmem:[%s16876_s2 + $0x98] sm:$0xf0] }
 0xa55   : > { %v9775_v48 = vmul.f32 -1.442695, %v6326_v44  ;;  %v9777_v55 = vmul.f32 -1.442695, %v6327_v1  ;;  %6689 = vmatpush.bf16.msra.mxu1 %v9852_v35  ;;  %v9860_v1 = vor.u32 %v10699_v60, %v9857_v57  ;;  %v9825_v57 = vld [vmem:[%s16876_s2 + $0x58] sm:$0xf0] }
 0xa57   : > { %11196 = vpow2.f32 %v9775_v48  ;;  %6717 = vmatpush.bf16.msra.mxu3 %v9860_v1  ;;  %v9839_v48 = vld [vmem:[%s16876_s2 + $0x68] sm:$0xf]  ;;  %v10688_v1 = vld [vmem:[%s16876_s2 + $0x2c] sm:$0xf0] }
 0xa58   : > { %11198 = vpow2.f32 %v9777_v55  ;;  %v10697_v55 = vld [vmem:[%s16876_s2 + $0x74] sm:$0xf0] }
 0xa59   : > { %v6321_v20 = vpop.f32.mrf.mxu3  ;;  %v6307_v44 = vpop.f32.mrf.mxu2  ;;  %v9840_v17 = vor.u32 %v10697_v55, %v9839_v48  ;;  %6690 = vmatpush.bf16.msra.mxu1 %v9836_v12  ;;  %v10687_v12 = vld [vmem:[%s16876_s2 + $0x2c] sm:$0xf] }
 0xa5a   : > { %v6329_v58 = vadd.f32 %v6321_v20, %v1089_v39  ;;  %v6281_v27 = vpop.f32.mrf.mxu0  ;;  %v6295_v30 = vpop.f32.mrf.mxu1  ;;  %v6328_v42 = vadd.f32 %v6307_v44, %v1000_v32  ;;  %v9844_v39 = vor.u32 %v10695_v33, %v9841_v25  ;;  %v9799_v44 = vld [vmem:[%s16876_s2 + $0x20] sm:$0xf] }
 0xa5b   : > { %v6330_v29 = vadd.f32 %v6281_v27, %v824_v6  ;;  %v6331_v34 = vadd.f32 %v6295_v30, %v913_v13  ;;  %v9816_v6 = vor.u32 %v10692_v49, %v9815_v54  ;;  %6704 = vmatpush.bf16.msra.mxu2 %v9840_v17  ;;  %v9809_v17 = vld [vmem:[%s16876_s2 + $0x38] sm:$0xf0] }
 0xa5c   : > { %v9779_v2 = vmul.f32 -1.442695, %v6329_v58  ;;  %v17130_v58 = vld [vmem:[#allocation73_spill] sm:$0xff]  ;;  %6718 = vmatpush.bf16.msra.mxu3 %v9844_v39 }
 0xa5d   : > { %v11197_v0 = vpop.eup %11196  ;;  %v9776_v8 = vmul.f32 -1.442695, %v6330_v29  ;;  %v9778_v52 = vmul.f32 -1.442695, %v6331_v34  ;;  %v1002_v27 = vadd.f32 %v17130_v58, %v12230_v47  ;;  %6677 = vmatpush.bf16.msra.mxu0 %v9816_v6  ;;  %6691 = vmatpush.bf16.msra.mxu1 %v9820_v18  ;;  %v10682_v6 = vld [vmem:[%s16876_s2 + $0x4] sm:$0xf]  ;;  %v9804_v18 = vor.u32 %v10686_v53, %v9801_v16 }
 0xa5e   : > { %v11199_v40 = vpop.eup %11198  ;;  %v15932_v28 = vadd.f32 1.0, %v11197_v0  ;;  %11200 = vpow2.f32 %v9779_v2  ;;  %v9791_v58 = vld [vmem:[%s16876_s2 + $0x8] sm:$0xf] }
 0xa5f   : > { %v15940_v45 = vadd.f32 1.0, %v11199_v40  ;;  %11202 = vpow2.f32 %v9776_v8  ;;  %v9823_v8 = vld [vmem:[%s16876_s2 + $0x48] sm:$0xf]  ;;  %v10691_v40 = vld [vmem:[%s16876_s2 + $0x4c] sm:$0xf] }
 0xa60   : > { %11204 = vrcp.f32 %v15932_v28  ;;  %v6351_v20 = vand.u32 2147483647, %v15932_v28  ;;  %v6353_v61 = vand.u32 2147483648, %v15932_v28  ;;  %vm6347_vm4 = vweird.f32 %v15932_v28 }
 0xa61   : > { %11206 = vrcp.f32 %v15940_v45  ;;  %v6323_v51 = vpop.f32.mrf.mxu3  ;;  %v6391_v19 = vand.u32 2147483648, %v15940_v45  ;;  %v6389_v56 = vand.u32 2147483647, %v15940_v45  ;;  %v6309_v15 = vpop.f32.mrf.mxu2  ;;  %vm6385_vm3 = vweird.f32 %v15940_v45  ;;  %6692 = vmatpush.bf16.msra.mxu1 %v9804_v18  ;;  %v10744_v18 = vld [vmem:[%s16876_s2 + $0xec] sm:$0xf0] }
 0xa62   : > { %11208 = vpow2.f32 %v9778_v52  ;;  %v6333_v63 = vadd.f32 %v6323_v51, %v1091_v50  ;;  %vm16006_vm1 = vcmp.eq.f32.partialorder %v6351_v20, 8.507059e+37  ;;  %v10693_v52 = vld [vmem:[%s16876_s2 + $0x54] sm:$0xf0]  ;;  %v6354_v59 = vor.u32 1.1754944e-38, %v6353_v61  ;;  %v9807_v50 = vld [vmem:[%s16876_s2 + $0x28] sm:$0xf] }
 0xa63   : > { %11210 = vtanh.f32 %v6328_v42  ;;  %v6332_v60 = vadd.f32 %v6309_v15, %v1002_v27  ;;  %v6392_v21 = vor.u32 1.1754944e-38, %v6391_v19  ;;  %vm16055_vm7 = vcmp.eq.f32.partialorder %v6389_v56, 8.507059e+37  ;;  %v10689_v42 = vld [vmem:[%s16876_s2 + $0x34] sm:$0xf0]  ;;  %v10683_v19 = vld [vmem:[%s16876_s2 + $0xc] sm:$0xf] }
 0xa64   : > { %v11201_v10 = vpop.eup %11200  ;;  %v9780_v4 = vmul.f32 -1.442695, %v6333_v63  ;;  %v9828_v25 = vor.u32 %v10691_v40, %v9825_v57  ;;  %v10684_v63 = vld [vmem:[%s16876_s2 + $0xc] sm:$0xf0]  ;;  %v10685_v27 = vld [vmem:[%s16876_s2 + $0x14] sm:$0xf0] }
 0xa65   : > { %v11203_v14 = vpop.eup %11202  ;;  %v15987_v22 = vadd.f32 1.0, %v11201_v10  ;;  %v9800_v10 = vor.u32 %v10688_v1, %v9799_v44  ;;  %v9793_v56 = vld [vmem:[%s16876_s2 + $0x18] sm:$0xf0]  ;;  %v9792_v40 = vor.u32 %v10685_v27, %v9791_v58  ;;  %v10031_v27 = vld [vmem:[%s16876_s2 + $0xf0] sm:$0xf0] }
 0xa66   : > { %v15984_v13 = vpop.eup %11204  ;;  %v15989_v36 = vadd.f32 1.0, %v11203_v14  ;;  %v9783_v14 = vld [vmem:[%s16876_s2] sm:$0xf]  ;;  %6719 = vmatpush.bf16.msra.mxu3 %v9828_v25 }
 0xa67   : > { %v15991_v62 = vpop.eup %11206  ;;  %v6343_v30 = vmul.f32 %v15984_v13, %v15932_v28  ;;  %vm6348_vm0 = vweird.f32 %v15984_v13  ;;  %6678 = vmatpush.bf16.msra.mxu0 %v9800_v10 }
 0xa68   : > { %v11209_v29 = vpop.eup %11208  ;;  %v6381_v34 = vmul.f32 %v15991_v62, %v15940_v45  ;;  %11212 = vrcp.f32 %v15989_v36  ;;  %vm6386_vm2 = vweird.f32 %v15991_v62  ;;  %vm16038_vm5 = vmor %vm6347_vm4, %vm6348_vm0  ;;  %v9824_v45 = vor.u32 %v10693_v52, %v9823_v8 }
 0xa69   : > { %v6344_v43 = vsub.f32 1.0, %v6343_v30  ;;  %v16003_v2 = vadd.f32 1.0, %v11209_v29  ;;  %11214 = vrcp.f32 %v15987_v22  ;;  %v11211_v46 = vpop.eup %11210  ;;  %vm16050_vm6 = vmor %vm6385_vm3, %vm6386_vm2  ;;  %v6366_v26 = vand.u32 2147483647, %v15989_v36 }
 0xa6a   : > { %v6382_v7 = vsub.f32 1.0, %v6381_v34  ;;  %6705 = vmatpush.bf16.msra.mxu2 %v9824_v45  ;;  %vm6362_vm8 = vweird.f32 %v15989_v36  ;;  %v6368_v34 = vand.u32 2147483648, %v15989_v36 }
 0xa6b   : > { %v6345_v35 = vmul.f32 %v15984_v13, %v6344_v43  ;;  %11216 = vrcp.f32 %v16003_v2  ;;  %v6406_v55 = vand.u32 2147483648, %v16003_v2  ;;  %v6404_v1 = vand.u32 2147483647, %v16003_v2 }
 0xa6c   : > { %v6383_v31 = vmul.f32 %v15991_v62, %v6382_v7  ;;  %11218 = vpow2.f32 %v9780_v4  ;;  %v9808_v4 = vor.u32 %v10689_v42, %v9807_v50  ;;  %v9784_v7 = vor.u32 %v10684_v63, %v9783_v14 }
 0xa6d   : > { %v6346_v24 = vadd.f32 %v15984_v13, %v6345_v35  ;;  %11220 = vtanh.f32 %v6332_v60  ;;  %vm6400_vm11 = vweird.f32 %v16003_v2  ;;  %vm6367_vm13 = vcmp.eq.f32.partialorder %v6366_v26, 8.507059e+37 }
 0xa6e   : > { %v6384_v51 = vadd.f32 %v15991_v62, %v6383_v31  ;;  %v16064_v38 = vpop.eup %11212  ;;  %6706 = vmatpush.bf16.msra.mxu2 %v9808_v4  ;;  %v9796_v31 = vor.u32 %v10683_v19, %v9793_v56  ;;  %6679 = vmatpush.bf16.msra.mxu0 %v9784_v7  ;;  %v6407_v53 = vor.u32 1.1754944e-38, %v6406_v55  ;;  %vm6405_vm15 = vcmp.eq.f32.partialorder %v6404_v1, 8.507059e+37  ;;  %v17140_v19 = vld [vmem:[#allocation76_spill] sm:$0xff]  ;;  %v10743_v4 = vld [vmem:[%s16876_s2 + $0xec] sm:$0xf] }
 0xa6f   : > { %v6350_v33 = vsel %vm16038_vm5, %v15984_v13, %v6346_v24  ;;  %v16078_v39 = vpop.eup %11214  ;;  %v6358_v37 = vmul.f32 %v16064_v38, %v15989_v36  ;;  %vm6363_vm9 = vweird.f32 %v16064_v38  ;;  %v6431_v26 = vand.u32 2147483648, %v15987_v22  ;;  %v10021_v1 = vld [vmem:[%s16876_s2 + $0xc8] sm:$0xf] }
 0xa70   : > { %v6355_v54 = vsel %vm16006_vm1, %v6354_v59, %v6350_v33  ;;  %v6388_v49 = vsel %vm16050_vm6, %v15991_v62, %v6384_v51  ;;  %v9785_v62 = vld [vmem:[%s16876_s2 + $0x10] sm:$0xf0]  ;;  %v6421_v15 = vmul.f32 %v16078_v39, %v15987_v22  ;;  %vm6364_vm12 = vmor %vm6362_vm8, %vm6363_vm9  ;;  %vm6426_vm0 = vweird.f32 %v16078_v39 }
 0xa71   : > { %v11217_v23 = vpop.eup %11216  ;;  %v6393_v13 = vsel %vm16055_vm7, %v6392_v21, %v6388_v49  ;;  %v6454_v20 = vmul.f32 %v11211_v46, %v6355_v54  ;;  %v6359_v61 = vsub.f32 1.0, %v6358_v37  ;;  %v9788_v59 = vor.u32 %v10682_v6, %v9785_v62  ;;  %v10742_v62 = vld [vmem:[%s16876_s2 + $0xe4] sm:$0xf] }
 0xa72   : > { %v6452_v30 = vmul.f32 %v6393_v13, %v15806_v9  ;;  %v6396_v29 = vmul.f32 %v11217_v23, %v16003_v2  ;;  %v11219_v43 = vpop.eup %11218  ;;  %v9812_v9 = vor.u32 %v10687_v12, %v9809_v17  ;;  %vm6401_vm10 = vweird.f32 %v11217_v23  ;;  %6707 = vmatpush.bf16.msra.mxu2 %v9792_v40  ;;  %v10013_v40 = vld [vmem:[%s16876_s2 + $0xc0] sm:$0xf] }
 0xa73   : > { %v6360_v52 = vmul.f32 %v16064_v38, %v6359_v61  ;;  %v6419_v35 = vadd.f32 1.0, %v11219_v43  ;;  %v11221_v60 = vpop.eup %11220  ;;  %v6369_v21 = vor.u32 1.1754944e-38, %v6368_v34  ;;  %6693 = vmatpush.bf16.msra.mxu1 %v9788_v59  ;;  %v6422_v24 = vsub.f32 1.0, %v6421_v15  ;;  %vm6402_vm14 = vmor %vm6400_vm11, %vm6401_vm10  ;;  %v10745_v61 = vld [vmem:[%s16876_s2 + $0xf4] sm:$0xf0] }
 0xa74   : > { %v16119_v0 = vadd.f32 %v6454_v20, %v6452_v30  ;;  %v6397_v8 = vsub.f32 1.0, %v6396_v29  ;;  %6720 = vmatpush.bf16.msra.mxu3 %v9812_v9  ;;  %vm6425_vm1 = vweird.f32 %v15987_v22  ;;  %v6432_v49 = vor.u32 1.1754944e-38, %v6431_v26  ;;  %v10037_v30 = vld [vmem:[%s16876_s2 + $0xe8] sm:$0xf]  ;;  %v10039_v9 = vld [vmem:[%s16876_s2 + $0xf8] sm:$0xf0] }
 0xa75   : > { %v6361_v44 = vadd.f32 %v16064_v38, %v6360_v52  ;;  %11222 = vrcp.f32 %v6419_v35  ;;  %v6423_v48 = vmul.f32 %v16078_v39, %v6422_v24  ;;  %v6446_v25 = vand.u32 2147483648, %v6419_v35  ;;  %vm6427_vm3 = vmor %vm6425_vm1, %vm6426_vm0  ;;  %v17139_v29 = vld [vmem:[#allocation75_spill] sm:$0xff] }
 0xa76   : > { %v6398_v57 = vmul.f32 %v11217_v23, %v6397_v8  ;;  %11224 = vtanh.f32 %v16119_v0  ;;  %v6444_v42 = vand.u32 2147483647, %v6419_v35  ;;  %vm6440_vm4 = vweird.f32 %v6419_v35  ;;  %v10005_v26 = vld [vmem:[%s16876_s2 + $0xa8] sm:$0xf] }
 0xa77   : > { %v6365_v28 = vsel %vm6364_vm12, %v16064_v38, %v6361_v44  ;;  %v6424_v2 = vadd.f32 %v16078_v39, %v6423_v48  ;;  %v6447_v37 = vor.u32 1.1754944e-38, %v6446_v25  ;;  %v827_v34 = vadd.f32 %v17139_v29, %v12095_v3  ;;  %v10015_v44 = vld [vmem:[%s16876_s2 + $0xd0] sm:$0xf0]  ;;  %v10736_v48 = vld [vmem:[%s16876_s2 + $0xac] sm:$0xf0] }
 0xa78   : > { %v6399_v45 = vadd.f32 %v11217_v23, %v6398_v57  ;;  %v6370_v16 = vsel %vm6367_vm13, %v6369_v21, %v6365_v28  ;;  %6721 = vmatpush.bf16.msra.mxu3 %v9796_v31  ;;  %vm6445_vm7 = vcmp.eq.f32.partialorder %v6444_v42, 8.507059e+37  ;;  %v916_v56 = vadd.f32 %v17140_v19, %v12120_v11  ;;  %v10740_v31 = vld [vmem:[%s16876_s2 + $0xcc] sm:$0xf0]  ;;  %v10741_v21 = vld [vmem:[%s16876_s2 + $0xd4] sm:$0xf0] }
 0xa79   : > { %v6455_v32 = vmul.f32 %v11221_v60, %v6370_v16  ;;  %v6428_v17 = vsel %vm6427_vm3, %v16078_v39, %v6424_v2  ;;  %v10029_v39 = vld [vmem:[%s16876_s2 + $0xe0] sm:$0xf]  ;;  %v10034_v43 = vor.u32 %v10742_v62, %v10031_v27  ;;  %v10038_v15 = vor.u32 %v10745_v61, %v10037_v30  ;;  %v10738_v60 = vld [vmem:[%s16876_s2 + $0xc4] sm:$0xf]  ;;  %v10739_v16 = vld [vmem:[%s16876_s2 + $0xcc] sm:$0xf] }
 0xa7a   : > { %v6403_v46 = vsel %vm6402_vm14, %v11217_v23, %v6399_v45  ;;  %v10030_v58 = vor.u32 %v10744_v18, %v10029_v39  ;;  %v10042_v52 = vor.u32 %v10743_v4, %v10039_v9  ;;  %v10014_v57 = vor.u32 %v10740_v31, %v10013_v40  ;;  %v10737_v25 = vld [vmem:[%s16876_s2 + $0xb4] sm:$0xf0]  ;;  %v17143_v42 = vld [vmem:[#allocation80_spill] sm:$0xff]  ;;  %v9981_v39 = vld [vmem:[%s16876_s2 + $0x80] sm:$0xf] }
 0xa7b   : > { %v6408_v51 = vsel %vm6405_vm15, %v6407_v53, %v6403_v46  ;;  %v11223_v38 = vpop.eup %11222  ;;  %7088 = vmatpush.bf16.msrb.mxu1 %v10034_v43  ;;  %7102 = vmatpush.bf16.msrb.mxu2 %v10038_v15  ;;  %v10018_v45 = vor.u32 %v10738_v60, %v10015_v44  ;;  %v10022_v53 = vor.u32 %v10741_v21, %v10021_v1  ;;  %v10023_v46 = vld [vmem:[%s16876_s2 + $0xd8] sm:$0xf0]  ;;  %v10732_v18 = vld [vmem:[%s16876_s2 + $0x8c] sm:$0xf0]  ;;  %v10730_v62 = vld [vmem:[%s16876_s2 + $0x84] sm:$0xf] }
 0xa7c   : > { %v6453_v50 = vmul.f32 %v6408_v51, %v15822_v5  ;;  %v6436_v36 = vmul.f32 %v11223_v38, %v6419_v35  ;;  %v6429_v5 = vand.u32 2147483647, %v15987_v22  ;;  %vm6441_vm2 = vweird.f32 %v11223_v38  ;;  %v11225_v54 = vpop.eup %11224  ;;  %7074 = vmatpush.bf16.msrb.mxu0 %v10030_v58  ;;  %7116 = vmatpush.bf16.msrb.mxu3 %v10042_v52  ;;  %v9997_v51 = vld [vmem:[%s16876_s2 + $0xa0] sm:$0xf]  ;;  %v9983_v30 = vld [vmem:[%s16876_s2 + $0x90] sm:$0xf0] }
 0xa7d   : > { %vm6442_vm5 = vmor %vm6440_vm4, %vm6441_vm2  ;;  %v9998_v2 = vor.u32 %v10736_v48, %v9997_v51  ;;  %v9982_v27 = vor.u32 %v10732_v18, %v9981_v39  ;;  %v9989_v61 = vld [vmem:[%s16876_s2 + $0x88] sm:$0xf]  ;;  %v10733_v43 = vld [vmem:[%s16876_s2 + $0x94] sm:$0xf0] }
 0xa7e   : > { %v16135_v33 = vadd.f32 %v6455_v32, %v6453_v50  ;;  %v6437_v55 = vsub.f32 1.0, %v6436_v36  ;;  %vm6430_vm6 = vcmp.eq.f32.partialorder %v6429_v5, 8.507059e+37  ;;  %v10026_v32 = vor.u32 %v10739_v16, %v10023_v46  ;;  %v10734_v50 = vld [vmem:[%s16876_s2 + $0xa4] sm:$0xf]  ;;  %v17142_v5 = vld [vmem:[#allocation79_spill] sm:$0xff]  ;;  %v17144_v44 = vld [vmem:[#allocation77_spill] sm:$0xff] }
 0xa7f   : > { %v6433_v6 = vsel %vm6430_vm6, %v6432_v49, %v6428_v17  ;;  %7089 = vmatpush.bf16.msrb.mxu1 %v10018_v45  ;;  %7103 = vmatpush.bf16.msrb.mxu2 %v10022_v53  ;;  %v10006_v49 = vor.u32 %v10737_v25, %v10005_v26  ;;  %v9990_v9 = vor.u32 %v10733_v43, %v9989_v61  ;;  %v9965_v40 = vld [vmem:[%s16876_s2 + $0x60] sm:$0xf]  ;;  %v10728_v31 = vld [vmem:[%s16876_s2 + $0x6c] sm:$0xf0]  ;;  %v10726_v60 = vld [vmem:[%s16876_s2 + $0x64] sm:$0xf] }
 0xa80   : > { %11226 = vtanh.f32 %v16135_v33  ;;  %v6438_v10 = vmul.f32 %v11223_v38, %v6437_v55  ;;  %v6460_v13 = vmul.f32 %v11225_v54, %v6433_v6  ;;  %7075 = vmatpush.bf16.msrb.mxu0 %v10014_v57  ;;  %v9999_v55 = vld [vmem:[%s16876_s2 + $0xb0] sm:$0xf0]  ;;  %7117 = vmatpush.bf16.msrb.mxu3 %v10026_v32  ;;  %v1005_v1 = vadd.f32 %v17144_v44, %v12230_v47  ;;  %v17145_v45 = vld [vmem:[#allocation82_spill] sm:$0xff]  ;;  %v10727_v46 = vld [vmem:[%s16876_s2 + $0x6c] sm:$0xf] }
 0xa81   : > { %v10002_v54 = vor.u32 %v10734_v50, %v9999_v55  ;;  %v9967_v57 = vld [vmem:[%s16876_s2 + $0x70] sm:$0xf0]  ;;  %v1096_v53 = vadd.f32 %v17145_v45, %v12159_v41  ;;  %v9966_v16 = vor.u32 %v10728_v31, %v9965_v40  ;;  %v9975_v32 = vld [vmem:[%s16876_s2 + $0x78] sm:$0xf0]  ;;  %v10724_v55 = vld [vmem:[%s16876_s2 + $0x4c] sm:$0xf0] }
 0xa82   : > { %v6439_v12 = vadd.f32 %v11223_v38, %v6438_v10  ;;  %v829_v10 = vadd.f32 %v17142_v5, %v12095_v3  ;;  %v9970_v50 = vor.u32 %v10726_v60, %v9967_v57  ;;  %v10722_v26 = vld [vmem:[%s16876_s2 + $0x44] sm:$0xf]  ;;  %v9935_v57 = vld [vmem:[%s16876_s2 + $0x30] sm:$0xf0] }
 0xa83   : > { %7090 = vmatpush.bf16.msrb.mxu1 %v10002_v54  ;;  %7104 = vmatpush.bf16.msrb.mxu2 %v10006_v49  ;;  %v10718_v60 = vld [vmem:[%s16876_s2 + $0x24] sm:$0xf] }
 0xa84   : > { %v6443_v63 = vsel %vm6442_vm5, %v11223_v38, %v6439_v12  ;;  %v17141_v38 = vld [vmem:[#allocation78_spill] sm:$0xff]  ;;  %v918_v12 = vadd.f32 %v17143_v42, %v12120_v11  ;;  %7076 = vmatpush.bf16.msrb.mxu0 %v9998_v2  ;;  %v9951_v42 = vld [vmem:[%s16876_s2 + $0x50] sm:$0xf0] }
 0xa85   : > { %v6448_v23 = vsel %vm6445_vm7, %v6447_v37, %v6443_v63  ;;  %v1094_v36 = vadd.f32 %v17141_v38, %v12159_v41  ;;  %v10735_v37 = vld [vmem:[%s16876_s2 + $0xac] sm:$0xf]  ;;  %v9949_v2 = vld [vmem:[%s16876_s2 + $0x40] sm:$0xf] }
 0xa86   : > { %v11227_v14 = vpop.eup %11226 }
 0xa87   : > { %v6461_v22 = vmul.f32 %v11227_v14, %v6448_v23  ;;  %v10007_v14 = vld [vmem:[%s16876_s2 + $0xb8] sm:$0xf0]  ;;  %7105 = vmatpush.bf16.msrb.mxu2 %v9990_v9 }
 0xa88   : > { %7077 = vmatpush.bf16.msrb.mxu0 %v9982_v27 }
 0xa89   : > { %v6479_v20 = vpack.c.bf16 %v6461_v22, %v6460_v13  ;;  %v10010_v13 = vor.u32 %v10735_v37, %v10007_v14  ;;  %v9954_v37 = vor.u32 %v10722_v26, %v9951_v42 }
 0xa8b   : > { %6680 = vmatmul.bf16.vlgmr.msra.gmra.mxu0 %v6479_v20  ;;  %6694 = vmatmul.bf16.vlgmr.msra.gmra.mxu1 %v6479_v20 }
 0xa8c   : > { %6708 = vmatmul.bf16.vlgmr.msra.gmra.mxu2 %v6479_v20  ;;  %6722 = vmatmul.bf16.vlgmr.msra.gmra.mxu3 %v6479_v20 }
 0xa8d   : > { %7118 = vmatpush.bf16.msrb.mxu3 %v10010_v13  ;;  %7078 = vmatpush.bf16.msrb.mxu0 %v9966_v16 }
 0xb08   : > { %v6681_v7 = vpop.f32.mrf.mxu0  ;;  %v6695_v8 = vpop.f32.mrf.mxu1 }
 0xb09   : > { %v6728_v35 = vadd.f32 %v6681_v7, %v827_v34  ;;  %v6729_v59 = vadd.f32 %v6695_v8, %v916_v56  ;;  %v9986_v56 = vor.u32 %v10730_v62, %v9983_v30  ;;  %v10731_v7 = vld [vmem:[%s16876_s2 + $0x8c] sm:$0xf]  ;;  %v9991_v8 = vld [vmem:[%s16876_s2 + $0x98] sm:$0xf0] }
 0xb0b   : > { %v9909_v24 = vmul.f32 -1.442695, %v6728_v35  ;;  %v9911_v28 = vmul.f32 -1.442695, %v6729_v59  ;;  %7091 = vmatpush.bf16.msrb.mxu1 %v9986_v56  ;;  %v9994_v59 = vor.u32 %v10731_v7, %v9991_v8  ;;  %v9959_v8 = vld [vmem:[%s16876_s2 + $0x58] sm:$0xf0] }
 0xb0d   : > { %11228 = vpow2.f32 %v9909_v24  ;;  %7119 = vmatpush.bf16.msrb.mxu3 %v9994_v59  ;;  %v9973_v24 = vld [vmem:[%s16876_s2 + $0x68] sm:$0xf]  ;;  %v10720_v59 = vld [vmem:[%s16876_s2 + $0x2c] sm:$0xf0] }
 0xb0e   : > { %11230 = vpow2.f32 %v9911_v28  ;;  %v10729_v28 = vld [vmem:[%s16876_s2 + $0x74] sm:$0xf0] }
 0xb0f   : > { %v6723_v17 = vpop.f32.mrf.mxu3  ;;  %v6709_v35 = vpop.f32.mrf.mxu2  ;;  %v9974_v38 = vor.u32 %v10729_v28, %v9973_v24  ;;  %7092 = vmatpush.bf16.msrb.mxu1 %v9970_v50  ;;  %v10719_v50 = vld [vmem:[%s16876_s2 + $0x2c] sm:$0xf] }
 0xb10   : > { %v6731_v63 = vadd.f32 %v6723_v17, %v1094_v36  ;;  %v6683_v6 = vpop.f32.mrf.mxu0  ;;  %v6697_v23 = vpop.f32.mrf.mxu1  ;;  %v6730_v48 = vadd.f32 %v6709_v35, %v1005_v1  ;;  %v9978_v36 = vor.u32 %v10727_v46, %v9975_v32  ;;  %v9933_v35 = vld [vmem:[%s16876_s2 + $0x20] sm:$0xf] }
 0xb11   : > { %v6732_v22 = vadd.f32 %v6683_v6, %v829_v10  ;;  %v6733_v20 = vadd.f32 %v6697_v23, %v918_v12  ;;  %v9950_v10 = vor.u32 %v10724_v55, %v9949_v2  ;;  %7106 = vmatpush.bf16.msrb.mxu2 %v9974_v38  ;;  %v9943_v38 = vld [vmem:[%s16876_s2 + $0x38] sm:$0xf0] }
 0xb12   : > { %v9913_v58 = vmul.f32 -1.442695, %v6731_v63  ;;  %v17146_v63 = vld [vmem:[#allocation81_spill] sm:$0xff]  ;;  %7120 = vmatpush.bf16.msrb.mxu3 %v9978_v36 }
 0xb13   : > { %v11229_v29 = vpop.eup %11228  ;;  %v9910_v34 = vmul.f32 -1.442695, %v6732_v22  ;;  %v9912_v19 = vmul.f32 -1.442695, %v6733_v20  ;;  %v1007_v6 = vadd.f32 %v17146_v63, %v12230_v47  ;;  %7079 = vmatpush.bf16.msrb.mxu0 %v9950_v10  ;;  %7093 = vmatpush.bf16.msrb.mxu1 %v9954_v37  ;;  %v10714_v10 = vld [vmem:[%s16876_s2 + $0x4] sm:$0xf]  ;;  %v9938_v37 = vor.u32 %v10718_v60, %v9935_v57 }
 0xb14   : > { %v11231_v15 = vpop.eup %11230  ;;  %v16245_v4 = vadd.f32 1.0, %v11229_v29  ;;  %11232 = vpow2.f32 %v9913_v58  ;;  %v9925_v63 = vld [vmem:[%s16876_s2 + $0x8] sm:$0xf] }
 0xb15   : > { %v16253_v52 = vadd.f32 1.0, %v11231_v15  ;;  %11234 = vpow2.f32 %v9910_v34  ;;  %v9957_v34 = vld [vmem:[%s16876_s2 + $0x48] sm:$0xf]  ;;  %v10723_v15 = vld [vmem:[%s16876_s2 + $0x4c] sm:$0xf] }
 0xb16   : > { %11236 = vrcp.f32 %v16245_v4  ;;  %v6753_v17 = vand.u32 2147483647, %v16245_v4  ;;  %v6755_v13 = vand.u32 2147483648, %v16245_v4  ;;  %vm6749_vm12 = vweird.f32 %v16245_v4 }
 0xb17   : > { %11238 = vrcp.f32 %v16253_v52  ;;  %v6725_v21 = vpop.f32.mrf.mxu3  ;;  %v6793_v39 = vand.u32 2147483648, %v16253_v52  ;;  %v6791_v18 = vand.u32 2147483647, %v16253_v52  ;;  %v6711_v27 = vpop.f32.mrf.mxu2  ;;  %vm6787_vm11 = vweird.f32 %v16253_v52  ;;  %7094 = vmatpush.bf16.msrb.mxu1 %v9938_v37  ;;  %v10776_v37 = vld [vmem:[%s16876_s2 + $0xec] sm:$0xf0] }
 0xb18   : > { %11240 = vpow2.f32 %v9912_v19  ;;  %v6735_v5 = vadd.f32 %v6725_v21, %v1096_v53  ;;  %vm16319_vm9 = vcmp.eq.f32.partialorder %v6753_v17, 8.507059e+37  ;;  %v10725_v19 = vld [vmem:[%s16876_s2 + $0x54] sm:$0xf0]  ;;  %v6756_v43 = vor.u32 1.1754944e-38, %v6755_v13  ;;  %v9941_v53 = vld [vmem:[%s16876_s2 + $0x28] sm:$0xf] }
 0xb19   : > { %11242 = vtanh.f32 %v6730_v48  ;;  %v6734_v7 = vadd.f32 %v6711_v27, %v1007_v6  ;;  %v6794_v40 = vor.u32 1.1754944e-38, %v6793_v39  ;;  %vm16368_vm15 = vcmp.eq.f32.partialorder %v6791_v18, 8.507059e+37  ;;  %v10721_v48 = vld [vmem:[%s16876_s2 + $0x34] sm:$0xf0]  ;;  %v10715_v39 = vld [vmem:[%s16876_s2 + $0xc] sm:$0xf] }
 0xb1a   : > { %v11233_v51 = vpop.eup %11232  ;;  %v9914_v30 = vmul.f32 -1.442695, %v6735_v5  ;;  %v9962_v32 = vor.u32 %v10723_v15, %v9959_v8  ;;  %v10716_v5 = vld [vmem:[%s16876_s2 + $0xc] sm:$0xf0]  ;;  %v10717_v6 = vld [vmem:[%s16876_s2 + $0x14] sm:$0xf0] }
 0xb1b   : > { %v11235_v25 = vpop.eup %11234  ;;  %v16300_v54 = vadd.f32 1.0, %v11233_v51  ;;  %v9934_v51 = vor.u32 %v10720_v59, %v9933_v35  ;;  %v9927_v18 = vld [vmem:[%s16876_s2 + $0x18] sm:$0xf0]  ;;  %v9926_v15 = vor.u32 %v10717_v6, %v9925_v63  ;;  %v10165_v6 = vld [vmem:[%s16876_s2 + $0xf0] sm:$0xf0] }
 0xb1c   : > { %v16297_v12 = vpop.eup %11236  ;;  %v16302_v49 = vadd.f32 1.0, %v11235_v25  ;;  %v9917_v25 = vld [vmem:[%s16876_s2] sm:$0xf]  ;;  %7121 = vmatpush.bf16.msrb.mxu3 %v9962_v32 }
 0xb1d   : > { %v16304_v14 = vpop.eup %11238  ;;  %v6745_v23 = vmul.f32 %v16297_v12, %v16245_v4  ;;  %vm6750_vm8 = vweird.f32 %v16297_v12  ;;  %7080 = vmatpush.bf16.msrb.mxu0 %v9934_v51 }
 0xb1e   : > { %v11241_v22 = vpop.eup %11240  ;;  %v6783_v20 = vmul.f32 %v16304_v14, %v16253_v52  ;;  %11244 = vrcp.f32 %v16302_v49  ;;  %vm6788_vm10 = vweird.f32 %v16304_v14  ;;  %vm16351_vm13 = vmor %vm6749_vm12, %vm6750_vm8  ;;  %v9958_v52 = vor.u32 %v10725_v19, %v9957_v34 }
 0xb1f   : > { %v6746_v62 = vsub.f32 1.0, %v6745_v23  ;;  %v16316_v58 = vadd.f32 1.0, %v11241_v22  ;;  %11246 = vrcp.f32 %v16300_v54  ;;  %v11243_v44 = vpop.eup %11242  ;;  %vm16363_vm14 = vmor %vm6787_vm11, %vm6788_vm10  ;;  %v6768_v45 = vand.u32 2147483647, %v16302_v49 }
 0xb20   : > { %v6784_v61 = vsub.f32 1.0, %v6783_v20  ;;  %7107 = vmatpush.bf16.msrb.mxu2 %v9958_v52  ;;  %vm6764_vm0 = vweird.f32 %v16302_v49  ;;  %v6770_v20 = vand.u32 2147483648, %v16302_v49 }
 0xb21   : > { %v6747_v56 = vmul.f32 %v16297_v12, %v6746_v62  ;;  %11248 = vrcp.f32 %v16316_v58  ;;  %v6808_v28 = vand.u32 2147483648, %v16316_v58  ;;  %v6806_v59 = vand.u32 2147483647, %v16316_v58 }
 0xb22   : > { %v6785_v9 = vmul.f32 %v16304_v14, %v6784_v61  ;;  %11250 = vpow2.f32 %v9914_v30  ;;  %v9942_v30 = vor.u32 %v10721_v48, %v9941_v53  ;;  %v9918_v61 = vor.u32 %v10716_v5, %v9917_v25 }
 0xb23   : > { %v6748_v31 = vadd.f32 %v16297_v12, %v6747_v56  ;;  %11252 = vtanh.f32 %v6734_v7  ;;  %vm6802_vm3 = vweird.f32 %v16316_v58  ;;  %vm6769_vm5 = vcmp.eq.f32.partialorder %v6768_v45, 8.507059e+37 }
 0xb24   : > { %v6786_v21 = vadd.f32 %v16304_v14, %v6785_v9  ;;  %v16377_v16 = vpop.eup %11244  ;;  %7108 = vmatpush.bf16.msrb.mxu2 %v9942_v30  ;;  %v9930_v9 = vor.u32 %v10715_v39, %v9927_v18  ;;  %7081 = vmatpush.bf16.msrb.mxu0 %v9918_v61  ;;  %v6809_v60 = vor.u32 1.1754944e-38, %v6808_v28  ;;  %vm6807_vm7 = vcmp.eq.f32.partialorder %v6806_v59, 8.507059e+37  ;;  %v17156_v39 = vld [vmem:[#allocation84_spill] sm:$0xff]  ;;  %v10775_v30 = vld [vmem:[%s16876_s2 + $0xec] sm:$0xf] }
 0xb25   : > { %v6752_v46 = vsel %vm16351_vm13, %v16297_v12, %v6748_v31  ;;  %v16391_v36 = vpop.eup %11246  ;;  %v6760_v26 = vmul.f32 %v16377_v16, %v16302_v49  ;;  %vm6765_vm1 = vweird.f32 %v16377_v16  ;;  %v6833_v45 = vand.u32 2147483648, %v16300_v54  ;;  %v10155_v59 = vld [vmem:[%s16876_s2 + $0xc8] sm:$0xf] }
 0xb26   : > { %v6757_v2 = vsel %vm16319_vm9, %v6756_v43, %v6752_v46  ;;  %v6790_v55 = vsel %vm16363_vm14, %v16304_v14, %v6786_v21  ;;  %v9919_v14 = vld [vmem:[%s16876_s2 + $0x10] sm:$0xf0]  ;;  %v6823_v27 = vmul.f32 %v16391_v36, %v16300_v54  ;;  %vm6766_vm4 = vmor %vm6764_vm0, %vm6765_vm1  ;;  %vm6828_vm8 = vweird.f32 %v16391_v36 }
 0xb27   : > { %v11249_v42 = vpop.eup %11248  ;;  %v6795_v12 = vsel %vm16368_vm15, %v6794_v40, %v6790_v55  ;;  %v6856_v17 = vmul.f32 %v11243_v44, %v6757_v2  ;;  %v6761_v13 = vsub.f32 1.0, %v6760_v26  ;;  %v9922_v43 = vor.u32 %v10714_v10, %v9919_v14  ;;  %v10774_v14 = vld [vmem:[%s16876_s2 + $0xe4] sm:$0xf] }
 0xb28   : > { %v6854_v23 = vmul.f32 %v6795_v12, %v16119_v0  ;;  %v6798_v22 = vmul.f32 %v11249_v42, %v16316_v58  ;;  %v11251_v62 = vpop.eup %11250  ;;  %v9946_v0 = vor.u32 %v10719_v50, %v9943_v38  ;;  %vm6803_vm2 = vweird.f32 %v11249_v42  ;;  %7109 = vmatpush.bf16.msrb.mxu2 %v9926_v15  ;;  %v10147_v15 = vld [vmem:[%s16876_s2 + $0xc0] sm:$0xf] }
 0xb29   : > { %v6762_v19 = vmul.f32 %v16377_v16, %v6761_v13  ;;  %v6821_v56 = vadd.f32 1.0, %v11251_v62  ;;  %v11253_v7 = vpop.eup %11252  ;;  %v6771_v40 = vor.u32 1.1754944e-38, %v6770_v20  ;;  %7095 = vmatpush.bf16.msrb.mxu1 %v9922_v43  ;;  %v6824_v31 = vsub.f32 1.0, %v6823_v27  ;;  %vm6804_vm6 = vmor %vm6802_vm3, %vm6803_vm2  ;;  %v10777_v13 = vld [vmem:[%s16876_s2 + $0xf4] sm:$0xf0] }
 0xb2a   : > { %v16432_v29 = vadd.f32 %v6856_v17, %v6854_v23  ;;  %v6799_v34 = vsub.f32 1.0, %v6798_v22  ;;  %7122 = vmatpush.bf16.msrb.mxu3 %v9946_v0  ;;  %vm6827_vm9 = vweird.f32 %v16300_v54  ;;  %v6834_v55 = vor.u32 1.1754944e-38, %v6833_v45  ;;  %v10171_v23 = vld [vmem:[%s16876_s2 + $0xe8] sm:$0xf]  ;;  %v10173_v0 = vld [vmem:[%s16876_s2 + $0xf8] sm:$0xf0] }
 0xb2b   : > { %v6763_v35 = vadd.f32 %v16377_v16, %v6762_v19  ;;  %11254 = vrcp.f32 %v6821_v56  ;;  %v6825_v24 = vmul.f32 %v16391_v36, %v6824_v31  ;;  %v6848_v32 = vand.u32 2147483648, %v6821_v56  ;;  %vm6829_vm11 = vmor %vm6827_vm9, %vm6828_vm8  ;;  %v17155_v22 = vld [vmem:[#allocation83_spill] sm:$0xff] }
 0xb2c   : > { %v6800_v8 = vmul.f32 %v11249_v42, %v6799_v34  ;;  %11256 = vtanh.f32 %v16432_v29  ;;  %v6846_v48 = vand.u32 2147483647, %v6821_v56  ;;  %vm6842_vm12 = vweird.f32 %v6821_v56  ;;  %v10139_v45 = vld [vmem:[%s16876_s2 + $0xa8] sm:$0xf] }
 0xb2d   : > { %v6767_v4 = vsel %vm6766_vm4, %v16377_v16, %v6763_v35  ;;  %v6826_v58 = vadd.f32 %v16391_v36, %v6825_v24  ;;  %v6849_v26 = vor.u32 1.1754944e-38, %v6848_v32  ;;  %v832_v20 = vadd.f32 %v17155_v22, %v12095_v3  ;;  %v10149_v35 = vld [vmem:[%s16876_s2 + $0xd0] sm:$0xf0]  ;;  %v10768_v24 = vld [vmem:[%s16876_s2 + $0xac] sm:$0xf0] }
 0xb2e   : > { %v6801_v52 = vadd.f32 %v11249_v42, %v6800_v8  ;;  %v6772_v57 = vsel %vm6769_vm5, %v6771_v40, %v6767_v4  ;;  %7123 = vmatpush.bf16.msrb.mxu3 %v9930_v9  ;;  %vm6847_vm15 = vcmp.eq.f32.partialorder %v6846_v48, 8.507059e+37  ;;  %v921_v18 = vadd.f32 %v17156_v39, %v12120_v11  ;;  %v10772_v9 = vld [vmem:[%s16876_s2 + $0xcc] sm:$0xf0]  ;;  %v10773_v40 = vld [vmem:[%s16876_s2 + $0xd4] sm:$0xf0] }
 0xb2f   : > { %v6857_v1 = vmul.f32 %v11253_v7, %v6772_v57  ;;  %v6830_v38 = vsel %vm6829_vm11, %v16391_v36, %v6826_v58  ;;  %v10163_v36 = vld [vmem:[%s16876_s2 + $0xe0] sm:$0xf]  ;;  %v10168_v62 = vor.u32 %v10774_v14, %v10165_v6  ;;  %v10172_v27 = vor.u32 %v10777_v13, %v10171_v23  ;;  %v10770_v7 = vld [vmem:[%s16876_s2 + $0xc4] sm:$0xf]  ;;  %v10771_v57 = vld [vmem:[%s16876_s2 + $0xcc] sm:$0xf] }
 0xb30   : > { %v6805_v44 = vsel %vm6804_vm6, %v11249_v42, %v6801_v52  ;;  %v10164_v63 = vor.u32 %v10776_v37, %v10163_v36  ;;  %v10176_v19 = vor.u32 %v10775_v30, %v10173_v0  ;;  %v10148_v8 = vor.u32 %v10772_v9, %v10147_v15  ;;  %v10769_v32 = vld [vmem:[%s16876_s2 + $0xb4] sm:$0xf0]  ;;  %v17159_v48 = vld [vmem:[#allocation88_spill] sm:$0xff]  ;;  %v10115_v36 = vld [vmem:[%s16876_s2 + $0x80] sm:$0xf] }
 0xb31   : > { %v6810_v21 = vsel %vm6807_vm7, %v6809_v60, %v6805_v44  ;;  %v11255_v16 = vpop.eup %11254  ;;  %7490 = vmatpush.bf16.msra.mxu1 %v10168_v62  ;;  %7504 = vmatpush.bf16.msra.mxu2 %v10172_v27  ;;  %v10152_v52 = vor.u32 %v10770_v7, %v10149_v35  ;;  %v10156_v60 = vor.u32 %v10773_v40, %v10155_v59  ;;  %v10157_v44 = vld [vmem:[%s16876_s2 + $0xd8] sm:$0xf0]  ;;  %v10764_v37 = vld [vmem:[%s16876_s2 + $0x8c] sm:$0xf0]  ;;  %v10762_v14 = vld [vmem:[%s16876_s2 + $0x84] sm:$0xf] }
 0xb32   : > { %v6855_v53 = vmul.f32 %v6810_v21, %v16135_v33  ;;  %v6838_v49 = vmul.f32 %v11255_v16, %v6821_v56  ;;  %v6831_v33 = vand.u32 2147483647, %v16300_v54  ;;  %vm6843_vm10 = vweird.f32 %v11255_v16  ;;  %v11257_v2 = vpop.eup %11256  ;;  %7476 = vmatpush.bf16.msra.mxu0 %v10164_v63  ;;  %7518 = vmatpush.bf16.msra.mxu3 %v10176_v19  ;;  %v10131_v21 = vld [vmem:[%s16876_s2 + $0xa0] sm:$0xf]  ;;  %v10117_v23 = vld [vmem:[%s16876_s2 + $0x90] sm:$0xf0] }
 0xb33   : > { %vm6844_vm13 = vmor %vm6842_vm12, %vm6843_vm10  ;;  %v10132_v58 = vor.u32 %v10768_v24, %v10131_v21  ;;  %v10116_v6 = vor.u32 %v10764_v37, %v10115_v36  ;;  %v10123_v13 = vld [vmem:[%s16876_s2 + $0x88] sm:$0xf]  ;;  %v10765_v62 = vld [vmem:[%s16876_s2 + $0x94] sm:$0xf0] }
 0xb34   : > { %v16448_v46 = vadd.f32 %v6857_v1, %v6855_v53  ;;  %v6839_v28 = vsub.f32 1.0, %v6838_v49  ;;  %vm6832_vm14 = vcmp.eq.f32.partialorder %v6831_v33, 8.507059e+37  ;;  %v10160_v1 = vor.u32 %v10771_v57, %v10157_v44  ;;  %v10766_v53 = vld [vmem:[%s16876_s2 + $0xa4] sm:$0xf]  ;;  %v17158_v33 = vld [vmem:[#allocation87_spill] sm:$0xff]  ;;  %v17160_v35 = vld [vmem:[#allocation85_spill] sm:$0xff] }
 0xb35   : > { %v6835_v10 = vsel %vm6832_vm14, %v6834_v55, %v6830_v38  ;;  %7491 = vmatpush.bf16.msra.mxu1 %v10152_v52  ;;  %7505 = vmatpush.bf16.msra.mxu2 %v10156_v60  ;;  %v10140_v55 = vor.u32 %v10769_v32, %v10139_v45  ;;  %v10124_v0 = vor.u32 %v10765_v62, %v10123_v13  ;;  %v10099_v15 = vld [vmem:[%s16876_s2 + $0x60] sm:$0xf]  ;;  %v10760_v9 = vld [vmem:[%s16876_s2 + $0x6c] sm:$0xf0]  ;;  %v10758_v7 = vld [vmem:[%s16876_s2 + $0x64] sm:$0xf] }
 0xb36   : > { %11258 = vtanh.f32 %v16448_v46  ;;  %v6840_v51 = vmul.f32 %v11255_v16, %v6839_v28  ;;  %v6862_v12 = vmul.f32 %v11257_v2, %v6835_v10  ;;  %7477 = vmatpush.bf16.msra.mxu0 %v10148_v8  ;;  %v10133_v28 = vld [vmem:[%s16876_s2 + $0xb0] sm:$0xf0]  ;;  %7519 = vmatpush.bf16.msra.mxu3 %v10160_v1  ;;  %v1010_v59 = vadd.f32 %v17160_v35, %v12230_v47  ;;  %v17161_v52 = vld [vmem:[#allocation89_spill] sm:$0xff]  ;;  %v10759_v44 = vld [vmem:[%s16876_s2 + $0x6c] sm:$0xf] }
 0xb37   : > { %v10136_v2 = vor.u32 %v10766_v53, %v10133_v28  ;;  %v10101_v8 = vld [vmem:[%s16876_s2 + $0x70] sm:$0xf0]  ;;  %v1101_v60 = vadd.f32 %v17161_v52, %v12159_v41  ;;  %v10100_v57 = vor.u32 %v10760_v9, %v10099_v15  ;;  %v10109_v1 = vld [vmem:[%s16876_s2 + $0x78] sm:$0xf0]  ;;  %v10756_v28 = vld [vmem:[%s16876_s2 + $0x4c] sm:$0xf0] }
 0xb38   : > { %v6841_v50 = vadd.f32 %v11255_v16, %v6840_v51  ;;  %v834_v51 = vadd.f32 %v17158_v33, %v12095_v3  ;;  %v10104_v53 = vor.u32 %v10758_v7, %v10101_v8  ;;  %v10754_v45 = vld [vmem:[%s16876_s2 + $0x44] sm:$0xf]  ;;  %v10069_v8 = vld [vmem:[%s16876_s2 + $0x30] sm:$0xf0] }
 0xb39   : > { %7492 = vmatpush.bf16.msra.mxu1 %v10136_v2  ;;  %7506 = vmatpush.bf16.msra.mxu2 %v10140_v55  ;;  %v10750_v7 = vld [vmem:[%s16876_s2 + $0x24] sm:$0xf] }
 0xb3a   : > { %v6845_v5 = vsel %vm6844_vm13, %v11255_v16, %v6841_v50  ;;  %v17157_v16 = vld [vmem:[#allocation86_spill] sm:$0xff]  ;;  %v923_v50 = vadd.f32 %v17159_v48, %v12120_v11  ;;  %7478 = vmatpush.bf16.msra.mxu0 %v10132_v58  ;;  %v10085_v48 = vld [vmem:[%s16876_s2 + $0x50] sm:$0xf0] }
 0xb3b   : > { %v6850_v42 = vsel %vm6847_vm15, %v6849_v26, %v6845_v5  ;;  %v1099_v49 = vadd.f32 %v17157_v16, %v12159_v41  ;;  %v10767_v26 = vld [vmem:[%s16876_s2 + $0xac] sm:$0xf]  ;;  %v10083_v58 = vld [vmem:[%s16876_s2 + $0x40] sm:$0xf] }
 0xb3c   : > { %v11259_v25 = vpop.eup %11258 }
 0xb3d   : > { %v6863_v54 = vmul.f32 %v11259_v25, %v6850_v42  ;;  %v10141_v25 = vld [vmem:[%s16876_s2 + $0xb8] sm:$0xf0]  ;;  %7507 = vmatpush.bf16.msra.mxu2 %v10124_v0 }
 0xb3e   : > { %7479 = vmatpush.bf16.msra.mxu0 %v10116_v6 }
 0xb3f   : > { %v6881_v17 = vpack.c.bf16 %v6863_v54, %v6862_v12  ;;  %v10144_v12 = vor.u32 %v10767_v26, %v10141_v25  ;;  %v10088_v26 = vor.u32 %v10754_v45, %v10085_v48 }
 0xb41   : > { %7082 = vmatmul.bf16.vlgmr.msrb.gmra.mxu0 %v6881_v17  ;;  %7096 = vmatmul.bf16.vlgmr.msrb.gmra.mxu1 %v6881_v17 }
 0xb42   : > { %7110 = vmatmul.bf16.vlgmr.msrb.gmra.mxu2 %v6881_v17  ;;  %7124 = vmatmul.bf16.vlgmr.msrb.gmra.mxu3 %v6881_v17 }
 0xb43   : > { %7520 = vmatpush.bf16.msra.mxu3 %v10144_v12  ;;  %7480 = vmatpush.bf16.msra.mxu0 %v10100_v57 }
 0xbbe   : > { %v7083_v61 = vpop.f32.mrf.mxu0  ;;  %v7097_v34 = vpop.f32.mrf.mxu1 }
 0xbbf   : > { %v7130_v56 = vadd.f32 %v7083_v61, %v832_v20  ;;  %v7131_v43 = vadd.f32 %v7097_v34, %v921_v18  ;;  %v10120_v18 = vor.u32 %v10762_v14, %v10117_v23  ;;  %v10763_v61 = vld [vmem:[%s16876_s2 + $0x8c] sm:$0xf]  ;;  %v10125_v34 = vld [vmem:[%s16876_s2 + $0x98] sm:$0xf0] }
 0xbc1   : > { %v10043_v31 = vmul.f32 -1.442695, %v7130_v56  ;;  %v10045_v4 = vmul.f32 -1.442695, %v7131_v43  ;;  %7493 = vmatpush.bf16.msra.mxu1 %v10120_v18  ;;  %v10128_v43 = vor.u32 %v10763_v61, %v10125_v34  ;;  %v10093_v34 = vld [vmem:[%s16876_s2 + $0x58] sm:$0xf0] }
 0xbc3   : > { %11260 = vpow2.f32 %v10043_v31  ;;  %7521 = vmatpush.bf16.msra.mxu3 %v10128_v43  ;;  %v10107_v31 = vld [vmem:[%s16876_s2 + $0x68] sm:$0xf]  ;;  %v10752_v43 = vld [vmem:[%s16876_s2 + $0x2c] sm:$0xf0] }
 0xbc4   : > { %11262 = vpow2.f32 %v10045_v4  ;;  %v10761_v4 = vld [vmem:[%s16876_s2 + $0x74] sm:$0xf0] }
 0xbc5   : > { %v7125_v38 = vpop.f32.mrf.mxu3  ;;  %v7111_v56 = vpop.f32.mrf.mxu2  ;;  %v10108_v16 = vor.u32 %v10761_v4, %v10107_v31  ;;  %7494 = vmatpush.bf16.msra.mxu1 %v10104_v53  ;;  %v10751_v53 = vld [vmem:[%s16876_s2 + $0x2c] sm:$0xf] }
 0xbc6   : > { %v7133_v5 = vadd.f32 %v7125_v38, %v1099_v49  ;;  %v7085_v10 = vpop.f32.mrf.mxu0  ;;  %v7099_v42 = vpop.f32.mrf.mxu1  ;;  %v7132_v24 = vadd.f32 %v7111_v56, %v1010_v59  ;;  %v10112_v49 = vor.u32 %v10759_v44, %v10109_v1  ;;  %v10067_v56 = vld [vmem:[%s16876_s2 + $0x20] sm:$0xf] }
 0xbc7   : > { %v7134_v54 = vadd.f32 %v7085_v10, %v834_v51  ;;  %v7135_v17 = vadd.f32 %v7099_v42, %v923_v50  ;;  %v10084_v51 = vor.u32 %v10756_v28, %v10083_v58  ;;  %7508 = vmatpush.bf16.msra.mxu2 %v10108_v16  ;;  %v10077_v16 = vld [vmem:[%s16876_s2 + $0x38] sm:$0xf0] }
 0xbc8   : > { %v10047_v63 = vmul.f32 -1.442695, %v7133_v5  ;;  %v17162_v5 = vld [vmem:[#allocation91_spill] sm:$0xff]  ;;  %7522 = vmatpush.bf16.msra.mxu3 %v10112_v49 }
 0xbc9   : > { %v11261_v22 = vpop.eup %11260  ;;  %v10044_v20 = vmul.f32 -1.442695, %v7134_v54  ;;  %v10046_v39 = vmul.f32 -1.442695, %v7135_v17  ;;  %v1012_v10 = vadd.f32 %v17162_v5, %v12230_v47  ;;  %7481 = vmatpush.bf16.msra.mxu0 %v10084_v51  ;;  %7495 = vmatpush.bf16.msra.mxu1 %v10088_v26  ;;  %v10746_v51 = vld [vmem:[%s16876_s2 + $0x4] sm:$0xf]  ;;  %v10072_v26 = vor.u32 %v10750_v7, %v10069_v8 }
 0xbca   : > { %v11263_v27 = vpop.eup %11262  ;;  %v16558_v30 = vadd.f32 1.0, %v11261_v22  ;;  %11264 = vpow2.f32 %v10047_v63  ;;  %v10059_v5 = vld [vmem:[%s16876_s2 + $0x8] sm:$0xf] }
 0xbcb   : > { %v16566_v19 = vadd.f32 1.0, %v11263_v27  ;;  %11266 = vpow2.f32 %v10044_v20  ;;  %v10091_v20 = vld [vmem:[%s16876_s2 + $0x48] sm:$0xf]  ;;  %v10755_v27 = vld [vmem:[%s16876_s2 + $0x4c] sm:$0xf] }
 0xbcc   : > { %11268 = vrcp.f32 %v16558_v30  ;;  %v7155_v38 = vand.u32 2147483647, %v16558_v30  ;;  %v7157_v12 = vand.u32 2147483648, %v16558_v30  ;;  %vm7151_vm4 = vweird.f32 %v16558_v30 }
 0xbcd   : > { %11270 = vrcp.f32 %v16566_v19  ;;  %v7127_v40 = vpop.f32.mrf.mxu3  ;;  %v7195_v36 = vand.u32 2147483648, %v16566_v19  ;;  %v7193_v37 = vand.u32 2147483647, %v16566_v19  ;;  %v7113_v6 = vpop.f32.mrf.mxu2  ;;  %vm7189_vm3 = vweird.f32 %v16566_v19  ;;  %7496 = vmatpush.bf16.msra.mxu1 %v10072_v26  ;;  %v17171_v26 = vld [vmem:[#allocation90_spill] sm:$0xff] }
 0xbce   : > { %11272 = vpow2.f32 %v10046_v39  ;;  %v7137_v33 = vadd.f32 %v7127_v40, %v1101_v60  ;;  %vm16632_vm1 = vcmp.eq.f32.partialorder %v7155_v38, 8.507059e+37  ;;  %v10757_v39 = vld [vmem:[%s16876_s2 + $0x54] sm:$0xf0]  ;;  %v7158_v62 = vor.u32 1.1754944e-38, %v7157_v12  ;;  %v10075_v60 = vld [vmem:[%s16876_s2 + $0x28] sm:$0xf] }
 0xbcf   : > { %11274 = vtanh.f32 %v7132_v24  ;;  %v7136_v61 = vadd.f32 %v7113_v6, %v1012_v10  ;;  %v7196_v15 = vor.u32 1.1754944e-38, %v7195_v36  ;;  %vm16681_vm7 = vcmp.eq.f32.partialorder %v7193_v37, 8.507059e+37  ;;  %v10753_v24 = vld [vmem:[%s16876_s2 + $0x34] sm:$0xf0]  ;;  %v10747_v36 = vld [vmem:[%s16876_s2 + $0xc] sm:$0xf] }
 0xbd0   : > { %v11265_v21 = vpop.eup %11264  ;;  %v10048_v23 = vmul.f32 -1.442695, %v7137_v33  ;;  %v10096_v1 = vor.u32 %v10755_v27, %v10093_v34  ;;  %v10748_v33 = vld [vmem:[%s16876_s2 + $0xc] sm:$0xf0]  ;;  %v10749_v10 = vld [vmem:[%s16876_s2 + $0x14] sm:$0xf0] }
 0xbd1   : > { %v11267_v32 = vpop.eup %11266  ;;  %v16613_v2 = vadd.f32 1.0, %v11265_v21  ;;  %v10068_v21 = vor.u32 %v10752_v43, %v10067_v56  ;;  %v10061_v37 = vld [vmem:[%s16876_s2 + $0x18] sm:$0xf0]  ;;  %v10060_v27 = vor.u32 %v10749_v10, %v10059_v5  ;;  %v17172_v5 = vld [vmem:[#allocation92_spill] sm:$0xff] }
 0xbd2   : > { %v16610_v50 = vpop.eup %11268  ;;  %v16615_v55 = vadd.f32 1.0, %v11267_v32  ;;  %v10051_v32 = vld [vmem:[%s16876_s2] sm:$0xf]  ;;  %7523 = vmatpush.bf16.msra.mxu3 %v10096_v1  ;;  %v926_v10 = vadd.f32 %v17172_v5, %v12120_v11 }
 0xbd3   : > { %v16617_v25 = vpop.eup %11270  ;;  %v7147_v42 = vmul.f32 %v16610_v50, %v16558_v30  ;;  %vm7152_vm0 = vweird.f32 %v16610_v50  ;;  %7482 = vmatpush.bf16.msra.mxu0 %v10068_v21 }
 0xbd4   : > { %v11273_v54 = vpop.eup %11272  ;;  %v7185_v17 = vmul.f32 %v16617_v25, %v16566_v19  ;;  %11276 = vrcp.f32 %v16615_v55  ;;  %vm7190_vm2 = vweird.f32 %v16617_v25  ;;  %vm16664_vm5 = vmor %vm7151_vm4, %vm7152_vm0  ;;  %v10092_v19 = vor.u32 %v10757_v39, %v10091_v20 }
 0xbd5   : > { %v7148_v14 = vsub.f32 1.0, %v7147_v42  ;;  %v16629_v63 = vadd.f32 1.0, %v11273_v54  ;;  %11278 = vrcp.f32 %v16613_v2  ;;  %v11275_v35 = vpop.eup %11274  ;;  %vm16676_vm6 = vmor %vm7189_vm3, %vm7190_vm2  ;;  %v7170_v52 = vand.u32 2147483647, %v16615_v55 }
 0xbd6   : > { %v7186_v13 = vsub.f32 1.0, %v7185_v17  ;;  %7509 = vmatpush.bf16.msra.mxu2 %v10092_v19  ;;  %vm7166_vm8 = vweird.f32 %v16615_v55  ;;  %v7172_v17 = vand.u32 2147483648, %v16615_v55 }
 0xbd7   : > { %v7149_v18 = vmul.f32 %v16610_v50, %v7148_v14  ;;  %11280 = vrcp.f32 %v16629_v63  ;;  %v7210_v4 = vand.u32 2147483648, %v16629_v63  ;;  %v7208_v43 = vand.u32 2147483647, %v16629_v63 }
 0xbd8   : > { %v7187_v0 = vmul.f32 %v16617_v25, %v7186_v13  ;;  %11282 = vpow2.f32 %v10048_v23  ;;  %v10076_v23 = vor.u32 %v10753_v24, %v10075_v60  ;;  %v10052_v13 = vor.u32 %v10748_v33, %v10051_v32 }
 0xbd9   : > { %v7150_v9 = vadd.f32 %v16610_v50, %v7149_v18  ;;  %11284 = vtanh.f32 %v7136_v61  ;;  %vm7204_vm11 = vweird.f32 %v16629_v63  ;;  %vm7171_vm13 = vcmp.eq.f32.partialorder %v7170_v52, 8.507059e+37 }
 0xbda   : > { %v7188_v40 = vadd.f32 %v16617_v25, %v7187_v0  ;;  %v16690_v57 = vpop.eup %11276  ;;  %7510 = vmatpush.bf16.msra.mxu2 %v10076_v23  ;;  %v10064_v0 = vor.u32 %v10747_v36, %v10061_v37  ;;  %7483 = vmatpush.bf16.msra.mxu0 %v10052_v13  ;;  %v7211_v7 = vor.u32 1.1754944e-38, %v7210_v4  ;;  %vm7209_vm15 = vcmp.eq.f32.partialorder %v7208_v43, 8.507059e+37  ;;  %v10784_v36 = vld [vmem:[%s16878_s4 + $0x30] sm:$0xff]  ;;  %v17174_v13 = vld [vmem:[#allocation94_spill] sm:$0xff] }
 0xbdb   : > { %v7154_v44 = vsel %vm16664_vm5, %v16610_v50, %v7150_v9  ;;  %v16704_v49 = vpop.eup %11278  ;;  %v7162_v45 = vmul.f32 %v16690_v57, %v16615_v55  ;;  %vm7167_vm9 = vweird.f32 %v16690_v57  ;;  %v7235_v52 = vand.u32 2147483648, %v16613_v2 }
 0xbdc   : > { %v7159_v58 = vsel %vm16632_vm1, %v7158_v62, %v7154_v44  ;;  %v7192_v28 = vsel %vm16676_vm6, %v16617_v25, %v7188_v40  ;;  %v10053_v25 = vld [vmem:[%s16876_s2 + $0x10] sm:$0xf0]  ;;  %v7225_v6 = vmul.f32 %v16704_v49, %v16613_v2  ;;  %vm7168_vm12 = vmor %vm7166_vm8, %vm7167_vm9  ;;  %vm7230_vm0 = vweird.f32 %v16704_v49 }
 0xbdd   : > { %v11281_v48 = vpop.eup %11280  ;;  %v7197_v50 = vsel %vm16681_vm7, %v7196_v15, %v7192_v28  ;;  %v7258_v38 = vmul.f32 %v11275_v35, %v7159_v58  ;;  %v7163_v12 = vsub.f32 1.0, %v7162_v45  ;;  %v10056_v62 = vor.u32 %v10746_v51, %v10053_v25 }
 0xbde   : > { %v7256_v42 = vmul.f32 %v7197_v50, %v16432_v29  ;;  %v7200_v54 = vmul.f32 %v11281_v48, %v16629_v63  ;;  %v11283_v14 = vpop.eup %11282  ;;  %v10080_v29 = vor.u32 %v10751_v53, %v10077_v16  ;;  %vm7205_vm10 = vweird.f32 %v11281_v48  ;;  %7511 = vmatpush.bf16.msra.mxu2 %v10060_v27 }
 0xbdf   : > { %v7164_v39 = vmul.f32 %v16690_v57, %v7163_v12  ;;  %v7223_v18 = vadd.f32 1.0, %v11283_v14  ;;  %v11285_v61 = vpop.eup %11284  ;;  %v7173_v15 = vor.u32 1.1754944e-38, %v7172_v17  ;;  %7497 = vmatpush.bf16.msra.mxu1 %v10056_v62  ;;  %v7226_v9 = vsub.f32 1.0, %v7225_v6  ;;  %vm7206_vm14 = vmor %vm7204_vm11, %vm7205_vm10  ;;  %v17173_v6 = vld [vmem:[#allocation93_spill] sm:$0xff] }
 0xbe0   : > { %v16745_v22 = vadd.f32 %v7258_v38, %v7256_v42  ;;  %v7201_v20 = vsub.f32 1.0, %v7200_v54  ;;  %7524 = vmatpush.bf16.msra.mxu3 %v10080_v29  ;;  %vm7229_vm1 = vweird.f32 %v16613_v2  ;;  %v7236_v28 = vor.u32 1.1754944e-38, %v7235_v52  ;;  %v10783_v29 = vld [vmem:[%s16878_s4 + $0x28] sm:$0xff] }
 0xbe1   : > { %v7165_v56 = vadd.f32 %v16690_v57, %v7164_v39  ;;  %11286 = vrcp.f32 %v7223_v18  ;;  %v7227_v31 = vmul.f32 %v16704_v49, %v7226_v9  ;;  %v7250_v1 = vand.u32 2147483648, %v7223_v18  ;;  %vm7231_vm3 = vmor %vm7229_vm1, %vm7230_vm0  ;;  %v17175_v39 = vld [vmem:[#allocation95_spill] sm:$0xff] }
 0xbe2   : > { %v7202_v34 = vmul.f32 %v11281_v48, %v7201_v20  ;;  %11288 = vtanh.f32 %v16745_v22  ;;  %v7248_v24 = vand.u32 2147483647, %v7223_v18  ;;  %vm7244_vm4 = vweird.f32 %v7223_v18 }
 0xbe3   : > { %v7169_v30 = vsel %vm7168_vm12, %v16690_v57, %v7165_v56  ;;  %v7228_v63 = vadd.f32 %v16704_v49, %v7227_v31  ;;  %v7251_v45 = vor.u32 1.1754944e-38, %v7250_v1  ;;  %v837_v25 = vadd.f32 %v17171_v26, %v12095_v3 }
 0xbe4   : > { %v7203_v19 = vadd.f32 %v11281_v48, %v7202_v34  ;;  %v7174_v8 = vsel %vm7171_vm13, %v7173_v15, %v7169_v30  ;;  %7525 = vmatpush.bf16.msra.mxu3 %v10064_v0  ;;  %vm7249_vm7 = vcmp.eq.f32.partialorder %v7248_v24, 8.507059e+37  ;;  %v1104_v23 = vadd.f32 %v17173_v6, %v12159_v41  ;;  %v10782_v15 = vld [vmem:[%s16878_s4 + $0x20] sm:$0xff] }
 0xbe5   : > { %v7259_v59 = vmul.f32 %v11285_v61, %v7174_v8  ;;  %v7232_v16 = vsel %vm7231_vm3, %v16704_v49, %v7228_v63  ;;  %v10785_v49 = vld [vmem:[%s16878_s4 + $0x38] sm:$0xff]  ;;  %v839_v20 = vadd.f32 %v17174_v13, %v12095_v3 }
 0xbe6   : > { %v7207_v35 = vsel %vm7206_vm14, %v11281_v48, %v7203_v19  ;;  %7743 = vmatpush.bf16.msrb.mxu0 %v10785_v49 }
 0xbe7   : > { %v7212_v40 = vsel %vm7209_vm15, %v7211_v7, %v7207_v35  ;;  %v11287_v57 = vpop.eup %11286  ;;  %v10781_v35 = vld [vmem:[%s16878_s4 + $0x18] sm:$0xff] }
 0xbe8   : > { %v7257_v60 = vmul.f32 %v7212_v40, %v16448_v46  ;;  %v7240_v55 = vmul.f32 %v11287_v57, %v7223_v18  ;;  %v7233_v46 = vand.u32 2147483647, %v16613_v2  ;;  %vm7245_vm2 = vweird.f32 %v11287_v57  ;;  %v11289_v58 = vpop.eup %11288 }
 0xbe9   : > { %vm7246_vm5 = vmor %vm7244_vm4, %vm7245_vm2  ;;  %v928_v18 = vadd.f32 %v17175_v39, %v12120_v11 }
 0xbea   : > { %v16761_v44 = vadd.f32 %v7259_v59, %v7257_v60  ;;  %v7241_v4 = vsub.f32 1.0, %v7240_v55  ;;  %vm7234_vm6 = vcmp.eq.f32.partialorder %v7233_v46, 8.507059e+37  ;;  %7744 = vmatpush.bf16.msrb.mxu0 %v10784_v36  ;;  %v17176_v59 = vld [vmem:[#allocation96_spill] sm:$0xff]  ;;  %v17177_v60 = vld [vmem:[#allocation97_spill] sm:$0xff] }
 0xbeb   : > { %v7237_v51 = vsel %vm7234_vm6, %v7236_v28, %v7232_v16  ;;  %v1015_v40 = vadd.f32 %v17176_v59, %v12230_v47  ;;  %v17178_v28 = vld [vmem:[#allocation98_spill] sm:$0xff] }
 0xbec   : > { %11290 = vtanh.f32 %v16761_v44  ;;  %v7242_v21 = vmul.f32 %v11287_v57, %v7241_v4  ;;  %v7264_v50 = vmul.f32 %v11289_v58, %v7237_v51  ;;  %v10780_v4 = vld [vmem:[%s16878_s4 + $0x10] sm:$0xff] }
 0xbee   : > { %v7243_v53 = vadd.f32 %v11287_v57, %v7242_v21  ;;  %7745 = vmatpush.bf16.msrb.mxu0 %v10783_v29 }
 0xbf0   : > { %v7247_v33 = vsel %vm7246_vm5, %v11287_v57, %v7243_v53  ;;  %v1106_v57 = vadd.f32 %v17177_v60, %v12159_v41  ;;  %v10779_v53 = vld [vmem:[%s16878_s4 + $0x8] sm:$0xff] }
 0xbf1   : > { %v7252_v48 = vsel %vm7249_vm7, %v7251_v45, %v7247_v33  ;;  %v1017_v45 = vadd.f32 %v17178_v28, %v12230_v47  ;;  %v10778_v47 = vld [vmem:[%s16878_s4] sm:$0xff] }
 0xbf2   : > { %v11291_v32 = vpop.eup %11290  ;;  %7746 = vmatpush.bf16.msrb.mxu0 %v10782_v15 }
 0xbf3   : > { %v7265_v2 = vmul.f32 %v11291_v32, %v7252_v48 }
 0xbf5   : > { %v7283_v38 = vpack.c.bf16 %v7265_v2, %v7264_v50 }
 0xbf6   : > { %7747 = vmatpush.bf16.msrb.mxu0 %v10781_v35 }
 0xbf7   : > { %7484 = vmatmul.bf16.vlgmr.msra.gmra.mxu0 %v7283_v38  ;;  %7498 = vmatmul.bf16.vlgmr.msra.gmra.mxu1 %v7283_v38 }
 0xbf8   : > { %7512 = vmatmul.bf16.vlgmr.msra.gmra.mxu2 %v7283_v38  ;;  %7526 = vmatmul.bf16.vlgmr.msra.gmra.mxu3 %v7283_v38 }
 0xbfa   : > { %7748 = vmatpush.bf16.msrb.mxu0 %v10780_v4 }
 0xbfe   : > { %7749 = vmatpush.bf16.msrb.mxu0 %v10779_v53 }
 0xc02   : > { %7750 = vmatpush.bf16.msrb.mxu0 %v10778_v47 }
 0xc74   : > { %v7485_v42 = vpop.f32.mrf.mxu0  ;;  %v7499_v12 = vpop.f32.mrf.mxu1 }
 0xc75   : > { %v7532_v54 = vadd.f32 %v7485_v42, %v837_v25  ;;  %v7533_v17 = vadd.f32 %v7499_v12, %v926_v10 }
 0xc77   : > { %v10177_v37 = vmul.f32 -1.442695, %v7532_v54  ;;  %v10179_v14 = vmul.f32 -1.442695, %v7533_v17 }
 0xc79   : > { %11292 = vpow2.f32 %v10177_v37 }
 0xc7a   : > { %11294 = vpow2.f32 %v10179_v14 }
 0xc7b   : > { %v7527_v62 = vpop.f32.mrf.mxu3  ;;  %v7513_v8 = vpop.f32.mrf.mxu2 }
 0xc7c   : > { %v7535_v27 = vadd.f32 %v7527_v62, %v1104_v23  ;;  %v7487_v0 = vpop.f32.mrf.mxu0  ;;  %v7501_v61 = vpop.f32.mrf.mxu1  ;;  %v7534_v63 = vadd.f32 %v7513_v8, %v1015_v40 }
 0xc7d   : > { %v7536_v34 = vadd.f32 %v7487_v0, %v839_v20  ;;  %v7537_v56 = vadd.f32 %v7501_v61, %v928_v18 }
 0xc7e   : > { %v10181_v43 = vmul.f32 -1.442695, %v7535_v27 }
 0xc7f   : > { %v11293_v9 = vpop.eup %11292  ;;  %v10178_v30 = vmul.f32 -1.442695, %v7536_v34  ;;  %v10180_v3 = vmul.f32 -1.442695, %v7537_v56 }
 0xc80   : > { %v11295_v19 = vpop.eup %11294  ;;  %v16793_v7 = vadd.f32 1.0, %v11293_v9  ;;  %11296 = vpow2.f32 %v10181_v43 }
 0xc81   : > { %v7584_v11 = vadd.f32 1.0, %v11295_v19  ;;  %11298 = vpow2.f32 %v10178_v30 }
 0xc82   : > { %11300 = vrcp.f32 %v16793_v7  ;;  %v7557_v38 = vand.u32 2147483647, %v16793_v7  ;;  %v7559_v49 = vand.u32 2147483648, %v16793_v7  ;;  %vm7553_vm10 = vweird.f32 %v16793_v7 }
 0xc83   : > { %11302 = vrcp.f32 %v7584_v11  ;;  %v7529_v31 = vpop.f32.mrf.mxu3  ;;  %v7597_v2 = vand.u32 2147483648, %v7584_v11  ;;  %v7515_v26 = vpop.f32.mrf.mxu2  ;;  %v7595_v5 = vand.u32 2147483647, %v7584_v11  ;;  %vm7591_vm11 = vweird.f32 %v7584_v11 }
 0xc84   : > { %11304 = vpow2.f32 %v10180_v3  ;;  %v7539_v46 = vadd.f32 %v7529_v31, %v1106_v57  ;;  %v7538_v54 = vadd.f32 %v7515_v26, %v1017_v45  ;;  %v7560_v36 = vor.u32 1.1754944e-38, %v7559_v49 }
 0xc85   : > { %v7598_v23 = vor.u32 1.1754944e-38, %v7597_v2  ;;  %vm7558_vm14 = vcmp.eq.f32.partialorder %v7557_v38, 8.507059e+37  ;;  %vm7596_vm15 = vcmp.eq.f32.partialorder %v7595_v5, 8.507059e+37 }
 0xc86   : > { %v11297_v55 = vpop.eup %11296  ;;  %v10182_v48 = vmul.f32 -1.442695, %v7539_v46 }
 0xc87   : > { %v11299_v52 = vpop.eup %11298  ;;  %v16806_v1 = vadd.f32 1.0, %v11297_v55 }
 0xc88   : > { %v11301_v21 = vpop.eup %11300  ;;  %v16808_v24 = vadd.f32 1.0, %v11299_v52 }
 0xc89   : > { %v11303_v16 = vpop.eup %11302  ;;  %v7549_v41 = vmul.f32 %v11301_v21, %v16793_v7  ;;  %11306 = vrcp.f32 %v16806_v1  ;;  %vm7554_vm8 = vweird.f32 %v11301_v21  ;;  %v7637_v61 = vand.u32 2147483648, %v16806_v1 }
 0xc8a   : > { %v11305_v58 = vpop.eup %11304  ;;  %v7587_v32 = vmul.f32 %v11303_v16, %v7584_v11  ;;  %11308 = vtanh.f32 %v7534_v63  ;;  %vm7592_vm9 = vweird.f32 %v11303_v16  ;;  %vm7555_vm12 = vmor %vm7553_vm10, %vm7554_vm8  ;;  %vm7568_vm0 = vweird.f32 %v16808_v24 }
 0xc8b   : > { %v7550_v33 = vsub.f32 1.0, %v7549_v41  ;;  %11310 = vrcp.f32 %v16808_v24  ;;  %v16818_v51 = vadd.f32 1.0, %v11305_v58  ;;  %vm7593_vm13 = vmor %vm7591_vm11, %vm7592_vm9  ;;  %v7572_v19 = vand.u32 2147483647, %v16808_v24 }
 0xc8c   : > { %v7588_v50 = vsub.f32 1.0, %v7587_v32  ;;  %v7574_v7 = vand.u32 2147483648, %v16808_v24  ;;  %vm7631_vm4 = vweird.f32 %v16806_v1  ;;  %v7635_v57 = vand.u32 2147483647, %v16806_v1 }
 0xc8d   : > { %v7551_v25 = vmul.f32 %v11301_v21, %v7550_v33  ;;  %11312 = vrcp.f32 %v16818_v51  ;;  %v7612_v30 = vand.u32 2147483648, %v16818_v51  ;;  %v7610_v35 = vand.u32 2147483647, %v16818_v51 }
 0xc8e   : > { %v7589_v10 = vmul.f32 %v11303_v16, %v7588_v50  ;;  %11314 = vpow2.f32 %v10182_v48  ;;  %v7575_v55 = vor.u32 1.1754944e-38, %v7574_v7  ;;  %vm7606_vm7 = vweird.f32 %v16818_v51 }
 0xc8f   : > { %v16826_v42 = vpop.eup %11306  ;;  %v7552_v12 = vadd.f32 %v11301_v21, %v7551_v25  ;;  %11316 = vtanh.f32 %v7538_v54  ;;  %vm7573_vm8 = vcmp.eq.f32.partialorder %v7572_v19, 8.507059e+37  ;;  %v7613_v46 = vor.u32 1.1754944e-38, %v7612_v30 }
 0xc90   : > { %v11309_v17 = vpop.eup %11308  ;;  %v7590_v37 = vadd.f32 %v11303_v16, %v7589_v10  ;;  %v7627_v14 = vmul.f32 %v16826_v42, %v16806_v1  ;;  %vm7632_vm2 = vweird.f32 %v16826_v42  ;;  %vm7611_vm10 = vcmp.eq.f32.partialorder %v7610_v35, 8.507059e+37 }
 0xc91   : > { %v11311_v6 = vpop.eup %11310  ;;  %v7556_v29 = vsel %vm7555_vm12, %v11301_v21, %v7552_v12  ;;  %vm16847_vm6 = vmor %vm7631_vm4, %vm7632_vm2  ;;  %vm7636_vm11 = vcmp.eq.f32.partialorder %v7635_v57, 8.507059e+37  ;;  %v10811_v12 = vld [vmem:[%s16879_s5] ss:$0 sm:$0xff] }
 0xc92   : > { %v7561_v13 = vsel %vm7558_vm14, %v7560_v36, %v7556_v29  ;;  %v7594_v20 = vsel %vm7593_vm13, %v11303_v16, %v7590_v37  ;;  %v7628_v39 = vsub.f32 1.0, %v7627_v14  ;;  %v7564_v18 = vmul.f32 %v11311_v6, %v16808_v24 }
 0xc93   : > { %v11313_v62 = vpop.eup %11312  ;;  %v7599_v27 = vsel %vm7596_vm15, %v7598_v23, %v7594_v20  ;;  %v7660_v0 = vmul.f32 %v11309_v17, %v7561_v13  ;;  %vm7569_vm1 = vweird.f32 %v11311_v6  ;;  %v7638_v24 = vor.u32 1.1754944e-38, %v7637_v61 }
 0xc94   : > { %v7658_v34 = vmul.f32 %v7599_v27, %v16745_v22  ;;  %v7629_v56 = vmul.f32 %v16826_v42, %v7628_v39  ;;  %v7565_v43 = vsub.f32 1.0, %v7564_v18  ;;  %v7602_v15 = vmul.f32 %v11313_v62, %v16818_v51  ;;  %v11315_v9 = vpop.eup %11314  ;;  %vm7570_vm5 = vmor %vm7568_vm0, %vm7569_vm1 }
 0xc95   : > { %v7625_v59 = vadd.f32 1.0, %v11315_v9  ;;  %vm7607_vm3 = vweird.f32 %v11313_v62  ;;  %v11317_v60 = vpop.eup %11316 }
 0xc96   : > { %v7662_v3 = vadd.f32 %v7660_v0, %v7658_v34  ;;  %v7603_v11 = vsub.f32 1.0, %v7602_v15  ;;  %v7566_v8 = vmul.f32 %v11311_v6, %v7565_v43  ;;  %v7630_v22 = vadd.f32 %v16826_v42, %v7629_v56  ;;  %vm7608_vm9 = vmor %vm7606_vm7, %vm7607_vm3 }
 0xc97   : > { %v7652_v2 = vand.u32 2147483648, %v7625_v59  ;;  %v7650_v49 = vand.u32 2147483647, %v7625_v59  ;;  %vm7646_vm13 = vweird.f32 %v7625_v59 }
 0xc98   : > { %11318 = vtanh.f32 %v7662_v3  ;;  %v7604_v40 = vmul.f32 %v11313_v62, %v7603_v11  ;;  %v7567_v31 = vadd.f32 %v11311_v6, %v7566_v8  ;;  %v7634_v1 = vsel %vm16847_vm6, %v16826_v42, %v7630_v22 }
 0xc99   : > { %11320 = vrcp.f32 %v7625_v59  ;;  %v7639_v45 = vsel %vm7636_vm11, %v7638_v24, %v7634_v1  ;;  %v7653_v47 = vor.u32 1.1754944e-38, %v7652_v2  ;;  %vm7651_vm15 = vcmp.eq.f32.partialorder %v7650_v49, 8.507059e+37 }
 0xc9a   : > { %v7571_v4 = vsel %vm7570_vm5, %v11311_v6, %v7567_v31  ;;  %v7605_v52 = vadd.f32 %v11313_v62, %v7604_v40 }
 0xc9b   : > { %v7576_v21 = vsel %vm7573_vm8, %v7575_v55, %v7571_v4 }
 0xc9c   : > { %v7609_v53 = vsel %vm7608_vm9, %v11313_v62, %v7605_v52  ;;  %v7661_v16 = vmul.f32 %v11317_v60, %v7576_v21 }
 0xc9d   : > { %v7614_v41 = vsel %vm7611_vm10, %v7613_v46, %v7609_v53 }
 0xc9e   : > { %v11319_v58 = vpop.eup %11318  ;;  %v7659_v28 = vmul.f32 %v7614_v41, %v16761_v44 }
 0xc9f   : > { %v11321_v32 = vpop.eup %11320  ;;  %v7666_v33 = vmul.f32 %v11319_v58, %v7639_v45 }
 0xca0   : > { %v7663_v51 = vadd.f32 %v7661_v16, %v7659_v28  ;;  %v7642_v48 = vmul.f32 %v11321_v32, %v7625_v59  ;;  %vm7647_vm12 = vweird.f32 %v11321_v32 }
 0xca1   : > { %vm7648_vm14 = vmor %vm7646_vm13, %vm7647_vm12 }
 0xca2   : > { %11322 = vtanh.f32 %v7663_v51  ;;  %v7643_v50 = vsub.f32 1.0, %v7642_v48 }
 0xca4   : > { %v7644_v38 = vmul.f32 %v11321_v32, %v7643_v50 }
 0xca6   : > { %v7645_v26 = vadd.f32 %v11321_v32, %v7644_v38 }
 0xca8   : > { %v11323_v25 = vpop.eup %11322  ;;  %v7649_v5 = vsel %vm7648_vm14, %v11321_v32, %v7645_v26 }
 0xca9   : > { %v7654_v44 = vsel %vm7651_vm15, %v7653_v47, %v7649_v5 }
 0xcaa   : > { %v7667_v10 = vmul.f32 %v11323_v25, %v7654_v44 }
 0xcac   : > { %v7674_v42 = vpack.c.bf16 %v7667_v10, %v7666_v33 }
 0xcae   : > { %7751 = vmatmul.bf16.vlgmr.msrb.gmra.mxu0 %v7674_v42 }
 0xd2b   : > { %v7752_v54 = vpop.f32.mrf.mxu0 }
 0xd2c   : > { %v7753_v17 = vadd.f32 %v10811_v12, %v7752_v54 }
 0xd2e   : > { %7757 = vst [vmem:[%s420_s21] sm:$0xff] %v7753_v17 }
 0xd33   : > { %v7754_v36 = vpop.f32.mrf.mxu0 }
 0xd34   : > { %v7755_v37 = vadd.f32 %v10811_v12, %v7754_v36 }
 0xd36   : > { %7758 = vst [vmem:[%s420_s21 + $0x8] sm:$0xff] %v7755_v37 }
 0xd37 PF: > { %p13_p9 = scmp.ge.s32.totalorder %s11401_s25, 4   ;;  %s17181_s21 = smov %s11342_s22 }
 0xd38   : > { %s17182_s22 = smov %s11410_s28  ;;  %s17183_s23 = smov %s11401_s25 }
 0xd39   :  { %15 = sbr.rel (!%p13_p9) target bundleno = 2 (0x2), region = 136 }

</bundles_post_ra>
